<compile_context>
chip_gen: v5e
topology: v5e:2x2
jax: 0.10.0
libtpu: 0.0.40
codegen_flags: <defaults>
</compile_context>

<pallas_src>
import functools
import math

import jax
import jax.numpy as jnp
from jax.experimental import pallas as pl
from jax.experimental.pallas import tpu as pltpu

_BN_EPS = 1e-5
_VMEM_LIMIT = 32 * 1024 * 1024  # leave headroom on v7x (64 MiB / TensorCore)


def _round_up(x, m):
    return ((x + m - 1) // m) * m


# ----------------------------------------------------------------------------
# Shared epilogue: bias already added by caller; activation (+ residual later)
# ----------------------------------------------------------------------------
def _activation(y, act):
    if act == "mish":
        # mish(y) = y * tanh(softplus(y)); with t = exp(y),
        # tanh(log1p(t)) == t*(t+2) / (t*(t+2) + 2).
        # One EUP exp + one approx reciprocal instead of exp+log1p+tanh.
        # PyTorch softplus threshold=20 passthrough kept via where().
        t = jnp.exp(jnp.minimum(y, 20.0))
        u = t * (t + 2.0)
        tanh_sp = u * pl.reciprocal(u + 2.0, approx=True)
        y = jnp.where(y > 20.0, y, y * tanh_sp)
    elif act == "relu":
        y = jnp.maximum(y, 0.0)
    return y


# ----------------------------------------------------------------------------
# Pallas kernel 1: fused matmul + bias + activation (+ residual)
# (1x1 convs and the im2col fallback for the stride-2 downsamples)
# ----------------------------------------------------------------------------
def _make_matmul_kernel(act, has_residual):
    def kernel(*refs):
        if has_residual:
            x_ref, w_ref, b_ref, r_ref, o_ref = refs
        else:
            x_ref, w_ref, b_ref, o_ref = refs
        # (tm, Kd) @ (Kd, Cout) in bf16 on the MXU, f32 accumulate.
        y = jnp.dot(x_ref[...], w_ref[...], preferred_element_type=jnp.float32)
        y = _activation(y + b_ref[...], act)   # BN scale pre-folded into w
        if has_residual:
            y = y + r_ref[...].astype(jnp.float32)
        o_ref[...] = y.astype(o_ref.dtype)

    return kernel


def _tile_m(M):
    """Sublane-aligned M tile.  Big tiles amortize per-step overhead; keep
    >= 2 grid steps when possible so both v7x TensorCores get work."""
    Ms = _round_up(M, 8)
    tm = min(1024, Ms)
    if pl.cdiv(M, tm) < 2 and Ms > 8:
        tm = _round_up(pl.cdiv(Ms, 2), 8)
    return tm


def fused_matmul(x, w, bias, act="none", residual=None, out_dtype=jnp.bfloat16):
    """x: (M, Kd) bf16, w: (Kd, Cout) bf16 (BN scale pre-folded),
    bias: (1, Cout) f32 -> (M, Cout)."""
    M, Kd = x.shape
    Kd2, Cout = w.shape
    assert Kd == Kd2
    tm = _tile_m(M)
    # Ragged tail: let the final partial block run; its out-of-bounds rows are
    # computed on garbage but the edge store is masked by the pipeline.
    grid = (pl.cdiv(M, tm),)

    # NOTE: every (fused) layer of this net has Cout <= 256, so a single
    # full-Cout block already matches the MXU width; no Cout grid axis needed.
    # (pl.Buffered(3) on the x stream was considered but left at the default
    # double-buffering; only x/residual stream, w/bias have constant blocks.)
    in_specs = [
        pl.BlockSpec((tm, Kd), lambda i: (i, 0)),
        pl.BlockSpec((Kd, Cout), lambda i: (0, 0)),
        pl.BlockSpec((1, Cout), lambda i: (0, 0)),
    ]
    args = [x.astype(jnp.bfloat16), w, bias]
    if residual is not None:
        in_specs.append(pl.BlockSpec((tm, Cout), lambda i: (i, 0)))
        args.append(residual.astype(jnp.bfloat16))

    return pl.pallas_call(
        _make_matmul_kernel(act, residual is not None),
        out_shape=jax.ShapeDtypeStruct((M, Cout), out_dtype),
        grid=grid,
        in_specs=in_specs,
        out_specs=pl.BlockSpec((tm, Cout), lambda i: (i, 0)),
        compiler_params=pltpu.CompilerParams(
            dimension_semantics=("parallel",),
            vmem_limit_bytes=_VMEM_LIMIT),
    )(*args)


# ----------------------------------------------------------------------------
# Pallas kernel 2: 3x3 stride-1 conv with in-kernel kh-tap accumulation.
# The input block holds (th + 2) halo'd image rows, already kw-folded to
# 3*Cin channels; each kh tap is a contiguous static row slice of that block.
# ----------------------------------------------------------------------------
def _make_conv3_kernel(act, has_residual, row_shift, tm_out, kc):
    def kernel(*refs):
        if has_residual:
            x_ref, w_ref, b_ref, r_ref, o_ref = refs
        else:
            x_ref, w_ref, b_ref, o_ref = refs
        acc = jnp.dot(x_ref[0:tm_out, :], w_ref[0],
                      preferred_element_type=jnp.float32)
        acc = acc + jnp.dot(x_ref[row_shift:row_shift + tm_out, :], w_ref[1],
                            preferred_element_type=jnp.float32)
        acc = acc + jnp.dot(x_ref[2 * row_shift:2 * row_shift + tm_out, :],
                            w_ref[2], preferred_element_type=jnp.float32)
        y = _activation(acc + b_ref[...], act)
        if has_residual:
            y = y + r_ref[...].astype(jnp.float32)
        o_ref[...] = y.astype(o_ref.dtype)

    return kernel


def _pick_th(N, Hout, Wout, row_cap=1024):
    """Output-row tile height: th | Hout, th*Wout and (th+2)*Wout sublane
    aligned, tile <= row_cap rows, and >= 2 grid steps when possible."""
    cands = [t for t in range(1, Hout + 1)
             if Hout % t == 0
             and (t * Wout) % 8 == 0
             and ((t + 2) * Wout) % 8 == 0
             and t * Wout <= row_cap]
    if not cands:
        return None
    multi = [t for t in cands if N * (Hout // t) >= 2]
    pool = multi if multi else cands
    return max(pool)


def conv3x3_fused(x_nhwc, conv, act="mish", residual_nhwc=None,
                  out_dtype=jnp.bfloat16):
    wm, bias = conv["wm"], conv["bias"]
    N, H, W, Cin = x_nhwc.shape
    Kd, Cout = wm.shape
    assert Kd == 9 * Cin
    th = _pick_th(N, H, W)
    if th is None:
        # irregular spatial sizes fall back to the im2col path
        return conv2d_gemm(x_nhwc, conv, stride=1, k=3, act=act,
                           residual_nhwc=residual_nhwc, out_dtype=out_dtype)

    xb = x_nhwc.astype(jnp.bfloat16)
    # fold the 3 kw taps into channels (W padded by 1 on each side) -> ~3x,
    # instead of the 9x full im2col patch tensor.
    xpw = jnp.pad(xb, ((0, 0), (0, 0), (1, 1), (0, 0)))
    xw = jnp.concatenate([xpw[:, :, kw:kw + W, :] for kw in range(3)], axis=-1)
    # pad H by 1 and gather halo'd row tiles of th+2 input rows per tile so a
    # plain Blocked BlockSpec covers each tile (no overlapping-block problem).
    xwp = jnp.pad(xw, ((0, 0), (1, 1), (0, 0), (0, 0)))   # (N, H+2, W, 3Cin)
    nt = H // th
    rows = (jnp.arange(nt)[:, None] * th
            + jnp.arange(th + 2)[None, :]).reshape(-1)
    xt = xwp[:, rows, :, :].reshape(N * nt * (th + 2) * W, 3 * Cin)

    tm_out = th * W
    blk_in = (th + 2) * W
    grid = (N * nt,)
    wm3 = wm.reshape(3, 3 * Cin, Cout)   # per-kh weight slabs

    in_specs = [
        pl.BlockSpec((blk_in, 3 * Cin), lambda g: (g, 0)),
        pl.BlockSpec((3, 3 * Cin, Cout), lambda g: (0, 0, 0)),
        pl.BlockSpec((1, Cout), lambda g: (0, 0)),
    ]
    args = [xt, wm3, bias]
    if residual_nhwc is not None:
        in_specs.append(pl.BlockSpec((tm_out, Cout), lambda g: (g, 0)))
        args.append(residual_nhwc.reshape(N * H * W, Cout).astype(jnp.bfloat16))

    out = pl.pallas_call(
        _make_conv3_kernel(act, residual_nhwc is not None, W, tm_out, 3 * Cin),
        out_shape=jax.ShapeDtypeStruct((N * H * W, Cout), out_dtype),
        grid=grid,
        in_specs=in_specs,
        out_specs=pl.BlockSpec((tm_out, Cout), lambda g: (g, 0)),
        compiler_params=pltpu.CompilerParams(
            dimension_semantics=("parallel",),
            vmem_limit_bytes=_VMEM_LIMIT),
    )(*args)
    return out.reshape(N, H, W, Cout)


# ----------------------------------------------------------------------------
# GEMM conv path (1x1 convs; im2col fallback for stride-2 3x3 downsamples)
# ----------------------------------------------------------------------------
def conv2d_gemm(x_nhwc, conv, stride, k, act="mish", residual_nhwc=None,
                out_dtype=jnp.bfloat16):
    wm, bias = conv["wm"], conv["bias"]
    N, H, W, Cin = x_nhwc.shape
    Kd, Cout = wm.shape
    pad = k // 2
    Hout = (H + 2 * pad - k) // stride + 1
    Wout = (W + 2 * pad - k) // stride + 1

    xb = x_nhwc.astype(jnp.bfloat16)
    if k == 1 and stride == 1:
        patches = xb.reshape(N * H * W, Cin)
    else:
        # TODO(synk): stride-2 3x3 im2col still materialized with XLA ops.
        xp = jnp.pad(xb, ((0, 0), (pad, pad), (pad, pad), (0, 0)))
        cols = []
        for kh in range(k):
            for kw in range(k):
                cols.append(xp[:, kh:kh + (Hout - 1) * stride + 1:stride,
                                  kw:kw + (Wout - 1) * stride + 1:stride, :])
        patches = jnp.concatenate(cols, axis=-1).reshape(
            N * Hout * Wout, k * k * Cin)

    res = None
    if residual_nhwc is not None:
        res = residual_nhwc.reshape(N * Hout * Wout, Cout)

    out = fused_matmul(patches, wm, bias, act=act, residual=res,
                       out_dtype=out_dtype)
    return out.reshape(N, Hout, Wout, Cout)


def conv2d_fused(x_nhwc, conv, stride=1, act="mish", residual_nhwc=None,
                 out_dtype=jnp.bfloat16):
    Cin = x_nhwc.shape[-1]
    Kd = conv["wm"].shape[0]
    k = int(round(math.sqrt(Kd / Cin)))
    assert k * k * Cin == Kd
    if k == 3 and stride == 1:
        return conv3x3_fused(x_nhwc, conv, act=act,
                             residual_nhwc=residual_nhwc, out_dtype=out_dtype)
    return conv2d_gemm(x_nhwc, conv, stride=stride, k=k, act=act,
                       residual_nhwc=residual_nhwc, out_dtype=out_dtype)


# ----------------------------------------------------------------------------
# Parameter init: weights laid out as (K*K*Cin, Cout) bf16 with the BN scale
# folded into the columns; bias kept as (1, Cout) f32.
# ----------------------------------------------------------------------------
def _layout_conv(w_oihw, scale, bias):
    cout, cin, k, _ = w_oihw.shape
    wm = jnp.transpose(w_oihw, (2, 3, 1, 0)).reshape(k * k * cin, cout)
    wm = wm * jnp.reshape(scale, (1, cout))          # fold BN scale
    return dict(wm=wm.astype(jnp.bfloat16),
                bias=jnp.reshape(bias, (1, cout)).astype(jnp.float32))


def _init_basic_conv(key, cin, cout, k):
    n = k * k * cout
    w = math.sqrt(2.0 / n) * jax.random.normal(key, (cout, cin, k, k),
                                               jnp.float32)
    # BN (eval): gamma=1, beta=0, running_mean=0, running_var=1 folded.
    scale = jnp.full((cout,), 1.0 / math.sqrt(1.0 + _BN_EPS), jnp.float32)
    bias = jnp.zeros((cout,), jnp.float32)
    return _layout_conv(w, scale, bias)


def _fuse_parallel(convs):
    """Fuse convs sharing the same input (same k, Cin) into one wider matmul."""
    return dict(wm=jnp.concatenate([c["wm"] for c in convs], axis=-1),
                bias=jnp.concatenate([c["bias"] for c in convs], axis=-1))


def init_params(layers, heads, head_conv, seed=0):
    keys = iter(jax.random.split(jax.random.PRNGKey(seed), 64))
    nk = lambda: next(keys)

    params = {"conv1": _init_basic_conv(nk(), 3, 32, 3)}

    def init_resblock(channels, hidden):
        return dict(c1=_init_basic_conv(nk(), channels, hidden, 1),
                    c2=_init_basic_conv(nk(), hidden, channels, 3))

    # stage 0: Resblock_body(32, 64, layers[0], first=True)
    s0 = dict(
        down=_init_basic_conv(nk(), 32, 64, 3),
        split=_fuse_parallel([_init_basic_conv(nk(), 64, 64, 1),    # split0
                              _init_basic_conv(nk(), 64, 64, 1)]),  # split1
        blocks=[init_resblock(64, 32)],          # single Resblock when first
        blocks_out=_init_basic_conv(nk(), 64, 64, 1),
        concat=_init_basic_conv(nk(), 128, 64, 1),
    )
    # stage 1: Resblock_body(64, 128, layers[1], first=False)
    s1 = dict(
        down=_init_basic_conv(nk(), 64, 128, 3),
        split=_fuse_parallel([_init_basic_conv(nk(), 128, 64, 1),
                              _init_basic_conv(nk(), 128, 64, 1)]),
        blocks=[init_resblock(64, 64) for _ in range(layers[1])],
        blocks_out=_init_basic_conv(nk(), 64, 64, 1),
        concat=_init_basic_conv(nk(), 128, 128, 1),
    )
    params["stages"] = [s0, s1]

    # ---- CenterNet heads: fuse the three 3x3 convs (Cout=64 each) into one
    # Cout=192 conv + ReLU, and the three 1x1 convs (Cout=2 each) into one
    # block-diagonal matmul padded to 128 output lanes (lane-dense stores). ---
    total_ch = sum(heads.values())
    rows = len(heads) * head_conv
    w2_cols = max(128, _round_up(total_ch, 128))
    wm2 = jnp.zeros((rows, w2_cols), jnp.float32)
    b2 = jnp.zeros((w2_cols,), jnp.float32)
    w1_parts = []
    roff = coff = 0
    for head, ch in heads.items():
        if "hm" in head:
            w1 = math.sqrt(2.0 / (9 * head_conv)) * jax.random.normal(
                nk(), (head_conv, 128, 3, 3), jnp.float32)
            b1 = jnp.zeros((head_conv,), jnp.float32)
            w2 = 0.01 * jax.random.normal(nk(), (ch, head_conv, 1, 1),
                                          jnp.float32)
            b2h = jnp.full((ch,), -2.19, jnp.float32)
        else:
            # fill_fc_weights: normal(std=0.001), bias=0
            w1 = 0.001 * jax.random.normal(nk(), (head_conv, 128, 3, 3),
                                           jnp.float32)
            b1 = jnp.zeros((head_conv,), jnp.float32)
            w2 = 0.001 * jax.random.normal(nk(), (ch, head_conv, 1, 1),
                                           jnp.float32)
            b2h = jnp.zeros((ch,), jnp.float32)
        w1_parts.append(_layout_conv(w1, jnp.ones((head_conv,), jnp.float32),
                                     b1))
        m2 = jnp.transpose(w2, (2, 3, 1, 0)).reshape(head_conv, ch)
        wm2 = wm2.at[roff:roff + head_conv, coff:coff + ch].set(m2)
        b2 = b2.at[coff:coff + ch].set(b2h)
        roff += head_conv
        coff += ch
    params["head_w1"] = _fuse_parallel(w1_parts)
    params["head_w2"] = dict(wm=wm2.astype(jnp.bfloat16),
                             bias=b2.reshape(1, w2_cols).astype(jnp.float32))
    return params


# ----------------------------------------------------------------------------
# Forward pass (matches CSPDarkNet.forward semantics)
# ----------------------------------------------------------------------------
def _basic_conv(p, x, stride=1, residual=None):
    return conv2d_fused(x, p, stride=stride, act="mish",
                        residual_nhwc=residual)


def _resblock(p, x):
    h = _basic_conv(p["c1"], x)
    # residual add fused into the 3x3 conv's Pallas kernel
    return _basic_conv(p["c2"], h, residual=x)


def _resblock_body(p, x):
    x = _basic_conv(p["down"], x, stride=2)
    s = _basic_conv(p["split"], x)           # fused split_conv0 + split_conv1
    c0 = s.shape[-1] // 2
    x0, x1 = s[..., :c0], s[..., c0:]
    for rb in p["blocks"]:
        x1 = _resblock(rb, x1)
    x1 = _basic_conv(p["blocks_out"], x1)
    x = jnp.concatenate([x1, x0], axis=-1)   # torch.cat([x1, x0], dim=1) in NHWC
    return _basic_conv(p["concat"], x)


def cspdarknet_forward(params, x_nchw, heads):
    x = jnp.transpose(x_nchw, (0, 2, 3, 1)).astype(jnp.bfloat16)  # NCHW -> NHWC
    x = _basic_conv(params["conv1"], x)
    x = _resblock_body(params["stages"][0], x)
    x = _resblock_body(params["stages"][1], x)

    # fused heads: one 3x3+bias+ReLU conv (Cout=3*head_conv), then one
    # block-diagonal 1x1 matmul (padded to 128 lanes), slice per head after.
    h = conv2d_fused(x, params["head_w1"], act="relu")
    o = conv2d_fused(h, params["head_w2"], act="none", out_dtype=jnp.float32)

    ret = {}
    off = 0
    for head, ch in heads.items():
        ret[head] = jnp.transpose(o[..., off:off + ch], (0, 3, 1, 2))  # NCHW
        off += ch
    return [ret]


# ----------------------------------------------------------------------------
if __name__ == "__main__":
    layers = [1, 2]
    heads = {"hm": 2, "wh": 2, "reg": 2}
    head_conv = 64

    params = init_params(layers, heads, head_conv, seed=0)

    x = jax.random.normal(jax.random.PRNGKey(0), (2, 3, 16, 16), jnp.float32)

    fwd = jax.jit(functools.partial(cspdarknet_forward, heads=heads))
    out = fwd(params, x)
    out = jax.tree_util.tree_map(jax.block_until_ready, out)

    # two stride-2 downsamples: 16 -> 8 -> 4 spatial
    for head, ch in heads.items():
        assert out[0][head].shape == (2, ch, 4, 4), out[0][head].shape
        assert bool(jnp.all(jnp.isfinite(out[0][head])))

    print("KERNEL_OK")
</pallas_src>

<mosaic_0001>
module attributes {stable_mosaic.version = 11 : i64} {
  func.func @kernel(%arg0: i32, %arg1: memref<288x9xbf16, #tpu.memory_space<vmem>>, %arg2: memref<3x9x32xbf16, #tpu.memory_space<vmem>>, %arg3: memref<1x32xf32, #tpu.memory_space<vmem>>, %arg4: memref<256x32xbf16, #tpu.memory_space<vmem>>) attributes {dimension_semantics = [#tpu.dimension_semantics<parallel>], iteration_bounds = array<i64: 2>, scalar_prefetch = 0 : i64, scratch_operands = 0 : i64, tpu.core_type = #tpu.core_type<tc>, window_params = [{transform_indices = @transform_0, window_bounds = array<i64: 288, 9>}, {pipeline_mode = #tpu.pipeline_mode<synchronous>, transform_indices = @transform_1, window_bounds = array<i64: 3, 9, 32>}, {pipeline_mode = #tpu.pipeline_mode<synchronous>, transform_indices = @transform_2, window_bounds = array<i64: 1, 32>}, {transform_indices = @transform_3, window_bounds = array<i64: 256, 32>}]} {
    %c0 = arith.constant 0 : index
    %c0_0 = arith.constant 0 : index
    %0 = vector.load %arg1[%c0, %c0_0] : memref<288x9xbf16, #tpu.memory_space<vmem>>, vector<256x9xbf16>
    %c0_1 = arith.constant 0 : index
    %c0_2 = arith.constant 0 : index
    %c0_3 = arith.constant 0 : index
    %1 = vector.load %arg2[%c0_1, %c0_2, %c0_3] : memref<3x9x32xbf16, #tpu.memory_space<vmem>>, vector<1x9x32xbf16>
    %2 = vector.shape_cast %1 : vector<1x9x32xbf16> to vector<9x32xbf16>
    %cst = arith.constant dense<0.000000e+00> : vector<256x32xf32>
    %3 = tpu.matmul %0, %2, %cst {dimension_numbers = #tpu.dot_dimension_numbers<[1], [0], [0], [1], [0, 0, 1, 1], [], []>} : vector<256x9xbf16>, vector<9x32xbf16>, vector<256x32xf32> -> vector<256x32xf32>
    %c16 = arith.constant 16 : index
    %c0_4 = arith.constant 0 : index
    %4 = vector.load %arg1[%c16, %c0_4] : memref<288x9xbf16, #tpu.memory_space<vmem>>, vector<256x9xbf16>
    %c1 = arith.constant 1 : index
    %c0_5 = arith.constant 0 : index
    %c0_6 = arith.constant 0 : index
    %5 = vector.load %arg2[%c1, %c0_5, %c0_6] : memref<3x9x32xbf16, #tpu.memory_space<vmem>>, vector<1x9x32xbf16>
    %6 = vector.shape_cast %5 : vector<1x9x32xbf16> to vector<9x32xbf16>
    %cst_7 = arith.constant dense<0.000000e+00> : vector<256x32xf32>
    %7 = tpu.matmul %4, %6, %cst_7 {dimension_numbers = #tpu.dot_dimension_numbers<[1], [0], [0], [1], [0, 0, 1, 1], [], []>} : vector<256x9xbf16>, vector<9x32xbf16>, vector<256x32xf32> -> vector<256x32xf32>
    %8 = arith.addf %3, %7 : vector<256x32xf32>
    %c32 = arith.constant 32 : index
    %c0_8 = arith.constant 0 : index
    %9 = vector.load %arg1[%c32, %c0_8] : memref<288x9xbf16, #tpu.memory_space<vmem>>, vector<256x9xbf16>
    %c2 = arith.constant 2 : index
    %c0_9 = arith.constant 0 : index
    %c0_10 = arith.constant 0 : index
    %10 = vector.load %arg2[%c2, %c0_9, %c0_10] : memref<3x9x32xbf16, #tpu.memory_space<vmem>>, vector<1x9x32xbf16>
    %11 = vector.shape_cast %10 : vector<1x9x32xbf16> to vector<9x32xbf16>
    %cst_11 = arith.constant dense<0.000000e+00> : vector<256x32xf32>
    %12 = tpu.matmul %9, %11, %cst_11 {dimension_numbers = #tpu.dot_dimension_numbers<[1], [0], [0], [1], [0, 0, 1, 1], [], []>} : vector<256x9xbf16>, vector<9x32xbf16>, vector<256x32xf32> -> vector<256x32xf32>
    %13 = arith.addf %8, %12 : vector<256x32xf32>
    %c0_12 = arith.constant 0 : index
    %c0_13 = arith.constant 0 : index
    %14 = vector.load %arg3[%c0_12, %c0_13] : memref<1x32xf32, #tpu.memory_space<vmem>>, vector<1x32xf32>
    %15 = vector.broadcast %14 : vector<1x32xf32> to vector<256x32xf32>
    %16 = arith.addf %13, %15 : vector<256x32xf32>
    %cst_14 = arith.constant 2.000000e+01 : f32
    %17 = vector.broadcast %cst_14 : f32 to vector<256x32xf32>
    %18 = arith.minimumf %16, %17 : vector<256x32xf32>
    %19 = math.exp %18 : vector<256x32xf32>
    %cst_15 = arith.constant 2.000000e+00 : f32
    %20 = vector.broadcast %cst_15 : f32 to vector<256x32xf32>
    %21 = arith.addf %19, %20 : vector<256x32xf32>
    %22 = arith.mulf %19, %21 : vector<256x32xf32>
    %cst_16 = arith.constant 2.000000e+00 : f32
    %23 = vector.broadcast %cst_16 : f32 to vector<256x32xf32>
    %24 = arith.addf %22, %23 : vector<256x32xf32>
    %25 = tpu.reciprocal %24 {approx = true} : vector<256x32xf32> -> vector<256x32xf32>
    %26 = arith.mulf %22, %25 : vector<256x32xf32>
    %cst_17 = arith.constant 2.000000e+01 : f32
    %27 = vector.broadcast %cst_17 : f32 to vector<256x32xf32>
    %28 = arith.cmpf ogt, %16, %27 : vector<256x32xf32>
    %29 = arith.mulf %16, %26 : vector<256x32xf32>
    %30 = arith.select %28, %16, %29 : vector<256x32xi1>, vector<256x32xf32>
    %31 = arith.truncf %30 : vector<256x32xf32> to vector<256x32xbf16>
    %c0_18 = arith.constant 0 : index
    %c0_19 = arith.constant 0 : index
    %32 = vector.load %arg4[%c0_18, %c0_19] : memref<256x32xbf16, #tpu.memory_space<vmem>>, vector<256x32xbf16>
    tpu.vector_store %arg4[%c0_18, %c0_19], %31 {strides = array<i32>} : memref<256x32xbf16, #tpu.memory_space<vmem>>, vector<256x32xbf16>,
    return
  }
  func.func @transform_0(%arg0: i32) -> (i32, i32) {
    %c0_i32 = arith.constant 0 : i32
    %c0_i32_0 = arith.constant 0 : i32
    return %arg0, %c0_i32 : i32, i32
  }
  func.func @transform_1(%arg0: i32) -> (i32, i32, i32) {
    %c0_i32 = arith.constant 0 : i32
    %c0_i32_0 = arith.constant 0 : i32
    %c0_i32_1 = arith.constant 0 : i32
    %c0_i32_2 = arith.constant 0 : i32
    return %c0_i32, %c0_i32_0, %c0_i32_1 : i32, i32, i32
  }
  func.func @transform_2(%arg0: i32) -> (i32, i32) {
    %c0_i32 = arith.constant 0 : i32
    %c0_i32_0 = arith.constant 0 : i32
    %c0_i32_1 = arith.constant 0 : i32
    return %c0_i32, %c0_i32_0 : i32, i32
  }
  func.func @transform_3(%arg0: i32) -> (i32, i32) {
    %c0_i32 = arith.constant 0 : i32
    %c0_i32_0 = arith.constant 0 : i32
    return %arg0, %c0_i32 : i32, i32
  }
}

module attributes {stable_mosaic.version = 11 : i64} {
  func.func @kernel(%arg0: i32, %arg1: memref<64x288xbf16, #tpu.memory_space<vmem>>, %arg2: memref<288x64xbf16, #tpu.memory_space<vmem>>, %arg3: memref<1x64xf32, #tpu.memory_space<vmem>>, %arg4: memref<64x64xbf16, #tpu.memory_space<vmem>>) attributes {dimension_semantics = [#tpu.dimension_semantics<parallel>], iteration_bounds = array<i64: 2>, scalar_prefetch = 0 : i64, scratch_operands = 0 : i64, tpu.core_type = #tpu.core_type<tc>, window_params = [{transform_indices = @transform_0, window_bounds = array<i64: 64, 288>}, {pipeline_mode = #tpu.pipeline_mode<synchronous>, transform_indices = @transform_1, window_bounds = array<i64: 288, 64>}, {pipeline_mode = #tpu.pipeline_mode<synchronous>, transform_indices = @transform_2, window_bounds = array<i64: 1, 64>}, {transform_indices = @transform_3, window_bounds = array<i64: 64, 64>}]} {
    %c0 = arith.constant 0 : index
    %c0_0 = arith.constant 0 : index
    %0 = vector.load %arg1[%c0, %c0_0] : memref<64x288xbf16, #tpu.memory_space<vmem>>, vector<64x288xbf16>
    %c0_1 = arith.constant 0 : index
    %c0_2 = arith.constant 0 : index
    %1 = vector.load %arg2[%c0_1, %c0_2] : memref<288x64xbf16, #tpu.memory_space<vmem>>, vector<288x64xbf16>
    %cst = arith.constant dense<0.000000e+00> : vector<64x64xf32>
    %2 = tpu.matmul %0, %1, %cst {dimension_numbers = #tpu.dot_dimension_numbers<[1], [0], [0], [1], [0, 0, 1, 1], [], []>} : vector<64x288xbf16>, vector<288x64xbf16>, vector<64x64xf32> -> vector<64x64xf32>
    %c0_3 = arith.constant 0 : index
    %c0_4 = arith.constant 0 : index
    %3 = vector.load %arg3[%c0_3, %c0_4] : memref<1x64xf32, #tpu.memory_space<vmem>>, vector<1x64xf32>
    %4 = vector.broadcast %3 : vector<1x64xf32> to vector<64x64xf32>
    %5 = arith.addf %2, %4 : vector<64x64xf32>
    %cst_5 = arith.constant 2.000000e+01 : f32
    %6 = vector.broadcast %cst_5 : f32 to vector<64x64xf32>
    %7 = arith.minimumf %5, %6 : vector<64x64xf32>
    %8 = math.exp %7 : vector<64x64xf32>
    %cst_6 = arith.constant 2.000000e+00 : f32
    %9 = vector.broadcast %cst_6 : f32 to vector<64x64xf32>
    %10 = arith.addf %8, %9 : vector<64x64xf32>
    %11 = arith.mulf %8, %10 : vector<64x64xf32>
    %cst_7 = arith.constant 2.000000e+00 : f32
    %12 = vector.broadcast %cst_7 : f32 to vector<64x64xf32>
    %13 = arith.addf %11, %12 : vector<64x64xf32>
    %14 = tpu.reciprocal %13 {approx = true} : vector<64x64xf32> -> vector<64x64xf32>
    %15 = arith.mulf %11, %14 : vector<64x64xf32>
    %cst_8 = arith.constant 2.000000e+01 : f32
    %16 = vector.broadcast %cst_8 : f32 to vector<64x64xf32>
    %17 = arith.cmpf ogt, %5, %16 : vector<64x64xf32>
    %18 = arith.mulf %5, %15 : vector<64x64xf32>
    %19 = arith.select %17, %5, %18 : vector<64x64xi1>, vector<64x64xf32>
    %20 = arith.truncf %19 : vector<64x64xf32> to vector<64x64xbf16>
    %c0_9 = arith.constant 0 : index
    %c0_10 = arith.constant 0 : index
    %21 = vector.load %arg4[%c0_9, %c0_10] : memref<64x64xbf16, #tpu.memory_space<vmem>>, vector<64x64xbf16>
    tpu.vector_store %arg4[%c0_9, %c0_10], %20 {strides = array<i32>} : memref<64x64xbf16, #tpu.memory_space<vmem>>, vector<64x64xbf16>,
    return
  }
  func.func @transform_0(%arg0: i32) -> (i32, i32) {
    %c0_i32 = arith.constant 0 : i32
    %c0_i32_0 = arith.constant 0 : i32
    return %arg0, %c0_i32 : i32, i32
  }
  func.func @transform_1(%arg0: i32) -> (i32, i32) {
    %c0_i32 = arith.constant 0 : i32
    %c0_i32_0 = arith.constant 0 : i32
    %c0_i32_1 = arith.constant 0 : i32
    return %c0_i32, %c0_i32_0 : i32, i32
  }
  func.func @transform_2(%arg0: i32) -> (i32, i32) {
    %c0_i32 = arith.constant 0 : i32
    %c0_i32_0 = arith.constant 0 : i32
    %c0_i32_1 = arith.constant 0 : i32
    return %c0_i32, %c0_i32_0 : i32, i32
  }
  func.func @transform_3(%arg0: i32) -> (i32, i32) {
    %c0_i32 = arith.constant 0 : i32
    %c0_i32_0 = arith.constant 0 : i32
    return %arg0, %c0_i32 : i32, i32
  }
}

module attributes {stable_mosaic.version = 11 : i64} {
  func.func @kernel(%arg0: i32, %arg1: memref<64x64xbf16, #tpu.memory_space<vmem>>, %arg2: memref<64x128xbf16, #tpu.memory_space<vmem>>, %arg3: memref<1x128xf32, #tpu.memory_space<vmem>>, %arg4: memref<64x128xbf16, #tpu.memory_space<vmem>>) attributes {dimension_semantics = [#tpu.dimension_semantics<parallel>], iteration_bounds = array<i64: 2>, scalar_prefetch = 0 : i64, scratch_operands = 0 : i64, tpu.core_type = #tpu.core_type<tc>, window_params = [{transform_indices = @transform_0, window_bounds = array<i64: 64, 64>}, {pipeline_mode = #tpu.pipeline_mode<synchronous>, transform_indices = @transform_1, window_bounds = array<i64: 64, 128>}, {pipeline_mode = #tpu.pipeline_mode<synchronous>, transform_indices = @transform_2, window_bounds = array<i64: 1, 128>}, {transform_indices = @transform_3, window_bounds = array<i64: 64, 128>}]} {
    %c0 = arith.constant 0 : index
    %c0_0 = arith.constant 0 : index
    %0 = vector.load %arg1[%c0, %c0_0] : memref<64x64xbf16, #tpu.memory_space<vmem>>, vector<64x64xbf16>
    %c0_1 = arith.constant 0 : index
    %c0_2 = arith.constant 0 : index
    %1 = vector.load %arg2[%c0_1, %c0_2] : memref<64x128xbf16, #tpu.memory_space<vmem>>, vector<64x128xbf16>
    %cst = arith.constant dense<0.000000e+00> : vector<64x128xf32>
    %2 = tpu.matmul %0, %1, %cst {dimension_numbers = #tpu.dot_dimension_numbers<[1], [0], [0], [1], [0, 0, 1, 1], [], []>} : vector<64x64xbf16>, vector<64x128xbf16>, vector<64x128xf32> -> vector<64x128xf32>
    %c0_3 = arith.constant 0 : index
    %c0_4 = arith.constant 0 : index
    %3 = vector.load %arg3[%c0_3, %c0_4] : memref<1x128xf32, #tpu.memory_space<vmem>>, vector<1x128xf32>
    %4 = vector.broadcast %3 : vector<1x128xf32> to vector<64x128xf32>
    %5 = arith.addf %2, %4 : vector<64x128xf32>
    %cst_5 = arith.constant 2.000000e+01 : f32
    %6 = vector.broadcast %cst_5 : f32 to vector<64x128xf32>
    %7 = arith.minimumf %5, %6 : vector<64x128xf32>
    %8 = math.exp %7 : vector<64x128xf32>
    %cst_6 = arith.constant 2.000000e+00 : f32
    %9 = vector.broadcast %cst_6 : f32 to vector<64x128xf32>
    %10 = arith.addf %8, %9 : vector<64x128xf32>
    %11 = arith.mulf %8, %10 : vector<64x128xf32>
    %cst_7 = arith.constant 2.000000e+00 : f32
    %12 = vector.broadcast %cst_7 : f32 to vector<64x128xf32>
    %13 = arith.addf %11, %12 : vector<64x128xf32>
    %14 = tpu.reciprocal %13 {approx = true} : vector<64x128xf32> -> vector<64x128xf32>
    %15 = arith.mulf %11, %14 : vector<64x128xf32>
    %cst_8 = arith.constant 2.000000e+01 : f32
    %16 = vector.broadcast %cst_8 : f32 to vector<64x128xf32>
    %17 = arith.cmpf ogt, %5, %16 : vector<64x128xf32>
    %18 = arith.mulf %5, %15 : vector<64x128xf32>
    %19 = arith.select %17, %5, %18 : vector<64x128xi1>, vector<64x128xf32>
    %20 = arith.truncf %19 : vector<64x128xf32> to vector<64x128xbf16>
    %c0_9 = arith.constant 0 : index
    %c0_10 = arith.constant 0 : index
    %21 = vector.load %arg4[%c0_9, %c0_10] : memref<64x128xbf16, #tpu.memory_space<vmem>>, vector<64x128xbf16>
    tpu.vector_store %arg4[%c0_9, %c0_10], %20 {strides = array<i32>} : memref<64x128xbf16, #tpu.memory_space<vmem>>, vector<64x128xbf16>,
    return
  }
  func.func @transform_0(%arg0: i32) -> (i32, i32) {
    %c0_i32 = arith.constant 0 : i32
    %c0_i32_0 = arith.constant 0 : i32
    return %arg0, %c0_i32 : i32, i32
  }
  func.func @transform_1(%arg0: i32) -> (i32, i32) {
    %c0_i32 = arith.constant 0 : i32
    %c0_i32_0 = arith.constant 0 : i32
    %c0_i32_1 = arith.constant 0 : i32
    return %c0_i32, %c0_i32_0 : i32, i32
  }
  func.func @transform_2(%arg0: i32) -> (i32, i32) {
    %c0_i32 = arith.constant 0 : i32
    %c0_i32_0 = arith.constant 0 : i32
    %c0_i32_1 = arith.constant 0 : i32
    return %c0_i32, %c0_i32_0 : i32, i32
  }
  func.func @transform_3(%arg0: i32) -> (i32, i32) {
    %c0_i32 = arith.constant 0 : i32
    %c0_i32_0 = arith.constant 0 : i32
    return %arg0, %c0_i32 : i32, i32
  }
}

module attributes {stable_mosaic.version = 11 : i64} {
  func.func @kernel(%arg0: i32, %arg1: memref<64x64xbf16, #tpu.memory_space<vmem>>, %arg2: memref<64x32xbf16, #tpu.memory_space<vmem>>, %arg3: memref<1x32xf32, #tpu.memory_space<vmem>>, %arg4: memref<64x32xbf16, #tpu.memory_space<vmem>>) attributes {dimension_semantics = [#tpu.dimension_semantics<parallel>], iteration_bounds = array<i64: 2>, scalar_prefetch = 0 : i64, scratch_operands = 0 : i64, tpu.core_type = #tpu.core_type<tc>, window_params = [{transform_indices = @transform_0, window_bounds = array<i64: 64, 64>}, {pipeline_mode = #tpu.pipeline_mode<synchronous>, transform_indices = @transform_1, window_bounds = array<i64: 64, 32>}, {pipeline_mode = #tpu.pipeline_mode<synchronous>, transform_indices = @transform_2, window_bounds = array<i64: 1, 32>}, {transform_indices = @transform_3, window_bounds = array<i64: 64, 32>}]} {
    %c0 = arith.constant 0 : index
    %c0_0 = arith.constant 0 : index
    %0 = vector.load %arg1[%c0, %c0_0] : memref<64x64xbf16, #tpu.memory_space<vmem>>, vector<64x64xbf16>
    %c0_1 = arith.constant 0 : index
    %c0_2 = arith.constant 0 : index
    %1 = vector.load %arg2[%c0_1, %c0_2] : memref<64x32xbf16, #tpu.memory_space<vmem>>, vector<64x32xbf16>
    %cst = arith.constant dense<0.000000e+00> : vector<64x32xf32>
    %2 = tpu.matmul %0, %1, %cst {dimension_numbers = #tpu.dot_dimension_numbers<[1], [0], [0], [1], [0, 0, 1, 1], [], []>} : vector<64x64xbf16>, vector<64x32xbf16>, vector<64x32xf32> -> vector<64x32xf32>
    %c0_3 = arith.constant 0 : index
    %c0_4 = arith.constant 0 : index
    %3 = vector.load %arg3[%c0_3, %c0_4] : memref<1x32xf32, #tpu.memory_space<vmem>>, vector<1x32xf32>
    %4 = vector.broadcast %3 : vector<1x32xf32> to vector<64x32xf32>
    %5 = arith.addf %2, %4 : vector<64x32xf32>
    %cst_5 = arith.constant 2.000000e+01 : f32
    %6 = vector.broadcast %cst_5 : f32 to vector<64x32xf32>
    %7 = arith.minimumf %5, %6 : vector<64x32xf32>
    %8 = math.exp %7 : vector<64x32xf32>
    %cst_6 = arith.constant 2.000000e+00 : f32
    %9 = vector.broadcast %cst_6 : f32 to vector<64x32xf32>
    %10 = arith.addf %8, %9 : vector<64x32xf32>
    %11 = arith.mulf %8, %10 : vector<64x32xf32>
    %cst_7 = arith.constant 2.000000e+00 : f32
    %12 = vector.broadcast %cst_7 : f32 to vector<64x32xf32>
    %13 = arith.addf %11, %12 : vector<64x32xf32>
    %14 = tpu.reciprocal %13 {approx = true} : vector<64x32xf32> -> vector<64x32xf32>
    %15 = arith.mulf %11, %14 : vector<64x32xf32>
    %cst_8 = arith.constant 2.000000e+01 : f32
    %16 = vector.broadcast %cst_8 : f32 to vector<64x32xf32>
    %17 = arith.cmpf ogt, %5, %16 : vector<64x32xf32>
    %18 = arith.mulf %5, %15 : vector<64x32xf32>
    %19 = arith.select %17, %5, %18 : vector<64x32xi1>, vector<64x32xf32>
    %20 = arith.truncf %19 : vector<64x32xf32> to vector<64x32xbf16>
    %c0_9 = arith.constant 0 : index
    %c0_10 = arith.constant 0 : index
    %21 = vector.load %arg4[%c0_9, %c0_10] : memref<64x32xbf16, #tpu.memory_space<vmem>>, vector<64x32xbf16>
    tpu.vector_store %arg4[%c0_9, %c0_10], %20 {strides = array<i32>} : memref<64x32xbf16, #tpu.memory_space<vmem>>, vector<64x32xbf16>,
    return
  }
  func.func @transform_0(%arg0: i32) -> (i32, i32) {
    %c0_i32 = arith.constant 0 : i32
    %c0_i32_0 = arith.constant 0 : i32
    return %arg0, %c0_i32 : i32, i32
  }
  func.func @transform_1(%arg0: i32) -> (i32, i32) {
    %c0_i32 = arith.constant 0 : i32
    %c0_i32_0 = arith.constant 0 : i32
    %c0_i32_1 = arith.constant 0 : i32
    return %c0_i32, %c0_i32_0 : i32, i32
  }
  func.func @transform_2(%arg0: i32) -> (i32, i32) {
    %c0_i32 = arith.constant 0 : i32
    %c0_i32_0 = arith.constant 0 : i32
    %c0_i32_1 = arith.constant 0 : i32
    return %c0_i32, %c0_i32_0 : i32, i32
  }
  func.func @transform_3(%arg0: i32) -> (i32, i32) {
    %c0_i32 = arith.constant 0 : i32
    %c0_i32_0 = arith.constant 0 : i32
    return %arg0, %c0_i32 : i32, i32
  }
}

module attributes {stable_mosaic.version = 11 : i64} {
  func.func @kernel(%arg0: i32, %arg1: memref<80x96xbf16, #tpu.memory_space<vmem>>, %arg2: memref<3x96x64xbf16, #tpu.memory_space<vmem>>, %arg3: memref<1x64xf32, #tpu.memory_space<vmem>>, %arg4: memref<64x64xbf16, #tpu.memory_space<vmem>>, %arg5: memref<64x64xbf16, #tpu.memory_space<vmem>>) attributes {dimension_semantics = [#tpu.dimension_semantics<parallel>], iteration_bounds = array<i64: 2>, scalar_prefetch = 0 : i64, scratch_operands = 0 : i64, tpu.core_type = #tpu.core_type<tc>, window_params = [{transform_indices = @transform_0, window_bounds = array<i64: 80, 96>}, {pipeline_mode = #tpu.pipeline_mode<synchronous>, transform_indices = @transform_1, window_bounds = array<i64: 3, 96, 64>}, {pipeline_mode = #tpu.pipeline_mode<synchronous>, transform_indices = @transform_2, window_bounds = array<i64: 1, 64>}, {transform_indices = @transform_3, window_bounds = array<i64: 64, 64>}, {transform_indices = @transform_4, window_bounds = array<i64: 64, 64>}]} {
    %c0 = arith.constant 0 : index
    %c0_0 = arith.constant 0 : index
    %0 = vector.load %arg1[%c0, %c0_0] : memref<80x96xbf16, #tpu.memory_space<vmem>>, vector<64x96xbf16>
    %c0_1 = arith.constant 0 : index
    %c0_2 = arith.constant 0 : index
    %c0_3 = arith.constant 0 : index
    %1 = vector.load %arg2[%c0_1, %c0_2, %c0_3] : memref<3x96x64xbf16, #tpu.memory_space<vmem>>, vector<1x96x64xbf16>
    %2 = vector.shape_cast %1 : vector<1x96x64xbf16> to vector<96x64xbf16>
    %cst = arith.constant dense<0.000000e+00> : vector<64x64xf32>
    %3 = tpu.matmul %0, %2, %cst {dimension_numbers = #tpu.dot_dimension_numbers<[1], [0], [0], [1], [0, 0, 1, 1], [], []>} : vector<64x96xbf16>, vector<96x64xbf16>, vector<64x64xf32> -> vector<64x64xf32>
    %c8 = arith.constant 8 : index
    %c0_4 = arith.constant 0 : index
    %4 = vector.load %arg1[%c8, %c0_4] : memref<80x96xbf16, #tpu.memory_space<vmem>>, vector<64x96xbf16>
    %c1 = arith.constant 1 : index
    %c0_5 = arith.constant 0 : index
    %c0_6 = arith.constant 0 : index
    %5 = vector.load %arg2[%c1, %c0_5, %c0_6] : memref<3x96x64xbf16, #tpu.memory_space<vmem>>, vector<1x96x64xbf16>
    %6 = vector.shape_cast %5 : vector<1x96x64xbf16> to vector<96x64xbf16>
    %cst_7 = arith.constant dense<0.000000e+00> : vector<64x64xf32>
    %7 = tpu.matmul %4, %6, %cst_7 {dimension_numbers = #tpu.dot_dimension_numbers<[1], [0], [0], [1], [0, 0, 1, 1], [], []>} : vector<64x96xbf16>, vector<96x64xbf16>, vector<64x64xf32> -> vector<64x64xf32>
    %8 = arith.addf %3, %7 : vector<64x64xf32>
    %c16 = arith.constant 16 : index
    %c0_8 = arith.constant 0 : index
    %9 = vector.load %arg1[%c16, %c0_8] : memref<80x96xbf16, #tpu.memory_space<vmem>>, vector<64x96xbf16>
    %c2 = arith.constant 2 : index
    %c0_9 = arith.constant 0 : index
    %c0_10 = arith.constant 0 : index
    %10 = vector.load %arg2[%c2, %c0_9, %c0_10] : memref<3x96x64xbf16, #tpu.memory_space<vmem>>, vector<1x96x64xbf16>
    %11 = vector.shape_cast %10 : vector<1x96x64xbf16> to vector<96x64xbf16>
    %cst_11 = arith.constant dense<0.000000e+00> : vector<64x64xf32>
    %12 = tpu.matmul %9, %11, %cst_11 {dimension_numbers = #tpu.dot_dimension_numbers<[1], [0], [0], [1], [0, 0, 1, 1], [], []>} : vector<64x96xbf16>, vector<96x64xbf16>, vector<64x64xf32> -> vector<64x64xf32>
    %13 = arith.addf %8, %12 : vector<64x64xf32>
    %c0_12 = arith.constant 0 : index
    %c0_13 = arith.constant 0 : index
    %14 = vector.load %arg3[%c0_12, %c0_13] : memref<1x64xf32, #tpu.memory_space<vmem>>, vector<1x64xf32>
    %15 = vector.broadcast %14 : vector<1x64xf32> to vector<64x64xf32>
    %16 = arith.addf %13, %15 : vector<64x64xf32>
    %cst_14 = arith.constant 2.000000e+01 : f32
    %17 = vector.broadcast %cst_14 : f32 to vector<64x64xf32>
    %18 = arith.minimumf %16, %17 : vector<64x64xf32>
    %19 = math.exp %18 : vector<64x64xf32>
    %cst_15 = arith.constant 2.000000e+00 : f32
    %20 = vector.broadcast %cst_15 : f32 to vector<64x64xf32>
    %21 = arith.addf %19, %20 : vector<64x64xf32>
    %22 = arith.mulf %19, %21 : vector<64x64xf32>
    %cst_16 = arith.constant 2.000000e+00 : f32
    %23 = vector.broadcast %cst_16 : f32 to vector<64x64xf32>
    %24 = arith.addf %22, %23 : vector<64x64xf32>
    %25 = tpu.reciprocal %24 {approx = true} : vector<64x64xf32> -> vector<64x64xf32>
    %26 = arith.mulf %22, %25 : vector<64x64xf32>
    %cst_17 = arith.constant 2.000000e+01 : f32
    %27 = vector.broadcast %cst_17 : f32 to vector<64x64xf32>
    %28 = arith.cmpf ogt, %16, %27 : vector<64x64xf32>
    %29 = arith.mulf %16, %26 : vector<64x64xf32>
    %30 = arith.select %28, %16, %29 : vector<64x64xi1>, vector<64x64xf32>
    %c0_18 = arith.constant 0 : index
    %c0_19 = arith.constant 0 : index
    %31 = vector.load %arg4[%c0_18, %c0_19] : memref<64x64xbf16, #tpu.memory_space<vmem>>, vector<64x64xbf16>
    %32 = arith.extf %31 : vector<64x64xbf16> to vector<64x64xf32>
    %33 = arith.addf %30, %32 : vector<64x64xf32>
    %34 = arith.truncf %33 : vector<64x64xf32> to vector<64x64xbf16>
    %c0_20 = arith.constant 0 : index
    %c0_21 = arith.constant 0 : index
    %35 = vector.load %arg5[%c0_20, %c0_21] : memref<64x64xbf16, #tpu.memory_space<vmem>>, vector<64x64xbf16>
    tpu.vector_store %arg5[%c0_20, %c0_21], %34 {strides = array<i32>} : memref<64x64xbf16, #tpu.memory_space<vmem>>, vector<64x64xbf16>,
    return
  }
  func.func @transform_0(%arg0: i32) -> (i32, i32) {
    %c0_i32 = arith.constant 0 : i32
    %c0_i32_0 = arith.constant 0 : i32
    return %arg0, %c0_i32 : i32, i32
  }
  func.func @transform_1(%arg0: i32) -> (i32, i32, i32) {
    %c0_i32 = arith.constant 0 : i32
    %c0_i32_0 = arith.constant 0 : i32
    %c0_i32_1 = arith.constant 0 : i32
    %c0_i32_2 = arith.constant 0 : i32
    return %c0_i32, %c0_i32_0, %c0_i32_1 : i32, i32, i32
  }
  func.func @transform_2(%arg0: i32) -> (i32, i32) {
    %c0_i32 = arith.constant 0 : i32
    %c0_i32_0 = arith.constant 0 : i32
    %c0_i32_1 = arith.constant 0 : i32
    return %c0_i32, %c0_i32_0 : i32, i32
  }
  func.func @transform_3(%arg0: i32) -> (i32, i32) {
    %c0_i32 = arith.constant 0 : i32
    %c0_i32_0 = arith.constant 0 : i32
    return %arg0, %c0_i32 : i32, i32
  }
  func.func @transform_4(%arg0: i32) -> (i32, i32) {
    %c0_i32 = arith.constant 0 : i32
    %c0_i32_0 = arith.constant 0 : i32
    return %arg0, %c0_i32 : i32, i32
  }
}

module attributes {stable_mosaic.version = 11 : i64} {
  func.func @kernel(%arg0: i32, %arg1: memref<64x64xbf16, #tpu.memory_space<vmem>>, %arg2: memref<64x64xbf16, #tpu.memory_space<vmem>>, %arg3: memref<1x64xf32, #tpu.memory_space<vmem>>, %arg4: memref<64x64xbf16, #tpu.memory_space<vmem>>) attributes {dimension_semantics = [#tpu.dimension_semantics<parallel>], iteration_bounds = array<i64: 2>, scalar_prefetch = 0 : i64, scratch_operands = 0 : i64, tpu.core_type = #tpu.core_type<tc>, window_params = [{transform_indices = @transform_0, window_bounds = array<i64: 64, 64>}, {pipeline_mode = #tpu.pipeline_mode<synchronous>, transform_indices = @transform_1, window_bounds = array<i64: 64, 64>}, {pipeline_mode = #tpu.pipeline_mode<synchronous>, transform_indices = @transform_2, window_bounds = array<i64: 1, 64>}, {transform_indices = @transform_3, window_bounds = array<i64: 64, 64>}]} {
    %c0 = arith.constant 0 : index
    %c0_0 = arith.constant 0 : index
    %0 = vector.load %arg1[%c0, %c0_0] : memref<64x64xbf16, #tpu.memory_space<vmem>>, vector<64x64xbf16>
    %c0_1 = arith.constant 0 : index
    %c0_2 = arith.constant 0 : index
    %1 = vector.load %arg2[%c0_1, %c0_2] : memref<64x64xbf16, #tpu.memory_space<vmem>>, vector<64x64xbf16>
    %cst = arith.constant dense<0.000000e+00> : vector<64x64xf32>
    %2 = tpu.matmul %0, %1, %cst {dimension_numbers = #tpu.dot_dimension_numbers<[1], [0], [0], [1], [0, 0, 1, 1], [], []>} : vector<64x64xbf16>, vector<64x64xbf16>, vector<64x64xf32> -> vector<64x64xf32>
    %c0_3 = arith.constant 0 : index
    %c0_4 = arith.constant 0 : index
    %3 = vector.load %arg3[%c0_3, %c0_4] : memref<1x64xf32, #tpu.memory_space<vmem>>, vector<1x64xf32>
    %4 = vector.broadcast %3 : vector<1x64xf32> to vector<64x64xf32>
    %5 = arith.addf %2, %4 : vector<64x64xf32>
    %cst_5 = arith.constant 2.000000e+01 : f32
    %6 = vector.broadcast %cst_5 : f32 to vector<64x64xf32>
    %7 = arith.minimumf %5, %6 : vector<64x64xf32>
    %8 = math.exp %7 : vector<64x64xf32>
    %cst_6 = arith.constant 2.000000e+00 : f32
    %9 = vector.broadcast %cst_6 : f32 to vector<64x64xf32>
    %10 = arith.addf %8, %9 : vector<64x64xf32>
    %11 = arith.mulf %8, %10 : vector<64x64xf32>
    %cst_7 = arith.constant 2.000000e+00 : f32
    %12 = vector.broadcast %cst_7 : f32 to vector<64x64xf32>
    %13 = arith.addf %11, %12 : vector<64x64xf32>
    %14 = tpu.reciprocal %13 {approx = true} : vector<64x64xf32> -> vector<64x64xf32>
    %15 = arith.mulf %11, %14 : vector<64x64xf32>
    %cst_8 = arith.constant 2.000000e+01 : f32
    %16 = vector.broadcast %cst_8 : f32 to vector<64x64xf32>
    %17 = arith.cmpf ogt, %5, %16 : vector<64x64xf32>
    %18 = arith.mulf %5, %15 : vector<64x64xf32>
    %19 = arith.select %17, %5, %18 : vector<64x64xi1>, vector<64x64xf32>
    %20 = arith.truncf %19 : vector<64x64xf32> to vector<64x64xbf16>
    %c0_9 = arith.constant 0 : index
    %c0_10 = arith.constant 0 : index
    %21 = vector.load %arg4[%c0_9, %c0_10] : memref<64x64xbf16, #tpu.memory_space<vmem>>, vector<64x64xbf16>
    tpu.vector_store %arg4[%c0_9, %c0_10], %20 {strides = array<i32>} : memref<64x64xbf16, #tpu.memory_space<vmem>>, vector<64x64xbf16>,
    return
  }
  func.func @transform_0(%arg0: i32) -> (i32, i32) {
    %c0_i32 = arith.constant 0 : i32
    %c0_i32_0 = arith.constant 0 : i32
    return %arg0, %c0_i32 : i32, i32
  }
  func.func @transform_1(%arg0: i32) -> (i32, i32) {
    %c0_i32 = arith.constant 0 : i32
    %c0_i32_0 = arith.constant 0 : i32
    %c0_i32_1 = arith.constant 0 : i32
    return %c0_i32, %c0_i32_0 : i32, i32
  }
  func.func @transform_2(%arg0: i32) -> (i32, i32) {
    %c0_i32 = arith.constant 0 : i32
    %c0_i32_0 = arith.constant 0 : i32
    %c0_i32_1 = arith.constant 0 : i32
    return %c0_i32, %c0_i32_0 : i32, i32
  }
  func.func @transform_3(%arg0: i32) -> (i32, i32) {
    %c0_i32 = arith.constant 0 : i32
    %c0_i32_0 = arith.constant 0 : i32
    return %arg0, %c0_i32 : i32, i32
  }
}

module attributes {stable_mosaic.version = 11 : i64} {
  func.func @kernel(%arg0: i32, %arg1: memref<64x128xbf16, #tpu.memory_space<vmem>>, %arg2: memref<128x64xbf16, #tpu.memory_space<vmem>>, %arg3: memref<1x64xf32, #tpu.memory_space<vmem>>, %arg4: memref<64x64xbf16, #tpu.memory_space<vmem>>) attributes {dimension_semantics = [#tpu.dimension_semantics<parallel>], iteration_bounds = array<i64: 2>, scalar_prefetch = 0 : i64, scratch_operands = 0 : i64, tpu.core_type = #tpu.core_type<tc>, window_params = [{transform_indices = @transform_0, window_bounds = array<i64: 64, 128>}, {pipeline_mode = #tpu.pipeline_mode<synchronous>, transform_indices = @transform_1, window_bounds = array<i64: 128, 64>}, {pipeline_mode = #tpu.pipeline_mode<synchronous>, transform_indices = @transform_2, window_bounds = array<i64: 1, 64>}, {transform_indices = @transform_3, window_bounds = array<i64: 64, 64>}]} {
    %c0 = arith.constant 0 : index
    %c0_0 = arith.constant 0 : index
    %0 = vector.load %arg1[%c0, %c0_0] : memref<64x128xbf16, #tpu.memory_space<vmem>>, vector<64x128xbf16>
    %c0_1 = arith.constant 0 : index
    %c0_2 = arith.constant 0 : index
    %1 = vector.load %arg2[%c0_1, %c0_2] : memref<128x64xbf16, #tpu.memory_space<vmem>>, vector<128x64xbf16>
    %cst = arith.constant dense<0.000000e+00> : vector<64x64xf32>
    %2 = tpu.matmul %0, %1, %cst {dimension_numbers = #tpu.dot_dimension_numbers<[1], [0], [0], [1], [0, 0, 1, 1], [], []>} : vector<64x128xbf16>, vector<128x64xbf16>, vector<64x64xf32> -> vector<64x64xf32>
    %c0_3 = arith.constant 0 : index
    %c0_4 = arith.constant 0 : index
    %3 = vector.load %arg3[%c0_3, %c0_4] : memref<1x64xf32, #tpu.memory_space<vmem>>, vector<1x64xf32>
    %4 = vector.broadcast %3 : vector<1x64xf32> to vector<64x64xf32>
    %5 = arith.addf %2, %4 : vector<64x64xf32>
    %cst_5 = arith.constant 2.000000e+01 : f32
    %6 = vector.broadcast %cst_5 : f32 to vector<64x64xf32>
    %7 = arith.minimumf %5, %6 : vector<64x64xf32>
    %8 = math.exp %7 : vector<64x64xf32>
    %cst_6 = arith.constant 2.000000e+00 : f32
    %9 = vector.broadcast %cst_6 : f32 to vector<64x64xf32>
    %10 = arith.addf %8, %9 : vector<64x64xf32>
    %11 = arith.mulf %8, %10 : vector<64x64xf32>
    %cst_7 = arith.constant 2.000000e+00 : f32
    %12 = vector.broadcast %cst_7 : f32 to vector<64x64xf32>
    %13 = arith.addf %11, %12 : vector<64x64xf32>
    %14 = tpu.reciprocal %13 {approx = true} : vector<64x64xf32> -> vector<64x64xf32>
    %15 = arith.mulf %11, %14 : vector<64x64xf32>
    %cst_8 = arith.constant 2.000000e+01 : f32
    %16 = vector.broadcast %cst_8 : f32 to vector<64x64xf32>
    %17 = arith.cmpf ogt, %5, %16 : vector<64x64xf32>
    %18 = arith.mulf %5, %15 : vector<64x64xf32>
    %19 = arith.select %17, %5, %18 : vector<64x64xi1>, vector<64x64xf32>
    %20 = arith.truncf %19 : vector<64x64xf32> to vector<64x64xbf16>
    %c0_9 = arith.constant 0 : index
    %c0_10 = arith.constant 0 : index
    %21 = vector.load %arg4[%c0_9, %c0_10] : memref<64x64xbf16, #tpu.memory_space<vmem>>, vector<64x64xbf16>
    tpu.vector_store %arg4[%c0_9, %c0_10], %20 {strides = array<i32>} : memref<64x64xbf16, #tpu.memory_space<vmem>>, vector<64x64xbf16>,
    return
  }
  func.func @transform_0(%arg0: i32) -> (i32, i32) {
    %c0_i32 = arith.constant 0 : i32
    %c0_i32_0 = arith.constant 0 : i32
    return %arg0, %c0_i32 : i32, i32
  }
  func.func @transform_1(%arg0: i32) -> (i32, i32) {
    %c0_i32 = arith.constant 0 : i32
    %c0_i32_0 = arith.constant 0 : i32
    %c0_i32_1 = arith.constant 0 : i32
    return %c0_i32, %c0_i32_0 : i32, i32
  }
  func.func @transform_2(%arg0: i32) -> (i32, i32) {
    %c0_i32 = arith.constant 0 : i32
    %c0_i32_0 = arith.constant 0 : i32
    %c0_i32_1 = arith.constant 0 : i32
    return %c0_i32, %c0_i32_0 : i32, i32
  }
  func.func @transform_3(%arg0: i32) -> (i32, i32) {
    %c0_i32 = arith.constant 0 : i32
    %c0_i32_0 = arith.constant 0 : i32
    return %arg0, %c0_i32 : i32, i32
  }
}

module attributes {stable_mosaic.version = 11 : i64} {
  func.func @kernel(%arg0: i32, %arg1: memref<16x576xbf16, #tpu.memory_space<vmem>>, %arg2: memref<576x128xbf16, #tpu.memory_space<vmem>>, %arg3: memref<1x128xf32, #tpu.memory_space<vmem>>, %arg4: memref<16x128xbf16, #tpu.memory_space<vmem>>) attributes {dimension_semantics = [#tpu.dimension_semantics<parallel>], iteration_bounds = array<i64: 2>, scalar_prefetch = 0 : i64, scratch_operands = 0 : i64, tpu.core_type = #tpu.core_type<tc>, window_params = [{transform_indices = @transform_0, window_bounds = array<i64: 16, 576>}, {pipeline_mode = #tpu.pipeline_mode<synchronous>, transform_indices = @transform_1, window_bounds = array<i64: 576, 128>}, {pipeline_mode = #tpu.pipeline_mode<synchronous>, transform_indices = @transform_2, window_bounds = array<i64: 1, 128>}, {transform_indices = @transform_3, window_bounds = array<i64: 16, 128>}]} {
    %c0 = arith.constant 0 : index
    %c0_0 = arith.constant 0 : index
    %0 = vector.load %arg1[%c0, %c0_0] : memref<16x576xbf16, #tpu.memory_space<vmem>>, vector<16x576xbf16>
    %c0_1 = arith.constant 0 : index
    %c0_2 = arith.constant 0 : index
    %1 = vector.load %arg2[%c0_1, %c0_2] : memref<576x128xbf16, #tpu.memory_space<vmem>>, vector<576x128xbf16>
    %cst = arith.constant dense<0.000000e+00> : vector<16x128xf32>
    %2 = tpu.matmul %0, %1, %cst {dimension_numbers = #tpu.dot_dimension_numbers<[1], [0], [0], [1], [0, 0, 1, 1], [], []>} : vector<16x576xbf16>, vector<576x128xbf16>, vector<16x128xf32> -> vector<16x128xf32>
    %c0_3 = arith.constant 0 : index
    %c0_4 = arith.constant 0 : index
    %3 = vector.load %arg3[%c0_3, %c0_4] : memref<1x128xf32, #tpu.memory_space<vmem>>, vector<1x128xf32>
    %4 = vector.broadcast %3 : vector<1x128xf32> to vector<16x128xf32>
    %5 = arith.addf %2, %4 : vector<16x128xf32>
    %cst_5 = arith.constant 2.000000e+01 : f32
    %6 = vector.broadcast %cst_5 : f32 to vector<16x128xf32>
    %7 = arith.minimumf %5, %6 : vector<16x128xf32>
    %8 = math.exp %7 : vector<16x128xf32>
    %cst_6 = arith.constant 2.000000e+00 : f32
    %9 = vector.broadcast %cst_6 : f32 to vector<16x128xf32>
    %10 = arith.addf %8, %9 : vector<16x128xf32>
    %11 = arith.mulf %8, %10 : vector<16x128xf32>
    %cst_7 = arith.constant 2.000000e+00 : f32
    %12 = vector.broadcast %cst_7 : f32 to vector<16x128xf32>
    %13 = arith.addf %11, %12 : vector<16x128xf32>
    %14 = tpu.reciprocal %13 {approx = true} : vector<16x128xf32> -> vector<16x128xf32>
    %15 = arith.mulf %11, %14 : vector<16x128xf32>
    %cst_8 = arith.constant 2.000000e+01 : f32
    %16 = vector.broadcast %cst_8 : f32 to vector<16x128xf32>
    %17 = arith.cmpf ogt, %5, %16 : vector<16x128xf32>
    %18 = arith.mulf %5, %15 : vector<16x128xf32>
    %19 = arith.select %17, %5, %18 : vector<16x128xi1>, vector<16x128xf32>
    %20 = arith.truncf %19 : vector<16x128xf32> to vector<16x128xbf16>
    %c0_9 = arith.constant 0 : index
    %c0_10 = arith.constant 0 : index
    %21 = vector.load %arg4[%c0_9, %c0_10] : memref<16x128xbf16, #tpu.memory_space<vmem>>, vector<16x128xbf16>
    tpu.vector_store %arg4[%c0_9, %c0_10], %20 {strides = array<i32>} : memref<16x128xbf16, #tpu.memory_space<vmem>>, vector<16x128xbf16>,
    return
  }
  func.func @transform_0(%arg0: i32) -> (i32, i32) {
    %c0_i32 = arith.constant 0 : i32
    %c0_i32_0 = arith.constant 0 : i32
    return %arg0, %c0_i32 : i32, i32
  }
  func.func @transform_1(%arg0: i32) -> (i32, i32) {
    %c0_i32 = arith.constant 0 : i32
    %c0_i32_0 = arith.constant 0 : i32
    %c0_i32_1 = arith.constant 0 : i32
    return %c0_i32, %c0_i32_0 : i32, i32
  }
  func.func @transform_2(%arg0: i32) -> (i32, i32) {
    %c0_i32 = arith.constant 0 : i32
    %c0_i32_0 = arith.constant 0 : i32
    %c0_i32_1 = arith.constant 0 : i32
    return %c0_i32, %c0_i32_0 : i32, i32
  }
  func.func @transform_3(%arg0: i32) -> (i32, i32) {
    %c0_i32 = arith.constant 0 : i32
    %c0_i32_0 = arith.constant 0 : i32
    return %arg0, %c0_i32 : i32, i32
  }
}

module attributes {stable_mosaic.version = 11 : i64} {
  func.func @kernel(%arg0: i32, %arg1: memref<16x128xbf16, #tpu.memory_space<vmem>>, %arg2: memref<128x128xbf16, #tpu.memory_space<vmem>>, %arg3: memref<1x128xf32, #tpu.memory_space<vmem>>, %arg4: memref<16x128xbf16, #tpu.memory_space<vmem>>) attributes {dimension_semantics = [#tpu.dimension_semantics<parallel>], iteration_bounds = array<i64: 2>, scalar_prefetch = 0 : i64, scratch_operands = 0 : i64, tpu.core_type = #tpu.core_type<tc>, window_params = [{transform_indices = @transform_0, window_bounds = array<i64: 16, 128>}, {pipeline_mode = #tpu.pipeline_mode<synchronous>, transform_indices = @transform_1, window_bounds = array<i64: 128, 128>}, {pipeline_mode = #tpu.pipeline_mode<synchronous>, transform_indices = @transform_2, window_bounds = array<i64: 1, 128>}, {transform_indices = @transform_3, window_bounds = array<i64: 16, 128>}]} {
    %c0 = arith.constant 0 : index
    %c0_0 = arith.constant 0 : index
    %0 = vector.load %arg1[%c0, %c0_0] : memref<16x128xbf16, #tpu.memory_space<vmem>>, vector<16x128xbf16>
    %c0_1 = arith.constant 0 : index
    %c0_2 = arith.constant 0 : index
    %1 = vector.load %arg2[%c0_1, %c0_2] : memref<128x128xbf16, #tpu.memory_space<vmem>>, vector<128x128xbf16>
    %cst = arith.constant dense<0.000000e+00> : vector<16x128xf32>
    %2 = tpu.matmul %0, %1, %cst {dimension_numbers = #tpu.dot_dimension_numbers<[1], [0], [0], [1], [0, 0, 1, 1], [], []>} : vector<16x128xbf16>, vector<128x128xbf16>, vector<16x128xf32> -> vector<16x128xf32>
    %c0_3 = arith.constant 0 : index
    %c0_4 = arith.constant 0 : index
    %3 = vector.load %arg3[%c0_3, %c0_4] : memref<1x128xf32, #tpu.memory_space<vmem>>, vector<1x128xf32>
    %4 = vector.broadcast %3 : vector<1x128xf32> to vector<16x128xf32>
    %5 = arith.addf %2, %4 : vector<16x128xf32>
    %cst_5 = arith.constant 2.000000e+01 : f32
    %6 = vector.broadcast %cst_5 : f32 to vector<16x128xf32>
    %7 = arith.minimumf %5, %6 : vector<16x128xf32>
    %8 = math.exp %7 : vector<16x128xf32>
    %cst_6 = arith.constant 2.000000e+00 : f32
    %9 = vector.broadcast %cst_6 : f32 to vector<16x128xf32>
    %10 = arith.addf %8, %9 : vector<16x128xf32>
    %11 = arith.mulf %8, %10 : vector<16x128xf32>
    %cst_7 = arith.constant 2.000000e+00 : f32
    %12 = vector.broadcast %cst_7 : f32 to vector<16x128xf32>
    %13 = arith.addf %11, %12 : vector<16x128xf32>
    %14 = tpu.reciprocal %13 {approx = true} : vector<16x128xf32> -> vector<16x128xf32>
    %15 = arith.mulf %11, %14 : vector<16x128xf32>
    %cst_8 = arith.constant 2.000000e+01 : f32
    %16 = vector.broadcast %cst_8 : f32 to vector<16x128xf32>
    %17 = arith.cmpf ogt, %5, %16 : vector<16x128xf32>
    %18 = arith.mulf %5, %15 : vector<16x128xf32>
    %19 = arith.select %17, %5, %18 : vector<16x128xi1>, vector<16x128xf32>
    %20 = arith.truncf %19 : vector<16x128xf32> to vector<16x128xbf16>
    %c0_9 = arith.constant 0 : index
    %c0_10 = arith.constant 0 : index
    %21 = vector.load %arg4[%c0_9, %c0_10] : memref<16x128xbf16, #tpu.memory_space<vmem>>, vector<16x128xbf16>
    tpu.vector_store %arg4[%c0_9, %c0_10], %20 {strides = array<i32>} : memref<16x128xbf16, #tpu.memory_space<vmem>>, vector<16x128xbf16>,
    return
  }
  func.func @transform_0(%arg0: i32) -> (i32, i32) {
    %c0_i32 = arith.constant 0 : i32
    %c0_i32_0 = arith.constant 0 : i32
    return %arg0, %c0_i32 : i32, i32
  }
  func.func @transform_1(%arg0: i32) -> (i32, i32) {
    %c0_i32 = arith.constant 0 : i32
    %c0_i32_0 = arith.constant 0 : i32
    %c0_i32_1 = arith.constant 0 : i32
    return %c0_i32, %c0_i32_0 : i32, i32
  }
  func.func @transform_2(%arg0: i32) -> (i32, i32) {
    %c0_i32 = arith.constant 0 : i32
    %c0_i32_0 = arith.constant 0 : i32
    %c0_i32_1 = arith.constant 0 : i32
    return %c0_i32, %c0_i32_0 : i32, i32
  }
  func.func @transform_3(%arg0: i32) -> (i32, i32) {
    %c0_i32 = arith.constant 0 : i32
    %c0_i32_0 = arith.constant 0 : i32
    return %arg0, %c0_i32 : i32, i32
  }
}

module attributes {stable_mosaic.version = 11 : i64} {
  func.func @kernel(%arg0: i32, %arg1: memref<16x64xbf16, #tpu.memory_space<vmem>>, %arg2: memref<64x64xbf16, #tpu.memory_space<vmem>>, %arg3: memref<1x64xf32, #tpu.memory_space<vmem>>, %arg4: memref<16x64xbf16, #tpu.memory_space<vmem>>) attributes {dimension_semantics = [#tpu.dimension_semantics<parallel>], iteration_bounds = array<i64: 2>, scalar_prefetch = 0 : i64, scratch_operands = 0 : i64, tpu.core_type = #tpu.core_type<tc>, window_params = [{transform_indices = @transform_0, window_bounds = array<i64: 16, 64>}, {pipeline_mode = #tpu.pipeline_mode<synchronous>, transform_indices = @transform_1, window_bounds = array<i64: 64, 64>}, {pipeline_mode = #tpu.pipeline_mode<synchronous>, transform_indices = @transform_2, window_bounds = array<i64: 1, 64>}, {transform_indices = @transform_3, window_bounds = array<i64: 16, 64>}]} {
    %c0 = arith.constant 0 : index
    %c0_0 = arith.constant 0 : index
    %0 = vector.load %arg1[%c0, %c0_0] : memref<16x64xbf16, #tpu.memory_space<vmem>>, vector<16x64xbf16>
    %c0_1 = arith.constant 0 : index
    %c0_2 = arith.constant 0 : index
    %1 = vector.load %arg2[%c0_1, %c0_2] : memref<64x64xbf16, #tpu.memory_space<vmem>>, vector<64x64xbf16>
    %cst = arith.constant dense<0.000000e+00> : vector<16x64xf32>
    %2 = tpu.matmul %0, %1, %cst {dimension_numbers = #tpu.dot_dimension_numbers<[1], [0], [0], [1], [0, 0, 1, 1], [], []>} : vector<16x64xbf16>, vector<64x64xbf16>, vector<16x64xf32> -> vector<16x64xf32>
    %c0_3 = arith.constant 0 : index
    %c0_4 = arith.constant 0 : index
    %3 = vector.load %arg3[%c0_3, %c0_4] : memref<1x64xf32, #tpu.memory_space<vmem>>, vector<1x64xf32>
    %4 = vector.broadcast %3 : vector<1x64xf32> to vector<16x64xf32>
    %5 = arith.addf %2, %4 : vector<16x64xf32>
    %cst_5 = arith.constant 2.000000e+01 : f32
    %6 = vector.broadcast %cst_5 : f32 to vector<16x64xf32>
    %7 = arith.minimumf %5, %6 : vector<16x64xf32>
    %8 = math.exp %7 : vector<16x64xf32>
    %cst_6 = arith.constant 2.000000e+00 : f32
    %9 = vector.broadcast %cst_6 : f32 to vector<16x64xf32>
    %10 = arith.addf %8, %9 : vector<16x64xf32>
    %11 = arith.mulf %8, %10 : vector<16x64xf32>
    %cst_7 = arith.constant 2.000000e+00 : f32
    %12 = vector.broadcast %cst_7 : f32 to vector<16x64xf32>
    %13 = arith.addf %11, %12 : vector<16x64xf32>
    %14 = tpu.reciprocal %13 {approx = true} : vector<16x64xf32> -> vector<16x64xf32>
    %15 = arith.mulf %11, %14 : vector<16x64xf32>
    %cst_8 = arith.constant 2.000000e+01 : f32
    %16 = vector.broadcast %cst_8 : f32 to vector<16x64xf32>
    %17 = arith.cmpf ogt, %5, %16 : vector<16x64xf32>
    %18 = arith.mulf %5, %15 : vector<16x64xf32>
    %19 = arith.select %17, %5, %18 : vector<16x64xi1>, vector<16x64xf32>
    %20 = arith.truncf %19 : vector<16x64xf32> to vector<16x64xbf16>
    %c0_9 = arith.constant 0 : index
    %c0_10 = arith.constant 0 : index
    %21 = vector.load %arg4[%c0_9, %c0_10] : memref<16x64xbf16, #tpu.memory_space<vmem>>, vector<16x64xbf16>
    tpu.vector_store %arg4[%c0_9, %c0_10], %20 {strides = array<i32>} : memref<16x64xbf16, #tpu.memory_space<vmem>>, vector<16x64xbf16>,
    return
  }
  func.func @transform_0(%arg0: i32) -> (i32, i32) {
    %c0_i32 = arith.constant 0 : i32
    %c0_i32_0 = arith.constant 0 : i32
    return %arg0, %c0_i32 : i32, i32
  }
  func.func @transform_1(%arg0: i32) -> (i32, i32) {
    %c0_i32 = arith.constant 0 : i32
    %c0_i32_0 = arith.constant 0 : i32
    %c0_i32_1 = arith.constant 0 : i32
    return %c0_i32, %c0_i32_0 : i32, i32
  }
  func.func @transform_2(%arg0: i32) -> (i32, i32) {
    %c0_i32 = arith.constant 0 : i32
    %c0_i32_0 = arith.constant 0 : i32
    %c0_i32_1 = arith.constant 0 : i32
    return %c0_i32, %c0_i32_0 : i32, i32
  }
  func.func @transform_3(%arg0: i32) -> (i32, i32) {
    %c0_i32 = arith.constant 0 : i32
    %c0_i32_0 = arith.constant 0 : i32
    return %arg0, %c0_i32 : i32, i32
  }
}

module attributes {stable_mosaic.version = 11 : i64} {
  func.func @kernel(%arg0: i32, %arg1: memref<24x192xbf16, #tpu.memory_space<vmem>>, %arg2: memref<3x192x64xbf16, #tpu.memory_space<vmem>>, %arg3: memref<1x64xf32, #tpu.memory_space<vmem>>, %arg4: memref<16x64xbf16, #tpu.memory_space<vmem>>, %arg5: memref<16x64xbf16, #tpu.memory_space<vmem>>) attributes {dimension_semantics = [#tpu.dimension_semantics<parallel>], iteration_bounds = array<i64: 2>, scalar_prefetch = 0 : i64, scratch_operands = 0 : i64, tpu.core_type = #tpu.core_type<tc>, window_params = [{transform_indices = @transform_0, window_bounds = array<i64: 24, 192>}, {pipeline_mode = #tpu.pipeline_mode<synchronous>, transform_indices = @transform_1, window_bounds = array<i64: 3, 192, 64>}, {pipeline_mode = #tpu.pipeline_mode<synchronous>, transform_indices = @transform_2, window_bounds = array<i64: 1, 64>}, {transform_indices = @transform_3, window_bounds = array<i64: 16, 64>}, {transform_indices = @transform_4, window_bounds = array<i64: 16, 64>}]} {
    %c0 = arith.constant 0 : index
    %c0_0 = arith.constant 0 : index
    %0 = vector.load %arg1[%c0, %c0_0] : memref<24x192xbf16, #tpu.memory_space<vmem>>, vector<16x192xbf16>
    %c0_1 = arith.constant 0 : index
    %c0_2 = arith.constant 0 : index
    %c0_3 = arith.constant 0 : index
    %1 = vector.load %arg2[%c0_1, %c0_2, %c0_3] : memref<3x192x64xbf16, #tpu.memory_space<vmem>>, vector<1x192x64xbf16>
    %2 = vector.shape_cast %1 : vector<1x192x64xbf16> to vector<192x64xbf16>
    %cst = arith.constant dense<0.000000e+00> : vector<16x64xf32>
    %3 = tpu.matmul %0, %2, %cst {dimension_numbers = #tpu.dot_dimension_numbers<[1], [0], [0], [1], [0, 0, 1, 1], [], []>} : vector<16x192xbf16>, vector<192x64xbf16>, vector<16x64xf32> -> vector<16x64xf32>
    %c4 = arith.constant 4 : index
    %c0_4 = arith.constant 0 : index
    %4 = vector.load %arg1[%c4, %c0_4] : memref<24x192xbf16, #tpu.memory_space<vmem>>, vector<16x192xbf16>
    %c1 = arith.constant 1 : index
    %c0_5 = arith.constant 0 : index
    %c0_6 = arith.constant 0 : index
    %5 = vector.load %arg2[%c1, %c0_5, %c0_6] : memref<3x192x64xbf16, #tpu.memory_space<vmem>>, vector<1x192x64xbf16>
    %6 = vector.shape_cast %5 : vector<1x192x64xbf16> to vector<192x64xbf16>
    %cst_7 = arith.constant dense<0.000000e+00> : vector<16x64xf32>
    %7 = tpu.matmul %4, %6, %cst_7 {dimension_numbers = #tpu.dot_dimension_numbers<[1], [0], [0], [1], [0, 0, 1, 1], [], []>} : vector<16x192xbf16>, vector<192x64xbf16>, vector<16x64xf32> -> vector<16x64xf32>
    %8 = arith.addf %3, %7 : vector<16x64xf32>
    %c8 = arith.constant 8 : index
    %c0_8 = arith.constant 0 : index
    %9 = vector.load %arg1[%c8, %c0_8] : memref<24x192xbf16, #tpu.memory_space<vmem>>, vector<16x192xbf16>
    %c2 = arith.constant 2 : index
    %c0_9 = arith.constant 0 : index
    %c0_10 = arith.constant 0 : index
    %10 = vector.load %arg2[%c2, %c0_9, %c0_10] : memref<3x192x64xbf16, #tpu.memory_space<vmem>>, vector<1x192x64xbf16>
    %11 = vector.shape_cast %10 : vector<1x192x64xbf16> to vector<192x64xbf16>
    %cst_11 = arith.constant dense<0.000000e+00> : vector<16x64xf32>
    %12 = tpu.matmul %9, %11, %cst_11 {dimension_numbers = #tpu.dot_dimension_numbers<[1], [0], [0], [1], [0, 0, 1, 1], [], []>} : vector<16x192xbf16>, vector<192x64xbf16>, vector<16x64xf32> -> vector<16x64xf32>
    %13 = arith.addf %8, %12 : vector<16x64xf32>
    %c0_12 = arith.constant 0 : index
    %c0_13 = arith.constant 0 : index
    %14 = vector.load %arg3[%c0_12, %c0_13] : memref<1x64xf32, #tpu.memory_space<vmem>>, vector<1x64xf32>
    %15 = vector.broadcast %14 : vector<1x64xf32> to vector<16x64xf32>
    %16 = arith.addf %13, %15 : vector<16x64xf32>
    %cst_14 = arith.constant 2.000000e+01 : f32
    %17 = vector.broadcast %cst_14 : f32 to vector<16x64xf32>
    %18 = arith.minimumf %16, %17 : vector<16x64xf32>
    %19 = math.exp %18 : vector<16x64xf32>
    %cst_15 = arith.constant 2.000000e+00 : f32
    %20 = vector.broadcast %cst_15 : f32 to vector<16x64xf32>
    %21 = arith.addf %19, %20 : vector<16x64xf32>
    %22 = arith.mulf %19, %21 : vector<16x64xf32>
    %cst_16 = arith.constant 2.000000e+00 : f32
    %23 = vector.broadcast %cst_16 : f32 to vector<16x64xf32>
    %24 = arith.addf %22, %23 : vector<16x64xf32>
    %25 = tpu.reciprocal %24 {approx = true} : vector<16x64xf32> -> vector<16x64xf32>
    %26 = arith.mulf %22, %25 : vector<16x64xf32>
    %cst_17 = arith.constant 2.000000e+01 : f32
    %27 = vector.broadcast %cst_17 : f32 to vector<16x64xf32>
    %28 = arith.cmpf ogt, %16, %27 : vector<16x64xf32>
    %29 = arith.mulf %16, %26 : vector<16x64xf32>
    %30 = arith.select %28, %16, %29 : vector<16x64xi1>, vector<16x64xf32>
    %c0_18 = arith.constant 0 : index
    %c0_19 = arith.constant 0 : index
    %31 = vector.load %arg4[%c0_18, %c0_19] : memref<16x64xbf16, #tpu.memory_space<vmem>>, vector<16x64xbf16>
    %32 = arith.extf %31 : vector<16x64xbf16> to vector<16x64xf32>
    %33 = arith.addf %30, %32 : vector<16x64xf32>
    %34 = arith.truncf %33 : vector<16x64xf32> to vector<16x64xbf16>
    %c0_20 = arith.constant 0 : index
    %c0_21 = arith.constant 0 : index
    %35 = vector.load %arg5[%c0_20, %c0_21] : memref<16x64xbf16, #tpu.memory_space<vmem>>, vector<16x64xbf16>
    tpu.vector_store %arg5[%c0_20, %c0_21], %34 {strides = array<i32>} : memref<16x64xbf16, #tpu.memory_space<vmem>>, vector<16x64xbf16>,
    return
  }
  func.func @transform_0(%arg0: i32) -> (i32, i32) {
    %c0_i32 = arith.constant 0 : i32
    %c0_i32_0 = arith.constant 0 : i32
    return %arg0, %c0_i32 : i32, i32
  }
  func.func @transform_1(%arg0: i32) -> (i32, i32, i32) {
    %c0_i32 = arith.constant 0 : i32
    %c0_i32_0 = arith.constant 0 : i32
    %c0_i32_1 = arith.constant 0 : i32
    %c0_i32_2 = arith.constant 0 : i32
    return %c0_i32, %c0_i32_0, %c0_i32_1 : i32, i32, i32
  }
  func.func @transform_2(%arg0: i32) -> (i32, i32) {
    %c0_i32 = arith.constant 0 : i32
    %c0_i32_0 = arith.constant 0 : i32
    %c0_i32_1 = arith.constant 0 : i32
    return %c0_i32, %c0_i32_0 : i32, i32
  }
  func.func @transform_3(%arg0: i32) -> (i32, i32) {
    %c0_i32 = arith.constant 0 : i32
    %c0_i32_0 = arith.constant 0 : i32
    return %arg0, %c0_i32 : i32, i32
  }
  func.func @transform_4(%arg0: i32) -> (i32, i32) {
    %c0_i32 = arith.constant 0 : i32
    %c0_i32_0 = arith.constant 0 : i32
    return %arg0, %c0_i32 : i32, i32
  }
}

module attributes {stable_mosaic.version = 11 : i64} {
  func.func @kernel(%arg0: i32, %arg1: memref<24x384xbf16, #tpu.memory_space<vmem>>, %arg2: memref<3x384x192xbf16, #tpu.memory_space<vmem>>, %arg3: memref<1x192xf32, #tpu.memory_space<vmem>>, %arg4: memref<16x192xbf16, #tpu.memory_space<vmem>>) attributes {dimension_semantics = [#tpu.dimension_semantics<parallel>], iteration_bounds = array<i64: 2>, scalar_prefetch = 0 : i64, scratch_operands = 0 : i64, tpu.core_type = #tpu.core_type<tc>, window_params = [{transform_indices = @transform_0, window_bounds = array<i64: 24, 384>}, {pipeline_mode = #tpu.pipeline_mode<synchronous>, transform_indices = @transform_1, window_bounds = array<i64: 3, 384, 192>}, {pipeline_mode = #tpu.pipeline_mode<synchronous>, transform_indices = @transform_2, window_bounds = array<i64: 1, 192>}, {transform_indices = @transform_3, window_bounds = array<i64: 16, 192>}]} {
    %c0 = arith.constant 0 : index
    %c0_0 = arith.constant 0 : index
    %0 = vector.load %arg1[%c0, %c0_0] : memref<24x384xbf16, #tpu.memory_space<vmem>>, vector<16x384xbf16>
    %c0_1 = arith.constant 0 : index
    %c0_2 = arith.constant 0 : index
    %c0_3 = arith.constant 0 : index
    %1 = vector.load %arg2[%c0_1, %c0_2, %c0_3] : memref<3x384x192xbf16, #tpu.memory_space<vmem>>, vector<1x384x192xbf16>
    %2 = vector.shape_cast %1 : vector<1x384x192xbf16> to vector<384x192xbf16>
    %cst = arith.constant dense<0.000000e+00> : vector<16x192xf32>
    %3 = tpu.matmul %0, %2, %cst {dimension_numbers = #tpu.dot_dimension_numbers<[1], [0], [0], [1], [0, 0, 1, 1], [], []>} : vector<16x384xbf16>, vector<384x192xbf16>, vector<16x192xf32> -> vector<16x192xf32>
    %c4 = arith.constant 4 : index
    %c0_4 = arith.constant 0 : index
    %4 = vector.load %arg1[%c4, %c0_4] : memref<24x384xbf16, #tpu.memory_space<vmem>>, vector<16x384xbf16>
    %c1 = arith.constant 1 : index
    %c0_5 = arith.constant 0 : index
    %c0_6 = arith.constant 0 : index
    %5 = vector.load %arg2[%c1, %c0_5, %c0_6] : memref<3x384x192xbf16, #tpu.memory_space<vmem>>, vector<1x384x192xbf16>
    %6 = vector.shape_cast %5 : vector<1x384x192xbf16> to vector<384x192xbf16>
    %cst_7 = arith.constant dense<0.000000e+00> : vector<16x192xf32>
    %7 = tpu.matmul %4, %6, %cst_7 {dimension_numbers = #tpu.dot_dimension_numbers<[1], [0], [0], [1], [0, 0, 1, 1], [], []>} : vector<16x384xbf16>, vector<384x192xbf16>, vector<16x192xf32> -> vector<16x192xf32>
    %8 = arith.addf %3, %7 : vector<16x192xf32>
    %c8 = arith.constant 8 : index
    %c0_8 = arith.constant 0 : index
    %9 = vector.load %arg1[%c8, %c0_8] : memref<24x384xbf16, #tpu.memory_space<vmem>>, vector<16x384xbf16>
    %c2 = arith.constant 2 : index
    %c0_9 = arith.constant 0 : index
    %c0_10 = arith.constant 0 : index
    %10 = vector.load %arg2[%c2, %c0_9, %c0_10] : memref<3x384x192xbf16, #tpu.memory_space<vmem>>, vector<1x384x192xbf16>
    %11 = vector.shape_cast %10 : vector<1x384x192xbf16> to vector<384x192xbf16>
    %cst_11 = arith.constant dense<0.000000e+00> : vector<16x192xf32>
    %12 = tpu.matmul %9, %11, %cst_11 {dimension_numbers = #tpu.dot_dimension_numbers<[1], [0], [0], [1], [0, 0, 1, 1], [], []>} : vector<16x384xbf16>, vector<384x192xbf16>, vector<16x192xf32> -> vector<16x192xf32>
    %13 = arith.addf %8, %12 : vector<16x192xf32>
    %c0_12 = arith.constant 0 : index
    %c0_13 = arith.constant 0 : index
    %14 = vector.load %arg3[%c0_12, %c0_13] : memref<1x192xf32, #tpu.memory_space<vmem>>, vector<1x192xf32>
    %15 = vector.broadcast %14 : vector<1x192xf32> to vector<16x192xf32>
    %16 = arith.addf %13, %15 : vector<16x192xf32>
    %cst_14 = arith.constant 0.000000e+00 : f32
    %17 = vector.broadcast %cst_14 : f32 to vector<16x192xf32>
    %18 = arith.maximumf %16, %17 : vector<16x192xf32>
    %19 = arith.truncf %18 : vector<16x192xf32> to vector<16x192xbf16>
    %c0_15 = arith.constant 0 : index
    %c0_16 = arith.constant 0 : index
    %20 = vector.load %arg4[%c0_15, %c0_16] : memref<16x192xbf16, #tpu.memory_space<vmem>>, vector<16x192xbf16>
    tpu.vector_store %arg4[%c0_15, %c0_16], %19 {strides = array<i32>} : memref<16x192xbf16, #tpu.memory_space<vmem>>, vector<16x192xbf16>,
    return
  }
  func.func @transform_0(%arg0: i32) -> (i32, i32) {
    %c0_i32 = arith.constant 0 : i32
    %c0_i32_0 = arith.constant 0 : i32
    return %arg0, %c0_i32 : i32, i32
  }
  func.func @transform_1(%arg0: i32) -> (i32, i32, i32) {
    %c0_i32 = arith.constant 0 : i32
    %c0_i32_0 = arith.constant 0 : i32
    %c0_i32_1 = arith.constant 0 : i32
    %c0_i32_2 = arith.constant 0 : i32
    return %c0_i32, %c0_i32_0, %c0_i32_1 : i32, i32, i32
  }
  func.func @transform_2(%arg0: i32) -> (i32, i32) {
    %c0_i32 = arith.constant 0 : i32
    %c0_i32_0 = arith.constant 0 : i32
    %c0_i32_1 = arith.constant 0 : i32
    return %c0_i32, %c0_i32_0 : i32, i32
  }
  func.func @transform_3(%arg0: i32) -> (i32, i32) {
    %c0_i32 = arith.constant 0 : i32
    %c0_i32_0 = arith.constant 0 : i32
    return %arg0, %c0_i32 : i32, i32
  }
}

module attributes {stable_mosaic.version = 11 : i64} {
  func.func @kernel(%arg0: i32, %arg1: memref<16x192xbf16, #tpu.memory_space<vmem>>, %arg2: memref<192x128xbf16, #tpu.memory_space<vmem>>, %arg3: memref<1x128xf32, #tpu.memory_space<vmem>>, %arg4: memref<16x128xf32, #tpu.memory_space<vmem>>) attributes {dimension_semantics = [#tpu.dimension_semantics<parallel>], iteration_bounds = array<i64: 2>, scalar_prefetch = 0 : i64, scratch_operands = 0 : i64, tpu.core_type = #tpu.core_type<tc>, window_params = [{transform_indices = @transform_0, window_bounds = array<i64: 16, 192>}, {pipeline_mode = #tpu.pipeline_mode<synchronous>, transform_indices = @transform_1, window_bounds = array<i64: 192, 128>}, {pipeline_mode = #tpu.pipeline_mode<synchronous>, transform_indices = @transform_2, window_bounds = array<i64: 1, 128>}, {transform_indices = @transform_3, window_bounds = array<i64: 16, 128>}]} {
    %c0 = arith.constant 0 : index
    %c0_0 = arith.constant 0 : index
    %0 = vector.load %arg1[%c0, %c0_0] : memref<16x192xbf16, #tpu.memory_space<vmem>>, vector<16x192xbf16>
    %c0_1 = arith.constant 0 : index
    %c0_2 = arith.constant 0 : index
    %1 = vector.load %arg2[%c0_1, %c0_2] : memref<192x128xbf16, #tpu.memory_space<vmem>>, vector<192x128xbf16>
    %cst = arith.constant dense<0.000000e+00> : vector<16x128xf32>
    %2 = tpu.matmul %0, %1, %cst {dimension_numbers = #tpu.dot_dimension_numbers<[1], [0], [0], [1], [0, 0, 1, 1], [], []>} : vector<16x192xbf16>, vector<192x128xbf16>, vector<16x128xf32> -> vector<16x128xf32>
    %c0_3 = arith.constant 0 : index
    %c0_4 = arith.constant 0 : index
    %3 = vector.load %arg3[%c0_3, %c0_4] : memref<1x128xf32, #tpu.memory_space<vmem>>, vector<1x128xf32>
    %4 = vector.broadcast %3 : vector<1x128xf32> to vector<16x128xf32>
    %5 = arith.addf %2, %4 : vector<16x128xf32>
    %c0_5 = arith.constant 0 : index
    %c0_6 = arith.constant 0 : index
    %6 = vector.load %arg4[%c0_5, %c0_6] : memref<16x128xf32, #tpu.memory_space<vmem>>, vector<16x128xf32>
    tpu.vector_store %arg4[%c0_5, %c0_6], %5 {strides = array<i32>} : memref<16x128xf32, #tpu.memory_space<vmem>>, vector<16x128xf32>,
    return
  }
  func.func @transform_0(%arg0: i32) -> (i32, i32) {
    %c0_i32 = arith.constant 0 : i32
    %c0_i32_0 = arith.constant 0 : i32
    return %arg0, %c0_i32 : i32, i32
  }
  func.func @transform_1(%arg0: i32) -> (i32, i32) {
    %c0_i32 = arith.constant 0 : i32
    %c0_i32_0 = arith.constant 0 : i32
    %c0_i32_1 = arith.constant 0 : i32
    return %c0_i32, %c0_i32_0 : i32, i32
  }
  func.func @transform_2(%arg0: i32) -> (i32, i32) {
    %c0_i32 = arith.constant 0 : i32
    %c0_i32_0 = arith.constant 0 : i32
    %c0_i32_1 = arith.constant 0 : i32
    return %c0_i32, %c0_i32_0 : i32, i32
  }
  func.func @transform_3(%arg0: i32) -> (i32, i32) {
    %c0_i32 = arith.constant 0 : i32
    %c0_i32_0 = arith.constant 0 : i32
    return %arg0, %c0_i32 : i32, i32
  }
}

</mosaic_0001>

<bundles_post_ra>
// kernel: cspdarknet_forward.17
= control target key start
LH: loop header
LB: loop body
LE: loop exit
PB: predicated region body
PF: predicated region fallthrough
CT: control target
= control target key end

     0   :  { %s1763_s12 = smov 0   ;;  %s2244_s0 = inlined_call_operand.vmem [shape: bf16[576,9], index: 0, kind: input, shape index: {}]   ;;  %s2245_s1 = inlined_call_operand.vmem [shape: bf16[3,9,32], index: 1, kind: input, shape index: {}]   ;;  %s2246_s2 = inlined_call_operand.vmem [shape: f32[1,32], index: 2, kind: input, shape index: {}]   ;;  %s2247_s3 = inlined_call_operand.vmem [shape: bf16[512,32], index: 3, kind: output, shape index: {}]  }
   0x1 LB: > { %s1350_s13 = sadd.s32 4294967295, %s1740_s12   ;;  %p1354_p0 = scmp.ge.s32.totalorder %s1740_s12, 1  ;;  %s1740_s12 = sphi %s1763_s12, %s13_s12  }
   0x2   : > { %p138_p1 = scmp.lt.s32.totalorder %s1740_s12, 3 }
   0x4   : > { %p139_p2 = pnand %p1354_p0, %p138_p1 }
   0x5   : > { %s162_s22 = smul.u32 (!%p139_p2), 36, %s1350_s13  ;;  %s1356_s6 = sshll.u32 (!%p139_p2), %s1350_s13, 5 }
   0x6   : > { %142 = sbr.rel (%p139_p2) target bundleno = 374 (0x176), region = 32  ;;  %p169_p4 = scmp.lt.s32.totalorder (!%p139_p2), %s1356_s6, 63 }
   0x7   : > { %p163_p3 = scmp.lt.s32.totalorder (!%p139_p2), %s162_s22, 71 }
   0xb   : > { %v1426_v0 = vld [vmem:[%s2245_s1 + $0x8] sm:$0xf]  ;;  %v1574_v1 = vld [vmem:[%s2245_s1 + $0x8] sm:$0x10]  ;;  %vm348_vm0 = vcmask 1043456   ;;  %vm349_vm1 = vcmask 1044480  }
   0xc   : > { %v1427_v2 = vor.u32 %v1574_v1, %v1426_v0  ;;  %v1450_v3 = vld [vmem:[%s2245_s1] sm:$0xf]  ;;  %v1572_v4 = vld [vmem:[%s2245_s1] sm:$0x10]  ;;  %v1742_v5 = vmov 65535   ;;  %s2249_s22 = smov (!%p163_p3, %s162_s22), 71 }
   0xd   : > { %v350_v6 = vsel %vm348_vm0, 4294967295, %v1742_v5  ;;  %v1451_v7 = vor.u32 %v1572_v4, %v1450_v3  ;;  %v1536_v8 = vld [vmem:[%s2245_s1 + $0x10] sm:$0xf]  ;;  %v1591_v9 = vld [vmem:[%s2245_s1 + $0x10] sm:$0x10]  ;;  %s1355_s27 = sshll.u32 %s2249_s22, 2 }
   0xe   : > { %v351_v10 = vsel %vm349_vm1, %v350_v6, 0  ;;  %v1537_v11 = vor.u32 %v1591_v9, %v1536_v8  ;;  %s1794_s30 = scalar_lea.vmem %s2244_s0, %s1355_s27  ;;  %vm299_vm2 = vcmask 72704   ;;  %v1865_v44 = vld [vmem:[%s2246_s2] ss:$0 sm:$0xff]  ;;  %s2251_s6 = smov (!%p169_p4, %s1356_s6), 63  ;;  %vm1261_vm4 = vcmask 257024  }
   0xf   : > { %v353_v12 = vand.u32 %v1427_v2, %v351_v10  ;;  %v458_v13 = vand.u32 %v1451_v7, %v351_v10  ;;  %v1557_v15 = vld [vmem:[%s1794_s30 + $0x8] sm:$0xff]  ;;  %v1556_v17 = vld [vmem:[%s1794_s30] sm:$0xff]  ;;  %v1575_v18 = vld [vmem:[%s1794_s30 + $0x10] sm:$0xff]  ;;  %s1357_s7 = sshll.u32 %s2251_s6, 2 }
  0x10   : > { %v718_v14 = vand.u32 %v1537_v11, %v351_v10  ;;  %v1569_v16 = vld [vmem:[%s1794_s30 + $0x68] sm:$0xff]  ;;  %v1558_v19 = vld [vmem:[%s1794_s30 + $0x10] sm:$0xff]  ;;  %v1576_v21 = vld [vmem:[%s1794_s30 + $0x18] sm:$0xff]  ;;  %s1916_s10 = scalar_lea.vmem %s2247_s3, %s1357_s7 }
  0x11   : > { %362 = vmatpush.bf16.msra.mxu0 %v353_v12  ;;  %1592 = vmatpush.bf16.msra.mxu3 %v353_v12  ;;  %v1570_v20 = vld [vmem:[%s1794_s30 + $0x70] sm:$0xff]  ;;  %v1559_v22 = vld [vmem:[%s1794_s30 + $0x18] sm:$0xff]  ;;  %v1577_v24 = vld [vmem:[%s1794_s30 + $0x20] sm:$0xff] }
  0x12   : > { %467 = vmatpush.bf16.msra.mxu1 %v458_v13  ;;  %727 = vmatpush.bf16.msra.mxu2 %v718_v14  ;;  %v1571_v23 = vld [vmem:[%s1794_s30 + $0x78] sm:$0xff]  ;;  %v1560_v25 = vld [vmem:[%s1794_s30 + $0x20] sm:$0xff]  ;;  %v1578_v27 = vld [vmem:[%s1794_s30 + $0x28] sm:$0xff] }
  0x13   : > { %v1573_v26 = vld [vmem:[%s1794_s30 + $0x80] sm:$0xff]  ;;  %v1561_v28 = vld [vmem:[%s1794_s30 + $0x28] sm:$0xff]  ;;  %v1579_v30 = vld [vmem:[%s1794_s30 + $0x30] sm:$0xff] }
  0x14   : > { %1428 = vmatmul.msk.bf16.vlgmr.msra.gmra.mxu0 %vm299_vm2, %v1557_v15  ;;  %1440 = vmatmul.msk.bf16.vlgmr.msra.gmra.mxu3 %vm299_vm2, %v1569_v16  ;;  %v1827_v29 = vld [vmem:[%s1794_s30 + $0x60] sm:$0xff]  ;;  %v1562_v31 = vld [vmem:[%s1794_s30 + $0x30] sm:$0xff]  ;;  %v1580_v32 = vld [vmem:[%s1794_s30 + $0x38] sm:$0xff] }
  0x15   : > { %1593 = vmatpush.bf16.msrb.mxu3 %v458_v13  ;;  %1452 = vmatmul.msk.bf16.vlgmr.msra.gmra.mxu1 %vm299_vm2, %v1556_v17  ;;  %v1563_v33 = vld [vmem:[%s1794_s30 + $0x38] sm:$0xff]  ;;  %v1581_v34 = vld [vmem:[%s1794_s30 + $0x40] sm:$0xff]  ;;  %v1582_v36 = vld [vmem:[%s1794_s30 + $0x48] sm:$0xff] }
  0x16   : > { %1538 = vmatmul.msk.bf16.vlgmr.msra.gmra.mxu2 %vm299_vm2, %v1575_v18  ;;  %v1564_v35 = vld [vmem:[%s1794_s30 + $0x40] sm:$0xff]  ;;  %v1565_v37 = vld [vmem:[%s1794_s30 + $0x48] sm:$0xff]  ;;  %v1587_v38 = vld [vmem:[%s1794_s30 + $0x70] sm:$0xff] }
  0x17   : > { %v1583_v40 = vld [vmem:[%s1794_s30 + $0x50] sm:$0xff]  ;;  %v1588_v56 = vld [vmem:[%s1794_s30 + $0x78] sm:$0xff] }
  0x18   : > { %v1566_v55 = vld [vmem:[%s1794_s30 + $0x50] sm:$0xff]  ;;  %v1584_v59 = vld [vmem:[%s1794_s30 + $0x58] sm:$0xff] }
  0x19   : > { %1594 = vmatpush.bf16.msra.mxu3 %v718_v14  ;;  %v1895_v18 = vld [vmem:[%s1794_s30 + $0x58] sm:$0xff] }
  0x24   : > { %1429 = vmatmul.msk.bf16.gmra.mxu0 %vm299_vm2, %v1558_v19  ;;  %1441 = vmatmul.msk.bf16.gmra.mxu3 %vm299_vm2, %v1570_v20 }
  0x25   : > { %1453 = vmatmul.msk.bf16.gmra.mxu1 %vm299_vm2, %v1557_v15 }
  0x26   : > { %1539 = vmatmul.msk.bf16.gmra.mxu2 %vm299_vm2, %v1576_v21 }
  0x34   : > { %1430 = vmatmul.msk.bf16.gmra.mxu0 %vm299_vm2, %v1559_v22  ;;  %1442 = vmatmul.msk.bf16.gmra.mxu3 %vm299_vm2, %v1571_v23 }
  0x35   : > { %1454 = vmatmul.msk.bf16.gmra.mxu1 %vm299_vm2, %v1558_v19  ;;  %v1589_v19 = vld [vmem:[%s1794_s30 + $0x80] sm:$0xff] }
  0x36   : > { %1540 = vmatmul.msk.bf16.gmra.mxu2 %vm299_vm2, %v1577_v24 }
  0x44   : > { %1431 = vmatmul.msk.bf16.gmra.mxu0 %vm299_vm2, %v1560_v25  ;;  %1443 = vmatmul.msk.bf16.gmra.mxu3 %vm299_vm2, %v1573_v26 }
  0x45   : > { %1455 = vmatmul.msk.bf16.gmra.mxu1 %vm299_vm2, %v1559_v22  ;;  %v1585_v22 = vld [vmem:[%s1794_s30 + $0x60] sm:$0xff] }
  0x46   : > { %1541 = vmatmul.msk.bf16.gmra.mxu2 %vm299_vm2, %v1578_v27 }
  0x54   : > { %1432 = vmatmul.msk.bf16.gmra.mxu0 %vm299_vm2, %v1561_v28  ;;  %1464 = vmatmul.msk.bf16.vlgmr.msrb.gmra.mxu3 %vm299_vm2, %v1827_v29 }
  0x55   : > { %1456 = vmatmul.msk.bf16.gmra.mxu1 %vm299_vm2, %v1560_v25 }
  0x56   : > { %1542 = vmatmul.msk.bf16.gmra.mxu2 %vm299_vm2, %v1579_v30 }
  0x64   : > { %1433 = vmatmul.msk.bf16.gmra.mxu0 %vm299_vm2, %v1562_v31  ;;  %1465 = vmatmul.msk.bf16.gmra.mxu3 %vm299_vm2, %v1569_v16 }
  0x65   : > { %1457 = vmatmul.msk.bf16.gmra.mxu1 %vm299_vm2, %v1561_v28 }
  0x66   : > { %1543 = vmatmul.msk.bf16.gmra.mxu2 %vm299_vm2, %v1580_v32 }
  0x74   : > { %1434 = vmatmul.msk.bf16.gmra.mxu0 %vm299_vm2, %v1563_v33  ;;  %1466 = vmatmul.msk.bf16.gmra.mxu3 %vm299_vm2, %v1570_v20 }
  0x75   : > { %1458 = vmatmul.msk.bf16.gmra.mxu1 %vm299_vm2, %v1562_v31 }
  0x76   : > { %1544 = vmatmul.msk.bf16.gmra.mxu2 %vm299_vm2, %v1581_v34 }
  0x84   : > { %1435 = vmatmul.msk.bf16.gmra.mxu0 %vm299_vm2, %v1564_v35  ;;  %1467 = vmatmul.msk.bf16.gmra.mxu3 %vm299_vm2, %v1571_v23 }
  0x85   : > { %1459 = vmatmul.msk.bf16.gmra.mxu1 %vm299_vm2, %v1563_v33 }
  0x86   : > { %1545 = vmatmul.msk.bf16.gmra.mxu2 %vm299_vm2, %v1582_v36 }
  0x91   : > { %v364_v39 = vpop.f32.mrf.mxu0 }
  0x92   : > { %v469_v41 = vpop.f32.mrf.mxu1 }
  0x93   : > { %v470_v42 = vadd.f32 %v469_v41, %v364_v39 }
  0x94   : > { %1436 = vmatmul.msk.bf16.gmra.mxu0 %vm299_vm2, %v1565_v37  ;;  %1550 = vmatmul.msk.bf16.vlgmr.msra.gmra.mxu3 %vm299_vm2, %v1587_v38 }
  0x95   : > { %1460 = vmatmul.msk.bf16.gmra.mxu1 %vm299_vm2, %v1564_v35 }
  0x96   : > { %1546 = vmatmul.msk.bf16.gmra.mxu2 %vm299_vm2, %v1583_v40 }
  0x97   : > { %v1860_v43 = vpop.f32.mrf.mxu3 }
  0x99   : > { %v729_v45 = vpop.f32.mrf.mxu2  ;;  %v366_v47 = vpop.f32.mrf.mxu0 }
  0x9a   : > { %v809_v46 = vadd.f32 %v729_v45, %v470_v42  ;;  %v471_v48 = vpop.f32.mrf.mxu1 }
  0x9b   : > { %v472_v52 = vadd.f32 %v471_v48, %v366_v47 }
  0x9c   : > { %v1868_v49 = vadd.f32 %v1865_v44, %v809_v46 }
  0x9e   : > { %v877_v50 = vmin.f32 %v1868_v49, 20.0  ;;  %vm1133_vm3 = vcmp.gt.f32.partialorder %v1868_v49, 20.0 }
  0x9f   : > { %v1871_v53 = vpop.f32.mrf.mxu3 }
  0xa0   : > { %v909_v51 = vmul.f32 1.442695, %v877_v50 }
  0xa1   : > { %v731_v54 = vpop.f32.mrf.mxu2  ;;  %v369_v58 = vpop.f32.mrf.mxu0 }
  0xa2   : > { %1605 = vpow2.f32 %v909_v51  ;;  %v810_v57 = vadd.f32 %v731_v54, %v472_v52  ;;  %v474_v60 = vpop.f32.mrf.mxu1 }
  0xa3   : > { %v475_v63 = vadd.f32 %v474_v60, %v369_v58 }
  0xa4   : > { %v1877_v61 = vadd.f32 %v1865_v44, %v810_v57  ;;  %1437 = vmatmul.msk.bf16.gmra.mxu0 %vm299_vm2, %v1566_v55  ;;  %1551 = vmatmul.msk.bf16.gmra.mxu3 %vm299_vm2, %v1588_v56 }
  0xa5   : > { %1461 = vmatmul.msk.bf16.gmra.mxu1 %vm299_vm2, %v1565_v37 }
  0xa6   : > { %v878_v62 = vmin.f32 %v1877_v61, 20.0  ;;  %1547 = vmatmul.msk.bf16.gmra.mxu2 %vm299_vm2, %v1584_v59  ;;  %vm1134_vm5 = vcmp.gt.f32.partialorder %v1877_v61, 20.0  ;;  %v1590_v59 = vld [vmem:[%s1794_s30 + $0x88] sm:$0xff] }
  0xa7   : > { %v1884_v2 = vpop.f32.mrf.mxu3 }
  0xa8   : > { %v1606_v0 = vpop.eup %1605  ;;  %v911_v1 = vmul.f32 1.442695, %v878_v62 }
  0xa9   : > { %v973_v3 = vadd.f32 2.0, %v1606_v0  ;;  %v734_v4 = vpop.f32.mrf.mxu2  ;;  %v371_v6 = vpop.f32.mrf.mxu0 }
  0xaa   : > { %1607 = vpow2.f32 %v911_v1  ;;  %v811_v5 = vadd.f32 %v734_v4, %v475_v63  ;;  %v476_v8 = vpop.f32.mrf.mxu1 }
  0xab   : > { %v1005_v7 = vmul.f32 %v1606_v0, %v973_v3  ;;  %v477_v14 = vadd.f32 %v476_v8, %v371_v6  ;;  %v1586_v0 = vld [vmem:[%s1794_s30 + $0x68] sm:$0xff] }
  0xac   : > { %v1889_v9 = vadd.f32 %v1865_v44, %v811_v5 }
  0xad   : > { %v1037_v10 = vadd.f32 2.0, %v1005_v7 }
  0xae   : > { %v879_v11 = vmin.f32 %v1889_v9, 20.0  ;;  %vm1135_vm6 = vcmp.gt.f32.partialorder %v1889_v9, 20.0 }
  0xaf   : > { %1609 = vrcp.f32 %v1037_v10  ;;  %v1892_v15 = vpop.f32.mrf.mxu3 }
  0xb0   : > { %v1608_v12 = vpop.eup %1607  ;;  %v913_v13 = vmul.f32 1.442695, %v879_v11 }
  0xb1   : > { %v974_v16 = vadd.f32 2.0, %v1608_v12  ;;  %v736_v17 = vpop.f32.mrf.mxu2  ;;  %v374_v21 = vpop.f32.mrf.mxu0 }
  0xb2   : > { %1611 = vpow2.f32 %v913_v13  ;;  %v812_v20 = vadd.f32 %v736_v17, %v477_v14  ;;  %v479_v24 = vpop.f32.mrf.mxu1 }
  0xb3   : > { %v1006_v23 = vmul.f32 %v1608_v12, %v974_v16  ;;  %v480_v31 = vadd.f32 %v479_v24, %v374_v21 }
  0xb4   : > { %v1901_v25 = vadd.f32 %v1865_v44, %v812_v20  ;;  %1438 = vmatmul.msk.bf16.gmra.mxu0 %vm299_vm2, %v1895_v18  ;;  %1552 = vmatmul.msk.bf16.gmra.mxu3 %vm299_vm2, %v1589_v19 }
  0xb5   : > { %v1610_v26 = vpop.eup %1609  ;;  %v1038_v27 = vadd.f32 2.0, %v1006_v23  ;;  %1462 = vmatmul.msk.bf16.gmra.mxu1 %vm299_vm2, %v1566_v55 }
  0xb6   : > { %v1101_v28 = vmul.f32 %v1610_v26, %v1005_v7  ;;  %v880_v30 = vmin.f32 %v1901_v25, 20.0  ;;  %1548 = vmatmul.msk.bf16.gmra.mxu2 %vm299_vm2, %v1585_v22  ;;  %vm1136_vm7 = vcmp.gt.f32.partialorder %v1901_v25, 20.0 }
  0xb7   : > { %1613 = vrcp.f32 %v1038_v27  ;;  %v1910_v35 = vpop.f32.mrf.mxu3 }
  0xb8   : > { %v1612_v32 = vpop.eup %1611  ;;  %v1165_v33 = vmul.f32 %v1101_v28, %v1868_v49  ;;  %v915_v34 = vmul.f32 1.442695, %v880_v30 }
  0xb9   : > { %v975_v36 = vadd.f32 2.0, %v1612_v32  ;;  %v739_v37 = vpop.f32.mrf.mxu2  ;;  %v376_v40 = vpop.f32.mrf.mxu0 }
  0xba   : > { %v1197_v38 = vsel %vm1133_vm3, %v1868_v49, %v1165_v33  ;;  %1615 = vpow2.f32 %v915_v34  ;;  %v813_v39 = vadd.f32 %v739_v37, %v480_v31  ;;  %v481_v45 = vpop.f32.mrf.mxu1 }
  0xbb   : > { %v1229_v41 = vpack.c.bf16 %v1197_v38, %v1197_v38  ;;  %v1007_v42 = vmul.f32 %v1612_v32, %v975_v36  ;;  %v482_v55 = vadd.f32 %v481_v45, %v376_v40 }
  0xbc   : > { %v1920_v46 = vadd.f32 %v1865_v44, %v813_v39 }
  0xbd   : > { %v1614_v47 = vpop.eup %1613  ;;  %1262 = vst.msk [vmem:[%s1916_s10] sm:$0xf] %vm1261_vm4, %v1229_v41  ;;  %v1039_v48 = vadd.f32 2.0, %v1007_v42 }
  0xbe   : > { %v1102_v50 = vmul.f32 %v1614_v47, %v1006_v23  ;;  %v881_v51 = vmin.f32 %v1920_v46, 20.0  ;;  %vm1137_vm8 = vcmp.gt.f32.partialorder %v1920_v46, 20.0 }
  0xbf   : > { %1617 = vrcp.f32 %v1039_v48  ;;  %v1926_v56 = vpop.f32.mrf.mxu3 }
  0xc0   : > { %v1616_v49 = vpop.eup %1615  ;;  %v1166_v52 = vmul.f32 %v1102_v50, %v1877_v61  ;;  %v917_v54 = vmul.f32 1.442695, %v881_v51 }
  0xc1   : > { %v976_v57 = vadd.f32 2.0, %v1616_v49  ;;  %v741_v58 = vpop.f32.mrf.mxu2  ;;  %v379_v63 = vpop.f32.mrf.mxu0 }
  0xc2   : > { %v1198_v60 = vsel %vm1134_vm5, %v1877_v61, %v1166_v52  ;;  %1619 = vpow2.f32 %v917_v54  ;;  %v814_v62 = vadd.f32 %v741_v58, %v482_v55  ;;  %v484_v4 = vpop.f32.mrf.mxu1 }
  0xc3   : > { %v1230_v1 = vpack.c.bf16 %v1198_v60, %v1198_v60  ;;  %v1008_v3 = vmul.f32 %v1616_v49, %v976_v57  ;;  %v485_v10 = vadd.f32 %v484_v4, %v379_v63 }
  0xc4   : > { %v1933_v5 = vadd.f32 %v1865_v44, %v814_v62  ;;  %1439 = vmatmul.msk.bf16.gmra.mxu0 %vm299_vm2, %v1827_v29  ;;  %1553 = vmatmul.msk.bf16.gmra.mxu3 %vm299_vm2, %v1590_v59 }
  0xc5   : > { %v1618_v6 = vpop.eup %1617  ;;  %1263 = vst.msk [vmem:[%s1916_s10 + $0x4] sm:$0xf] %vm1261_vm4, %v1230_v1  ;;  %v1040_v7 = vadd.f32 2.0, %v1008_v3  ;;  %1463 = vmatmul.msk.bf16.gmra.mxu1 %vm299_vm2, %v1895_v18 }
  0xc6   : > { %v1103_v61 = vmul.f32 %v1618_v6, %v1007_v42  ;;  %v882_v8 = vmin.f32 %v1933_v5, 20.0  ;;  %1549 = vmatmul.msk.bf16.gmra.mxu2 %vm299_vm2, %v1586_v0  ;;  %vm1138_vm9 = vcmp.gt.f32.partialorder %v1933_v5, 20.0 }
  0xc7   : > { %1621 = vrcp.f32 %v1040_v7  ;;  %v1945_v14 = vpop.f32.mrf.mxu3 }
  0xc8   : > { %v1620_v11 = vpop.eup %1619  ;;  %v1167_v12 = vmul.f32 %v1103_v61, %v1889_v9  ;;  %v919_v13 = vmul.f32 1.442695, %v882_v8 }
  0xc9   : > { %v977_v29 = vadd.f32 2.0, %v1620_v11  ;;  %v744_v16 = vpop.f32.mrf.mxu2  ;;  %v381_v20 = vpop.f32.mrf.mxu0 }
  0xca   : > { %v1199_v17 = vsel %vm1135_vm6, %v1889_v9, %v1167_v12  ;;  %1623 = vpow2.f32 %v919_v13  ;;  %v815_v19 = vadd.f32 %v744_v16, %v485_v10  ;;  %v486_v22 = vpop.f32.mrf.mxu1 }
  0xcb   : > { %v1231_v18 = vpack.c.bf16 %v1199_v17, %v1199_v17  ;;  %v1009_v21 = vmul.f32 %v1620_v11, %v977_v29  ;;  %v487_v32 = vadd.f32 %v486_v22, %v381_v20 }
  0xcc   : > { %v1950_v23 = vadd.f32 %v1865_v44, %v815_v19 }
  0xcd   : > { %v1622_v24 = vpop.eup %1621  ;;  %1264 = vst.msk [vmem:[%s1916_s10 + $0x8] sm:$0xf] %vm1261_vm4, %v1231_v18  ;;  %v1041_v26 = vadd.f32 2.0, %v1009_v21 }
  0xce   : > { %v1104_v27 = vmul.f32 %v1622_v24, %v1008_v3  ;;  %v883_v28 = vmin.f32 %v1950_v23, 20.0  ;;  %vm1139_vm10 = vcmp.gt.f32.partialorder %v1950_v23, 20.0 }
  0xcf   : > { %1625 = vrcp.f32 %v1041_v26  ;;  %v1956_v33 = vpop.f32.mrf.mxu3 }
  0xd0   : > { %v1624_v30 = vpop.eup %1623  ;;  %v1168_v9 = vmul.f32 %v1104_v27, %v1901_v25  ;;  %v921_v31 = vmul.f32 1.442695, %v883_v28 }
  0xd1   : > { %v978_v34 = vadd.f32 2.0, %v1624_v30  ;;  %v746_v36 = vpop.f32.mrf.mxu2  ;;  %v384_v39 = vpop.f32.mrf.mxu0 }
  0xd2   : > { %v1200_v37 = vsel %vm1136_vm7, %v1901_v25, %v1168_v9  ;;  %1627 = vpow2.f32 %v921_v31  ;;  %v816_v38 = vadd.f32 %v746_v36, %v487_v32  ;;  %v489_v42 = vpop.f32.mrf.mxu1 }
  0xd3   : > { %v1232_v40 = vpack.c.bf16 %v1200_v37, %v1200_v37  ;;  %v1010_v41 = vmul.f32 %v1624_v30, %v978_v34  ;;  %v490_v49 = vadd.f32 %v489_v42, %v384_v39 }
  0xd4   : > { %v1961_v45 = vadd.f32 %v1865_v44, %v816_v38 }
  0xd5   : > { %v1626_v47 = vpop.eup %1625  ;;  %1265 = vst.msk [vmem:[%s1916_s10 + $0xc] sm:$0xf] %vm1261_vm4, %v1232_v40  ;;  %v1042_v48 = vadd.f32 2.0, %v1010_v41 }
  0xd6   : > { %v1105_v50 = vmul.f32 %v1626_v47, %v1009_v21  ;;  %v884_v51 = vmin.f32 %v1961_v45, 20.0  ;;  %vm1140_vm11 = vcmp.gt.f32.partialorder %v1961_v45, 20.0 }
  0xd7   : > { %1629 = vrcp.f32 %v1042_v48  ;;  %v1967_v55 = vpop.f32.mrf.mxu3 }
  0xd8   : > { %v1628_v52 = vpop.eup %1627  ;;  %v1169_v25 = vmul.f32 %v1105_v50, %v1920_v46  ;;  %v923_v54 = vmul.f32 1.442695, %v884_v51 }
  0xd9   : > { %v979_v57 = vadd.f32 2.0, %v1628_v52  ;;  %v749_v58 = vpop.f32.mrf.mxu2  ;;  %v386_v62 = vpop.f32.mrf.mxu0 }
  0xda   : > { %v1201_v59 = vsel %vm1137_vm8, %v1920_v46, %v1169_v25  ;;  %1631 = vpow2.f32 %v923_v54  ;;  %v817_v60 = vadd.f32 %v749_v58, %v490_v49  ;;  %v491_v1 = vpop.f32.mrf.mxu1 }
  0xdb   : > { %v1233_v63 = vpack.c.bf16 %v1201_v59, %v1201_v59  ;;  %v1011_v0 = vmul.f32 %v1628_v52, %v979_v57  ;;  %v492_v11 = vadd.f32 %v491_v1, %v386_v62 }
  0xdc   : > { %v1972_v3 = vadd.f32 %v1865_v44, %v817_v60 }
  0xdd   : > { %v1630_v4 = vpop.eup %1629  ;;  %1266 = vst.msk [vmem:[%s1916_s10 + $0x10] sm:$0xf] %vm1261_vm4, %v1233_v63  ;;  %v1043_v6 = vadd.f32 2.0, %v1011_v0 }
  0xde   : > { %v1106_v7 = vmul.f32 %v1630_v4, %v1010_v41  ;;  %v885_v61 = vmin.f32 %v1972_v3, 20.0  ;;  %vm1141_vm12 = vcmp.gt.f32.partialorder %v1972_v3, 20.0 }
  0xdf   : > { %1633 = vrcp.f32 %v1043_v6  ;;  %v1978_v12 = vpop.f32.mrf.mxu3 }
  0xe0   : > { %v1632_v8 = vpop.eup %1631  ;;  %v1170_v46 = vmul.f32 %v1106_v7, %v1933_v5  ;;  %v925_v10 = vmul.f32 1.442695, %v885_v61 }
  0xe1   : > { %v980_v13 = vadd.f32 2.0, %v1632_v8  ;;  %v751_v29 = vpop.f32.mrf.mxu2  ;;  %v389_v19 = vpop.f32.mrf.mxu0 }
  0xe2   : > { %v1202_v16 = vsel %vm1138_vm9, %v1933_v5, %v1170_v46  ;;  %1635 = vpow2.f32 %v925_v10  ;;  %v818_v17 = vadd.f32 %v751_v29, %v492_v11  ;;  %v494_v21 = vpop.f32.mrf.mxu1 }
  0xe3   : > { %v1234_v20 = vpack.c.bf16 %v1202_v16, %v1202_v16  ;;  %v1012_v18 = vmul.f32 %v1632_v8, %v980_v13  ;;  %v495_v30 = vadd.f32 %v494_v21, %v389_v19 }
  0xe4   : > { %v1983_v22 = vadd.f32 %v1865_v44, %v818_v17 }
  0xe5   : > { %v1634_v24 = vpop.eup %1633  ;;  %1267 = vst.msk [vmem:[%s1916_s10 + $0x14] sm:$0xf] %vm1261_vm4, %v1234_v20  ;;  %v1044_v26 = vadd.f32 2.0, %v1012_v18 }
  0xe6   : > { %v1107_v27 = vmul.f32 %v1634_v24, %v1011_v0  ;;  %v886_v28 = vmin.f32 %v1983_v22, 20.0  ;;  %vm1142_vm13 = vcmp.gt.f32.partialorder %v1983_v22, 20.0 }
  0xe7   : > { %1637 = vrcp.f32 %v1044_v26  ;;  %v1989_v32 = vpop.f32.mrf.mxu3 }
  0xe8   : > { %v1636_v9 = vpop.eup %1635  ;;  %v1171_v5 = vmul.f32 %v1107_v27, %v1950_v23  ;;  %v927_v31 = vmul.f32 1.442695, %v886_v28 }
  0xe9   : > { %v981_v34 = vadd.f32 2.0, %v1636_v9  ;;  %v754_v36 = vpop.f32.mrf.mxu2  ;;  %v391_v39 = vpop.f32.mrf.mxu0 }
  0xea   : > { %v1203_v37 = vsel %vm1139_vm10, %v1950_v23, %v1171_v5  ;;  %1639 = vpow2.f32 %v927_v31  ;;  %v819_v38 = vadd.f32 %v754_v36, %v495_v30  ;;  %v496_v42 = vpop.f32.mrf.mxu1 }
  0xeb   : > { %v1235_v40 = vpack.c.bf16 %v1203_v37, %v1203_v37  ;;  %v1013_v41 = vmul.f32 %v1636_v9, %v981_v34  ;;  %v497_v54 = vadd.f32 %v496_v42, %v391_v39 }
  0xec   : > { %v1994_v47 = vadd.f32 %v1865_v44, %v819_v38 }
  0xed   : > { %v1638_v48 = vpop.eup %1637  ;;  %1268 = vst.msk [vmem:[%s1916_s10 + $0x18] sm:$0xf] %vm1261_vm4, %v1235_v40  ;;  %v1045_v50 = vadd.f32 2.0, %v1013_v41 }
  0xee   : > { %v1108_v51 = vmul.f32 %v1638_v48, %v1012_v18  ;;  %v887_v49 = vmin.f32 %v1994_v47, 20.0  ;;  %vm1143_vm14 = vcmp.gt.f32.partialorder %v1994_v47, 20.0 }
  0xef   : > { %1641 = vrcp.f32 %v1045_v50  ;;  %v2000_v57 = vpop.f32.mrf.mxu3 }
  0xf0   : > { %v1640_v52 = vpop.eup %1639  ;;  %v1172_v23 = vmul.f32 %v1108_v51, %v1961_v45  ;;  %v929_v25 = vmul.f32 1.442695, %v887_v49 }
  0xf1   : > { %v982_v58 = vadd.f32 2.0, %v1640_v52  ;;  %v756_v59 = vpop.f32.mrf.mxu2  ;;  %v394_v63 = vpop.f32.mrf.mxu0 }
  0xf2   : > { %v1204_v60 = vsel %vm1140_vm11, %v1961_v45, %v1172_v23  ;;  %1643 = vpow2.f32 %v929_v25  ;;  %v820_v62 = vadd.f32 %v756_v59, %v497_v54  ;;  %v499_v4 = vpop.f32.mrf.mxu1 }
  0xf3   : > { %v1236_v0 = vpack.c.bf16 %v1204_v60, %v1204_v60  ;;  %v1014_v1 = vmul.f32 %v1640_v52, %v982_v58  ;;  %v500_v10 = vadd.f32 %v499_v4, %v394_v63 }
  0xf4   : > { %v2005_v6 = vadd.f32 %v1865_v44, %v820_v62 }
  0xf5   : > { %v1642_v7 = vpop.eup %1641  ;;  %1269 = vst.msk [vmem:[%s1916_s10 + $0x1c] sm:$0xf] %vm1261_vm4, %v1236_v0  ;;  %v1046_v61 = vadd.f32 2.0, %v1014_v1 }
  0xf6   : > { %v1109_v8 = vmul.f32 %v1642_v7, %v1013_v41  ;;  %v888_v46 = vmin.f32 %v2005_v6, 20.0  ;;  %vm1144_vm15 = vcmp.gt.f32.partialorder %v2005_v6, 20.0 }
  0xf7   : > { %1645 = vrcp.f32 %v1046_v61  ;;  %v2011_v29 = vpop.f32.mrf.mxu3 }
  0xf8   : > { %v1644_v11 = vpop.eup %1643  ;;  %v1173_v45 = vmul.f32 %v1109_v8, %v1972_v3  ;;  %v931_v13 = vmul.f32 1.442695, %v888_v46 }
  0xf9   : > { %v983_v16 = vadd.f32 2.0, %v1644_v11  ;;  %v759_v17 = vpop.f32.mrf.mxu2  ;;  %v396_v18 = vpop.f32.mrf.mxu0 }
  0xfa   : > { %v1205_v19 = vsel %vm1141_vm12, %v1972_v3, %v1173_v45  ;;  %1647 = vpow2.f32 %v931_v13  ;;  %v821_v20 = vadd.f32 %v759_v17, %v500_v10  ;;  %v501_v26 = vpop.f32.mrf.mxu1 }
  0xfb   : > { %v1237_v21 = vpack.c.bf16 %v1205_v19, %v1205_v19  ;;  %v1015_v24 = vmul.f32 %v1644_v11, %v983_v16  ;;  %v502_v36 = vadd.f32 %v501_v26, %v396_v18 }
  0xfc   : > { %v2016_v27 = vadd.f32 %v1865_v44, %v821_v20 }
  0xfd   : > { %v1646_v28 = vpop.eup %1645  ;;  %1270 = vst.msk [vmem:[%s1916_s10 + $0x20] sm:$0xf] %vm1261_vm4, %v1237_v21  ;;  %v1047_v30 = vadd.f32 2.0, %v1015_v24 }
  0xfe   : > { %v1110_v9 = vmul.f32 %v1646_v28, %v1014_v1  ;;  %v889_v5 = vmin.f32 %v2016_v27, 20.0  ;;  %vm1145_vm0 = vcmp.gt.f32.partialorder %v2016_v27, 20.0 }
  0xff   : > { %1649 = vrcp.f32 %v1047_v30  ;;  %v2022_v37 = vpop.f32.mrf.mxu3 }
 0x100   : > { %v1648_v31 = vpop.eup %1647  ;;  %v1174_v3 = vmul.f32 %v1110_v9, %v1983_v22  ;;  %v933_v34 = vmul.f32 1.442695, %v889_v5 }
 0x101   : > { %v984_v38 = vadd.f32 2.0, %v1648_v31  ;;  %v761_v39 = vpop.f32.mrf.mxu2  ;;  %v399_v42 = vpop.f32.mrf.mxu0 }
 0x102   : > { %v1206_v40 = vsel %vm1142_vm13, %v1983_v22, %v1174_v3  ;;  %1651 = vpow2.f32 %v933_v34  ;;  %v822_v41 = vadd.f32 %v761_v39, %v502_v36  ;;  %v504_v51 = vpop.f32.mrf.mxu1 }
 0x103   : > { %v1238_v48 = vpack.c.bf16 %v1206_v40, %v1206_v40  ;;  %v1016_v50 = vmul.f32 %v1648_v31, %v984_v38  ;;  %v505_v58 = vadd.f32 %v504_v51, %v399_v42 }
 0x104   : > { %v2027_v49 = vadd.f32 %v1865_v44, %v822_v41 }
 0x105   : > { %v1650_v52 = vpop.eup %1649  ;;  %1271 = vst.msk [vmem:[%s1916_s10 + $0x24] sm:$0xf] %vm1261_vm4, %v1238_v48  ;;  %v1048_v23 = vadd.f32 2.0, %v1016_v50 }
 0x106   : > { %v1111_v25 = vmul.f32 %v1650_v52, %v1015_v24  ;;  %v890_v54 = vmin.f32 %v2027_v49, 20.0  ;;  %vm1146_vm1 = vcmp.gt.f32.partialorder %v2027_v49, 20.0 }
 0x107   : > { %1653 = vrcp.f32 %v1048_v23  ;;  %v2033_v62 = vpop.f32.mrf.mxu3 }
 0x108   : > { %v1652_v59 = vpop.eup %1651  ;;  %v1175_v22 = vmul.f32 %v1111_v25, %v1994_v47  ;;  %v935_v60 = vmul.f32 1.442695, %v890_v54 }
 0x109   : > { %v985_v63 = vadd.f32 2.0, %v1652_v59  ;;  %v764_v0 = vpop.f32.mrf.mxu2  ;;  %v401_v7 = vpop.f32.mrf.mxu0 }
 0x10a   : > { %v1207_v1 = vsel %vm1143_vm14, %v1994_v47, %v1175_v22  ;;  %1655 = vpow2.f32 %v935_v60  ;;  %v823_v4 = vadd.f32 %v764_v0, %v505_v58  ;;  %v506_v46 = vpop.f32.mrf.mxu1 }
 0x10b   : > { %v1239_v61 = vpack.c.bf16 %v1207_v1, %v1207_v1  ;;  %v1017_v8 = vmul.f32 %v1652_v59, %v985_v63  ;;  %v507_v20 = vadd.f32 %v506_v46, %v401_v7  ;;  %v532_v7 = vadd.f32 %v1978_v12, %v1871_v53 }
 0x10c   : > { %v2038_v10 = vadd.f32 %v1865_v44, %v823_v4 }
 0x10d   : > { %v1654_v11 = vpop.eup %1653  ;;  %1272 = vst.msk [vmem:[%s1916_s10 + $0x28] sm:$0xf] %vm1261_vm4, %v1239_v61  ;;  %v1049_v45 = vadd.f32 2.0, %v1017_v8 }
 0x10e   : > { %v1112_v13 = vmul.f32 %v1654_v11, %v1016_v50  ;;  %v891_v16 = vmin.f32 %v2038_v10, 20.0  ;;  %vm1147_vm2 = vcmp.gt.f32.partialorder %v2038_v10, 20.0 }
 0x10f   : > { %1657 = vrcp.f32 %v1049_v45  ;;  %v2044_v18 = vpop.f32.mrf.mxu3 }
 0x110   : > { %v1656_v17 = vpop.eup %1655  ;;  %v1176_v47 = vmul.f32 %v1112_v13, %v2005_v6  ;;  %v937_v19 = vmul.f32 1.442695, %v891_v16 }
 0x111   : > { %v986_v21 = vadd.f32 2.0, %v1656_v17  ;;  %v766_v24 = vpop.f32.mrf.mxu2  ;;  %v404_v30 = vpop.f32.mrf.mxu0 }
 0x112   : > { %v1208_v26 = vsel %vm1144_vm15, %v2005_v6, %v1176_v47  ;;  %1659 = vpow2.f32 %v937_v19  ;;  %v824_v28 = vadd.f32 %v766_v24, %v507_v20  ;;  %v509_v31 = vpop.f32.mrf.mxu1  ;;  %v530_v6 = vadd.f32 %v1967_v55, %v1860_v43 }
 0x113   : > { %v1240_v9 = vpack.c.bf16 %v1208_v26, %v1208_v26  ;;  %v1018_v5 = vmul.f32 %v1656_v17, %v986_v21  ;;  %v510_v40 = vadd.f32 %v509_v31, %v404_v30 }
 0x114   : > { %v2049_v3 = vadd.f32 %v1865_v44, %v824_v28 }
 0x115   : > { %v1658_v34 = vpop.eup %1657  ;;  %1273 = vst.msk [vmem:[%s1916_s10 + $0x2c] sm:$0xf] %vm1261_vm4, %v1240_v9  ;;  %v1050_v36 = vadd.f32 2.0, %v1018_v5 }
 0x116   : > { %v1113_v38 = vmul.f32 %v1658_v34, %v1017_v8  ;;  %v892_v39 = vmin.f32 %v2049_v3, 20.0  ;;  %vm1148_vm3 = vcmp.gt.f32.partialorder %v2049_v3, 20.0 }
 0x117   : > { %1661 = vrcp.f32 %v1050_v36  ;;  %v789_v50 = vpop.f32.mrf.mxu3 }
 0x118   : > { %v1660_v41 = vpop.eup %1659  ;;  %v1177_v42 = vmul.f32 %v1113_v38, %v2016_v27  ;;  %v939_v48 = vmul.f32 1.442695, %v892_v39  ;;  %v833_v23 = vadd.f32 %v789_v50, %v530_v6  ;;  %v535_v38 = vadd.f32 %v1989_v32, %v1884_v2 }
 0x119   : > { %v987_v51 = vadd.f32 2.0, %v1660_v41  ;;  %v769_v52 = vpop.f32.mrf.mxu2  ;;  %v406_v58 = vpop.f32.mrf.mxu0 }
 0x11a   : > { %v1209_v25 = vsel %vm1145_vm0, %v2016_v27, %v1177_v42  ;;  %1663 = vpow2.f32 %v939_v48  ;;  %v825_v54 = vadd.f32 %v769_v52, %v510_v40  ;;  %v2060_v43 = vadd.f32 %v1865_v44, %v833_v23  ;;  %v511_v55 = vpop.f32.mrf.mxu1 }
 0x11b   : > { %v1241_v59 = vpack.c.bf16 %v1209_v25, %v1209_v25  ;;  %v1019_v22 = vmul.f32 %v1660_v41, %v987_v51  ;;  %v512_v45 = vadd.f32 %v511_v55, %v406_v58 }
 0x11c   : > { %v2063_v60 = vadd.f32 %v1865_v44, %v825_v54  ;;  %v901_v1 = vmin.f32 %v2060_v43, 20.0  ;;  %vm1157_vm5 = vcmp.gt.f32.partialorder %v2060_v43, 20.0 }
 0x11d   : > { %v1662_v63 = vpop.eup %1661  ;;  %1274 = vst.msk [vmem:[%s1916_s10 + $0x30] sm:$0xf] %vm1261_vm4, %v1241_v59  ;;  %v1051_v0 = vadd.f32 2.0, %v1019_v22 }
 0x11e   : > { %v1114_v4 = vmul.f32 %v1662_v63, %v1018_v5  ;;  %v893_v27 = vmin.f32 %v2063_v60, 20.0  ;;  %v957_v61 = vmul.f32 1.442695, %v901_v1  ;;  %vm1149_vm6 = vcmp.gt.f32.partialorder %v2063_v60, 20.0 }
 0x11f   : > { %1665 = vrcp.f32 %v1051_v0  ;;  %v791_v13 = vpop.f32.mrf.mxu3 }
 0x120   : > { %v1664_v8 = vpop.eup %1663  ;;  %v1178_v46 = vmul.f32 %v1114_v4, %v2027_v49  ;;  %v941_v11 = vmul.f32 1.442695, %v893_v27  ;;  %1667 = vpow2.f32 %v957_v61  ;;  %v834_v47 = vadd.f32 %v791_v13, %v532_v7 }
 0x121   : > { %v988_v16 = vadd.f32 2.0, %v1664_v8  ;;  %v771_v17 = vpop.f32.mrf.mxu2  ;;  %v409_v53 = vpop.f32.mrf.mxu0  ;;  %v537_v61 = vadd.f32 %v2000_v57, %v1892_v15 }
 0x122   : > { %v1210_v19 = vsel %vm1146_vm1, %v2027_v49, %v1178_v46  ;;  %1669 = vpow2.f32 %v941_v11  ;;  %v826_v20 = vadd.f32 %v771_v17, %v512_v45  ;;  %v2075_v24 = vadd.f32 %v1865_v44, %v834_v47  ;;  %v514_v26 = vpop.f32.mrf.mxu1 }
 0x123   : > { %v1242_v12 = vpack.c.bf16 %v1210_v19, %v1210_v19  ;;  %v1020_v21 = vmul.f32 %v1664_v8, %v988_v16  ;;  %v515_v34 = vadd.f32 %v514_v26, %v409_v53 }
 0x124   : > { %v2078_v28 = vadd.f32 %v1865_v44, %v826_v20  ;;  %v902_v5 = vmin.f32 %v2075_v24, 20.0  ;;  %vm1158_vm7 = vcmp.gt.f32.partialorder %v2075_v24, 20.0 }
 0x125   : > { %v1666_v30 = vpop.eup %1665  ;;  %1275 = vst.msk [vmem:[%s1916_s10 + $0x34] sm:$0xf] %vm1261_vm4, %v1242_v12  ;;  %v1052_v9 = vadd.f32 2.0, %v1020_v21 }
 0x126   : > { %v1115_v31 = vmul.f32 %v1666_v30, %v1019_v22  ;;  %v894_v49 = vmin.f32 %v2078_v28, 20.0  ;;  %v1668_v36 = vpop.eup %1667  ;;  %v959_v39 = vmul.f32 1.442695, %v902_v5  ;;  %vm1150_vm8 = vcmp.gt.f32.partialorder %v2078_v28, 20.0 }
 0x127   : > { %1671 = vrcp.f32 %v1052_v9  ;;  %v997_v41 = vadd.f32 2.0, %v1668_v36  ;;  %v794_v48 = vpop.f32.mrf.mxu3 }
 0x128   : > { %v1670_v40 = vpop.eup %1669  ;;  %v1179_v6 = vmul.f32 %v1115_v31, %v2038_v10  ;;  %v943_v42 = vmul.f32 1.442695, %v894_v49  ;;  %1673 = vpow2.f32 %v959_v39  ;;  %v835_v52 = vadd.f32 %v794_v48, %v535_v38 }
 0x129   : > { %v989_v50 = vadd.f32 2.0, %v1670_v40  ;;  %v774_v51 = vpop.f32.mrf.mxu2  ;;  %v1029_v25 = vmul.f32 %v1668_v36, %v997_v41  ;;  %v411_v32 = vpop.f32.mrf.mxu0  ;;  %v540_v36 = vadd.f32 %v2011_v29, %v1910_v35 }
 0x12a   : > { %v1211_v23 = vsel %vm1147_vm2, %v2038_v10, %v1179_v6  ;;  %1675 = vpow2.f32 %v943_v42  ;;  %v827_v2 = vadd.f32 %v774_v51, %v515_v34  ;;  %v2090_v59 = vadd.f32 %v1865_v44, %v835_v52  ;;  %v516_v22 = vpop.f32.mrf.mxu1 }
 0x12b   : > { %v1243_v54 = vpack.c.bf16 %v1211_v23, %v1211_v23  ;;  %v1021_v58 = vmul.f32 %v1670_v40, %v989_v50  ;;  %v1061_v55 = vadd.f32 2.0, %v1029_v25  ;;  %v517_v16 = vadd.f32 %v516_v22, %v411_v32 }
 0x12c   : > { %v2093_v63 = vadd.f32 %v1865_v44, %v827_v2  ;;  %v903_v10 = vmin.f32 %v2090_v59, 20.0  ;;  %vm1159_vm10 = vcmp.gt.f32.partialorder %v2090_v59, 20.0 }
 0x12d   : > { %v1672_v0 = vpop.eup %1671  ;;  %1276 = vst.msk [vmem:[%s1916_s10 + $0x38] sm:$0xf] %vm1261_vm4, %v1243_v54  ;;  %v1053_v1 = vadd.f32 2.0, %v1021_v58  ;;  %1677 = vrcp.f32 %v1061_v55 }
 0x12e   : > { %v1116_v4 = vmul.f32 %v1672_v0, %v1020_v21  ;;  %v895_v27 = vmin.f32 %v2093_v63, 20.0  ;;  %v1674_v7 = vpop.eup %1673  ;;  %v961_v8 = vmul.f32 1.442695, %v903_v10  ;;  %vm1151_vm9 = vcmp.gt.f32.partialorder %v2093_v63, 20.0 }
 0x12f   : > { %1679 = vrcp.f32 %v1053_v1  ;;  %v998_v45 = vadd.f32 2.0, %v1674_v7  ;;  %v796_v17 = vpop.f32.mrf.mxu3 }
 0x130   : > { %v1676_v46 = vpop.eup %1675  ;;  %v1180_v11 = vmul.f32 %v1116_v4, %v2049_v3  ;;  %v945_v13 = vmul.f32 1.442695, %v895_v27  ;;  %1681 = vpow2.f32 %v961_v8  ;;  %v836_v20 = vadd.f32 %v796_v17, %v537_v61 }
 0x131   : > { %v990_v47 = vadd.f32 2.0, %v1676_v46  ;;  %v776_v19 = vpop.f32.mrf.mxu2  ;;  %v1030_v12 = vmul.f32 %v1674_v7, %v998_v45  ;;  %v414_v57 = vpop.f32.mrf.mxu0 }
 0x132   : > { %v1212_v53 = vsel %vm1148_vm3, %v2049_v3, %v1180_v11  ;;  %1683 = vpow2.f32 %v945_v13  ;;  %v828_v15 = vadd.f32 %v776_v19, %v517_v16  ;;  %v2105_v30 = vadd.f32 %v1865_v44, %v836_v20  ;;  %v519_v9 = vpop.f32.mrf.mxu1 }
 0x133   : > { %v1244_v21 = vpack.c.bf16 %v1212_v53, %v1212_v53  ;;  %v1022_v26 = vmul.f32 %v1676_v46, %v990_v47  ;;  %v1678_v5 = vpop.eup %1677  ;;  %v1062_v31 = vadd.f32 2.0, %v1030_v12  ;;  %v520_v50 = vadd.f32 %v519_v9, %v414_v57 }
 0x134   : > { %v2108_v49 = vadd.f32 %v1865_v44, %v828_v15  ;;  %v1125_v3 = vmul.f32 %v1678_v5, %v1029_v25  ;;  %v904_v39 = vmin.f32 %v2105_v30, 20.0  ;;  %v542_v13 = vadd.f32 %v2022_v37, %v1926_v56 }
 0x135   : > { %v1680_v34 = vpop.eup %1679  ;;  %1277 = vst.msk [vmem:[%s1916_s10 + $0x3c] sm:$0xf] %vm1261_vm4, %v1244_v21  ;;  %v1054_v38 = vadd.f32 2.0, %v1022_v26  ;;  %1685 = vrcp.f32 %v1062_v31  ;;  %vm1160_vm11 = vcmp.gt.f32.partialorder %v2105_v30, 20.0 }
 0x136   : > { %v1117_v40 = vmul.f32 %v1680_v34, %v1021_v58  ;;  %v896_v6 = vmin.f32 %v2108_v49, 20.0  ;;  %v1682_v41 = vpop.eup %1681  ;;  %v1189_v42 = vmul.f32 %v1125_v3, %v2060_v43  ;;  %v963_v48 = vmul.f32 1.442695, %v904_v39 }
 0x137   : > { %1687 = vrcp.f32 %v1054_v38  ;;  %v999_v29 = vadd.f32 2.0, %v1682_v41  ;;  %v799_v23 = vpop.f32.mrf.mxu3  ;;  %vm1152_vm12 = vcmp.gt.f32.partialorder %v2108_v49, 20.0 }
 0x138   : > { %v1684_v51 = vpop.eup %1683  ;;  %v1181_v35 = vmul.f32 %v1117_v40, %v2063_v60  ;;  %v947_v52 = vmul.f32 1.442695, %v896_v6  ;;  %v1221_v25 = vsel %vm1157_vm5, %v2060_v43, %v1189_v42  ;;  %1689 = vpow2.f32 %v963_v48 }
 0x139   : > { %v991_v2 = vadd.f32 2.0, %v1684_v51  ;;  %v779_v32 = vpop.f32.mrf.mxu2  ;;  %v837_v54 = vadd.f32 %v799_v23, %v540_v36  ;;  %v1253_v22 = vpack.c.bf16 %v1221_v25, %v1221_v25  ;;  %v1031_v55 = vmul.f32 %v1682_v41, %v999_v29  ;;  %v416_v0 = vpop.f32.mrf.mxu0  ;;  %v2147_v41 = vld [vmem:[%s2246_s2] ss:$0 sm:$0xff] }
 0x13a   : > { %v1213_v58 = vsel %vm1149_vm6, %v2063_v60, %v1181_v35  ;;  %1691 = vpow2.f32 %v947_v52  ;;  %v829_v4 = vadd.f32 %v779_v32, %v520_v50  ;;  %v521_v7 = vpop.f32.mrf.mxu1  ;;  %v545_v35 = vadd.f32 %v2033_v62, %v1945_v14 }
 0x13b   : > { %v1245_v1 = vpack.c.bf16 %v1213_v58, %v1213_v58  ;;  %v1023_v10 = vmul.f32 %v1684_v51, %v991_v2  ;;  %v2123_v27 = vadd.f32 %v1865_v44, %v837_v54  ;;  %v1686_v43 = vpop.eup %1685  ;;  %1286 = vst.msk [vmem:[%s1916_s10 + $0x60] sm:$0xf] %vm1261_vm4, %v1253_v22  ;;  %v1063_v61 = vadd.f32 2.0, %v1031_v55 }
 0x13c   : > { %v1126_v46 = vmul.f32 %v1686_v43, %v1030_v12  ;;  %v2130_v11 = vadd.f32 %v1865_v44, %v829_v4  ;;  %v522_v15 = vadd.f32 %v521_v7, %v416_v0 }
 0x13d   : > { %v1688_v8 = vpop.eup %1687  ;;  %1278 = vst.msk [vmem:[%s1916_s10 + $0x40] sm:$0xf] %vm1261_vm4, %v1245_v1  ;;  %v1055_v60 = vadd.f32 2.0, %v1023_v10  ;;  %v905_v45 = vmin.f32 %v2123_v27, 20.0  ;;  %1693 = vrcp.f32 %v1063_v61  ;;  %vm1161_vm13 = vcmp.gt.f32.partialorder %v2123_v27, 20.0 }
 0x13e   : > { %v1118_v16 = vmul.f32 %v1688_v8, %v1022_v26  ;;  %v1690_v17 = vpop.eup %1689  ;;  %v1190_v47 = vmul.f32 %v1126_v46, %v2075_v24  ;;  %v897_v19 = vmin.f32 %v2130_v11, 20.0  ;;  %vm1153_vm14 = vcmp.gt.f32.partialorder %v2130_v11, 20.0 }
 0x13f   : > { %1695 = vrcp.f32 %v1055_v60  ;;  %v1000_v53 = vadd.f32 2.0, %v1690_v17  ;;  %v965_v12 = vmul.f32 1.442695, %v905_v45  ;;  %v801_v57 = vpop.f32.mrf.mxu3 }
 0x140   : > { %v1692_v20 = vpop.eup %1691  ;;  %v1182_v44 = vmul.f32 %v1118_v16, %v2078_v28  ;;  %v1222_v56 = vsel %vm1158_vm7, %v2075_v24, %v1190_v47  ;;  %v949_v21 = vmul.f32 1.442695, %v897_v19  ;;  %v838_v9 = vadd.f32 %v801_v57, %v542_v13 }
 0x141   : > { %v992_v37 = vadd.f32 2.0, %v1692_v20  ;;  %v781_v26 = vpop.f32.mrf.mxu2  ;;  %v1254_v31 = vpack.c.bf16 %v1222_v56, %v1222_v56  ;;  %v1032_v34 = vmul.f32 %v1690_v17, %v1000_v53  ;;  %1697 = vpow2.f32 %v965_v12  ;;  %v419_v39 = vpop.f32.mrf.mxu0 }
 0x142   : > { %v1214_v5 = vsel %vm1150_vm8, %v2078_v28, %v1182_v44  ;;  %1699 = vpow2.f32 %v949_v21  ;;  %v830_v38 = vadd.f32 %v781_v26, %v522_v15  ;;  %v524_v40 = vpop.f32.mrf.mxu1  ;;  %v2150_v28 = vadd.f32 %v2147_v41, %v838_v9 }
 0x143   : > { %v1246_v36 = vpack.c.bf16 %v1214_v5, %v1214_v5  ;;  %v1024_v3 = vmul.f32 %v1692_v20, %v992_v37  ;;  %v1694_v6 = vpop.eup %1693  ;;  %1287 = vst.msk [vmem:[%s1916_s10 + $0x64] sm:$0xf] %vm1261_vm4, %v1254_v31  ;;  %v1064_v24 = vadd.f32 2.0, %v1032_v34  ;;  %v525_v2 = vadd.f32 %v524_v40, %v419_v39 }
 0x144   : > { %v1127_v48 = vmul.f32 %v1694_v6, %v1031_v55  ;;  %v2155_v51 = vadd.f32 %v2147_v41, %v830_v38  ;;  %v906_v52 = vmin.f32 %v2150_v28, 20.0  ;;  %v547_v16 = vadd.f32 %v2044_v18, %v1956_v33 }
 0x145   : > { %v1696_v42 = vpop.eup %1695  ;;  %1279 = vst.msk [vmem:[%s1916_s10 + $0x44] sm:$0xf] %vm1261_vm4, %v1246_v36  ;;  %v1056_v50 = vadd.f32 2.0, %v1024_v3  ;;  %1701 = vrcp.f32 %v1064_v24  ;;  %vm1162_vm15 = vcmp.gt.f32.partialorder %v2150_v28, 20.0 }
 0x146   : > { %v1119_v29 = vmul.f32 %v1696_v42, %v1023_v10  ;;  %v1191_v23 = vmul.f32 %v1127_v48, %v2090_v59  ;;  %v898_v25 = vmin.f32 %v2155_v51, 20.0  ;;  %v967_v58 = vmul.f32 1.442695, %v906_v52 }
 0x147   : > { %1703 = vrcp.f32 %v1056_v50  ;;  %v1698_v32 = vpop.eup %1697  ;;  %v804_v22 = vpop.f32.mrf.mxu3  ;;  %vm1154_vm0 = vcmp.gt.f32.partialorder %v2155_v51, 20.0 }
 0x148   : > { %v1183_v54 = vmul.f32 %v1119_v29, %v2093_v63  ;;  %v1700_v14 = vpop.eup %1699  ;;  %v1223_v62 = vsel %vm1159_vm10, %v2090_v59, %v1191_v23  ;;  %v1001_v55 = vadd.f32 2.0, %v1698_v32  ;;  %v951_v0 = vmul.f32 1.442695, %v898_v25 }
 0x149   : > { %v784_v1 = vpop.f32.mrf.mxu2  ;;  %v839_v10 = vadd.f32 %v804_v22, %v545_v35  ;;  %v1255_v7 = vpack.c.bf16 %v1223_v62, %v1223_v62  ;;  %v993_v43 = vadd.f32 2.0, %v1700_v14  ;;  %1705 = vpow2.f32 %v967_v58  ;;  %v421_v19 = vpop.f32.mrf.mxu0 }
 0x14a   : > { %v1215_v4 = vsel %vm1151_vm9, %v2093_v63, %v1183_v54  ;;  %v1033_v8 = vmul.f32 %v1698_v32, %v1001_v55  ;;  %1707 = vpow2.f32 %v951_v0  ;;  %v831_v46 = vadd.f32 %v784_v1, %v525_v2  ;;  %v526_v20 = vpop.f32.mrf.mxu1 }
 0x14b   : > { %v1247_v61 = vpack.c.bf16 %v1215_v4, %v1215_v4  ;;  %v1702_v60 = vpop.eup %1701  ;;  %1288 = vst.msk [vmem:[%s1916_s10 + $0x68] sm:$0xf] %vm1261_vm4, %v1255_v7  ;;  %v1025_v45 = vmul.f32 %v1700_v14, %v993_v43  ;;  %v2170_v59 = vadd.f32 %v2147_v41, %v839_v10  ;;  %v527_v37 = vadd.f32 %v526_v20, %v421_v19 }
 0x14c   : > { %v1128_v63 = vmul.f32 %v1702_v60, %v1032_v34  ;;  %v1065_v17 = vadd.f32 2.0, %v1033_v8  ;;  %v2177_v47 = vadd.f32 %v2147_v41, %v831_v46 }
 0x14d   : > { %v1704_v13 = vpop.eup %1703  ;;  %1280 = vst.msk [vmem:[%s1916_s10 + $0x48] sm:$0xf] %vm1261_vm4, %v1247_v61  ;;  %v1057_v53 = vadd.f32 2.0, %v1025_v45  ;;  %v907_v12 = vmin.f32 %v2170_v59, 20.0  ;;  %vm1163_vm1 = vcmp.gt.f32.partialorder %v2170_v59, 20.0 }
 0x14e   : > { %v1120_v44 = vmul.f32 %v1704_v13, %v1024_v3  ;;  %v1192_v15 = vmul.f32 %v1128_v63, %v2105_v30  ;;  %1709 = vrcp.f32 %v1065_v17  ;;  %v899_v33 = vmin.f32 %v2177_v47, 20.0 }
 0x14f   : > { %v1706_v18 = vpop.eup %1705  ;;  %1711 = vrcp.f32 %v1057_v53  ;;  %v969_v56 = vmul.f32 1.442695, %v907_v12  ;;  %v806_v21 = vpop.f32.mrf.mxu3  ;;  %vm1155_vm2 = vcmp.gt.f32.partialorder %v2177_v47, 20.0 }
 0x150   : > { %v1184_v57 = vmul.f32 %v1120_v44, %v2108_v49  ;;  %v1708_v26 = vpop.eup %1707  ;;  %v1224_v9 = vsel %vm1160_vm11, %v2105_v30, %v1192_v15  ;;  %v1002_v5 = vadd.f32 2.0, %v1706_v18  ;;  %v953_v31 = vmul.f32 1.442695, %v899_v33 }
 0x151   : > { %v786_v34 = vpop.f32.mrf.mxu2  ;;  %v840_v36 = vadd.f32 %v806_v21, %v547_v16  ;;  %v1256_v38 = vpack.c.bf16 %v1224_v9, %v1224_v9  ;;  %v994_v39 = vadd.f32 2.0, %v1708_v26  ;;  %1713 = vpow2.f32 %v969_v56 }
 0x152   : > { %v1216_v3 = vsel %vm1152_vm12, %v2108_v49, %v1184_v57  ;;  %v1034_v6 = vmul.f32 %v1706_v18, %v1002_v5  ;;  %1715 = vpow2.f32 %v953_v31  ;;  %v832_v24 = vadd.f32 %v786_v34, %v527_v37 }
 0x153   : > { %v1248_v40 = vpack.c.bf16 %v1216_v3, %v1216_v3  ;;  %1289 = vst.msk [vmem:[%s1916_s10 + $0x6c] sm:$0xf] %vm1261_vm4, %v1256_v38  ;;  %v1026_v42 = vmul.f32 %v1708_v26, %v994_v39  ;;  %v2192_v30 = vadd.f32 %v2147_v41, %v840_v36 }
 0x154   : > { %v1710_v48 = vpop.eup %1709  ;;  %v1066_v50 = vadd.f32 2.0, %v1034_v6  ;;  %v2197_v35 = vadd.f32 %v2147_v41, %v832_v24 }
 0x155   : > { %1281 = vst.msk [vmem:[%s1916_s10 + $0x4c] sm:$0xf] %vm1261_vm4, %v1248_v40  ;;  %v1712_v49 = vpop.eup %1711  ;;  %v1129_v29 = vmul.f32 %v1710_v48, %v1033_v8  ;;  %v1058_v52 = vadd.f32 2.0, %v1026_v42  ;;  %v908_v23 = vmin.f32 %v2192_v30, 20.0  ;;  %vm1164_vm3 = vcmp.gt.f32.partialorder %v2192_v30, 20.0 }
 0x156   : > { %v1121_v25 = vmul.f32 %v1712_v49, %v1025_v45  ;;  %1717 = vrcp.f32 %v1066_v50  ;;  %v900_v2 = vmin.f32 %v2197_v35, 20.0  ;;  %vm1156_vm5 = vcmp.gt.f32.partialorder %v2197_v35, 20.0 }
 0x157   : > { %v1714_v32 = vpop.eup %1713  ;;  %v1193_v54 = vmul.f32 %v1129_v29, %v2123_v27  ;;  %1719 = vrcp.f32 %v1058_v52  ;;  %v971_v58 = vmul.f32 1.442695, %v908_v23 }
 0x158   : > { %v1716_v22 = vpop.eup %1715  ;;  %v1185_v14 = vmul.f32 %v1121_v25, %v2130_v11  ;;  %v1003_v41 = vadd.f32 2.0, %v1714_v32  ;;  %v955_v62 = vmul.f32 1.442695, %v900_v2 }
 0x159   : > { %v1225_v55 = vsel %vm1161_vm13, %v2123_v27, %v1193_v54  ;;  %v995_v0 = vadd.f32 2.0, %v1716_v22  ;;  %1721 = vpow2.f32 %v971_v58 }
 0x15a   : > { %v1217_v1 = vsel %vm1153_vm14, %v2130_v11, %v1185_v14  ;;  %v1257_v10 = vpack.c.bf16 %v1225_v55, %v1225_v55  ;;  %v1035_v4 = vmul.f32 %v1714_v32, %v1003_v41  ;;  %1723 = vpow2.f32 %v955_v62 }
 0x15b   : > { %v1249_v7 = vpack.c.bf16 %v1217_v1, %v1217_v1  ;;  %v1027_v43 = vmul.f32 %v1716_v22, %v995_v0 }
 0x15c   : > { %v1718_v61 = vpop.eup %1717  ;;  %1290 = vst.msk [vmem:[%s1916_s10 + $0x70] sm:$0xf] %vm1261_vm4, %v1257_v10  ;;  %v1067_v8 = vadd.f32 2.0, %v1035_v4 }
 0x15d   : > { %v1720_v46 = vpop.eup %1719  ;;  %1282 = vst.msk [vmem:[%s1916_s10 + $0x50] sm:$0xf] %vm1261_vm4, %v1249_v7  ;;  %v1130_v60 = vmul.f32 %v1718_v61, %v1034_v6  ;;  %v1059_v45 = vadd.f32 2.0, %v1027_v43 }
 0x15e   : > { %v1122_v13 = vmul.f32 %v1720_v46, %v1026_v42  ;;  %1725 = vrcp.f32 %v1067_v8 }
 0x15f   : > { %v1722_v27 = vpop.eup %1721  ;;  %v1194_v11 = vmul.f32 %v1130_v60, %v2150_v28  ;;  %1727 = vrcp.f32 %v1059_v45 }
 0x160   : > { %v1724_v16 = vpop.eup %1723  ;;  %v1186_v63 = vmul.f32 %v1122_v13, %v2155_v51  ;;  %v1004_v17 = vadd.f32 2.0, %v1722_v27 }
 0x161   : > { %v1226_v19 = vsel %vm1162_vm15, %v2150_v28, %v1194_v11  ;;  %v996_v20 = vadd.f32 2.0, %v1724_v16 }
 0x162   : > { %v1218_v44 = vsel %vm1154_vm0, %v2155_v51, %v1186_v63  ;;  %v1258_v53 = vpack.c.bf16 %v1226_v19, %v1226_v19  ;;  %v1036_v12 = vmul.f32 %v1722_v27, %v1004_v17 }
 0x163   : > { %v1250_v15 = vpack.c.bf16 %v1218_v44, %v1218_v44  ;;  %v1028_v33 = vmul.f32 %v1724_v16, %v996_v20 }
 0x164   : > { %v1726_v18 = vpop.eup %1725  ;;  %1291 = vst.msk [vmem:[%s1916_s10 + $0x74] sm:$0xf] %vm1261_vm4, %v1258_v53  ;;  %v1068_v57 = vadd.f32 2.0, %v1036_v12 }
 0x165   : > { %v1728_v56 = vpop.eup %1727  ;;  %1283 = vst.msk [vmem:[%s1916_s10 + $0x54] sm:$0xf] %vm1261_vm4, %v1250_v15  ;;  %v1131_v37 = vmul.f32 %v1726_v18, %v1035_v4  ;;  %v1060_v21 = vadd.f32 2.0, %v1028_v33 }
 0x166   : > { %v1123_v26 = vmul.f32 %v1728_v56, %v1027_v43  ;;  %1729 = vrcp.f32 %v1068_v57 }
 0x167   : > { %v1195_v28 = vmul.f32 %v1131_v37, %v2170_v59  ;;  %1731 = vrcp.f32 %v1060_v21 }
 0x168   : > { %v1187_v51 = vmul.f32 %v1123_v26, %v2177_v47 }
 0x169   : > { %v1227_v9 = vsel %vm1163_vm1, %v2170_v59, %v1195_v28 }
 0x16a   : > { %v1219_v5 = vsel %vm1155_vm2, %v2177_v47, %v1187_v51  ;;  %v1259_v31 = vpack.c.bf16 %v1227_v9, %v1227_v9 }
 0x16b   : > { %v1251_v34 = vpack.c.bf16 %v1219_v5, %v1219_v5 }
 0x16c   : > { %v1730_v36 = vpop.eup %1729  ;;  %1292 = vst.msk [vmem:[%s1916_s10 + $0x78] sm:$0xf] %vm1261_vm4, %v1259_v31 }
 0x16d   : > { %v1732_v3 = vpop.eup %1731  ;;  %1284 = vst.msk [vmem:[%s1916_s10 + $0x58] sm:$0xf] %vm1261_vm4, %v1251_v34  ;;  %v1132_v38 = vmul.f32 %v1730_v36, %v1036_v12 }
 0x16e   : > { %v1124_v39 = vmul.f32 %v1732_v3, %v1028_v33 }
 0x16f   : > { %v1196_v40 = vmul.f32 %v1132_v38, %v2192_v30 }
 0x170   : > { %v1188_v6 = vmul.f32 %v1124_v39, %v2197_v35 }
 0x171   : > { %v1228_v59 = vsel %vm1164_vm3, %v2192_v30, %v1196_v40 }
 0x172   : > { %v1220_v47 = vsel %vm1156_vm5, %v2197_v35, %v1188_v6  ;;  %v1260_v24 = vpack.c.bf16 %v1228_v59, %v1228_v59 }
 0x173   : > { %v1252_v42 = vpack.c.bf16 %v1220_v47, %v1220_v47 }
 0x174   : > { %1293 = vst.msk [vmem:[%s1916_s10 + $0x7c] sm:$0xf] %vm1261_vm4, %v1260_v24 }
 0x175   : > { %1285 = vst.msk [vmem:[%s1916_s10 + $0x5c] sm:$0xf] %vm1261_vm4, %v1252_v42 }
 0x176 PF: > { %s13_s12 = sadd.s32 1, %s1740_s12  }
 0x177   : > { %p10_p5 = scmp.ge.s32.totalorder %s13_s12, 4  }
 0x179   :  { %12 = sbr.rel (!%p10_p5) target bundleno = 1 (0x1), region = 64 }

// kernel: cspdarknet_forward.18
= control target key start
LH: loop header
LB: loop body
LE: loop exit
PB: predicated region body
PF: predicated region fallthrough
CT: control target
= control target key end

     0   :  { %s914_s12 = smov 0   ;;  %s1105_s0 = inlined_call_operand.vmem [shape: bf16[128,288], index: 0, kind: input, shape index: {}]   ;;  %s1106_s1 = inlined_call_operand.vmem [shape: bf16[288,64], index: 1, kind: input, shape index: {}]   ;;  %s1107_s2 = inlined_call_operand.vmem [shape: f32[1,64], index: 2, kind: input, shape index: {}]   ;;  %s1108_s3 = inlined_call_operand.vmem [shape: bf16[128,64], index: 3, kind: output, shape index: {}]  }
   0x1 LB: > { %s663_s13 = sadd.s32 4294967295, %s892_s12   ;;  %p667_p0 = scmp.ge.s32.totalorder %s892_s12, 1  ;;  %s892_s12 = sphi %s914_s12, %s13_s12  }
   0x2   : > { %p139_p1 = scmp.lt.s32.totalorder %s892_s12, 3 }
   0x4   : > { %p140_p2 = pnand %p667_p0, %p139_p1 }
   0x5   : > { %s668_s18 = sshll.u32 (!%p140_p2), %s663_s13, 3 }
   0x6   : > { %143 = sbr.rel (%p140_p2) target bundleno = 253 (0xfd), region = 32  ;;  %p165_p3 = scmp.lt.s32.totalorder (!%p140_p2), %s668_s18, 15 }
   0xb   : > { %v817_v0 = vld [vmem:[%s1106_s1 + $0x38] sm:$0xff]  ;;  %v827_v2 = vld [vmem:[%s1106_s1 + $0x88] sm:$0xff]  ;;  %v816_v3 = vld [vmem:[%s1106_s1 + $0x30] sm:$0xff]  ;;  %s1110_s18 = smov (!%p165_p3, %s668_s18), 15  ;;  %vm402_vm0 = vcmask 261120   ;;  %vm598_vm2 = vcmask 519168  }
   0xc   : > { %v928_v1 = vld [vmem:[%s1106_s1 + $0x78] sm:$0xff]  ;;  %415 = vmatpush.bf16.msra.mxu0 %v817_v0  ;;  %828 = vmatpush.bf16.msra.mxu3 %v817_v0  ;;  %v824_v4 = vld [vmem:[%s1106_s1 + $0x70] sm:$0xff]  ;;  %v826_v5 = vld [vmem:[%s1106_s1 + $0x80] sm:$0xff]  ;;  %s844_s27 = smul.u32 12, %s1110_s18  ;;  %s671_s5 = sshll.u32 %s1110_s18, 2 }
   0xd   : > { %836 = vmatpush.bf16.msra.mxu1 %v928_v1  ;;  %479 = vmatpush.bf16.msra.mxu2 %v827_v2  ;;  %v815_v6 = vld [vmem:[%s1106_s1 + $0x28] sm:$0xff]  ;;  %v814_v11 = vld [vmem:[%s1106_s1 + $0x20] sm:$0xff]  ;;  %v813_v13 = vld [vmem:[%s1106_s1 + $0x18] sm:$0xff] }
   0xe   : > { %v823_v7 = vld [vmem:[%s1106_s1 + $0x68] sm:$0xff]  ;;  %s955_s7 = scalar_lea.vmem %s1105_s0, %s844_s27  ;;  %v822_v12 = vld [vmem:[%s1106_s1 + $0x60] sm:$0xff]  ;;  %v821_v14 = vld [vmem:[%s1106_s1 + $0x58] sm:$0xff] }
   0xf   : > { %v682_v8 = vld [vmem:[%s955_s7 + $0x8] sm:$0xf]  ;;  %v800_v9 = vld [vmem:[%s955_s7 + $0x10] sm:$0xf0]  ;;  %v694_v17 = vld [vmem:[%s955_s7 + $0x20] sm:$0xf] }
  0x10   : > { %416 = vmatpush.bf16.msra.mxu0 %v816_v3  ;;  %829 = vmatpush.bf16.msra.mxu3 %v816_v3  ;;  %v683_v10 = vor.u32 %v800_v9, %v682_v8  ;;  %v812_v15 = vld [vmem:[%s1106_s1 + $0x10] sm:$0xff]  ;;  %v803_v18 = vld [vmem:[%s955_s7 + $0x28] sm:$0xf0]  ;;  %v810_v22 = vld [vmem:[%s1106_s1] sm:$0xff] }
  0x11   : > { %837 = vmatpush.bf16.msra.mxu1 %v824_v4  ;;  %480 = vmatpush.bf16.msra.mxu2 %v826_v5  ;;  %v820_v16 = vld [vmem:[%s1106_s1 + $0x50] sm:$0xff]  ;;  %v811_v19 = vld [vmem:[%s1106_s1 + $0x8] sm:$0xff]  ;;  %v695_v21 = vor.u32 %v803_v18, %v694_v17  ;;  %v686_v23 = vld [vmem:[%s955_s7 + $0x18] sm:$0xf] }
  0x12   : > { %v819_v20 = vld [vmem:[%s1106_s1 + $0x48] sm:$0xff]  ;;  %v802_v24 = vld [vmem:[%s955_s7 + $0x20] sm:$0xf0]  ;;  %v674_v25 = vld [vmem:[%s955_s7] sm:$0xf] }
  0x13   : > { %v799_v26 = vld [vmem:[%s955_s7 + $0x8] sm:$0xf0]  ;;  %v818_v27 = vld [vmem:[%s1106_s1 + $0x40] sm:$0xff]  ;;  %v801_v28 = vld [vmem:[%s955_s7 + $0x1c] sm:$0xf]  ;;  %v687_v30 = vor.u32 %v802_v24, %v686_v23 }
  0x14   : > { %417 = vmatpush.bf16.msra.mxu0 %v815_v6  ;;  %830 = vmatpush.bf16.msra.mxu3 %v815_v6  ;;  %v688_v29 = vld [vmem:[%s955_s7 + $0x24] sm:$0xf0]  ;;  %v675_v31 = vor.u32 %v799_v26, %v674_v25  ;;  %v706_v33 = vld [vmem:[%s955_s7 + $0x38] sm:$0xf]  ;;  %v806_v34 = vld [vmem:[%s955_s7 + $0x40] sm:$0xf0] }
  0x15   : > { %838 = vmatpush.bf16.msra.mxu1 %v823_v7  ;;  %792 = vmatmul.msk.bf16.vlgmr.msra.gmra.mxu2 %vm402_vm0, %v683_v10  ;;  %v691_v32 = vor.u32 %v801_v28, %v688_v29  ;;  %v707_v35 = vor.u32 %v806_v34, %v706_v33  ;;  %v698_v36 = vld [vmem:[%s955_s7 + $0x30] sm:$0xf]  ;;  %v805_v37 = vld [vmem:[%s955_s7 + $0x38] sm:$0xf0]  ;;  %v804_v38 = vld [vmem:[%s955_s7 + $0x34] sm:$0xf] }
  0x16   : > { %v700_v39 = vld [vmem:[%s955_s7 + $0x3c] sm:$0xf0]  ;;  %v699_v40 = vor.u32 %v805_v37, %v698_v36  ;;  %v718_v42 = vld [vmem:[%s955_s7 + $0x50] sm:$0xf]  ;;  %v809_v43 = vld [vmem:[%s955_s7 + $0x58] sm:$0xf0] }
  0x17   : > { %v703_v41 = vor.u32 %v804_v38, %v700_v39  ;;  %v719_v44 = vor.u32 %v809_v43, %v718_v42  ;;  %v798_v45 = vld [vmem:[%s955_s7 + $0x4] sm:$0xf]  ;;  %v676_v46 = vld [vmem:[%s955_s7 + $0xc] sm:$0xf0]  ;;  %v710_v48 = vld [vmem:[%s955_s7 + $0x48] sm:$0xf] }
  0x18   : > { %418 = vmatpush.bf16.msra.mxu0 %v814_v11  ;;  %831 = vmatpush.bf16.msra.mxu3 %v814_v11  ;;  %v679_v47 = vor.u32 %v798_v45, %v676_v46  ;;  %v808_v49 = vld [vmem:[%s955_s7 + $0x50] sm:$0xf0]  ;;  %v807_v50 = vld [vmem:[%s955_s7 + $0x4c] sm:$0xf]  ;;  %v712_v51 = vld [vmem:[%s955_s7 + $0x54] sm:$0xf0]  ;;  %s1054_s7 = scalar_lea.vmem %s1108_s3, %s671_s5 }
  0x19   : > { %839 = vmatpush.bf16.msra.mxu1 %v822_v12  ;;  %v711_v52 = vor.u32 %v808_v49, %v710_v48  ;;  %v715_v53 = vor.u32 %v807_v50, %v712_v51  ;;  %v1021_v58 = vld [vmem:[%s1107_s2] ss:$0 sm:$0xff] }
  0x1c   : > { %419 = vmatpush.bf16.msra.mxu0 %v813_v13  ;;  %832 = vmatpush.bf16.msra.mxu3 %v813_v13 }
  0x1d   : > { %840 = vmatpush.bf16.msra.mxu1 %v821_v14 }
  0x20   : > { %420 = vmatpush.bf16.msra.mxu0 %v812_v15  ;;  %833 = vmatpush.bf16.msra.mxu3 %v812_v15 }
  0x21   : > { %841 = vmatpush.bf16.msra.mxu1 %v820_v16 }
  0x24   : > { %421 = vmatpush.bf16.msra.mxu0 %v811_v19  ;;  %834 = vmatpush.bf16.msra.mxu3 %v811_v19 }
  0x25   : > { %842 = vmatpush.bf16.msra.mxu1 %v819_v20  ;;  %793 = vmatmul.msk.bf16.gmra.mxu2 %vm402_vm0, %v695_v21 }
  0x28   : > { %422 = vmatpush.bf16.msra.mxu0 %v810_v22  ;;  %835 = vmatpush.bf16.msra.mxu3 %v810_v22 }
  0x29   : > { %843 = vmatpush.bf16.msra.mxu1 %v818_v27 }
  0x2b   : > { %428 = vmatmul.bf16.vlgmr.msra.gmra.mxu3 %v687_v30  ;;  %423 = vmatmul.bf16.vlgmr.msra.gmra.mxu0 %v675_v31 }
  0x2c   : > { %444 = vmatpush.bf16.msrb.mxu0 %v928_v1  ;;  %457 = vmatmul.bf16.vlgmr.msra.gmra.mxu1 %v691_v32 }
  0x30   : > { %445 = vmatpush.bf16.msrb.mxu0 %v824_v4 }
  0x34   : > { %446 = vmatpush.bf16.msrb.mxu0 %v823_v7 }
  0x35   : > { %794 = vmatmul.msk.bf16.gmra.mxu2 %vm402_vm0, %v707_v35 }
  0x38   : > { %447 = vmatpush.bf16.msrb.mxu0 %v822_v12 }
  0x3b   : > { %433 = vmatmul.bf16.gmra.mxu3 %v699_v40 }
  0x3c   : > { %448 = vmatpush.bf16.msrb.mxu0 %v821_v14  ;;  %462 = vmatmul.bf16.gmra.mxu1 %v703_v41 }
  0x40   : > { %449 = vmatpush.bf16.msrb.mxu0 %v820_v16 }
  0x44   : > { %450 = vmatpush.bf16.msrb.mxu0 %v819_v20 }
  0x45   : > { %795 = vmatmul.msk.bf16.gmra.mxu2 %vm402_vm0, %v719_v44 }
  0x48   : > { %451 = vmatpush.bf16.msrb.mxu0 %v818_v27 }
  0x4b   : > { %452 = vmatmul.bf16.vlgmr.msrb.gmra.mxu0 %v679_v47  ;;  %438 = vmatmul.bf16.gmra.mxu3 %v711_v52 }
  0x4c   : > { %467 = vmatmul.bf16.gmra.mxu1 %v715_v53 }
  0x98   : > { %v482_v54 = vpop.f32.mrf.mxu2 }
  0xa0   : > { %v1016_v55 = vpop.f32.mrf.mxu2 }
  0xa8   : > { %v487_v56 = vpop.f32.mrf.mxu2  ;;  %v424_v63 = vpop.f32.mrf.mxu0 }
  0xa9   : > { %v458_v57 = vpop.f32.mrf.mxu1  ;;  %v425_v21 = vadd.f32 %v1021_v58, %v424_v63 }
  0xae   : > { %v429_v59 = vpop.f32.mrf.mxu3 }
  0xaf   : > { %v430_v60 = vadd.f32 %v1021_v58, %v429_v59 }
  0xb0   : > { %v489_v0 = vpop.f32.mrf.mxu2  ;;  %v426_v9 = vpop.f32.mrf.mxu0 }
  0xb1   : > { %v459_v61 = vadd.f32 %v458_v57, %v430_v60  ;;  %v460_v62 = vpop.f32.mrf.mxu1  ;;  %v427_v39 = vadd.f32 %v1021_v58, %v426_v9 }
  0xb3   : > { %v1024_v1 = vadd.f32 %v487_v56, %v459_v61 }
  0xb5   : > { %v504_v2 = vmin.f32 %v1024_v1, 20.0  ;;  %vm568_vm1 = vcmp.gt.f32.partialorder %v1024_v1, 20.0 }
  0xb6   : > { %v431_v3 = vpop.f32.mrf.mxu3 }
  0xb7   : > { %v514_v4 = vmul.f32 1.442695, %v504_v2  ;;  %v432_v5 = vadd.f32 %v1021_v58, %v431_v3 }
  0xb8   : > { %v492_v10 = vpop.f32.mrf.mxu2 }
  0xb9   : > { %854 = vpow2.f32 %v514_v4  ;;  %v461_v6 = vadd.f32 %v460_v62, %v432_v5  ;;  %v463_v7 = vpop.f32.mrf.mxu1 }
  0xbb   : > { %v1028_v8 = vadd.f32 %v489_v0, %v461_v6 }
  0xbd   : > { %v505_v11 = vmin.f32 %v1028_v8, 20.0  ;;  %vm569_vm3 = vcmp.gt.f32.partialorder %v1028_v8, 20.0 }
  0xbe   : > { %v434_v12 = vpop.f32.mrf.mxu3 }
  0xbf   : > { %v855_v13 = vpop.eup %854  ;;  %v516_v14 = vmul.f32 1.442695, %v505_v11  ;;  %v435_v15 = vadd.f32 %v1021_v58, %v434_v12 }
  0xc0   : > { %v528_v16 = vadd.f32 2.0, %v855_v13  ;;  %v494_v25 = vpop.f32.mrf.mxu2 }
  0xc1   : > { %856 = vpow2.f32 %v516_v14  ;;  %v464_v17 = vadd.f32 %v463_v7, %v435_v15  ;;  %v465_v22 = vpop.f32.mrf.mxu1 }
  0xc2   : > { %v536_v18 = vmul.f32 %v855_v13, %v528_v16 }
  0xc3   : > { %v1032_v19 = vadd.f32 %v492_v10, %v464_v17 }
  0xc4   : > { %v544_v20 = vadd.f32 2.0, %v536_v18 }
  0xc5   : > { %v506_v23 = vmin.f32 %v1032_v19, 20.0  ;;  %vm570_vm4 = vcmp.gt.f32.partialorder %v1032_v19, 20.0 }
  0xc6   : > { %858 = vrcp.f32 %v544_v20  ;;  %v436_v27 = vpop.f32.mrf.mxu3 }
  0xc7   : > { %v857_v28 = vpop.eup %856  ;;  %v518_v29 = vmul.f32 1.442695, %v506_v23  ;;  %v437_v30 = vadd.f32 %v1021_v58, %v436_v27 }
  0xc8   : > { %v453_v24 = vpop.f32.mrf.mxu0  ;;  %v529_v31 = vadd.f32 2.0, %v857_v28  ;;  %v497_v52 = vpop.f32.mrf.mxu2 }
  0xc9   : > { %v454_v26 = vadd.f32 %v453_v24, %v425_v21  ;;  %860 = vpow2.f32 %v518_v29  ;;  %v466_v33 = vadd.f32 %v465_v22, %v437_v30  ;;  %v468_v44 = vpop.f32.mrf.mxu1 }
  0xca   : > { %v537_v34 = vmul.f32 %v857_v28, %v529_v31 }
  0xcb   : > { %v1037_v32 = vadd.f32 %v482_v54, %v454_v26  ;;  %v1040_v36 = vadd.f32 %v494_v25, %v466_v33 }
  0xcc   : > { %v859_v37 = vpop.eup %858  ;;  %v545_v38 = vadd.f32 2.0, %v537_v34 }
  0xcd   : > { %v502_v35 = vmin.f32 %v1037_v32, 20.0  ;;  %v560_v41 = vmul.f32 %v859_v37, %v536_v18  ;;  %v507_v42 = vmin.f32 %v1040_v36, 20.0  ;;  %vm566_vm5 = vcmp.gt.f32.partialorder %v1037_v32, 20.0 }
  0xce   : > { %862 = vrcp.f32 %v545_v38  ;;  %v439_v46 = vpop.f32.mrf.mxu3  ;;  %vm571_vm6 = vcmp.gt.f32.partialorder %v1040_v36, 20.0 }
  0xcf   : > { %v510_v40 = vmul.f32 1.442695, %v502_v35  ;;  %v861_v47 = vpop.eup %860  ;;  %v576_v48 = vmul.f32 %v560_v41, %v1024_v1  ;;  %v520_v49 = vmul.f32 1.442695, %v507_v42  ;;  %v440_v50 = vadd.f32 %v1021_v58, %v439_v46 }
  0xd0   : > { %v455_v43 = vpop.f32.mrf.mxu0  ;;  %v530_v51 = vadd.f32 2.0, %v861_v47  ;;  %v499_v18 = vpop.f32.mrf.mxu2 }
  0xd1   : > { %v456_v45 = vadd.f32 %v455_v43, %v427_v39  ;;  %864 = vpow2.f32 %v510_v40  ;;  %v584_v54 = vsel %vm568_vm1, %v1024_v1, %v576_v48  ;;  %v469_v56 = vadd.f32 %v468_v44, %v440_v50  ;;  %v470_v12 = vpop.f32.mrf.mxu1 }
  0xd2   : > { %866 = vpow2.f32 %v520_v49  ;;  %v592_v57 = vpack.c.bf16 %v584_v54, %v584_v54  ;;  %v538_v59 = vmul.f32 %v861_v47, %v530_v51 }
  0xd3   : > { %v1049_v53 = vadd.f32 %v1016_v55, %v456_v45  ;;  %v1058_v61 = vadd.f32 %v497_v52, %v469_v56 }
  0xd4   : > { %v863_v62 = vpop.eup %862  ;;  %601 = vst.msk [vmem:[%s1054_s7 + $0x8] sm:$0xf] %vm598_vm2, %v592_v57  ;;  %v546_v55 = vadd.f32 2.0, %v538_v59 }
  0xd5   : > { %v503_v60 = vmin.f32 %v1049_v53, 20.0  ;;  %v561_v2 = vmul.f32 %v863_v62, %v537_v34  ;;  %v508_v3 = vmin.f32 %v1058_v61, 20.0  ;;  %vm567_vm7 = vcmp.gt.f32.partialorder %v1049_v53, 20.0 }
  0xd6   : > { %868 = vrcp.f32 %v546_v55  ;;  %v441_v4 = vpop.f32.mrf.mxu3  ;;  %vm572_vm8 = vcmp.gt.f32.partialorder %v1058_v61, 20.0 }
  0xd7   : > { %v512_v63 = vmul.f32 1.442695, %v503_v60  ;;  %v865_v0 = vpop.eup %864  ;;  %v577_v6 = vmul.f32 %v561_v2, %v1028_v8  ;;  %v522_v7 = vmul.f32 1.442695, %v508_v3  ;;  %v442_v9 = vadd.f32 %v1021_v58, %v441_v4 }
  0xd8   : > { %v526_v1 = vadd.f32 2.0, %v865_v0  ;;  %v867_v5 = vpop.eup %866 }
  0xd9   : > { %870 = vpow2.f32 %v512_v63  ;;  %v531_v11 = vadd.f32 2.0, %v867_v5  ;;  %v585_v13 = vsel %vm569_vm3, %v1028_v8, %v577_v6  ;;  %v471_v14 = vadd.f32 %v470_v12, %v442_v9 }
  0xda   : > { %v534_v10 = vmul.f32 %v865_v0, %v526_v1  ;;  %872 = vpow2.f32 %v522_v7  ;;  %v593_v15 = vpack.c.bf16 %v585_v13, %v585_v13 }
  0xdb   : > { %v539_v17 = vmul.f32 %v867_v5, %v531_v11  ;;  %v1067_v20 = vadd.f32 %v499_v18, %v471_v14 }
  0xdc   : > { %v542_v16 = vadd.f32 2.0, %v534_v10  ;;  %v869_v21 = vpop.eup %868  ;;  %602 = vst.msk [vmem:[%s1054_s7 + $0xc] sm:$0xf] %vm598_vm2, %v593_v15 }
  0xdd   : > { %v547_v58 = vadd.f32 2.0, %v539_v17  ;;  %v562_v23 = vmul.f32 %v869_v21, %v538_v59  ;;  %v509_v24 = vmin.f32 %v1067_v20, 20.0  ;;  %vm573_vm9 = vcmp.gt.f32.partialorder %v1067_v20, 20.0 }
  0xde   : > { %874 = vrcp.f32 %v542_v16 }
  0xdf   : > { %v871_v22 = vpop.eup %870  ;;  %876 = vrcp.f32 %v547_v58  ;;  %v578_v26 = vmul.f32 %v562_v23, %v1032_v19  ;;  %v524_v27 = vmul.f32 1.442695, %v509_v24 }
  0xe0   : > { %v527_v8 = vadd.f32 2.0, %v871_v22  ;;  %v873_v25 = vpop.eup %872 }
  0xe1   : > { %v532_v29 = vadd.f32 2.0, %v873_v25  ;;  %v586_v30 = vsel %vm570_vm4, %v1032_v19, %v578_v26  ;;  %878 = vpow2.f32 %v524_v27 }
  0xe2   : > { %v535_v28 = vmul.f32 %v871_v22, %v527_v8  ;;  %v594_v33 = vpack.c.bf16 %v586_v30, %v586_v30 }
  0xe3   : > { %v540_v35 = vmul.f32 %v873_v25, %v532_v29 }
  0xe4   : > { %v875_v31 = vpop.eup %874  ;;  %v543_v34 = vadd.f32 2.0, %v535_v28  ;;  %603 = vst.msk [vmem:[%s1054_s7 + $0x10] sm:$0xf] %vm598_vm2, %v594_v33 }
  0xe5   : > { %v558_v37 = vmul.f32 %v875_v31, %v534_v10  ;;  %v877_v38 = vpop.eup %876  ;;  %v548_v39 = vadd.f32 2.0, %v540_v35 }
  0xe6   : > { %880 = vrcp.f32 %v543_v34  ;;  %v563_v41 = vmul.f32 %v877_v38, %v539_v17 }
  0xe7   : > { %v574_v40 = vmul.f32 %v558_v37, %v1037_v32  ;;  %882 = vrcp.f32 %v548_v39  ;;  %v879_v19 = vpop.eup %878 }
  0xe8   : > { %v579_v43 = vmul.f32 %v563_v41, %v1040_v36  ;;  %v533_v45 = vadd.f32 2.0, %v879_v19 }
  0xe9   : > { %v582_v42 = vsel %vm566_vm5, %v1037_v32, %v574_v40 }
  0xea   : > { %v590_v44 = vpack.c.bf16 %v582_v42, %v582_v42  ;;  %v587_v46 = vsel %vm571_vm6, %v1040_v36, %v579_v43  ;;  %v541_v49 = vmul.f32 %v879_v19, %v533_v45 }
  0xeb   : > { %v595_v48 = vpack.c.bf16 %v587_v46, %v587_v46 }
  0xec   : > { %v881_v47 = vpop.eup %880  ;;  %599 = vst.msk [vmem:[%s1054_s7] sm:$0xf] %vm598_vm2, %v590_v44  ;;  %v549_v32 = vadd.f32 2.0, %v541_v49 }
  0xed   : > { %v559_v50 = vmul.f32 %v881_v47, %v535_v28  ;;  %v883_v51 = vpop.eup %882  ;;  %604 = vst.msk [vmem:[%s1054_s7 + $0x14] sm:$0xf] %vm598_vm2, %v595_v48 }
  0xee   : > { %v564_v54 = vmul.f32 %v883_v51, %v540_v35  ;;  %884 = vrcp.f32 %v549_v32 }
  0xef   : > { %v575_v52 = vmul.f32 %v559_v50, %v1049_v53 }
  0xf0   : > { %v580_v56 = vmul.f32 %v564_v54, %v1058_v61 }
  0xf1   : > { %v583_v36 = vsel %vm567_vm7, %v1049_v53, %v575_v52 }
  0xf2   : > { %v591_v57 = vpack.c.bf16 %v583_v36, %v583_v36  ;;  %v588_v59 = vsel %vm572_vm8, %v1058_v61, %v580_v56 }
  0xf3   : > { %v596_v60 = vpack.c.bf16 %v588_v59, %v588_v59 }
  0xf4   : > { %600 = vst.msk [vmem:[%s1054_s7 + $0x4] sm:$0xf] %vm598_vm2, %v591_v57  ;;  %v885_v62 = vpop.eup %884 }
  0xf5   : > { %605 = vst.msk [vmem:[%s1054_s7 + $0x18] sm:$0xf] %vm598_vm2, %v596_v60  ;;  %v565_v55 = vmul.f32 %v885_v62, %v541_v49 }
  0xf7   : > { %v581_v63 = vmul.f32 %v565_v55, %v1067_v20 }
  0xf9   : > { %v589_v53 = vsel %vm573_vm9, %v1067_v20, %v581_v63 }
  0xfa   : > { %v597_v0 = vpack.c.bf16 %v589_v53, %v589_v53 }
  0xfc   : > { %606 = vst.msk [vmem:[%s1054_s7 + $0x1c] sm:$0xf] %vm598_vm2, %v597_v0 }
  0xfd PF: > { %s13_s12 = sadd.s32 1, %s892_s12  }
  0xfe   : > { %p10_p4 = scmp.ge.s32.totalorder %s13_s12, 4  }
 0x100   :  { %12 = sbr.rel (!%p10_p4) target bundleno = 1 (0x1), region = 62 }

// kernel: cspdarknet_forward.19
= control target key start
LH: loop header
LB: loop body
LE: loop exit
PB: predicated region body
PF: predicated region fallthrough
CT: control target
= control target key end

     0   :  { %s600_s12 = smov 0   ;;  %s687_s0 = inlined_call_operand.vmem [shape: bf16[128,64], index: 0, kind: input, shape index: {}]   ;;  %s688_s1 = inlined_call_operand.vmem [shape: bf16[64,128], index: 1, kind: input, shape index: {}]   ;;  %s689_s2 = inlined_call_operand.vmem [shape: f32[1,128], index: 2, kind: input, shape index: {}]   ;;  %s690_s3 = inlined_call_operand.vmem [shape: bf16[128,128], index: 3, kind: output, shape index: {}]  }
   0x1 LB: > { %s441_s13 = sadd.s32 4294967295, %s578_s12   ;;  %p445_p0 = scmp.ge.s32.totalorder %s578_s12, 1  ;;  %s578_s12 = sphi %s600_s12, %s13_s12  }
   0x2   : > { %p138_p1 = scmp.lt.s32.totalorder %s578_s12, 3 }
   0x4   : > { %p139_p2 = pnand %p445_p0, %p138_p1 }
   0x5   : > { %s446_s16 = sshll.u32 (!%p139_p2), %s441_s13, 3 }
   0x6   : > { %142 = sbr.rel (%p139_p2) target bundleno = 203 (0xcb), region = 32  ;;  %p163_p3 = scmp.lt.s32.totalorder (!%p139_p2), %s446_s16, 15 }
   0xb   : > { %v495_v0 = vld [vmem:[%s688_s1 + $0x18] sm:$0xff]  ;;  %v494_v1 = vld [vmem:[%s688_s1 + $0x10] sm:$0xff]  ;;  %s692_s16 = smov (!%p163_p3, %s446_s16), 15  ;;  %v493_v2 = vld [vmem:[%s688_s1 + $0x8] sm:$0xff]  ;;  %vm239_vm0 = vcmask 523264  }
   0xc   : > { %256 = vmatpush.bf16.msra.mxu0 %v495_v0  ;;  %519 = vmatpush.bf16.msra.mxu1 %v495_v0  ;;  %s447_s21 = sshll.u32 %s692_s16, 2  ;;  %v492_v3 = vld [vmem:[%s688_s1] sm:$0xff] }
   0xd   : > { %520 = vmatpush.bf16.msra.mxu2 %v495_v0  ;;  %521 = vmatpush.bf16.msra.mxu3 %v495_v0  ;;  %s166_s26 = scalar_lea.vmem %s687_s0, %s447_s21  ;;  %v539_v8 = vld [vmem:[%s689_s2] ss:$0 sm:$0xff]  ;;  %s172_s4 = scalar_lea.vmem %s690_s3, %s447_s21 }
   0xe   : > { %v488_v4 = vld [vmem:[%s166_s26] sm:$0xff]  ;;  %v489_v5 = vld [vmem:[%s166_s26 + $0x8] sm:$0xff]  ;;  %v490_v6 = vld [vmem:[%s166_s26 + $0x10] sm:$0xff] }
   0xf   : > { %v491_v7 = vld [vmem:[%s166_s26 + $0x18] sm:$0xff] }
  0x10   : > { %257 = vmatpush.bf16.msra.mxu0 %v494_v1  ;;  %522 = vmatpush.bf16.msra.mxu1 %v494_v1 }
  0x11   : > { %523 = vmatpush.bf16.msra.mxu2 %v494_v1  ;;  %524 = vmatpush.bf16.msra.mxu3 %v494_v1 }
  0x14   : > { %258 = vmatpush.bf16.msra.mxu0 %v493_v2  ;;  %525 = vmatpush.bf16.msra.mxu1 %v493_v2 }
  0x15   : > { %526 = vmatpush.bf16.msra.mxu2 %v493_v2  ;;  %527 = vmatpush.bf16.msra.mxu3 %v493_v2 }
  0x18   : > { %259 = vmatpush.bf16.msra.mxu0 %v492_v3  ;;  %528 = vmatpush.bf16.msra.mxu1 %v492_v3 }
  0x19   : > { %529 = vmatpush.bf16.msra.mxu2 %v492_v3  ;;  %530 = vmatpush.bf16.msra.mxu3 %v492_v3 }
  0x1b   : > { %482 = vmatmul.msk.bf16.vlgmr.msra.gmra.mxu0 %vm239_vm0, %v488_v4  ;;  %483 = vmatmul.msk.bf16.vlgmr.msra.gmra.mxu1 %vm239_vm0, %v489_v5 }
  0x1c   : > { %484 = vmatmul.msk.bf16.vlgmr.msra.gmra.mxu2 %vm239_vm0, %v490_v6  ;;  %485 = vmatmul.msk.bf16.vlgmr.msra.gmra.mxu3 %vm239_vm0, %v491_v7 }
  0x98   : > { %v261_v9 = vpop.f32.mrf.mxu0  ;;  %v266_v10 = vpop.f32.mrf.mxu1 }
  0x99   : > { %v631_v11 = vadd.f32 %v539_v8, %v261_v9  ;;  %v633_v12 = vadd.f32 %v539_v8, %v266_v10 }
  0x9b   : > { %v281_v13 = vmin.f32 %v631_v11, 20.0  ;;  %v283_v14 = vmin.f32 %v633_v12, 20.0  ;;  %vm345_vm1 = vcmp.gt.f32.partialorder %v631_v11, 20.0  ;;  %vm347_vm3 = vcmp.gt.f32.partialorder %v633_v12, 20.0 }
  0x9d   : > { %v289_v15 = vmul.f32 1.442695, %v281_v13  ;;  %v293_v16 = vmul.f32 1.442695, %v283_v14 }
  0x9f   : > { %540 = vpow2.f32 %v289_v15  ;;  %v271_v17 = vpop.f32.mrf.mxu2  ;;  %v276_v18 = vpop.f32.mrf.mxu3 }
  0xa0   : > { %542 = vpow2.f32 %v293_v16  ;;  %v637_v19 = vadd.f32 %v539_v8, %v271_v17  ;;  %v639_v20 = vadd.f32 %v539_v8, %v276_v18  ;;  %v263_v21 = vpop.f32.mrf.mxu0  ;;  %v268_v22 = vpop.f32.mrf.mxu1 }
  0xa1   : > { %v641_v23 = vadd.f32 %v539_v8, %v263_v21  ;;  %v643_v24 = vadd.f32 %v539_v8, %v268_v22 }
  0xa2   : > { %v285_v25 = vmin.f32 %v637_v19, 20.0  ;;  %v287_v26 = vmin.f32 %v639_v20, 20.0  ;;  %vm349_vm5 = vcmp.gt.f32.partialorder %v637_v19, 20.0  ;;  %vm351_vm7 = vcmp.gt.f32.partialorder %v639_v20, 20.0 }
  0xa3   : > { %v282_v27 = vmin.f32 %v641_v23, 20.0  ;;  %v284_v28 = vmin.f32 %v643_v24, 20.0  ;;  %vm346_vm2 = vcmp.gt.f32.partialorder %v641_v23, 20.0  ;;  %vm348_vm4 = vcmp.gt.f32.partialorder %v643_v24, 20.0 }
  0xa4   : > { %v297_v29 = vmul.f32 1.442695, %v285_v25  ;;  %v301_v30 = vmul.f32 1.442695, %v287_v26 }
  0xa5   : > { %v541_v31 = vpop.eup %540  ;;  %v291_v32 = vmul.f32 1.442695, %v282_v27  ;;  %v295_v33 = vmul.f32 1.442695, %v284_v28 }
  0xa6   : > { %v543_v34 = vpop.eup %542  ;;  %v305_v35 = vadd.f32 2.0, %v541_v31  ;;  %544 = vpow2.f32 %v297_v29 }
  0xa7   : > { %v307_v36 = vadd.f32 2.0, %v543_v34  ;;  %546 = vpow2.f32 %v301_v30  ;;  %v273_v37 = vpop.f32.mrf.mxu2  ;;  %v278_v38 = vpop.f32.mrf.mxu3 }
  0xa8   : > { %v313_v39 = vmul.f32 %v541_v31, %v305_v35  ;;  %548 = vpow2.f32 %v291_v32  ;;  %v649_v40 = vadd.f32 %v539_v8, %v273_v37  ;;  %v651_v41 = vadd.f32 %v539_v8, %v278_v38 }
  0xa9   : > { %v315_v42 = vmul.f32 %v543_v34, %v307_v36  ;;  %550 = vpow2.f32 %v295_v33 }
  0xaa   : > { %v321_v43 = vadd.f32 2.0, %v313_v39  ;;  %v286_v44 = vmin.f32 %v649_v40, 20.0  ;;  %v288_v45 = vmin.f32 %v651_v41, 20.0  ;;  %vm350_vm6 = vcmp.gt.f32.partialorder %v649_v40, 20.0 }
  0xab   : > { %v323_v47 = vadd.f32 2.0, %v315_v42  ;;  %vm352_vm8 = vcmp.gt.f32.partialorder %v651_v41, 20.0 }
  0xac   : > { %v545_v46 = vpop.eup %544  ;;  %v299_v48 = vmul.f32 1.442695, %v286_v44  ;;  %v303_v49 = vmul.f32 1.442695, %v288_v45  ;;  %552 = vrcp.f32 %v321_v43 }
  0xad   : > { %v547_v50 = vpop.eup %546  ;;  %v309_v51 = vadd.f32 2.0, %v545_v46 }
  0xae   : > { %v549_v52 = vpop.eup %548  ;;  %v311_v53 = vadd.f32 2.0, %v547_v50  ;;  %554 = vpow2.f32 %v299_v48 }
  0xaf   : > { %v551_v54 = vpop.eup %550  ;;  %v317_v55 = vmul.f32 %v545_v46, %v309_v51  ;;  %v306_v56 = vadd.f32 2.0, %v549_v52  ;;  %556 = vpow2.f32 %v303_v49 }
  0xb0   : > { %558 = vrcp.f32 %v323_v47  ;;  %v319_v57 = vmul.f32 %v547_v50, %v311_v53  ;;  %v308_v58 = vadd.f32 2.0, %v551_v54 }
  0xb1   : > { %v325_v59 = vadd.f32 2.0, %v317_v55  ;;  %v314_v60 = vmul.f32 %v549_v52, %v306_v56 }
  0xb2   : > { %v327_v61 = vadd.f32 2.0, %v319_v57  ;;  %v316_v62 = vmul.f32 %v551_v54, %v308_v58  ;;  %v553_v63 = vpop.eup %552 }
  0xb3   : > { %560 = vrcp.f32 %v325_v59  ;;  %v322_v0 = vadd.f32 2.0, %v314_v60  ;;  %v337_v8 = vmul.f32 %v553_v63, %v313_v39 }
  0xb4   : > { %v555_v1 = vpop.eup %554  ;;  %562 = vrcp.f32 %v327_v61  ;;  %v324_v2 = vadd.f32 2.0, %v316_v62 }
  0xb5   : > { %v557_v3 = vpop.eup %556  ;;  %564 = vrcp.f32 %v322_v0  ;;  %v310_v4 = vadd.f32 2.0, %v555_v1  ;;  %v353_v21 = vmul.f32 %v337_v8, %v631_v11 }
  0xb6   : > { %v559_v5 = vpop.eup %558  ;;  %566 = vrcp.f32 %v324_v2  ;;  %v312_v6 = vadd.f32 2.0, %v557_v3 }
  0xb7   : > { %v318_v7 = vmul.f32 %v555_v1, %v310_v4  ;;  %v339_v13 = vmul.f32 %v559_v5, %v315_v42  ;;  %v361_v31 = vsel %vm345_vm1, %v631_v11, %v353_v21 }
  0xb8   : > { %v320_v9 = vmul.f32 %v557_v3, %v312_v6 }
  0xb9   : > { %v561_v10 = vpop.eup %560  ;;  %v326_v14 = vadd.f32 2.0, %v318_v7  ;;  %v355_v25 = vmul.f32 %v339_v13, %v633_v12 }
  0xba   : > { %v563_v15 = vpop.eup %562  ;;  %v328_v16 = vadd.f32 2.0, %v320_v9  ;;  %v341_v27 = vmul.f32 %v561_v10, %v317_v55 }
  0xbb   : > { %v565_v17 = vpop.eup %564  ;;  %568 = vrcp.f32 %v326_v14  ;;  %v343_v29 = vmul.f32 %v563_v15, %v319_v57  ;;  %v363_v34 = vsel %vm347_vm3, %v633_v12, %v355_v25 }
  0xbc   : > { %v567_v18 = vpop.eup %566  ;;  %v338_v22 = vmul.f32 %v565_v17, %v314_v60  ;;  %570 = vrcp.f32 %v328_v16  ;;  %v357_v11 = vmul.f32 %v341_v27, %v637_v19 }
  0xbd   : > { %v340_v26 = vmul.f32 %v567_v18, %v316_v62  ;;  %v359_v42 = vmul.f32 %v343_v29, %v639_v20 }
  0xbe   : > { %v354_v28 = vmul.f32 %v338_v22, %v641_v23 }
  0xbf   : > { %v356_v30 = vmul.f32 %v340_v26, %v643_v24  ;;  %v367_v45 = vsel %vm351_vm7, %v639_v20, %v359_v42 }
  0xc0   : > { %v362_v32 = vsel %vm346_vm2, %v641_v23, %v354_v28 }
  0xc1   : > { %v569_v33 = vpop.eup %568  ;;  %v499_v35 = vpack.c.bf16 %v362_v32, %v361_v31  ;;  %v364_v36 = vsel %vm348_vm4, %v643_v24, %v356_v30  ;;  %v365_v24 = vsel %vm349_vm5, %v637_v19, %v357_v11 }
  0xc2   : > { %v571_v37 = vpop.eup %570  ;;  %v504_v38 = vpack.c.bf16 %v364_v36, %v363_v34  ;;  %v342_v39 = vmul.f32 %v569_v33, %v318_v7 }
  0xc3   : > { %500 = vst [vmem:[%s172_s4] sm:$0xff] %v499_v35   ;;  %v344_v43 = vmul.f32 %v571_v37, %v320_v9 }
  0xc4   : > { %516 = vst [vmem:[%s172_s4 + $0x8] sm:$0xff] %v504_v38   ;;  %v358_v23 = vmul.f32 %v342_v39, %v649_v40 }
  0xc5   : > { %v360_v12 = vmul.f32 %v344_v43, %v651_v41 }
  0xc6   : > { %v366_v44 = vsel %vm350_vm6, %v649_v40, %v358_v23 }
  0xc7   : > { %v509_v46 = vpack.c.bf16 %v366_v44, %v365_v24  ;;  %v368_v47 = vsel %vm352_vm8, %v651_v41, %v360_v12 }
  0xc8   : > { %v514_v48 = vpack.c.bf16 %v368_v47, %v367_v45 }
  0xc9   : > { %517 = vst [vmem:[%s172_s4 + $0x10] sm:$0xff] %v509_v46  }
  0xca   : > { %518 = vst [vmem:[%s172_s4 + $0x18] sm:$0xff] %v514_v48  }
  0xcb PF: > { %s13_s12 = sadd.s32 1, %s578_s12  }
  0xcc   : > { %p10_p4 = scmp.ge.s32.totalorder %s13_s12, 4  }
  0xce   :  { %12 = sbr.rel (!%p10_p4) target bundleno = 1 (0x1), region = 62 }

// kernel: cspdarknet_forward.20
= control target key start
LH: loop header
LB: loop body
LE: loop exit
PB: predicated region body
PF: predicated region fallthrough
CT: control target
= control target key end

     0   :  { %s578_s12 = smov 0   ;;  %s683_s0 = inlined_call_operand.vmem [shape: bf16[128,64], index: 0, kind: input, shape index: {}]   ;;  %s684_s1 = inlined_call_operand.vmem [shape: bf16[64,32], index: 1, kind: input, shape index: {}]   ;;  %s685_s2 = inlined_call_operand.vmem [shape: f32[1,32], index: 2, kind: input, shape index: {}]   ;;  %s686_s3 = inlined_call_operand.vmem [shape: bf16[128,32], index: 3, kind: output, shape index: {}]  }
   0x1 LB: > { %s442_s13 = sadd.s32 4294967295, %s556_s12   ;;  %p446_p0 = scmp.ge.s32.totalorder %s556_s12, 1  ;;  %s556_s12 = sphi %s578_s12, %s13_s12  }
   0x2   : > { %p138_p1 = scmp.lt.s32.totalorder %s556_s12, 3 }
   0x4   : > { %p139_p2 = pnand %p446_p0, %p138_p1 }
   0x5   : > { %s447_s16 = sshll.u32 (!%p139_p2), %s442_s13, 3 }
   0x6   : > { %142 = sbr.rel (%p139_p2) target bundleno = 203 (0xcb), region = 32  ;;  %p163_p3 = scmp.lt.s32.totalorder (!%p139_p2), %s447_s16, 15 }
   0xb   : > { %v496_v0 = vld [vmem:[%s684_s1 + $0x18] sm:$0xff]  ;;  %v495_v1 = vld [vmem:[%s684_s1 + $0x10] sm:$0xff]  ;;  %s688_s16 = smov (!%p163_p3, %s447_s16), 15  ;;  %v494_v2 = vld [vmem:[%s684_s1 + $0x8] sm:$0xff]  ;;  %vm239_vm0 = vcmask 523264   ;;  %vm377_vm2 = vcmask 257024  }
   0xc   : > { %256 = vmatpush.bf16.msra.mxu0 %v496_v0  ;;  %497 = vmatpush.bf16.msra.mxu1 %v496_v0  ;;  %s448_s21 = sshll.u32 %s688_s16, 2  ;;  %v493_v3 = vld [vmem:[%s684_s1] sm:$0xff] }
   0xd   : > { %498 = vmatpush.bf16.msra.mxu2 %v496_v0  ;;  %499 = vmatpush.bf16.msra.mxu3 %v496_v0  ;;  %s166_s26 = scalar_lea.vmem %s683_s0, %s448_s21  ;;  %v517_v8 = vld [vmem:[%s685_s2] ss:$0 sm:$0xff]  ;;  %s641_s4 = scalar_lea.vmem %s686_s3, %s448_s21 }
   0xe   : > { %v489_v4 = vld [vmem:[%s166_s26] sm:$0xff]  ;;  %v490_v5 = vld [vmem:[%s166_s26 + $0x8] sm:$0xff]  ;;  %v491_v6 = vld [vmem:[%s166_s26 + $0x10] sm:$0xff] }
   0xf   : > { %v492_v7 = vld [vmem:[%s166_s26 + $0x18] sm:$0xff] }
  0x10   : > { %257 = vmatpush.bf16.msra.mxu0 %v495_v1  ;;  %500 = vmatpush.bf16.msra.mxu1 %v495_v1 }
  0x11   : > { %501 = vmatpush.bf16.msra.mxu2 %v495_v1  ;;  %502 = vmatpush.bf16.msra.mxu3 %v495_v1 }
  0x14   : > { %258 = vmatpush.bf16.msra.mxu0 %v494_v2  ;;  %503 = vmatpush.bf16.msra.mxu1 %v494_v2 }
  0x15   : > { %504 = vmatpush.bf16.msra.mxu2 %v494_v2  ;;  %505 = vmatpush.bf16.msra.mxu3 %v494_v2 }
  0x18   : > { %259 = vmatpush.bf16.msra.mxu0 %v493_v3  ;;  %506 = vmatpush.bf16.msra.mxu1 %v493_v3 }
  0x19   : > { %507 = vmatpush.bf16.msra.mxu2 %v493_v3  ;;  %508 = vmatpush.bf16.msra.mxu3 %v493_v3 }
  0x1b   : > { %483 = vmatmul.msk.bf16.vlgmr.msra.gmra.mxu0 %vm239_vm0, %v489_v4  ;;  %484 = vmatmul.msk.bf16.vlgmr.msra.gmra.mxu1 %vm239_vm0, %v490_v5 }
  0x1c   : > { %485 = vmatmul.msk.bf16.vlgmr.msra.gmra.mxu2 %vm239_vm0, %v491_v6  ;;  %486 = vmatmul.msk.bf16.vlgmr.msra.gmra.mxu3 %vm239_vm0, %v492_v7 }
  0x98   : > { %v261_v9 = vpop.f32.mrf.mxu0  ;;  %v266_v10 = vpop.f32.mrf.mxu1 }
  0x99   : > { %v609_v11 = vadd.f32 %v517_v8, %v261_v9  ;;  %v611_v12 = vadd.f32 %v517_v8, %v266_v10 }
  0x9b   : > { %v281_v13 = vmin.f32 %v609_v11, 20.0  ;;  %v283_v14 = vmin.f32 %v611_v12, 20.0  ;;  %vm345_vm1 = vcmp.gt.f32.partialorder %v609_v11, 20.0  ;;  %vm347_vm3 = vcmp.gt.f32.partialorder %v611_v12, 20.0 }
  0x9d   : > { %v289_v15 = vmul.f32 1.442695, %v281_v13  ;;  %v293_v16 = vmul.f32 1.442695, %v283_v14 }
  0x9f   : > { %518 = vpow2.f32 %v289_v15  ;;  %v271_v17 = vpop.f32.mrf.mxu2  ;;  %v276_v18 = vpop.f32.mrf.mxu3 }
  0xa0   : > { %520 = vpow2.f32 %v293_v16  ;;  %v615_v19 = vadd.f32 %v517_v8, %v271_v17  ;;  %v617_v20 = vadd.f32 %v517_v8, %v276_v18  ;;  %v263_v21 = vpop.f32.mrf.mxu0  ;;  %v268_v22 = vpop.f32.mrf.mxu1 }
  0xa1   : > { %v619_v23 = vadd.f32 %v517_v8, %v263_v21  ;;  %v621_v24 = vadd.f32 %v517_v8, %v268_v22 }
  0xa2   : > { %v285_v25 = vmin.f32 %v615_v19, 20.0  ;;  %v287_v26 = vmin.f32 %v617_v20, 20.0  ;;  %vm349_vm4 = vcmp.gt.f32.partialorder %v615_v19, 20.0  ;;  %vm351_vm5 = vcmp.gt.f32.partialorder %v617_v20, 20.0 }
  0xa3   : > { %v282_v27 = vmin.f32 %v619_v23, 20.0  ;;  %v284_v28 = vmin.f32 %v621_v24, 20.0  ;;  %vm346_vm6 = vcmp.gt.f32.partialorder %v619_v23, 20.0  ;;  %vm348_vm7 = vcmp.gt.f32.partialorder %v621_v24, 20.0 }
  0xa4   : > { %v297_v29 = vmul.f32 1.442695, %v285_v25  ;;  %v301_v30 = vmul.f32 1.442695, %v287_v26 }
  0xa5   : > { %v519_v31 = vpop.eup %518  ;;  %v291_v32 = vmul.f32 1.442695, %v282_v27  ;;  %v295_v33 = vmul.f32 1.442695, %v284_v28 }
  0xa6   : > { %v521_v34 = vpop.eup %520  ;;  %v305_v35 = vadd.f32 2.0, %v519_v31  ;;  %522 = vpow2.f32 %v297_v29 }
  0xa7   : > { %v307_v36 = vadd.f32 2.0, %v521_v34  ;;  %524 = vpow2.f32 %v301_v30  ;;  %v273_v37 = vpop.f32.mrf.mxu2  ;;  %v278_v38 = vpop.f32.mrf.mxu3 }
  0xa8   : > { %v313_v39 = vmul.f32 %v519_v31, %v305_v35  ;;  %526 = vpow2.f32 %v291_v32  ;;  %v627_v40 = vadd.f32 %v517_v8, %v273_v37  ;;  %v629_v41 = vadd.f32 %v517_v8, %v278_v38 }
  0xa9   : > { %v315_v42 = vmul.f32 %v521_v34, %v307_v36  ;;  %528 = vpow2.f32 %v295_v33 }
  0xaa   : > { %v321_v43 = vadd.f32 2.0, %v313_v39  ;;  %v286_v44 = vmin.f32 %v627_v40, 20.0  ;;  %v288_v45 = vmin.f32 %v629_v41, 20.0  ;;  %vm350_vm8 = vcmp.gt.f32.partialorder %v627_v40, 20.0 }
  0xab   : > { %v323_v46 = vadd.f32 2.0, %v315_v42  ;;  %vm352_vm9 = vcmp.gt.f32.partialorder %v629_v41, 20.0 }
  0xac   : > { %v523_v47 = vpop.eup %522  ;;  %530 = vrcp.f32 %v321_v43  ;;  %v299_v48 = vmul.f32 1.442695, %v286_v44  ;;  %v303_v49 = vmul.f32 1.442695, %v288_v45 }
  0xad   : > { %v525_v50 = vpop.eup %524  ;;  %532 = vrcp.f32 %v323_v46  ;;  %v309_v51 = vadd.f32 2.0, %v523_v47 }
  0xae   : > { %v527_v52 = vpop.eup %526  ;;  %v311_v53 = vadd.f32 2.0, %v525_v50  ;;  %534 = vpow2.f32 %v299_v48 }
  0xaf   : > { %v529_v54 = vpop.eup %528  ;;  %v317_v55 = vmul.f32 %v523_v47, %v309_v51  ;;  %v306_v56 = vadd.f32 2.0, %v527_v52  ;;  %536 = vpow2.f32 %v303_v49 }
  0xb0   : > { %v319_v57 = vmul.f32 %v525_v50, %v311_v53  ;;  %v308_v58 = vadd.f32 2.0, %v529_v54 }
  0xb1   : > { %v325_v59 = vadd.f32 2.0, %v317_v55  ;;  %v314_v60 = vmul.f32 %v527_v52, %v306_v56 }
  0xb2   : > { %v531_v61 = vpop.eup %530  ;;  %v327_v62 = vadd.f32 2.0, %v319_v57  ;;  %v316_v63 = vmul.f32 %v529_v54, %v308_v58 }
  0xb3   : > { %v533_v0 = vpop.eup %532  ;;  %v337_v1 = vmul.f32 %v531_v61, %v313_v39  ;;  %538 = vrcp.f32 %v325_v59  ;;  %v322_v2 = vadd.f32 2.0, %v314_v60 }
  0xb4   : > { %v535_v3 = vpop.eup %534  ;;  %v339_v4 = vmul.f32 %v533_v0, %v315_v42  ;;  %540 = vrcp.f32 %v327_v62  ;;  %v324_v5 = vadd.f32 2.0, %v316_v63 }
  0xb5   : > { %v537_v6 = vpop.eup %536  ;;  %v353_v7 = vmul.f32 %v337_v1, %v609_v11  ;;  %542 = vrcp.f32 %v322_v2  ;;  %v310_v8 = vadd.f32 2.0, %v535_v3 }
  0xb6   : > { %v355_v9 = vmul.f32 %v339_v4, %v611_v12  ;;  %544 = vrcp.f32 %v324_v5  ;;  %v312_v10 = vadd.f32 2.0, %v537_v6 }
  0xb7   : > { %v361_v13 = vsel %vm345_vm1, %v609_v11, %v353_v7  ;;  %v318_v14 = vmul.f32 %v535_v3, %v310_v8 }
  0xb8   : > { %v369_v15 = vpack.c.bf16 %v361_v13, %v361_v13  ;;  %v363_v16 = vsel %vm347_vm3, %v611_v12, %v355_v9  ;;  %v320_v17 = vmul.f32 %v537_v6, %v312_v10 }
  0xb9   : > { %v539_v18 = vpop.eup %538  ;;  %v371_v21 = vpack.c.bf16 %v363_v16, %v363_v16  ;;  %v326_v22 = vadd.f32 2.0, %v318_v14 }
  0xba   : > { %v541_v25 = vpop.eup %540  ;;  %378 = vst.msk [vmem:[%s641_s4] sm:$0xf] %vm377_vm2, %v369_v15  ;;  %v341_v26 = vmul.f32 %v539_v18, %v317_v55  ;;  %v328_v27 = vadd.f32 2.0, %v320_v17 }
  0xbb   : > { %v543_v28 = vpop.eup %542  ;;  %380 = vst.msk [vmem:[%s641_s4 + $0x8] sm:$0xf] %vm377_vm2, %v371_v21  ;;  %v343_v11 = vmul.f32 %v541_v25, %v319_v57  ;;  %546 = vrcp.f32 %v326_v22 }
  0xbc   : > { %v545_v29 = vpop.eup %544  ;;  %v357_v30 = vmul.f32 %v341_v26, %v615_v19  ;;  %v338_v31 = vmul.f32 %v543_v28, %v314_v60  ;;  %548 = vrcp.f32 %v328_v27 }
  0xbd   : > { %v359_v12 = vmul.f32 %v343_v11, %v617_v20  ;;  %v340_v32 = vmul.f32 %v545_v29, %v316_v63 }
  0xbe   : > { %v365_v33 = vsel %vm349_vm4, %v615_v19, %v357_v30  ;;  %v354_v34 = vmul.f32 %v338_v31, %v619_v23 }
  0xbf   : > { %v373_v35 = vpack.c.bf16 %v365_v33, %v365_v33  ;;  %v367_v36 = vsel %vm351_vm5, %v617_v20, %v359_v12  ;;  %v356_v37 = vmul.f32 %v340_v32, %v621_v24 }
  0xc0   : > { %v375_v38 = vpack.c.bf16 %v367_v36, %v367_v36  ;;  %v362_v39 = vsel %vm346_vm6, %v619_v23, %v354_v34 }
  0xc1   : > { %v547_v42 = vpop.eup %546  ;;  %382 = vst.msk [vmem:[%s641_s4 + $0x10] sm:$0xf] %vm377_vm2, %v373_v35  ;;  %v370_v19 = vpack.c.bf16 %v362_v39, %v362_v39  ;;  %v364_v43 = vsel %vm348_vm7, %v621_v24, %v356_v37 }
  0xc2   : > { %v549_v44 = vpop.eup %548  ;;  %384 = vst.msk [vmem:[%s641_s4 + $0x18] sm:$0xf] %vm377_vm2, %v375_v38  ;;  %v372_v20 = vpack.c.bf16 %v364_v43, %v364_v43  ;;  %v342_v45 = vmul.f32 %v547_v42, %v318_v14 }
  0xc3   : > { %379 = vst.msk [vmem:[%s641_s4 + $0x4] sm:$0xf] %vm377_vm2, %v370_v19  ;;  %v344_v46 = vmul.f32 %v549_v44, %v320_v17 }
  0xc4   : > { %381 = vst.msk [vmem:[%s641_s4 + $0xc] sm:$0xf] %vm377_vm2, %v372_v20  ;;  %v358_v23 = vmul.f32 %v342_v45, %v627_v40 }
  0xc5   : > { %v360_v47 = vmul.f32 %v344_v46, %v629_v41 }
  0xc6   : > { %v366_v24 = vsel %vm350_vm8, %v627_v40, %v358_v23 }
  0xc7   : > { %v374_v48 = vpack.c.bf16 %v366_v24, %v366_v24  ;;  %v368_v49 = vsel %vm352_vm9, %v629_v41, %v360_v47 }
  0xc8   : > { %v376_v50 = vpack.c.bf16 %v368_v49, %v368_v49 }
  0xc9   : > { %383 = vst.msk [vmem:[%s641_s4 + $0x14] sm:$0xf] %vm377_vm2, %v374_v48 }
  0xca   : > { %385 = vst.msk [vmem:[%s641_s4 + $0x1c] sm:$0xf] %vm377_vm2, %v376_v50 }
  0xcb PF: > { %s13_s12 = sadd.s32 1, %s556_s12  }
  0xcc   : > { %p10_p4 = scmp.ge.s32.totalorder %s13_s12, 4  }
  0xce   :  { %12 = sbr.rel (!%p10_p4) target bundleno = 1 (0x1), region = 62 }

// kernel: cspdarknet_forward.22
= control target key start
LH: loop header
LB: loop body
LE: loop exit
PB: predicated region body
PF: predicated region fallthrough
CT: control target
= control target key end

     0   :  { %s578_s12 = smov 0   ;;  %s683_s0 = inlined_call_operand.vmem [shape: bf16[128,64], index: 0, kind: input, shape index: {}]   ;;  %s684_s1 = inlined_call_operand.vmem [shape: bf16[64,64], index: 1, kind: input, shape index: {}]   ;;  %s685_s2 = inlined_call_operand.vmem [shape: f32[1,64], index: 2, kind: input, shape index: {}]   ;;  %s686_s3 = inlined_call_operand.vmem [shape: bf16[128,64], index: 3, kind: output, shape index: {}]  }
   0x1 LB: > { %s442_s13 = sadd.s32 4294967295, %s556_s12   ;;  %p446_p0 = scmp.ge.s32.totalorder %s556_s12, 1  ;;  %s556_s12 = sphi %s578_s12, %s13_s12  }
   0x2   : > { %p138_p1 = scmp.lt.s32.totalorder %s556_s12, 3 }
   0x4   : > { %p139_p2 = pnand %p446_p0, %p138_p1 }
   0x5   : > { %s447_s16 = sshll.u32 (!%p139_p2), %s442_s13, 3 }
   0x6   : > { %142 = sbr.rel (%p139_p2) target bundleno = 203 (0xcb), region = 32  ;;  %p163_p3 = scmp.lt.s32.totalorder (!%p139_p2), %s447_s16, 15 }
   0xb   : > { %v496_v0 = vld [vmem:[%s684_s1 + $0x18] sm:$0xff]  ;;  %v495_v1 = vld [vmem:[%s684_s1 + $0x10] sm:$0xff]  ;;  %s688_s16 = smov (!%p163_p3, %s447_s16), 15  ;;  %v494_v2 = vld [vmem:[%s684_s1 + $0x8] sm:$0xff]  ;;  %vm239_vm0 = vcmask 523264   ;;  %vm377_vm2 = vcmask 519168  }
   0xc   : > { %256 = vmatpush.bf16.msra.mxu0 %v496_v0  ;;  %497 = vmatpush.bf16.msra.mxu1 %v496_v0  ;;  %s448_s21 = sshll.u32 %s688_s16, 2  ;;  %v493_v3 = vld [vmem:[%s684_s1] sm:$0xff] }
   0xd   : > { %498 = vmatpush.bf16.msra.mxu2 %v496_v0  ;;  %499 = vmatpush.bf16.msra.mxu3 %v496_v0  ;;  %s166_s26 = scalar_lea.vmem %s683_s0, %s448_s21  ;;  %v517_v8 = vld [vmem:[%s685_s2] ss:$0 sm:$0xff]  ;;  %s641_s4 = scalar_lea.vmem %s686_s3, %s448_s21 }
   0xe   : > { %v489_v4 = vld [vmem:[%s166_s26] sm:$0xff]  ;;  %v490_v5 = vld [vmem:[%s166_s26 + $0x8] sm:$0xff]  ;;  %v491_v6 = vld [vmem:[%s166_s26 + $0x10] sm:$0xff] }
   0xf   : > { %v492_v7 = vld [vmem:[%s166_s26 + $0x18] sm:$0xff] }
  0x10   : > { %257 = vmatpush.bf16.msra.mxu0 %v495_v1  ;;  %500 = vmatpush.bf16.msra.mxu1 %v495_v1 }
  0x11   : > { %501 = vmatpush.bf16.msra.mxu2 %v495_v1  ;;  %502 = vmatpush.bf16.msra.mxu3 %v495_v1 }
  0x14   : > { %258 = vmatpush.bf16.msra.mxu0 %v494_v2  ;;  %503 = vmatpush.bf16.msra.mxu1 %v494_v2 }
  0x15   : > { %504 = vmatpush.bf16.msra.mxu2 %v494_v2  ;;  %505 = vmatpush.bf16.msra.mxu3 %v494_v2 }
  0x18   : > { %259 = vmatpush.bf16.msra.mxu0 %v493_v3  ;;  %506 = vmatpush.bf16.msra.mxu1 %v493_v3 }
  0x19   : > { %507 = vmatpush.bf16.msra.mxu2 %v493_v3  ;;  %508 = vmatpush.bf16.msra.mxu3 %v493_v3 }
  0x1b   : > { %483 = vmatmul.msk.bf16.vlgmr.msra.gmra.mxu0 %vm239_vm0, %v489_v4  ;;  %484 = vmatmul.msk.bf16.vlgmr.msra.gmra.mxu1 %vm239_vm0, %v490_v5 }
  0x1c   : > { %485 = vmatmul.msk.bf16.vlgmr.msra.gmra.mxu2 %vm239_vm0, %v491_v6  ;;  %486 = vmatmul.msk.bf16.vlgmr.msra.gmra.mxu3 %vm239_vm0, %v492_v7 }
  0x98   : > { %v261_v9 = vpop.f32.mrf.mxu0  ;;  %v266_v10 = vpop.f32.mrf.mxu1 }
  0x99   : > { %v609_v11 = vadd.f32 %v517_v8, %v261_v9  ;;  %v611_v12 = vadd.f32 %v517_v8, %v266_v10 }
  0x9b   : > { %v281_v13 = vmin.f32 %v609_v11, 20.0  ;;  %v283_v14 = vmin.f32 %v611_v12, 20.0  ;;  %vm345_vm1 = vcmp.gt.f32.partialorder %v609_v11, 20.0  ;;  %vm347_vm3 = vcmp.gt.f32.partialorder %v611_v12, 20.0 }
  0x9d   : > { %v289_v15 = vmul.f32 1.442695, %v281_v13  ;;  %v293_v16 = vmul.f32 1.442695, %v283_v14 }
  0x9f   : > { %518 = vpow2.f32 %v289_v15  ;;  %v271_v17 = vpop.f32.mrf.mxu2  ;;  %v276_v18 = vpop.f32.mrf.mxu3 }
  0xa0   : > { %520 = vpow2.f32 %v293_v16  ;;  %v615_v19 = vadd.f32 %v517_v8, %v271_v17  ;;  %v617_v20 = vadd.f32 %v517_v8, %v276_v18  ;;  %v263_v21 = vpop.f32.mrf.mxu0  ;;  %v268_v22 = vpop.f32.mrf.mxu1 }
  0xa1   : > { %v619_v23 = vadd.f32 %v517_v8, %v263_v21  ;;  %v621_v24 = vadd.f32 %v517_v8, %v268_v22 }
  0xa2   : > { %v285_v25 = vmin.f32 %v615_v19, 20.0  ;;  %v287_v26 = vmin.f32 %v617_v20, 20.0  ;;  %vm349_vm4 = vcmp.gt.f32.partialorder %v615_v19, 20.0  ;;  %vm351_vm5 = vcmp.gt.f32.partialorder %v617_v20, 20.0 }
  0xa3   : > { %v282_v27 = vmin.f32 %v619_v23, 20.0  ;;  %v284_v28 = vmin.f32 %v621_v24, 20.0  ;;  %vm346_vm6 = vcmp.gt.f32.partialorder %v619_v23, 20.0  ;;  %vm348_vm7 = vcmp.gt.f32.partialorder %v621_v24, 20.0 }
  0xa4   : > { %v297_v29 = vmul.f32 1.442695, %v285_v25  ;;  %v301_v30 = vmul.f32 1.442695, %v287_v26 }
  0xa5   : > { %v519_v31 = vpop.eup %518  ;;  %v291_v32 = vmul.f32 1.442695, %v282_v27  ;;  %v295_v33 = vmul.f32 1.442695, %v284_v28 }
  0xa6   : > { %v521_v34 = vpop.eup %520  ;;  %v305_v35 = vadd.f32 2.0, %v519_v31  ;;  %522 = vpow2.f32 %v297_v29 }
  0xa7   : > { %v307_v36 = vadd.f32 2.0, %v521_v34  ;;  %524 = vpow2.f32 %v301_v30  ;;  %v273_v37 = vpop.f32.mrf.mxu2  ;;  %v278_v38 = vpop.f32.mrf.mxu3 }
  0xa8   : > { %v313_v39 = vmul.f32 %v519_v31, %v305_v35  ;;  %526 = vpow2.f32 %v291_v32  ;;  %v627_v40 = vadd.f32 %v517_v8, %v273_v37  ;;  %v629_v41 = vadd.f32 %v517_v8, %v278_v38 }
  0xa9   : > { %v315_v42 = vmul.f32 %v521_v34, %v307_v36  ;;  %528 = vpow2.f32 %v295_v33 }
  0xaa   : > { %v321_v43 = vadd.f32 2.0, %v313_v39  ;;  %v286_v44 = vmin.f32 %v627_v40, 20.0  ;;  %v288_v45 = vmin.f32 %v629_v41, 20.0  ;;  %vm350_vm8 = vcmp.gt.f32.partialorder %v627_v40, 20.0 }
  0xab   : > { %v323_v46 = vadd.f32 2.0, %v315_v42  ;;  %vm352_vm9 = vcmp.gt.f32.partialorder %v629_v41, 20.0 }
  0xac   : > { %v523_v47 = vpop.eup %522  ;;  %530 = vrcp.f32 %v321_v43  ;;  %v299_v48 = vmul.f32 1.442695, %v286_v44  ;;  %v303_v49 = vmul.f32 1.442695, %v288_v45 }
  0xad   : > { %v525_v50 = vpop.eup %524  ;;  %532 = vrcp.f32 %v323_v46  ;;  %v309_v51 = vadd.f32 2.0, %v523_v47 }
  0xae   : > { %v527_v52 = vpop.eup %526  ;;  %v311_v53 = vadd.f32 2.0, %v525_v50  ;;  %534 = vpow2.f32 %v299_v48 }
  0xaf   : > { %v529_v54 = vpop.eup %528  ;;  %v317_v55 = vmul.f32 %v523_v47, %v309_v51  ;;  %v306_v56 = vadd.f32 2.0, %v527_v52  ;;  %536 = vpow2.f32 %v303_v49 }
  0xb0   : > { %v319_v57 = vmul.f32 %v525_v50, %v311_v53  ;;  %v308_v58 = vadd.f32 2.0, %v529_v54 }
  0xb1   : > { %v325_v59 = vadd.f32 2.0, %v317_v55  ;;  %v314_v60 = vmul.f32 %v527_v52, %v306_v56 }
  0xb2   : > { %v531_v61 = vpop.eup %530  ;;  %v327_v62 = vadd.f32 2.0, %v319_v57  ;;  %v316_v63 = vmul.f32 %v529_v54, %v308_v58 }
  0xb3   : > { %v533_v0 = vpop.eup %532  ;;  %v337_v1 = vmul.f32 %v531_v61, %v313_v39  ;;  %538 = vrcp.f32 %v325_v59  ;;  %v322_v2 = vadd.f32 2.0, %v314_v60 }
  0xb4   : > { %v535_v3 = vpop.eup %534  ;;  %v339_v4 = vmul.f32 %v533_v0, %v315_v42  ;;  %540 = vrcp.f32 %v327_v62  ;;  %v324_v5 = vadd.f32 2.0, %v316_v63 }
  0xb5   : > { %v537_v6 = vpop.eup %536  ;;  %v353_v7 = vmul.f32 %v337_v1, %v609_v11  ;;  %542 = vrcp.f32 %v322_v2  ;;  %v310_v8 = vadd.f32 2.0, %v535_v3 }
  0xb6   : > { %v355_v9 = vmul.f32 %v339_v4, %v611_v12  ;;  %544 = vrcp.f32 %v324_v5  ;;  %v312_v10 = vadd.f32 2.0, %v537_v6 }
  0xb7   : > { %v361_v13 = vsel %vm345_vm1, %v609_v11, %v353_v7  ;;  %v318_v14 = vmul.f32 %v535_v3, %v310_v8 }
  0xb8   : > { %v369_v15 = vpack.c.bf16 %v361_v13, %v361_v13  ;;  %v363_v16 = vsel %vm347_vm3, %v611_v12, %v355_v9  ;;  %v320_v17 = vmul.f32 %v537_v6, %v312_v10 }
  0xb9   : > { %v539_v18 = vpop.eup %538  ;;  %v371_v21 = vpack.c.bf16 %v363_v16, %v363_v16  ;;  %v326_v22 = vadd.f32 2.0, %v318_v14 }
  0xba   : > { %v541_v25 = vpop.eup %540  ;;  %378 = vst.msk [vmem:[%s641_s4] sm:$0xf] %vm377_vm2, %v369_v15  ;;  %v341_v26 = vmul.f32 %v539_v18, %v317_v55  ;;  %v328_v27 = vadd.f32 2.0, %v320_v17 }
  0xbb   : > { %v543_v28 = vpop.eup %542  ;;  %380 = vst.msk [vmem:[%s641_s4 + $0x8] sm:$0xf] %vm377_vm2, %v371_v21  ;;  %v343_v11 = vmul.f32 %v541_v25, %v319_v57  ;;  %546 = vrcp.f32 %v326_v22 }
  0xbc   : > { %v545_v29 = vpop.eup %544  ;;  %v357_v30 = vmul.f32 %v341_v26, %v615_v19  ;;  %v338_v31 = vmul.f32 %v543_v28, %v314_v60  ;;  %548 = vrcp.f32 %v328_v27 }
  0xbd   : > { %v359_v12 = vmul.f32 %v343_v11, %v617_v20  ;;  %v340_v32 = vmul.f32 %v545_v29, %v316_v63 }
  0xbe   : > { %v365_v33 = vsel %vm349_vm4, %v615_v19, %v357_v30  ;;  %v354_v34 = vmul.f32 %v338_v31, %v619_v23 }
  0xbf   : > { %v373_v35 = vpack.c.bf16 %v365_v33, %v365_v33  ;;  %v367_v36 = vsel %vm351_vm5, %v617_v20, %v359_v12  ;;  %v356_v37 = vmul.f32 %v340_v32, %v621_v24 }
  0xc0   : > { %v375_v38 = vpack.c.bf16 %v367_v36, %v367_v36  ;;  %v362_v39 = vsel %vm346_vm6, %v619_v23, %v354_v34 }
  0xc1   : > { %v547_v42 = vpop.eup %546  ;;  %382 = vst.msk [vmem:[%s641_s4 + $0x10] sm:$0xf] %vm377_vm2, %v373_v35  ;;  %v370_v19 = vpack.c.bf16 %v362_v39, %v362_v39  ;;  %v364_v43 = vsel %vm348_vm7, %v621_v24, %v356_v37 }
  0xc2   : > { %v549_v44 = vpop.eup %548  ;;  %384 = vst.msk [vmem:[%s641_s4 + $0x18] sm:$0xf] %vm377_vm2, %v375_v38  ;;  %v372_v20 = vpack.c.bf16 %v364_v43, %v364_v43  ;;  %v342_v45 = vmul.f32 %v547_v42, %v318_v14 }
  0xc3   : > { %379 = vst.msk [vmem:[%s641_s4 + $0x4] sm:$0xf] %vm377_vm2, %v370_v19  ;;  %v344_v46 = vmul.f32 %v549_v44, %v320_v17 }
  0xc4   : > { %381 = vst.msk [vmem:[%s641_s4 + $0xc] sm:$0xf] %vm377_vm2, %v372_v20  ;;  %v358_v23 = vmul.f32 %v342_v45, %v627_v40 }
  0xc5   : > { %v360_v47 = vmul.f32 %v344_v46, %v629_v41 }
  0xc6   : > { %v366_v24 = vsel %vm350_vm8, %v627_v40, %v358_v23 }
  0xc7   : > { %v374_v48 = vpack.c.bf16 %v366_v24, %v366_v24  ;;  %v368_v49 = vsel %vm352_vm9, %v629_v41, %v360_v47 }
  0xc8   : > { %v376_v50 = vpack.c.bf16 %v368_v49, %v368_v49 }
  0xc9   : > { %383 = vst.msk [vmem:[%s641_s4 + $0x14] sm:$0xf] %vm377_vm2, %v374_v48 }
  0xca   : > { %385 = vst.msk [vmem:[%s641_s4 + $0x1c] sm:$0xf] %vm377_vm2, %v376_v50 }
  0xcb PF: > { %s13_s12 = sadd.s32 1, %s556_s12  }
  0xcc   : > { %p10_p4 = scmp.ge.s32.totalorder %s13_s12, 4  }
  0xce   :  { %12 = sbr.rel (!%p10_p4) target bundleno = 1 (0x1), region = 62 }

// kernel: cspdarknet_forward.21
= control target key start
LH: loop header
LB: loop body
LE: loop exit
PB: predicated region body
PF: predicated region fallthrough
CT: control target
= control target key end

     0   :  { %s1078_s15 = smov 0   ;;  %s1248_s0 = inlined_call_operand.vmem [shape: bf16[160,96], index: 0, kind: input, shape index: {}]   ;;  %s1249_s1 = inlined_call_operand.vmem [shape: bf16[3,96,64], index: 1, kind: input, shape index: {}]   ;;  %s1250_s2 = inlined_call_operand.vmem [shape: f32[1,64], index: 2, kind: input, shape index: {}]   ;;  %s1251_s3 = inlined_call_operand.vmem [shape: bf16[128,64], index: 3, kind: input, shape index: {}]   ;;  %s1252_s4 = inlined_call_operand.vmem [shape: bf16[128,64], index: 4, kind: output, shape index: {}]  }
   0x1 LB: > { %s774_s16 = sadd.s32 4294967295, %s1051_s15   ;;  %p778_p0 = scmp.ge.s32.totalorder %s1051_s15, 1  ;;  %s1051_s15 = sphi %s1078_s15, %s14_s15  }
   0x2   : > { %p174_p1 = scmp.lt.s32.totalorder %s1051_s15, 3 }
   0x4   : > { %p175_p2 = pnand %p778_p0, %p174_p1 }
   0x5   : > { %s205_s29 = smul.u32 (!%p175_p2), 10, %s774_s16  ;;  %s780_s10 = sshll.u32 (!%p175_p2), %s774_s16, 3 }
   0x6   : > { %178 = sbr.rel (%p175_p2) target bundleno = 262 (0x106), region = 36  ;;  %p212_p4 = scmp.lt.s32.totalorder (!%p175_p2), %s780_s10, 15 }
   0x7   : > { %p206_p3 = scmp.lt.s32.totalorder (!%p175_p2), %s205_s29, 19 }
   0xb   : > { %v921_v0 = vld [vmem:[%s1249_s1 + $0x58] sm:$0xff]  ;;  %v915_v1 = vld [vmem:[%s1249_s1 + $0x28] sm:$0xff]  ;;  %v920_v3 = vld [vmem:[%s1249_s1 + $0x50] sm:$0xff]  ;;  %s1254_s29 = smov (!%p206_p3, %s205_s29), 19  ;;  %vm314_vm0 = vcmask 785408   ;;  %s1256_s10 = smov (!%p212_p4, %s780_s10), 15 }
   0xc   : > { %v931_v2 = vld [vmem:[%s1249_s1 + $0x88] sm:$0xff]  ;;  %329 = vmatpush.bf16.msra.mxu0 %v921_v0  ;;  %412 = vmatpush.bf16.msra.mxu1 %v915_v1  ;;  %v914_v4 = vld [vmem:[%s1249_s1 + $0x20] sm:$0xff]  ;;  %v913_v7 = vld [vmem:[%s1249_s1 + $0x18] sm:$0xff]  ;;  %s779_s24 = sshll.u32 %s1254_s29, 2  ;;  %s781_s16 = sshll.u32 %s1256_s10, 2  ;;  %vm697_vm2 = vcmask 519168  }
   0xd   : > { %530 = vmatpush.bf16.msra.mxu2 %v931_v2  ;;  %v930_v5 = vld [vmem:[%s1249_s1 + $0x80] sm:$0xff]  ;;  %990 = vmatpush.bf16.msra.mxu3 %v921_v0  ;;  %v919_v6 = vld [vmem:[%s1249_s1 + $0x48] sm:$0xff]  ;;  %v929_v8 = vld [vmem:[%s1249_s1 + $0x78] sm:$0xff]  ;;  %s209_s6 = scalar_lea.vmem %s1248_s0, %s779_s24  ;;  %s1181_s13 = scalar_lea.vmem %s1251_s3, %s781_s16 }
   0xe   : > { %v918_v9 = vld [vmem:[%s1249_s1 + $0x40] sm:$0xff]  ;;  %v912_v10 = vld [vmem:[%s1249_s1 + $0x10] sm:$0xff]  ;;  %v917_v12 = vld [vmem:[%s1249_s1 + $0x38] sm:$0xff]  ;;  %s1193_s18 = scalar_lea.vmem %s1252_s4, %s781_s16 }
   0xf   : > { %v928_v11 = vld [vmem:[%s1249_s1 + $0x70] sm:$0xff]  ;;  %v911_v13 = vld [vmem:[%s1249_s1 + $0x8] sm:$0xff]  ;;  %v910_v16 = vld [vmem:[%s1249_s1] sm:$0xff] }
  0x10   : > { %330 = vmatpush.bf16.msra.mxu0 %v920_v3  ;;  %413 = vmatpush.bf16.msra.mxu1 %v914_v4  ;;  %v927_v14 = vld [vmem:[%s1249_s1 + $0x68] sm:$0xff]  ;;  %v916_v15 = vld [vmem:[%s1249_s1 + $0x30] sm:$0xff]  ;;  %v926_v17 = vld [vmem:[%s1249_s1 + $0x60] sm:$0xff] }
  0x11   : > { %531 = vmatpush.bf16.msra.mxu2 %v930_v5  ;;  %991 = vmatpush.bf16.msra.mxu3 %v920_v3  ;;  %v998_v18 = vld [vmem:[%s209_s6 + $0x4] sm:$0xff]   ;;  %v1000_v21 = vld [vmem:[%s209_s6 + $0xc] sm:$0xff]   ;;  %v1002_v24 = vld [vmem:[%s209_s6 + $0x14] sm:$0xff]  }
  0x12   : > { %v933_v19 = vld [vmem:[%s209_s6] sm:$0xff]   ;;  %v922_v20 = vld [vmem:[%s209_s6 + $0x8] sm:$0xff]  ;;  %v923_v23 = vld [vmem:[%s209_s6 + $0x10] sm:$0xff] }
  0x13   : > { %v964_v22 = vld [vmem:[%s209_s6 + $0x8] sm:$0xff]   ;;  %v965_v25 = vld [vmem:[%s209_s6 + $0x10] sm:$0xff]   ;;  %v924_v26 = vld [vmem:[%s209_s6 + $0x18] sm:$0xff] }
  0x14   : > { %331 = vmatpush.bf16.msra.mxu0 %v919_v6  ;;  %414 = vmatpush.bf16.msra.mxu1 %v913_v7  ;;  %v1003_v27 = vld [vmem:[%s209_s6 + $0x1c] sm:$0xff] }
  0x15   : > { %532 = vmatpush.bf16.msra.mxu2 %v929_v8  ;;  %992 = vmatpush.bf16.msra.mxu3 %v919_v6  ;;  %v966_v28 = vld [vmem:[%s209_s6 + $0x18] sm:$0xff]   ;;  %v925_v29 = vld [vmem:[%s209_s6 + $0x20] sm:$0xff] }
  0x16   : > { %v1160_v33 = vld [vmem:[%s1250_s2] ss:$0 sm:$0xff] }
  0x17   : > { %v949_v5 = vld [vmem:[%s1181_s13] sm:$0xff]  }
  0x18   : > { %332 = vmatpush.bf16.msra.mxu0 %v918_v9  ;;  %415 = vmatpush.bf16.msra.mxu1 %v912_v10 }
  0x19   : > { %533 = vmatpush.bf16.msra.mxu2 %v928_v11  ;;  %993 = vmatpush.bf16.msra.mxu3 %v918_v9 }
  0x1c   : > { %333 = vmatpush.bf16.msra.mxu0 %v917_v12  ;;  %416 = vmatpush.bf16.msra.mxu1 %v911_v13 }
  0x1d   : > { %534 = vmatpush.bf16.msra.mxu2 %v927_v14  ;;  %994 = vmatpush.bf16.msra.mxu3 %v917_v12  ;;  %v950_v12 = vunpack.c.l.bf16 %v949_v5 }
  0x20   : > { %334 = vmatpush.bf16.msra.mxu0 %v916_v15  ;;  %417 = vmatpush.bf16.msra.mxu1 %v910_v16 }
  0x21   : > { %535 = vmatpush.bf16.msra.mxu2 %v926_v17  ;;  %995 = vmatpush.bf16.msra.mxu3 %v916_v15 }
  0x23   : > { %820 = vmatmul.msk.bf16.vlgmr.msra.gmra.mxu0 %vm314_vm0, %v998_v18  ;;  %848 = vmatmul.msk.bf16.vlgmr.msra.gmra.mxu1 %vm314_vm0, %v933_v19 }
  0x24   : > { %904 = vmatmul.msk.bf16.vlgmr.msra.gmra.mxu2 %vm314_vm0, %v922_v20  ;;  %821 = vmatmul.msk.bf16.vlgmr.msra.gmra.mxu3 %vm314_vm0, %v1000_v21 }
  0x33   : > { %849 = vmatmul.msk.bf16.gmra.mxu1 %vm314_vm0, %v964_v22 }
  0x34   : > { %905 = vmatmul.msk.bf16.gmra.mxu2 %vm314_vm0, %v923_v23  ;;  %822 = vmatmul.msk.bf16.gmra.mxu3 %vm314_vm0, %v1002_v24 }
  0x43   : > { %850 = vmatmul.msk.bf16.gmra.mxu1 %vm314_vm0, %v965_v25 }
  0x44   : > { %906 = vmatmul.msk.bf16.gmra.mxu2 %vm314_vm0, %v924_v26  ;;  %823 = vmatmul.msk.bf16.gmra.mxu3 %vm314_vm0, %v1003_v27 }
  0x53   : > { %851 = vmatmul.msk.bf16.gmra.mxu1 %vm314_vm0, %v966_v28 }
  0x54   : > { %907 = vmatmul.msk.bf16.gmra.mxu2 %vm314_vm0, %v925_v29 }
  0xa0   : > { %v419_v30 = vpop.f32.mrf.mxu1  ;;  %v336_v31 = vpop.f32.mrf.mxu0 }
  0xa1   : > { %v420_v32 = vadd.f32 %v419_v30, %v336_v31  ;;  %v951_v30 = vunpack.c.h.bf16 %v949_v5 }
  0xa7   : > { %v537_v34 = vpop.f32.mrf.mxu2  ;;  %v341_v39 = vpop.f32.mrf.mxu3 }
  0xa8   : > { %v557_v35 = vadd.f32 %v537_v34, %v420_v32  ;;  %v421_v36 = vpop.f32.mrf.mxu1  ;;  %v338_v38 = vpop.f32.mrf.mxu0 }
  0xa9   : > { %v422_v42 = vadd.f32 %v421_v36, %v338_v38 }
  0xaa   : > { %v569_v37 = vadd.f32 %v1160_v33, %v557_v35 }
  0xac   : > { %v577_v40 = vmin.f32 %v569_v37, 20.0  ;;  %vm641_vm1 = vcmp.gt.f32.partialorder %v569_v37, 20.0 }
  0xae   : > { %v585_v41 = vmul.f32 1.442695, %v577_v40 }
  0xaf   : > { %v539_v43 = vpop.f32.mrf.mxu2  ;;  %v343_v49 = vpop.f32.mrf.mxu3 }
  0xb0   : > { %1013 = vpow2.f32 %v585_v41  ;;  %v558_v44 = vadd.f32 %v539_v43, %v422_v42  ;;  %v424_v45 = vpop.f32.mrf.mxu1  ;;  %v967_v43 = vld [vmem:[%s1181_s13 + $0x8] sm:$0xff]  }
  0xb1   : > { %v425_v48 = vadd.f32 %v424_v45, %v341_v39 }
  0xb2   : > { %v1166_v46 = vadd.f32 %v1160_v33, %v558_v44 }
  0xb4   : > { %v578_v47 = vmin.f32 %v1166_v46, 20.0  ;;  %vm642_vm3 = vcmp.gt.f32.partialorder %v1166_v46, 20.0 }
  0xb6   : > { %v1014_v50 = vpop.eup %1013  ;;  %v587_v51 = vmul.f32 1.442695, %v578_v47 }
  0xb7   : > { %v601_v52 = vadd.f32 2.0, %v1014_v50  ;;  %v542_v53 = vpop.f32.mrf.mxu2  ;;  %v346_v0 = vpop.f32.mrf.mxu3 }
  0xb8   : > { %1015 = vpow2.f32 %v587_v51  ;;  %v559_v54 = vadd.f32 %v542_v53, %v425_v48  ;;  %v426_v55 = vpop.f32.mrf.mxu1 }
  0xb9   : > { %v609_v56 = vmul.f32 %v1014_v50, %v601_v52  ;;  %v427_v62 = vadd.f32 %v426_v55, %v343_v49 }
  0xba   : > { %v1172_v57 = vadd.f32 %v1160_v33, %v559_v54 }
  0xbb   : > { %v617_v58 = vadd.f32 2.0, %v609_v56 }
  0xbc   : > { %v579_v59 = vmin.f32 %v1172_v57, 20.0  ;;  %vm643_vm4 = vcmp.gt.f32.partialorder %v1172_v57, 20.0 }
  0xbd   : > { %1017 = vrcp.f32 %v617_v58 }
  0xbe   : > { %v1016_v60 = vpop.eup %1015  ;;  %v589_v61 = vmul.f32 1.442695, %v579_v59 }
  0xbf   : > { %v602_v63 = vadd.f32 2.0, %v1016_v60  ;;  %v544_v1 = vpop.f32.mrf.mxu2  ;;  %v348_v23 = vpop.f32.mrf.mxu3 }
  0xc0   : > { %1019 = vpow2.f32 %v589_v61  ;;  %v560_v2 = vadd.f32 %v544_v1, %v427_v62  ;;  %v429_v3 = vpop.f32.mrf.mxu1 }
  0xc1   : > { %v610_v4 = vmul.f32 %v1016_v60, %v602_v63  ;;  %v430_v11 = vadd.f32 %v429_v3, %v346_v0 }
  0xc2   : > { %v1185_v6 = vadd.f32 %v1160_v33, %v560_v2 }
  0xc3   : > { %v1018_v7 = vpop.eup %1017  ;;  %v618_v8 = vadd.f32 2.0, %v610_v4 }
  0xc4   : > { %v633_v9 = vmul.f32 %v1018_v7, %v609_v56  ;;  %v580_v10 = vmin.f32 %v1185_v6, 20.0  ;;  %v955_v7 = vunpack.c.h.bf16 %v967_v43  ;;  %vm644_vm5 = vcmp.gt.f32.partialorder %v1185_v6, 20.0 }
  0xc5   : > { %1021 = vrcp.f32 %v618_v8 }
  0xc6   : > { %v1020_v13 = vpop.eup %1019  ;;  %v649_v14 = vmul.f32 %v633_v9, %v569_v37  ;;  %v591_v15 = vmul.f32 1.442695, %v580_v10 }
  0xc7   : > { %v603_v16 = vadd.f32 2.0, %v1020_v13  ;;  %v547_v17 = vpop.f32.mrf.mxu2  ;;  %v351_v49 = vpop.f32.mrf.mxu3 }
  0xc8   : > { %v657_v18 = vsel %vm641_vm1, %v569_v37, %v649_v14  ;;  %1023 = vpow2.f32 %v591_v15  ;;  %v561_v19 = vadd.f32 %v547_v17, %v430_v11  ;;  %v431_v20 = vpop.f32.mrf.mxu1 }
  0xc9   : > { %v681_v21 = vadd.f32 %v950_v12, %v657_v18  ;;  %v611_v22 = vmul.f32 %v1020_v13, %v603_v16  ;;  %v432_v35 = vadd.f32 %v431_v20, %v348_v23  ;;  %v968_v18 = vld [vmem:[%s1181_s13 + $0x10] sm:$0xff]  }
  0xca   : > { %v1196_v24 = vadd.f32 %v1160_v33, %v561_v19 }
  0xcb   : > { %v1022_v25 = vpop.eup %1021  ;;  %v689_v26 = vpack.c.bf16 %v681_v21, %v681_v21  ;;  %v619_v27 = vadd.f32 2.0, %v611_v22 }
  0xcc   : > { %v634_v28 = vmul.f32 %v1022_v25, %v610_v4  ;;  %v581_v29 = vmin.f32 %v1196_v24, 20.0  ;;  %vm645_vm6 = vcmp.gt.f32.partialorder %v1196_v24, 20.0 }
  0xcd   : > { %698 = vst.msk [vmem:[%s1193_s18] sm:$0xf] %vm697_vm2, %v689_v26  ;;  %1025 = vrcp.f32 %v619_v27  ;;  %v958_v26 = vunpack.c.l.bf16 %v968_v18 }
  0xce   : > { %v1024_v31 = vpop.eup %1023  ;;  %v650_v32 = vmul.f32 %v634_v28, %v1166_v46  ;;  %v593_v34 = vmul.f32 1.442695, %v581_v29 }
  0xcf   : > { %v604_v36 = vadd.f32 2.0, %v1024_v31  ;;  %v549_v37 = vpop.f32.mrf.mxu2 }
  0xd0   : > { %v658_v38 = vsel %vm642_vm3, %v1166_v46, %v650_v32  ;;  %1027 = vpow2.f32 %v593_v34  ;;  %v562_v39 = vadd.f32 %v549_v37, %v432_v35  ;;  %v434_v42 = vpop.f32.mrf.mxu1  ;;  %v954_v46 = vunpack.c.l.bf16 %v967_v43  ;;  %v969_v43 = vld [vmem:[%s1181_s13 + $0x18] sm:$0xff]  }
  0xd1   : > { %v682_v40 = vadd.f32 %v951_v30, %v658_v38  ;;  %v612_v41 = vmul.f32 %v1024_v31, %v604_v36  ;;  %v435_v52 = vadd.f32 %v434_v42, %v351_v49  ;;  %v959_v37 = vunpack.c.h.bf16 %v968_v18 }
  0xd2   : > { %v1206_v44 = vadd.f32 %v1160_v33, %v562_v39 }
  0xd3   : > { %v1026_v45 = vpop.eup %1025  ;;  %v690_v47 = vpack.c.bf16 %v682_v40, %v682_v40  ;;  %v620_v48 = vadd.f32 2.0, %v612_v41 }
  0xd4   : > { %v635_v50 = vmul.f32 %v1026_v45, %v611_v22  ;;  %v582_v51 = vmin.f32 %v1206_v44, 20.0  ;;  %vm646_vm7 = vcmp.gt.f32.partialorder %v1206_v44, 20.0 }
  0xd5   : > { %699 = vst.msk [vmem:[%s1193_s18 + $0x4] sm:$0xf] %vm697_vm2, %v690_v47  ;;  %1029 = vrcp.f32 %v620_v48 }
  0xd6   : > { %v1028_v53 = vpop.eup %1027  ;;  %v651_v54 = vmul.f32 %v635_v50, %v1172_v57  ;;  %v595_v55 = vmul.f32 1.442695, %v582_v51  ;;  %v962_v50 = vunpack.c.l.bf16 %v969_v43 }
  0xd7   : > { %v605_v56 = vadd.f32 2.0, %v1028_v53  ;;  %v552_v58 = vpop.f32.mrf.mxu2 }
  0xd8   : > { %v659_v59 = vsel %vm643_vm4, %v1172_v57, %v651_v54  ;;  %1031 = vpow2.f32 %v595_v55  ;;  %v563_v60 = vadd.f32 %v552_v58, %v435_v52  ;;  %v436_v3 = vpop.f32.mrf.mxu1  ;;  %v353_v57 = vpop.f32.mrf.mxu3  ;;  %v963_v55 = vunpack.c.h.bf16 %v969_v43 }
  0xd9   : > { %v683_v61 = vadd.f32 %v954_v46, %v659_v59  ;;  %v613_v62 = vmul.f32 %v1028_v53, %v605_v56  ;;  %v437_v11 = vadd.f32 %v436_v3, %v353_v57 }
  0xda   : > { %v1215_v63 = vadd.f32 %v1160_v33, %v563_v60 }
  0xdb   : > { %v1030_v0 = vpop.eup %1029  ;;  %v691_v1 = vpack.c.bf16 %v683_v61, %v683_v61  ;;  %v621_v2 = vadd.f32 2.0, %v613_v62 }
  0xdc   : > { %v636_v4 = vmul.f32 %v1030_v0, %v612_v41  ;;  %v583_v5 = vmin.f32 %v1215_v63, 20.0  ;;  %vm647_vm8 = vcmp.gt.f32.partialorder %v1215_v63, 20.0 }
  0xdd   : > { %700 = vst.msk [vmem:[%s1193_s18 + $0x8] sm:$0xf] %vm697_vm2, %v691_v1  ;;  %1033 = vrcp.f32 %v621_v2 }
  0xde   : > { %v1032_v8 = vpop.eup %1031  ;;  %v652_v9 = vmul.f32 %v636_v4, %v1185_v6  ;;  %v597_v10 = vmul.f32 1.442695, %v583_v5 }
  0xdf   : > { %v606_v12 = vadd.f32 2.0, %v1032_v8  ;;  %v554_v13 = vpop.f32.mrf.mxu2 }
  0xe0   : > { %v660_v14 = vsel %vm644_vm5, %v1185_v6, %v652_v9  ;;  %1035 = vpow2.f32 %v597_v10  ;;  %v564_v15 = vadd.f32 %v554_v13, %v437_v11 }
  0xe1   : > { %v684_v16 = vadd.f32 %v955_v7, %v660_v14  ;;  %v614_v17 = vmul.f32 %v1032_v8, %v606_v12 }
  0xe2   : > { %v576_v19 = vadd.f32 %v1160_v33, %v564_v15 }
  0xe3   : > { %v1034_v20 = vpop.eup %1033  ;;  %v692_v21 = vpack.c.bf16 %v684_v16, %v684_v16  ;;  %v622_v22 = vadd.f32 2.0, %v614_v17 }
  0xe4   : > { %v637_v23 = vmul.f32 %v1034_v20, %v613_v62  ;;  %v584_v25 = vmin.f32 %v576_v19, 20.0  ;;  %vm648_vm9 = vcmp.gt.f32.partialorder %v576_v19, 20.0 }
  0xe5   : > { %701 = vst.msk [vmem:[%s1193_s18 + $0xc] sm:$0xf] %vm697_vm2, %v692_v21  ;;  %1037 = vrcp.f32 %v622_v22 }
  0xe6   : > { %v1036_v27 = vpop.eup %1035  ;;  %v653_v6 = vmul.f32 %v637_v23, %v1196_v24  ;;  %v599_v28 = vmul.f32 1.442695, %v584_v25 }
  0xe7   : > { %v607_v29 = vadd.f32 2.0, %v1036_v27 }
  0xe8   : > { %v661_v30 = vsel %vm645_vm6, %v1196_v24, %v653_v6  ;;  %1039 = vpow2.f32 %v599_v28 }
  0xe9   : > { %v685_v33 = vadd.f32 %v958_v26, %v661_v30  ;;  %v615_v31 = vmul.f32 %v1036_v27, %v607_v29 }
  0xeb   : > { %v1038_v32 = vpop.eup %1037  ;;  %v693_v34 = vpack.c.bf16 %v685_v33, %v685_v33  ;;  %v623_v35 = vadd.f32 2.0, %v615_v31 }
  0xec   : > { %v638_v36 = vmul.f32 %v1038_v32, %v614_v17 }
  0xed   : > { %702 = vst.msk [vmem:[%s1193_s18 + $0x10] sm:$0xf] %vm697_vm2, %v693_v34  ;;  %1041 = vrcp.f32 %v623_v35 }
  0xee   : > { %v1040_v38 = vpop.eup %1039  ;;  %v654_v39 = vmul.f32 %v638_v36, %v1206_v44 }
  0xef   : > { %v608_v40 = vadd.f32 2.0, %v1040_v38 }
  0xf0   : > { %v662_v24 = vsel %vm646_vm7, %v1206_v44, %v654_v39 }
  0xf1   : > { %v686_v41 = vadd.f32 %v959_v37, %v662_v24  ;;  %v616_v42 = vmul.f32 %v1040_v38, %v608_v40 }
  0xf3   : > { %v1042_v45 = vpop.eup %1041  ;;  %v694_v47 = vpack.c.bf16 %v686_v41, %v686_v41  ;;  %v624_v48 = vadd.f32 2.0, %v616_v42 }
  0xf4   : > { %v639_v49 = vmul.f32 %v1042_v45, %v615_v31 }
  0xf5   : > { %703 = vst.msk [vmem:[%s1193_s18 + $0x14] sm:$0xf] %vm697_vm2, %v694_v47  ;;  %1043 = vrcp.f32 %v624_v48 }
  0xf6   : > { %v655_v51 = vmul.f32 %v639_v49, %v1215_v63 }
  0xf8   : > { %v663_v52 = vsel %vm647_vm8, %v1215_v63, %v655_v51 }
  0xf9   : > { %v687_v44 = vadd.f32 %v962_v50, %v663_v52 }
  0xfb   : > { %v1044_v46 = vpop.eup %1043  ;;  %v695_v53 = vpack.c.bf16 %v687_v44, %v687_v44 }
  0xfc   : > { %v640_v54 = vmul.f32 %v1044_v46, %v616_v42 }
  0xfd   : > { %704 = vst.msk [vmem:[%s1193_s18 + $0x18] sm:$0xf] %vm697_vm2, %v695_v53 }
  0xfe   : > { %v656_v56 = vmul.f32 %v640_v54, %v576_v19 }
 0x100   : > { %v664_v58 = vsel %vm648_vm9, %v576_v19, %v656_v56 }
 0x101   : > { %v688_v59 = vadd.f32 %v963_v55, %v664_v58 }
 0x103   : > { %v696_v60 = vpack.c.bf16 %v688_v59, %v688_v59 }
 0x105   : > { %705 = vst.msk [vmem:[%s1193_s18 + $0x1c] sm:$0xf] %vm697_vm2, %v696_v60 }
 0x106 PF: > { %s14_s15 = sadd.s32 1, %s1051_s15  }
 0x107   : > { %p11_p5 = scmp.ge.s32.totalorder %s14_s15, 4  }
 0x109   :  { %13 = sbr.rel (!%p11_p5) target bundleno = 1 (0x1), region = 71 }

// kernel: cspdarknet_forward.23
= control target key start
LH: loop header
LB: loop body
LE: loop exit
PB: predicated region body
PF: predicated region fallthrough
CT: control target
= control target key end

     0   :  { %s628_s12 = smov 0   ;;  %s745_s0 = inlined_call_operand.vmem [shape: bf16[128,128], index: 0, kind: input, shape index: {}]   ;;  %s746_s1 = inlined_call_operand.vmem [shape: bf16[128,64], index: 1, kind: input, shape index: {}]   ;;  %s747_s2 = inlined_call_operand.vmem [shape: f32[1,64], index: 2, kind: input, shape index: {}]   ;;  %s748_s3 = inlined_call_operand.vmem [shape: bf16[128,64], index: 3, kind: output, shape index: {}]  }
   0x1 LB: > { %s464_s13 = sadd.s32 4294967295, %s606_s12   ;;  %p468_p0 = scmp.ge.s32.totalorder %s606_s12, 1  ;;  %s606_s12 = sphi %s628_s12, %s13_s12  }
   0x2   : > { %p138_p1 = scmp.lt.s32.totalorder %s606_s12, 3 }
   0x4   : > { %p139_p2 = pnand %p468_p0, %p138_p1 }
   0x5   : > { %s469_s22 = sshll.u32 (!%p139_p2), %s464_s13, 3 }
   0x6   : > { %142 = sbr.rel (%p139_p2) target bundleno = 219 (0xdb), region = 32  ;;  %p163_p3 = scmp.lt.s32.totalorder (!%p139_p2), %s469_s22, 15 }
   0xb   : > { %v534_v0 = vld [vmem:[%s746_s1 + $0x38] sm:$0xff]  ;;  %v533_v1 = vld [vmem:[%s746_s1 + $0x30] sm:$0xff]  ;;  %v532_v2 = vld [vmem:[%s746_s1 + $0x28] sm:$0xff]  ;;  %s750_s22 = smov (!%p163_p3, %s469_s22), 15  ;;  %vm399_vm1 = vcmask 519168  }
   0xc   : > { %274 = vmatpush.bf16.msra.mxu0 %v534_v0  ;;  %535 = vmatpush.bf16.msra.mxu1 %v534_v0  ;;  %v531_v3 = vld [vmem:[%s746_s1 + $0x20] sm:$0xff]  ;;  %v530_v4 = vld [vmem:[%s746_s1 + $0x18] sm:$0xff]  ;;  %v529_v5 = vld [vmem:[%s746_s1 + $0x10] sm:$0xff]  ;;  %s470_s29 = sshll.u32 %s750_s22, 2 }
   0xd   : > { %536 = vmatpush.bf16.msra.mxu2 %v534_v0  ;;  %537 = vmatpush.bf16.msra.mxu3 %v534_v0  ;;  %v528_v6 = vld [vmem:[%s746_s1 + $0x8] sm:$0xff]  ;;  %v527_v7 = vld [vmem:[%s746_s1] sm:$0xff]  ;;  %s166_s7 = scalar_lea.vmem %s745_s0, %s470_s29  ;;  %s703_s13 = scalar_lea.vmem %s748_s3, %s470_s29 }
   0xe   : > { %v523_v8 = vld [vmem:[%s166_s7] sm:$0xff]  ;;  %v524_v9 = vld [vmem:[%s166_s7 + $0x8] sm:$0xff]  ;;  %v525_v10 = vld [vmem:[%s166_s7 + $0x10] sm:$0xff] }
   0xf   : > { %v526_v11 = vld [vmem:[%s166_s7 + $0x18] sm:$0xff]  ;;  %v567_v12 = vld [vmem:[%s747_s2] ss:$0 sm:$0xff] }
  0x10   : > { %275 = vmatpush.bf16.msra.mxu0 %v533_v1  ;;  %538 = vmatpush.bf16.msra.mxu1 %v533_v1 }
  0x11   : > { %539 = vmatpush.bf16.msra.mxu2 %v533_v1  ;;  %540 = vmatpush.bf16.msra.mxu3 %v533_v1 }
  0x14   : > { %276 = vmatpush.bf16.msra.mxu0 %v532_v2  ;;  %541 = vmatpush.bf16.msra.mxu1 %v532_v2 }
  0x15   : > { %542 = vmatpush.bf16.msra.mxu2 %v532_v2  ;;  %543 = vmatpush.bf16.msra.mxu3 %v532_v2 }
  0x18   : > { %277 = vmatpush.bf16.msra.mxu0 %v531_v3  ;;  %544 = vmatpush.bf16.msra.mxu1 %v531_v3 }
  0x19   : > { %545 = vmatpush.bf16.msra.mxu2 %v531_v3  ;;  %546 = vmatpush.bf16.msra.mxu3 %v531_v3 }
  0x1c   : > { %278 = vmatpush.bf16.msra.mxu0 %v530_v4  ;;  %547 = vmatpush.bf16.msra.mxu1 %v530_v4 }
  0x1d   : > { %548 = vmatpush.bf16.msra.mxu2 %v530_v4  ;;  %549 = vmatpush.bf16.msra.mxu3 %v530_v4 }
  0x20   : > { %279 = vmatpush.bf16.msra.mxu0 %v529_v5  ;;  %550 = vmatpush.bf16.msra.mxu1 %v529_v5 }
  0x21   : > { %551 = vmatpush.bf16.msra.mxu2 %v529_v5  ;;  %552 = vmatpush.bf16.msra.mxu3 %v529_v5 }
  0x24   : > { %280 = vmatpush.bf16.msra.mxu0 %v528_v6  ;;  %553 = vmatpush.bf16.msra.mxu1 %v528_v6 }
  0x25   : > { %554 = vmatpush.bf16.msra.mxu2 %v528_v6  ;;  %555 = vmatpush.bf16.msra.mxu3 %v528_v6 }
  0x28   : > { %281 = vmatpush.bf16.msra.mxu0 %v527_v7  ;;  %556 = vmatpush.bf16.msra.mxu1 %v527_v7 }
  0x29   : > { %557 = vmatpush.bf16.msra.mxu2 %v527_v7  ;;  %558 = vmatpush.bf16.msra.mxu3 %v527_v7 }
  0x2b   : > { %282 = vmatmul.bf16.vlgmr.msra.gmra.mxu0 %v523_v8  ;;  %287 = vmatmul.bf16.vlgmr.msra.gmra.mxu1 %v524_v9 }
  0x2c   : > { %292 = vmatmul.bf16.vlgmr.msra.gmra.mxu2 %v525_v10  ;;  %297 = vmatmul.bf16.vlgmr.msra.gmra.mxu3 %v526_v11 }
  0xa8   : > { %v283_v13 = vpop.f32.mrf.mxu0  ;;  %v288_v14 = vpop.f32.mrf.mxu1 }
  0xa9   : > { %v671_v15 = vadd.f32 %v567_v12, %v283_v13  ;;  %v673_v16 = vadd.f32 %v567_v12, %v288_v14 }
  0xab   : > { %v303_v17 = vmin.f32 %v671_v15, 20.0  ;;  %v305_v18 = vmin.f32 %v673_v16, 20.0  ;;  %vm367_vm0 = vcmp.gt.f32.partialorder %v671_v15, 20.0  ;;  %vm369_vm2 = vcmp.gt.f32.partialorder %v673_v16, 20.0 }
  0xad   : > { %v311_v19 = vmul.f32 1.442695, %v303_v17  ;;  %v315_v20 = vmul.f32 1.442695, %v305_v18 }
  0xaf   : > { %568 = vpow2.f32 %v311_v19  ;;  %v293_v21 = vpop.f32.mrf.mxu2  ;;  %v298_v22 = vpop.f32.mrf.mxu3 }
  0xb0   : > { %570 = vpow2.f32 %v315_v20  ;;  %v677_v23 = vadd.f32 %v567_v12, %v293_v21  ;;  %v679_v24 = vadd.f32 %v567_v12, %v298_v22  ;;  %v285_v25 = vpop.f32.mrf.mxu0  ;;  %v290_v26 = vpop.f32.mrf.mxu1 }
  0xb1   : > { %v681_v27 = vadd.f32 %v567_v12, %v285_v25  ;;  %v683_v28 = vadd.f32 %v567_v12, %v290_v26 }
  0xb2   : > { %v307_v29 = vmin.f32 %v677_v23, 20.0  ;;  %v309_v30 = vmin.f32 %v679_v24, 20.0  ;;  %vm371_vm3 = vcmp.gt.f32.partialorder %v677_v23, 20.0  ;;  %vm373_vm4 = vcmp.gt.f32.partialorder %v679_v24, 20.0 }
  0xb3   : > { %v304_v31 = vmin.f32 %v681_v27, 20.0  ;;  %v306_v32 = vmin.f32 %v683_v28, 20.0  ;;  %vm368_vm5 = vcmp.gt.f32.partialorder %v681_v27, 20.0  ;;  %vm370_vm6 = vcmp.gt.f32.partialorder %v683_v28, 20.0 }
  0xb4   : > { %v319_v33 = vmul.f32 1.442695, %v307_v29  ;;  %v323_v34 = vmul.f32 1.442695, %v309_v30 }
  0xb5   : > { %v569_v35 = vpop.eup %568  ;;  %v313_v36 = vmul.f32 1.442695, %v304_v31  ;;  %v317_v37 = vmul.f32 1.442695, %v306_v32 }
  0xb6   : > { %v571_v38 = vpop.eup %570  ;;  %v327_v39 = vadd.f32 2.0, %v569_v35  ;;  %572 = vpow2.f32 %v319_v33 }
  0xb7   : > { %v329_v40 = vadd.f32 2.0, %v571_v38  ;;  %574 = vpow2.f32 %v323_v34  ;;  %v295_v41 = vpop.f32.mrf.mxu2  ;;  %v300_v42 = vpop.f32.mrf.mxu3 }
  0xb8   : > { %v335_v43 = vmul.f32 %v569_v35, %v327_v39  ;;  %576 = vpow2.f32 %v313_v36  ;;  %v689_v44 = vadd.f32 %v567_v12, %v295_v41  ;;  %v691_v45 = vadd.f32 %v567_v12, %v300_v42 }
  0xb9   : > { %v337_v46 = vmul.f32 %v571_v38, %v329_v40  ;;  %578 = vpow2.f32 %v317_v37 }
  0xba   : > { %v343_v47 = vadd.f32 2.0, %v335_v43  ;;  %v308_v48 = vmin.f32 %v689_v44, 20.0  ;;  %v310_v49 = vmin.f32 %v691_v45, 20.0  ;;  %vm372_vm7 = vcmp.gt.f32.partialorder %v689_v44, 20.0 }
  0xbb   : > { %v345_v50 = vadd.f32 2.0, %v337_v46  ;;  %vm374_vm8 = vcmp.gt.f32.partialorder %v691_v45, 20.0 }
  0xbc   : > { %v573_v51 = vpop.eup %572  ;;  %580 = vrcp.f32 %v343_v47  ;;  %v321_v52 = vmul.f32 1.442695, %v308_v48  ;;  %v325_v53 = vmul.f32 1.442695, %v310_v49 }
  0xbd   : > { %v575_v54 = vpop.eup %574  ;;  %582 = vrcp.f32 %v345_v50  ;;  %v331_v55 = vadd.f32 2.0, %v573_v51 }
  0xbe   : > { %v577_v56 = vpop.eup %576  ;;  %v333_v57 = vadd.f32 2.0, %v575_v54  ;;  %584 = vpow2.f32 %v321_v52 }
  0xbf   : > { %v579_v58 = vpop.eup %578  ;;  %v339_v59 = vmul.f32 %v573_v51, %v331_v55  ;;  %v328_v60 = vadd.f32 2.0, %v577_v56  ;;  %586 = vpow2.f32 %v325_v53 }
  0xc0   : > { %v341_v61 = vmul.f32 %v575_v54, %v333_v57  ;;  %v330_v62 = vadd.f32 2.0, %v579_v58 }
  0xc1   : > { %v347_v63 = vadd.f32 2.0, %v339_v59  ;;  %v336_v0 = vmul.f32 %v577_v56, %v328_v60 }
  0xc2   : > { %v581_v1 = vpop.eup %580  ;;  %v349_v2 = vadd.f32 2.0, %v341_v61  ;;  %v338_v3 = vmul.f32 %v579_v58, %v330_v62 }
  0xc3   : > { %v583_v4 = vpop.eup %582  ;;  %v359_v5 = vmul.f32 %v581_v1, %v335_v43  ;;  %588 = vrcp.f32 %v347_v63  ;;  %v344_v6 = vadd.f32 2.0, %v336_v0 }
  0xc4   : > { %v585_v7 = vpop.eup %584  ;;  %v361_v8 = vmul.f32 %v583_v4, %v337_v46  ;;  %590 = vrcp.f32 %v349_v2  ;;  %v346_v9 = vadd.f32 2.0, %v338_v3 }
  0xc5   : > { %v587_v10 = vpop.eup %586  ;;  %v375_v11 = vmul.f32 %v359_v5, %v671_v15  ;;  %592 = vrcp.f32 %v344_v6  ;;  %v332_v12 = vadd.f32 2.0, %v585_v7 }
  0xc6   : > { %v377_v13 = vmul.f32 %v361_v8, %v673_v16  ;;  %594 = vrcp.f32 %v346_v9  ;;  %v334_v14 = vadd.f32 2.0, %v587_v10 }
  0xc7   : > { %v383_v17 = vsel %vm367_vm0, %v671_v15, %v375_v11  ;;  %v340_v18 = vmul.f32 %v585_v7, %v332_v12 }
  0xc8   : > { %v391_v19 = vpack.c.bf16 %v383_v17, %v383_v17  ;;  %v385_v20 = vsel %vm369_vm2, %v673_v16, %v377_v13  ;;  %v342_v21 = vmul.f32 %v587_v10, %v334_v14 }
  0xc9   : > { %v589_v22 = vpop.eup %588  ;;  %v393_v25 = vpack.c.bf16 %v385_v20, %v385_v20  ;;  %v348_v26 = vadd.f32 2.0, %v340_v18 }
  0xca   : > { %v591_v29 = vpop.eup %590  ;;  %400 = vst.msk [vmem:[%s703_s13] sm:$0xf] %vm399_vm1, %v391_v19  ;;  %v363_v30 = vmul.f32 %v589_v22, %v339_v59  ;;  %v350_v31 = vadd.f32 2.0, %v342_v21 }
  0xcb   : > { %v593_v32 = vpop.eup %592  ;;  %402 = vst.msk [vmem:[%s703_s13 + $0x8] sm:$0xf] %vm399_vm1, %v393_v25  ;;  %v365_v15 = vmul.f32 %v591_v29, %v341_v61  ;;  %596 = vrcp.f32 %v348_v26 }
  0xcc   : > { %v595_v33 = vpop.eup %594  ;;  %v379_v34 = vmul.f32 %v363_v30, %v677_v23  ;;  %v360_v35 = vmul.f32 %v593_v32, %v336_v0  ;;  %598 = vrcp.f32 %v350_v31 }
  0xcd   : > { %v381_v16 = vmul.f32 %v365_v15, %v679_v24  ;;  %v362_v36 = vmul.f32 %v595_v33, %v338_v3 }
  0xce   : > { %v387_v37 = vsel %vm371_vm3, %v677_v23, %v379_v34  ;;  %v376_v38 = vmul.f32 %v360_v35, %v681_v27 }
  0xcf   : > { %v395_v39 = vpack.c.bf16 %v387_v37, %v387_v37  ;;  %v389_v40 = vsel %vm373_vm4, %v679_v24, %v381_v16  ;;  %v378_v41 = vmul.f32 %v362_v36, %v683_v28 }
  0xd0   : > { %v397_v42 = vpack.c.bf16 %v389_v40, %v389_v40  ;;  %v384_v43 = vsel %vm368_vm5, %v681_v27, %v376_v38 }
  0xd1   : > { %v597_v46 = vpop.eup %596  ;;  %404 = vst.msk [vmem:[%s703_s13 + $0x10] sm:$0xf] %vm399_vm1, %v395_v39  ;;  %v392_v23 = vpack.c.bf16 %v384_v43, %v384_v43  ;;  %v386_v47 = vsel %vm370_vm6, %v683_v28, %v378_v41 }
  0xd2   : > { %v599_v48 = vpop.eup %598  ;;  %406 = vst.msk [vmem:[%s703_s13 + $0x18] sm:$0xf] %vm399_vm1, %v397_v42  ;;  %v394_v24 = vpack.c.bf16 %v386_v47, %v386_v47  ;;  %v364_v49 = vmul.f32 %v597_v46, %v340_v18 }
  0xd3   : > { %401 = vst.msk [vmem:[%s703_s13 + $0x4] sm:$0xf] %vm399_vm1, %v392_v23  ;;  %v366_v50 = vmul.f32 %v599_v48, %v342_v21 }
  0xd4   : > { %403 = vst.msk [vmem:[%s703_s13 + $0xc] sm:$0xf] %vm399_vm1, %v394_v24  ;;  %v380_v27 = vmul.f32 %v364_v49, %v689_v44 }
  0xd5   : > { %v382_v51 = vmul.f32 %v366_v50, %v691_v45 }
  0xd6   : > { %v388_v28 = vsel %vm372_vm7, %v689_v44, %v380_v27 }
  0xd7   : > { %v396_v52 = vpack.c.bf16 %v388_v28, %v388_v28  ;;  %v390_v53 = vsel %vm374_vm8, %v691_v45, %v382_v51 }
  0xd8   : > { %v398_v54 = vpack.c.bf16 %v390_v53, %v390_v53 }
  0xd9   : > { %405 = vst.msk [vmem:[%s703_s13 + $0x14] sm:$0xf] %vm399_vm1, %v396_v52 }
  0xda   : > { %407 = vst.msk [vmem:[%s703_s13 + $0x1c] sm:$0xf] %vm399_vm1, %v398_v54 }
  0xdb PF: > { %s13_s12 = sadd.s32 1, %s606_s12  }
  0xdc   : > { %p10_p4 = scmp.ge.s32.totalorder %s13_s12, 4  }
  0xde   :  { %12 = sbr.rel (!%p10_p4) target bundleno = 1 (0x1), region = 62 }

// kernel: cspdarknet_forward.24
= control target key start
LH: loop header
LB: loop body
LE: loop exit
PB: predicated region body
PF: predicated region fallthrough
CT: control target
= control target key end

     0   :  { %s925_s12 = smov 0   ;;  %s1069_s0 = inlined_call_operand.vmem [shape: bf16[32,576], index: 0, kind: input, shape index: {}]   ;;  %s1070_s1 = inlined_call_operand.vmem [shape: bf16[576,128], index: 1, kind: input, shape index: {}]   ;;  %s1071_s2 = inlined_call_operand.vmem [shape: f32[1,128], index: 2, kind: input, shape index: {}]   ;;  %s1072_s3 = inlined_call_operand.vmem [shape: bf16[32,128], index: 3, kind: output, shape index: {}]  }
   0x1 LB: > { %s657_s13 = sadd.s32 4294967295, %s903_s12   ;;  %p661_p0 = scmp.ge.s32.totalorder %s903_s12, 1  ;;  %s903_s12 = sphi %s925_s12, %s13_s12  }
   0x2   : > { %p139_p1 = scmp.lt.s32.totalorder %s903_s12, 3 }
   0x4   : > { %p140_p2 = pnand %p661_p0, %p139_p1 }
   0x5   : > { %s662_s11 = sshll.u32 (!%p140_p2), %s657_s13, 1 }
   0x6   : > { %143 = sbr.rel (%p140_p2) target bundleno = 227 (0xe3), region = 32  ;;  %p165_p3 = scmp.lt.s32.totalorder (!%p140_p2), %s662_s11, 3 }
   0xb   : > { %v845_v0 = vld [vmem:[%s1070_s1 + $0x38] sm:$0xff]  ;;  %v844_v4 = vld [vmem:[%s1070_s1 + $0x30] sm:$0xff]  ;;  %v843_v8 = vld [vmem:[%s1070_s1 + $0x28] sm:$0xff]  ;;  %s1074_s11 = smov (!%p165_p3, %s662_s11), 3  ;;  %vm501_vm0 = vcmask 523264  }
   0xc   : > { %v861_v1 = vld [vmem:[%s1070_s1 + $0xb8] sm:$0xff]  ;;  %505 = vmatpush.bf16.msra.mxu0 %v845_v0  ;;  %v860_v5 = vld [vmem:[%s1070_s1 + $0xb0] sm:$0xff]  ;;  %v859_v9 = vld [vmem:[%s1070_s1 + $0xa8] sm:$0xff]  ;;  %s879_s6 = smul.u32 20, %s1074_s11  ;;  %s665_s18 = sshll.u32 %s1074_s11, 2 }
   0xd   : > { %v869_v2 = vld [vmem:[%s1070_s1 + $0xf8] sm:$0xff]  ;;  %533 = vmatpush.bf16.msra.mxu2 %v861_v1  ;;  %v868_v6 = vld [vmem:[%s1070_s1 + $0xf0] sm:$0xff]  ;;  %v867_v10 = vld [vmem:[%s1070_s1 + $0xe8] sm:$0xff]  ;;  %s175_s21 = scalar_lea.vmem %s1072_s3, %s665_s18 }
   0xe   : > { %v853_v3 = vld [vmem:[%s1070_s1 + $0x78] sm:$0xff]  ;;  %547 = vmatpush.bf16.msra.mxu3 %v869_v2  ;;  %v852_v7 = vld [vmem:[%s1070_s1 + $0x70] sm:$0xff]  ;;  %v851_v11 = vld [vmem:[%s1070_s1 + $0x68] sm:$0xff]  ;;  %s1017_s20 = scalar_lea.vmem %s1069_s0, %s879_s6 }
   0xf   : > { %519 = vmatpush.bf16.msra.mxu1 %v853_v3  ;;  %v842_v12 = vld [vmem:[%s1070_s1 + $0x20] sm:$0xff]  ;;  %v841_v16 = vld [vmem:[%s1070_s1 + $0x18] sm:$0xff]  ;;  %v840_v20 = vld [vmem:[%s1070_s1 + $0x10] sm:$0xff] }
  0x10   : > { %506 = vmatpush.bf16.msra.mxu0 %v844_v4  ;;  %v858_v13 = vld [vmem:[%s1070_s1 + $0xa0] sm:$0xff]  ;;  %v857_v17 = vld [vmem:[%s1070_s1 + $0x98] sm:$0xff]  ;;  %v856_v21 = vld [vmem:[%s1070_s1 + $0x90] sm:$0xff] }
  0x11   : > { %534 = vmatpush.bf16.msra.mxu2 %v860_v5  ;;  %v866_v14 = vld [vmem:[%s1070_s1 + $0xe0] sm:$0xff]  ;;  %v865_v18 = vld [vmem:[%s1070_s1 + $0xd8] sm:$0xff]  ;;  %v864_v22 = vld [vmem:[%s1070_s1 + $0xd0] sm:$0xff] }
  0x12   : > { %548 = vmatpush.bf16.msra.mxu3 %v868_v6  ;;  %v850_v15 = vld [vmem:[%s1070_s1 + $0x60] sm:$0xff]  ;;  %v849_v19 = vld [vmem:[%s1070_s1 + $0x58] sm:$0xff]  ;;  %v848_v23 = vld [vmem:[%s1070_s1 + $0x50] sm:$0xff] }
  0x13   : > { %520 = vmatpush.bf16.msra.mxu1 %v852_v7  ;;  %v839_v24 = vld [vmem:[%s1070_s1 + $0x8] sm:$0xff]  ;;  %v838_v28 = vld [vmem:[%s1070_s1] sm:$0xff]  ;;  %v835_v33 = vld [vmem:[%s1017_s20 + $0x10] sm:$0xf0] }
  0x14   : > { %507 = vmatpush.bf16.msra.mxu0 %v843_v8  ;;  %v855_v25 = vld [vmem:[%s1070_s1 + $0x88] sm:$0xff]  ;;  %v854_v29 = vld [vmem:[%s1070_s1 + $0x80] sm:$0xff]  ;;  %v836_v35 = vld [vmem:[%s1017_s20 + $0x18] sm:$0xf0] }
  0x15   : > { %535 = vmatpush.bf16.msra.mxu2 %v859_v9  ;;  %v863_v26 = vld [vmem:[%s1070_s1 + $0xc8] sm:$0xff]  ;;  %v862_v30 = vld [vmem:[%s1070_s1 + $0xc0] sm:$0xff]  ;;  %v670_v39 = vld [vmem:[%s1017_s20 + $0x14] sm:$0xf0] }
  0x16   : > { %549 = vmatpush.bf16.msra.mxu3 %v867_v10  ;;  %v847_v27 = vld [vmem:[%s1070_s1 + $0x48] sm:$0xff]  ;;  %v846_v31 = vld [vmem:[%s1070_s1 + $0x40] sm:$0xff]  ;;  %v873_v40 = vld [vmem:[%s1070_s1 + $0x118] sm:$0xff] }
  0x17   : > { %521 = vmatpush.bf16.msra.mxu1 %v851_v11  ;;  %v668_v32 = vld [vmem:[%s1017_s20] sm:$0xf]  ;;  %v676_v34 = vld [vmem:[%s1017_s20 + $0x8] sm:$0xf]  ;;  %v834_v36 = vld [vmem:[%s1017_s20 + $0xc] sm:$0xf] }
  0x18   : > { %508 = vmatpush.bf16.msra.mxu0 %v842_v12  ;;  %v678_v37 = vld [vmem:[%s1017_s20 + $0x1c] sm:$0xf0]  ;;  %v833_v38 = vld [vmem:[%s1017_s20 + $0x4] sm:$0xf]  ;;  %v669_v41 = vor.u32 %v835_v33, %v668_v32  ;;  %v677_v42 = vor.u32 %v836_v35, %v676_v34  ;;  %v872_v45 = vld [vmem:[%s1070_s1 + $0x110] sm:$0xff] }
  0x19   : > { %536 = vmatpush.bf16.msra.mxu2 %v858_v13  ;;  %v681_v43 = vor.u32 %v834_v36, %v678_v37  ;;  %v673_v44 = vor.u32 %v833_v38, %v670_v39  ;;  %v871_v46 = vld [vmem:[%s1070_s1 + $0x108] sm:$0xff]  ;;  %v870_v47 = vld [vmem:[%s1070_s1 + $0x100] sm:$0xff]  ;;  %v684_v48 = vld [vmem:[%s1017_s20 + $0x10] sm:$0xf] }
  0x1a   : > { %550 = vmatpush.bf16.msra.mxu3 %v866_v14  ;;  %v837_v49 = vld [vmem:[%s1017_s20 + $0x20] sm:$0xf0]  ;;  %v888_v52 = vld [vmem:[%s1071_s2] ss:$0 sm:$0xff] }
  0x1b   : > { %522 = vmatpush.bf16.msra.mxu1 %v850_v15  ;;  %v685_v50 = vor.u32 %v837_v49, %v684_v48 }
  0x1c   : > { %509 = vmatpush.bf16.msra.mxu0 %v841_v16 }
  0x1d   : > { %537 = vmatpush.bf16.msra.mxu2 %v857_v17 }
  0x1e   : > { %551 = vmatpush.bf16.msra.mxu3 %v865_v18 }
  0x1f   : > { %523 = vmatpush.bf16.msra.mxu1 %v849_v19 }
  0x20   : > { %510 = vmatpush.bf16.msra.mxu0 %v840_v20 }
  0x21   : > { %538 = vmatpush.bf16.msra.mxu2 %v856_v21 }
  0x22   : > { %552 = vmatpush.bf16.msra.mxu3 %v864_v22 }
  0x23   : > { %524 = vmatpush.bf16.msra.mxu1 %v848_v23 }
  0x24   : > { %511 = vmatpush.bf16.msra.mxu0 %v839_v24 }
  0x25   : > { %539 = vmatpush.bf16.msra.mxu2 %v855_v25 }
  0x26   : > { %553 = vmatpush.bf16.msra.mxu3 %v863_v26 }
  0x27   : > { %525 = vmatpush.bf16.msra.mxu1 %v847_v27 }
  0x28   : > { %512 = vmatpush.bf16.msra.mxu0 %v838_v28 }
  0x29   : > { %540 = vmatpush.bf16.msra.mxu2 %v854_v29 }
  0x2a   : > { %554 = vmatpush.bf16.msra.mxu3 %v862_v30 }
  0x2b   : > { %526 = vmatpush.bf16.msra.mxu1 %v846_v31  ;;  %513 = vmatmul.bf16.vlgmr.msra.gmra.mxu0 %v669_v41 }
  0x2c   : > { %565 = vmatpush.bf16.msrb.mxu0 %v873_v40  ;;  %541 = vmatmul.bf16.vlgmr.msra.gmra.mxu2 %v677_v42 }
  0x2d   : > { %555 = vmatmul.bf16.vlgmr.msra.gmra.mxu3 %v681_v43 }
  0x2e   : > { %527 = vmatmul.bf16.vlgmr.msra.gmra.mxu1 %v673_v44 }
  0x30   : > { %566 = vmatpush.bf16.msrb.mxu0 %v872_v45 }
  0x34   : > { %567 = vmatpush.bf16.msrb.mxu0 %v871_v46 }
  0x38   : > { %568 = vmatpush.bf16.msrb.mxu0 %v870_v47 }
  0x3b   : > { %830 = vmatmul.msk.bf16.vlgmr.msrb.gmra.mxu0 %vm501_vm0, %v685_v50 }
  0xa8   : > { %v514_v51 = vpop.f32.mrf.mxu0 }
  0xa9   : > { %v515_v54 = vadd.f32 %v888_v52, %v514_v51 }
  0xab   : > { %v528_v53 = vpop.f32.mrf.mxu1 }
  0xac   : > { %v529_v57 = vadd.f32 %v528_v53, %v515_v54 }
  0xaf   : > { %v542_v55 = vpop.f32.mrf.mxu2 }
  0xb0   : > { %v516_v56 = vpop.f32.mrf.mxu0  ;;  %v543_v58 = vadd.f32 %v542_v55, %v529_v57  ;;  %v556_v59 = vpop.f32.mrf.mxu3 }
  0xb1   : > { %v517_v60 = vadd.f32 %v888_v52, %v516_v56 }
  0xb2   : > { %v557_v62 = vadd.f32 %v556_v59, %v543_v58 }
  0xb3   : > { %v530_v61 = vpop.f32.mrf.mxu1 }
  0xb4   : > { %v531_v1 = vadd.f32 %v530_v61, %v517_v60 }
  0xb7   : > { %v544_v63 = vpop.f32.mrf.mxu2 }
  0xb8   : > { %v570_v0 = vpop.f32.mrf.mxu0  ;;  %v545_v3 = vadd.f32 %v544_v63, %v531_v1  ;;  %v558_v6 = vpop.f32.mrf.mxu3 }
  0xb9   : > { %v571_v2 = vadd.f32 %v570_v0, %v557_v62 }
  0xba   : > { %v559_v7 = vadd.f32 %v558_v6, %v545_v3 }
  0xbb   : > { %v575_v4 = vmin.f32 %v571_v2, 20.0  ;;  %vm591_vm1 = vcmp.gt.f32.partialorder %v571_v2, 20.0 }
  0xbd   : > { %v577_v5 = vmul.f32 1.442695, %v575_v4 }
  0xbf   : > { %889 = vpow2.f32 %v577_v5 }
  0xc0   : > { %v572_v8 = vpop.f32.mrf.mxu0 }
  0xc1   : > { %v573_v9 = vadd.f32 %v572_v8, %v559_v7 }
  0xc3   : > { %v576_v10 = vmin.f32 %v573_v9, 20.0  ;;  %vm592_vm2 = vcmp.gt.f32.partialorder %v573_v9, 20.0 }
  0xc5   : > { %v890_v11 = vpop.eup %889  ;;  %v579_v12 = vmul.f32 1.442695, %v576_v10 }
  0xc6   : > { %v581_v13 = vadd.f32 2.0, %v890_v11 }
  0xc7   : > { %891 = vpow2.f32 %v579_v12 }
  0xc8   : > { %v583_v14 = vmul.f32 %v890_v11, %v581_v13 }
  0xca   : > { %v585_v15 = vadd.f32 2.0, %v583_v14 }
  0xcc   : > { %893 = vrcp.f32 %v585_v15 }
  0xcd   : > { %v892_v16 = vpop.eup %891 }
  0xce   : > { %v582_v17 = vadd.f32 2.0, %v892_v16 }
  0xd0   : > { %v584_v18 = vmul.f32 %v892_v16, %v582_v17 }
  0xd2   : > { %v586_v19 = vadd.f32 2.0, %v584_v18  ;;  %v894_v20 = vpop.eup %893 }
  0xd3   : > { %v589_v21 = vmul.f32 %v894_v20, %v583_v14 }
  0xd4   : > { %895 = vrcp.f32 %v586_v19 }
  0xd5   : > { %v593_v23 = vmul.f32 %v589_v21, %v571_v2 }
  0xd7   : > { %v595_v26 = vsel %vm591_vm1, %v571_v2, %v593_v23 }
  0xda   : > { %v896_v22 = vpop.eup %895 }
  0xdb   : > { %v590_v24 = vmul.f32 %v896_v22, %v584_v18 }
  0xdd   : > { %v594_v25 = vmul.f32 %v590_v24, %v573_v9 }
  0xdf   : > { %v596_v27 = vsel %vm592_vm2, %v573_v9, %v594_v25 }
  0xe0   : > { %v877_v28 = vpack.c.bf16 %v596_v27, %v595_v26 }
  0xe2   : > { %878 = vst [vmem:[%s175_s21] sm:$0xff] %v877_v28  }
  0xe3 PF: > { %s13_s12 = sadd.s32 1, %s903_s12  }
  0xe4   : > { %p10_p4 = scmp.ge.s32.totalorder %s13_s12, 4  }
  0xe6   :  { %12 = sbr.rel (!%p10_p4) target bundleno = 1 (0x1), region = 62 }

// kernel: cspdarknet_forward.25
= control target key start
LH: loop header
LB: loop body
LE: loop exit
PB: predicated region body
PF: predicated region fallthrough
CT: control target
= control target key end

     0   :  { %s452_s12 = smov 0   ;;  %s503_s0 = inlined_call_operand.vmem [shape: bf16[32,128], index: 0, kind: input, shape index: {}]   ;;  %s504_s1 = inlined_call_operand.vmem [shape: bf16[128,128], index: 1, kind: input, shape index: {}]   ;;  %s505_s2 = inlined_call_operand.vmem [shape: f32[1,128], index: 2, kind: input, shape index: {}]   ;;  %s506_s3 = inlined_call_operand.vmem [shape: bf16[32,128], index: 3, kind: output, shape index: {}]  }
   0x1 LB: > { %s346_s13 = sadd.s32 4294967295, %s430_s12   ;;  %p350_p0 = scmp.ge.s32.totalorder %s430_s12, 1  ;;  %s430_s12 = sphi %s452_s12, %s13_s12  }
   0x2   : > { %p138_p1 = scmp.lt.s32.totalorder %s430_s12, 3 }
   0x4   : > { %p139_p2 = pnand %p350_p0, %p138_p1 }
   0x5   : > { %s351_s22 = sshll.u32 (!%p139_p2), %s346_s13, 1 }
   0x6   : > { %142 = sbr.rel (%p139_p2) target bundleno = 211 (0xd3), region = 32  ;;  %p163_p3 = scmp.lt.s32.totalorder (!%p139_p2), %s351_s22, 3 }
   0xb   : > { %v401_v0 = vld [vmem:[%s504_s1 + $0x38] sm:$0xff]  ;;  %v400_v1 = vld [vmem:[%s504_s1 + $0x30] sm:$0xff]  ;;  %v399_v2 = vld [vmem:[%s504_s1 + $0x28] sm:$0xff]  ;;  %s508_s22 = smov (!%p163_p3, %s351_s22), 3 }
   0xc   : > { %250 = vmatpush.bf16.msra.mxu0 %v401_v0  ;;  %v398_v3 = vld [vmem:[%s504_s1 + $0x20] sm:$0xff]  ;;  %v397_v4 = vld [vmem:[%s504_s1 + $0x18] sm:$0xff]  ;;  %v396_v5 = vld [vmem:[%s504_s1 + $0x10] sm:$0xff]  ;;  %s352_s29 = sshll.u32 %s508_s22, 2 }
   0xd   : > { %v395_v6 = vld [vmem:[%s504_s1 + $0x8] sm:$0xff]  ;;  %v394_v7 = vld [vmem:[%s504_s1] sm:$0xff]  ;;  %s166_s7 = scalar_lea.vmem %s503_s0, %s352_s29  ;;  %s172_s13 = scalar_lea.vmem %s506_s3, %s352_s29 }
   0xe   : > { %v393_v8 = vld [vmem:[%s166_s7] sm:$0xff] }
   0xf   : > { %v415_v9 = vld [vmem:[%s505_s2] ss:$0 sm:$0xff] }
  0x10   : > { %251 = vmatpush.bf16.msra.mxu0 %v400_v1 }
  0x14   : > { %252 = vmatpush.bf16.msra.mxu0 %v399_v2 }
  0x18   : > { %253 = vmatpush.bf16.msra.mxu0 %v398_v3 }
  0x1c   : > { %254 = vmatpush.bf16.msra.mxu0 %v397_v4 }
  0x20   : > { %255 = vmatpush.bf16.msra.mxu0 %v396_v5 }
  0x24   : > { %256 = vmatpush.bf16.msra.mxu0 %v395_v6 }
  0x28   : > { %257 = vmatpush.bf16.msra.mxu0 %v394_v7 }
  0x2b   : > { %258 = vmatmul.bf16.vlgmr.msra.gmra.mxu0 %v393_v8 }
  0xa8   : > { %v259_v10 = vpop.f32.mrf.mxu0 }
  0xa9   : > { %v260_v11 = vadd.f32 %v415_v9, %v259_v10 }
  0xab   : > { %v264_v12 = vmin.f32 %v260_v11, 20.0  ;;  %vm280_vm0 = vcmp.gt.f32.partialorder %v260_v11, 20.0 }
  0xad   : > { %v266_v13 = vmul.f32 1.442695, %v264_v12 }
  0xaf   : > { %416 = vpow2.f32 %v266_v13 }
  0xb0   : > { %v261_v14 = vpop.f32.mrf.mxu0 }
  0xb1   : > { %v262_v15 = vadd.f32 %v415_v9, %v261_v14 }
  0xb3   : > { %v265_v16 = vmin.f32 %v262_v15, 20.0  ;;  %vm281_vm1 = vcmp.gt.f32.partialorder %v262_v15, 20.0 }
  0xb5   : > { %v417_v17 = vpop.eup %416  ;;  %v268_v18 = vmul.f32 1.442695, %v265_v16 }
  0xb6   : > { %v270_v19 = vadd.f32 2.0, %v417_v17 }
  0xb7   : > { %418 = vpow2.f32 %v268_v18 }
  0xb8   : > { %v272_v20 = vmul.f32 %v417_v17, %v270_v19 }
  0xba   : > { %v274_v21 = vadd.f32 2.0, %v272_v20 }
  0xbc   : > { %420 = vrcp.f32 %v274_v21 }
  0xbd   : > { %v419_v22 = vpop.eup %418 }
  0xbe   : > { %v271_v23 = vadd.f32 2.0, %v419_v22 }
  0xc0   : > { %v273_v24 = vmul.f32 %v419_v22, %v271_v23 }
  0xc2   : > { %v275_v25 = vadd.f32 2.0, %v273_v24  ;;  %v421_v26 = vpop.eup %420 }
  0xc3   : > { %v278_v27 = vmul.f32 %v421_v26, %v272_v20 }
  0xc4   : > { %422 = vrcp.f32 %v275_v25 }
  0xc5   : > { %v282_v29 = vmul.f32 %v278_v27, %v260_v11 }
  0xc7   : > { %v284_v32 = vsel %vm280_vm0, %v260_v11, %v282_v29 }
  0xca   : > { %v423_v28 = vpop.eup %422 }
  0xcb   : > { %v279_v30 = vmul.f32 %v423_v28, %v273_v24 }
  0xcd   : > { %v283_v31 = vmul.f32 %v279_v30, %v262_v15 }
  0xcf   : > { %v285_v33 = vsel %vm281_vm1, %v262_v15, %v283_v31 }
  0xd0   : > { %v405_v34 = vpack.c.bf16 %v285_v33, %v284_v32 }
  0xd2   : > { %406 = vst [vmem:[%s172_s13] sm:$0xff] %v405_v34  }
  0xd3 PF: > { %s13_s12 = sadd.s32 1, %s430_s12  }
  0xd4   : > { %p10_p4 = scmp.ge.s32.totalorder %s13_s12, 4  }
  0xd6   :  { %12 = sbr.rel (!%p10_p4) target bundleno = 1 (0x1), region = 62 }

// kernel: cspdarknet_forward.26
= control target key start
LH: loop header
LB: loop body
LE: loop exit
PB: predicated region body
PF: predicated region fallthrough
CT: control target
= control target key end

     0   :  { %s401_s12 = smov 0   ;;  %s440_s0 = inlined_call_operand.vmem [shape: bf16[32,64], index: 0, kind: input, shape index: {}]   ;;  %s441_s1 = inlined_call_operand.vmem [shape: bf16[64,64], index: 1, kind: input, shape index: {}]   ;;  %s442_s2 = inlined_call_operand.vmem [shape: f32[1,64], index: 2, kind: input, shape index: {}]   ;;  %s443_s3 = inlined_call_operand.vmem [shape: bf16[32,64], index: 3, kind: output, shape index: {}]  }
   0x1 LB: > { %s319_s13 = sadd.s32 4294967295, %s379_s12   ;;  %p323_p0 = scmp.ge.s32.totalorder %s379_s12, 1  ;;  %s379_s12 = sphi %s401_s12, %s13_s12  }
   0x2   : > { %p138_p1 = scmp.lt.s32.totalorder %s379_s12, 3 }
   0x4   : > { %p139_p2 = pnand %p323_p0, %p138_p1 }
   0x5   : > { %s324_s16 = sshll.u32 (!%p139_p2), %s319_s13, 1 }
   0x6   : > { %142 = sbr.rel (%p139_p2) target bundleno = 195 (0xc3), region = 32  ;;  %p163_p3 = scmp.lt.s32.totalorder (!%p139_p2), %s324_s16, 3 }
   0xb   : > { %v355_v0 = vld [vmem:[%s441_s1 + $0x18] sm:$0xff]  ;;  %v354_v1 = vld [vmem:[%s441_s1 + $0x10] sm:$0xff]  ;;  %s445_s16 = smov (!%p163_p3, %s324_s16), 3  ;;  %v353_v2 = vld [vmem:[%s441_s1 + $0x8] sm:$0xff]  ;;  %vm218_vm0 = vcmask 523264   ;;  %vm260_vm2 = vcmask 519168  }
   0xc   : > { %226 = vmatpush.bf16.msra.mxu0 %v355_v0  ;;  %s325_s21 = sshll.u32 %s445_s16, 2  ;;  %v352_v3 = vld [vmem:[%s441_s1] sm:$0xff] }
   0xd   : > { %s166_s26 = scalar_lea.vmem %s440_s0, %s325_s21  ;;  %v364_v5 = vld [vmem:[%s442_s2] ss:$0 sm:$0xff]  ;;  %s172_s4 = scalar_lea.vmem %s443_s3, %s325_s21 }
   0xe   : > { %v351_v4 = vld [vmem:[%s166_s26] sm:$0xff] }
  0x10   : > { %227 = vmatpush.bf16.msra.mxu0 %v354_v1 }
  0x14   : > { %228 = vmatpush.bf16.msra.mxu0 %v353_v2 }
  0x18   : > { %229 = vmatpush.bf16.msra.mxu0 %v352_v3 }
  0x1b   : > { %348 = vmatmul.msk.bf16.vlgmr.msra.gmra.mxu0 %vm218_vm0, %v351_v4 }
  0x98   : > { %v231_v6 = vpop.f32.mrf.mxu0 }
  0x99   : > { %v232_v7 = vadd.f32 %v364_v5, %v231_v6 }
  0x9b   : > { %v236_v8 = vmin.f32 %v232_v7, 20.0  ;;  %vm252_vm1 = vcmp.gt.f32.partialorder %v232_v7, 20.0 }
  0x9d   : > { %v238_v9 = vmul.f32 1.442695, %v236_v8 }
  0x9f   : > { %365 = vpow2.f32 %v238_v9 }
  0xa0   : > { %v233_v10 = vpop.f32.mrf.mxu0 }
  0xa1   : > { %v234_v11 = vadd.f32 %v364_v5, %v233_v10 }
  0xa3   : > { %v237_v12 = vmin.f32 %v234_v11, 20.0  ;;  %vm253_vm3 = vcmp.gt.f32.partialorder %v234_v11, 20.0 }
  0xa5   : > { %v366_v13 = vpop.eup %365  ;;  %v240_v14 = vmul.f32 1.442695, %v237_v12 }
  0xa6   : > { %v242_v15 = vadd.f32 2.0, %v366_v13 }
  0xa7   : > { %367 = vpow2.f32 %v240_v14 }
  0xa8   : > { %v244_v16 = vmul.f32 %v366_v13, %v242_v15 }
  0xaa   : > { %v246_v17 = vadd.f32 2.0, %v244_v16 }
  0xac   : > { %369 = vrcp.f32 %v246_v17 }
  0xad   : > { %v368_v18 = vpop.eup %367 }
  0xae   : > { %v243_v19 = vadd.f32 2.0, %v368_v18 }
  0xb0   : > { %v245_v20 = vmul.f32 %v368_v18, %v243_v19 }
  0xb2   : > { %v370_v21 = vpop.eup %369  ;;  %v247_v22 = vadd.f32 2.0, %v245_v20 }
  0xb3   : > { %v250_v23 = vmul.f32 %v370_v21, %v244_v16 }
  0xb4   : > { %371 = vrcp.f32 %v247_v22 }
  0xb5   : > { %v254_v24 = vmul.f32 %v250_v23, %v232_v7 }
  0xb7   : > { %v256_v25 = vsel %vm252_vm1, %v232_v7, %v254_v24 }
  0xb8   : > { %v258_v26 = vpack.c.bf16 %v256_v25, %v256_v25 }
  0xba   : > { %v372_v27 = vpop.eup %371  ;;  %261 = vst.msk [vmem:[%s172_s4] sm:$0xf] %vm260_vm2, %v258_v26 }
  0xbb   : > { %v251_v28 = vmul.f32 %v372_v27, %v245_v20 }
  0xbd   : > { %v255_v29 = vmul.f32 %v251_v28, %v234_v11 }
  0xbf   : > { %v257_v30 = vsel %vm253_vm3, %v234_v11, %v255_v29 }
  0xc0   : > { %v259_v31 = vpack.c.bf16 %v257_v30, %v257_v30 }
  0xc2   : > { %262 = vst.msk [vmem:[%s172_s4 + $0x4] sm:$0xf] %vm260_vm2, %v259_v31 }
  0xc3 PF: > { %s13_s12 = sadd.s32 1, %s379_s12  }
  0xc4   : > { %p10_p4 = scmp.ge.s32.totalorder %s13_s12, 4  }
  0xc6   :  { %12 = sbr.rel (!%p10_p4) target bundleno = 1 (0x1), region = 62 }

// kernel: cspdarknet_forward.27
= control target key start
LH: loop header
LB: loop body
LE: loop exit
PB: predicated region body
PF: predicated region fallthrough
CT: control target
= control target key end

     0   :  { %s1057_s15 = smov 0   ;;  %s1213_s0 = inlined_call_operand.vmem [shape: bf16[48,192], index: 0, kind: input, shape index: {}]   ;;  %s1214_s1 = inlined_call_operand.vmem [shape: bf16[3,192,64], index: 1, kind: input, shape index: {}]   ;;  %s1215_s2 = inlined_call_operand.vmem [shape: f32[1,64], index: 2, kind: input, shape index: {}]   ;;  %s1216_s3 = inlined_call_operand.vmem [shape: bf16[32,64], index: 3, kind: input, shape index: {}]   ;;  %s1217_s4 = inlined_call_operand.vmem [shape: bf16[32,64], index: 4, kind: output, shape index: {}]  }
   0x1 LB: > { %s758_s16 = sadd.s32 4294967295, %s1030_s15   ;;  %p762_p0 = scmp.ge.s32.totalorder %s1030_s15, 1  ;;  %s1030_s15 = sphi %s1057_s15, %s14_s15  }
   0x2   : > { %p175_p1 = scmp.lt.s32.totalorder %s1030_s15, 3 }
   0x4   : > { %p176_p2 = pnand %p762_p0, %p175_p1 }
   0x5   : > { %s207_s23 = smul.u32 (!%p176_p2), 3, %s758_s16  ;;  %s765_s25 = sshll.u32 (!%p176_p2), %s758_s16, 1 }
   0x6   : > { %179 = sbr.rel (%p176_p2) target bundleno = 234 (0xea), region = 36  ;;  %p215_p4 = scmp.lt.s32.totalorder (!%p176_p2), %s765_s25, 3 }
   0x7   : > { %p208_p3 = scmp.lt.s32.totalorder (!%p176_p2), %s207_s23, 5 }
   0xb   : > { %v986_v0 = vld [vmem:[%s1214_s1 + $0x98] sm:$0xff]  ;;  %v985_v4 = vld [vmem:[%s1214_s1 + $0x90] sm:$0xff]  ;;  %s1219_s23 = smov (!%p208_p3, %s207_s23), 5  ;;  %v984_v8 = vld [vmem:[%s1214_s1 + $0x88] sm:$0xff]  ;;  %vm293_vm0 = vcmask 1045504   ;;  %vm373_vm1 = vcmask 523264  }
   0xc   : > { %v990_v1 = vld [vmem:[%s1214_s1 + $0xb8] sm:$0xff]  ;;  %377 = vmatpush.bf16.msra.mxu0 %v986_v0  ;;  %v989_v5 = vld [vmem:[%s1214_s1 + $0xb0] sm:$0xff]  ;;  %v988_v9 = vld [vmem:[%s1214_s1 + $0xa8] sm:$0xff]  ;;  %s966_s12 = sshll.u32 %s1219_s23, 3  ;;  %s1221_s25 = smov (!%p215_p4, %s765_s25), 3  ;;  %vm687_vm3 = vcmask 519168  }
   0xd   : > { %v974_v2 = vld [vmem:[%s1214_s1 + $0x38] sm:$0xff]  ;;  %395 = vmatpush.bf16.msra.mxu1 %v990_v1  ;;  %v973_v6 = vld [vmem:[%s1214_s1 + $0x30] sm:$0xff]  ;;  %v972_v10 = vld [vmem:[%s1214_s1 + $0x28] sm:$0xff]  ;;  %s1106_s21 = scalar_lea.vmem %s1213_s0, %s966_s12  ;;  %s766_s26 = sshll.u32 %s1221_s25, 2 }
   0xe   : > { %v978_v3 = vld [vmem:[%s1214_s1 + $0x58] sm:$0xff]  ;;  %486 = vmatpush.bf16.msra.mxu2 %v974_v2  ;;  %v977_v7 = vld [vmem:[%s1214_s1 + $0x50] sm:$0xff]  ;;  %v976_v11 = vld [vmem:[%s1214_s1 + $0x48] sm:$0xff]  ;;  %s218_s29 = scalar_lea.vmem %s1216_s3, %s766_s26  ;;  %s224_s5 = scalar_lea.vmem %s1217_s4, %s766_s26 }
   0xf   : > { %504 = vmatpush.bf16.msra.mxu3 %v978_v3  ;;  %v1109_v12 = vld [vmem:[%s1106_s21] sm:$0xff]  ;;  %v228_v13 = vld [vmem:[%s1106_s21 + $0x8] sm:$0xff]  ;;  %v254_v16 = vld [vmem:[%s1106_s21 + $0x10] sm:$0x33] }
  0x10   : > { %378 = vmatpush.bf16.msra.mxu0 %v985_v4  ;;  %v253_v14 = vld [vmem:[%s1106_s21] sm:$0xcc]  ;;  %v1113_v15 = vunpack.c.h.b16 %v228_v13  ;;  %v407_v20 = vunpack.c.h.b16 %v1109_v12  ;;  %v288_v21 = vunpack.c.h.b16 %v254_v16  ;;  %v998_v25 = vld [vmem:[%s1214_s1 + $0xf8] sm:$0xff]  ;;  %v997_v33 = vld [vmem:[%s1214_s1 + $0xf0] sm:$0xff]  ;;  %v285_v38 = vunpack.c.l.b16 %v228_v13 }
  0x11   : > { %396 = vmatpush.bf16.msra.mxu1 %v989_v5  ;;  %v284_v17 = vunpack.c.h.b16 %v253_v14  ;;  %v983_v18 = vld [vmem:[%s1214_s1 + $0x80] sm:$0xff]  ;;  %v1002_v26 = vld [vmem:[%s1214_s1 + $0x118] sm:$0xff]  ;;  %v1001_v35 = vld [vmem:[%s1214_s1 + $0x110] sm:$0xff]  ;;  %v283_v37 = vunpack.c.l.b16 %v253_v14  ;;  %v287_v39 = vunpack.c.l.b16 %v254_v16  ;;  %v406_v53 = vunpack.c.l.b16 %v1109_v12 }
  0x12   : > { %487 = vmatpush.bf16.msra.mxu2 %v973_v6  ;;  %v987_v19 = vld [vmem:[%s1214_s1 + $0xa0] sm:$0xff]  ;;  %v292_v27 = vpack.c.b16 %v288_v21, %v288_v21  ;;  %v409_v29 = vpack.c.b16 %v1113_v15, %v407_v20  ;;  %v982_v30 = vld [vmem:[%s1214_s1 + $0x78] sm:$0xff]  ;;  %v981_v36 = vld [vmem:[%s1214_s1 + $0x70] sm:$0xff] }
  0x13   : > { %505 = vmatpush.bf16.msra.mxu3 %v977_v7  ;;  %v971_v22 = vld [vmem:[%s1214_s1 + $0x20] sm:$0xff]  ;;  %v290_v24 = vpack.c.b16 %v1113_v15, %v284_v17  ;;  %v970_v32 = vld [vmem:[%s1214_s1 + $0x18] sm:$0xff]  ;;  %v969_v40 = vld [vmem:[%s1214_s1 + $0x10] sm:$0xff]  ;;  %v289_v44 = vpack.c.b16 %v285_v38, %v283_v37  ;;  %v291_v45 = vpack.c.b16 %v287_v39, %v287_v39  ;;  %v408_v58 = vpack.c.b16 %v285_v38, %v406_v53 }
  0x14   : > { %379 = vmatpush.bf16.msra.mxu0 %v984_v8  ;;  %v975_v23 = vld [vmem:[%s1214_s1 + $0x40] sm:$0xff]  ;;  %v298_v31 = vrot.slane %v292_v27, 2  ;;  %v996_v41 = vld [vmem:[%s1214_s1 + $0xe8] sm:$0xff]  ;;  %v514_v47 = vld [vmem:[%s1106_s21 + $0x10] sm:$0xff] }
  0x15   : > { %397 = vmatpush.bf16.msra.mxu1 %v988_v9  ;;  %v297_v28 = vrot.slane %v290_v24, 2  ;;  %v1000_v42 = vld [vmem:[%s1214_s1 + $0x108] sm:$0xff]  ;;  %v995_v48 = vld [vmem:[%s1214_s1 + $0xe0] sm:$0xff]  ;;  %v294_v51 = vrot.slane %v289_v44, 2  ;;  %v295_v52 = vrot.slane %v291_v45, 2  ;;  %v542_v54 = vunpack.c.h.b16 %v514_v47  ;;  %v994_v56 = vld [vmem:[%s1214_s1 + $0xd8] sm:$0xff] }
  0x16   : > { %488 = vmatpush.bf16.msra.mxu2 %v972_v10  ;;  %v980_v43 = vld [vmem:[%s1214_s1 + $0x68] sm:$0xff]  ;;  %v999_v49 = vld [vmem:[%s1214_s1 + $0x100] sm:$0xff]  ;;  %v993_v60 = vld [vmem:[%s1214_s1 + $0xd0] sm:$0xff]  ;;  %v541_v62 = vunpack.c.l.b16 %v514_v47 }
  0x17   : > { %506 = vmatpush.bf16.msra.mxu3 %v976_v11  ;;  %v299_v34 = vsel %vm293_vm0, %v297_v28, %v298_v31  ;;  %v968_v46 = vld [vmem:[%s1214_s1 + $0x8] sm:$0xff]  ;;  %v979_v50 = vld [vmem:[%s1214_s1 + $0x60] sm:$0xff]  ;;  %v296_v57 = vsel %vm293_vm0, %v294_v51, %v295_v52  ;;  %v544_v59 = vpack.c.b16 %v542_v54, %v1113_v15 }
  0x18   : > { %380 = vmatpush.bf16.msra.mxu0 %v983_v18  ;;  %v967_v55 = vld [vmem:[%s1214_s1] sm:$0xff]  ;;  %v992_v61 = vld [vmem:[%s1214_s1 + $0xc8] sm:$0xff]  ;;  %v543_v0 = vpack.c.b16 %v541_v62, %v285_v38 }
  0x19   : > { %398 = vmatpush.bf16.msra.mxu1 %v987_v19  ;;  %v991_v63 = vld [vmem:[%s1214_s1 + $0xc0] sm:$0xff] }
  0x1a   : > { %489 = vmatpush.bf16.msra.mxu2 %v971_v22  ;;  %v1015_v14 = vld [vmem:[%s1215_s2] ss:$0 sm:$0xff] }
  0x1b   : > { %507 = vmatpush.bf16.msra.mxu3 %v975_v23  ;;  %v1004_v37 = vld [vmem:[%s218_s29] sm:$0xff]  }
  0x1c   : > { %841 = vmatmul.msk.bf16.vlgmr.msra.gmra.mxu1 %vm373_vm1, %v299_v34  ;;  %381 = vmatpush.bf16.msra.mxu0 %v982_v30 }
  0x1d   : > { %621 = vmatpush.bf16.msrb.mxu1 %v998_v25 }
  0x1e   : > { %890 = vmatmul.msk.bf16.vlgmr.msra.gmra.mxu3 %vm373_vm1, %v409_v29  ;;  %490 = vmatpush.bf16.msra.mxu2 %v970_v32 }
  0x1f   : > { %639 = vmatpush.bf16.msrb.mxu3 %v1002_v26 }
  0x20   : > { %382 = vmatpush.bf16.msra.mxu0 %v981_v36 }
  0x21   : > { %622 = vmatpush.bf16.msrb.mxu1 %v997_v33 }
  0x22   : > { %491 = vmatpush.bf16.msra.mxu2 %v969_v40 }
  0x23   : > { %640 = vmatpush.bf16.msrb.mxu3 %v1001_v35 }
  0x24   : > { %383 = vmatpush.bf16.msra.mxu0 %v980_v43 }
  0x25   : > { %623 = vmatpush.bf16.msrb.mxu1 %v996_v41  ;;  %v1005_v41 = vunpack.c.l.bf16 %v1004_v37 }
  0x26   : > { %492 = vmatpush.bf16.msra.mxu2 %v968_v46 }
  0x27   : > { %641 = vmatpush.bf16.msrb.mxu3 %v1000_v42 }
  0x28   : > { %384 = vmatpush.bf16.msra.mxu0 %v979_v50 }
  0x29   : > { %624 = vmatpush.bf16.msrb.mxu1 %v995_v48  ;;  %v1006_v48 = vunpack.c.h.bf16 %v1004_v37 }
  0x2a   : > { %493 = vmatpush.bf16.msra.mxu2 %v967_v55 }
  0x2b   : > { %642 = vmatpush.bf16.msrb.mxu3 %v999_v49  ;;  %385 = vmatmul.bf16.vlgmr.msra.gmra.mxu0 %v296_v57 }
  0x2d   : > { %625 = vmatpush.bf16.msrb.mxu1 %v994_v56  ;;  %494 = vmatmul.bf16.vlgmr.msra.gmra.mxu2 %v408_v58 }
  0x2e   : > { %963 = vmatmul.msk.bf16.vlgmr.msrb.gmra.mxu3 %vm373_vm1, %v544_v59 }
  0x31   : > { %626 = vmatpush.bf16.msrb.mxu1 %v993_v60 }
  0x35   : > { %627 = vmatpush.bf16.msrb.mxu1 %v992_v61 }
  0x39   : > { %628 = vmatpush.bf16.msrb.mxu1 %v991_v63 }
  0x3c   : > { %629 = vmatmul.bf16.vlgmr.msrb.gmra.mxu1 %v543_v0 }
  0x99   : > { %v400_v2 = vpop.f32.mrf.mxu1 }
  0xa1   : > { %v509_v1 = vpop.f32.mrf.mxu3  ;;  %v402_v5 = vpop.f32.mrf.mxu1 }
  0xa8   : > { %v386_v4 = vpop.f32.mrf.mxu0 }
  0xa9   : > { %v511_v3 = vpop.f32.mrf.mxu3  ;;  %v401_v7 = vadd.f32 %v400_v2, %v386_v4 }
  0xb0   : > { %v495_v6 = vpop.f32.mrf.mxu2  ;;  %v388_v10 = vpop.f32.mrf.mxu0 }
  0xb1   : > { %v496_v8 = vadd.f32 %v495_v6, %v401_v7  ;;  %v644_v9 = vpop.f32.mrf.mxu3  ;;  %v403_v16 = vadd.f32 %v402_v5, %v388_v10 }
  0xb3   : > { %v510_v12 = vadd.f32 %v509_v1, %v496_v8 }
  0xb8   : > { %v497_v15 = vpop.f32.mrf.mxu2 }
  0xb9   : > { %v630_v11 = vpop.f32.mrf.mxu1  ;;  %v498_v19 = vadd.f32 %v497_v15, %v403_v16  ;;  %v646_v21 = vpop.f32.mrf.mxu3 }
  0xba   : > { %v645_v13 = vadd.f32 %v644_v9, %v630_v11 }
  0xbb   : > { %v512_v24 = vadd.f32 %v511_v3, %v498_v19 }
  0xbc   : > { %v649_v17 = vadd.f32 %v645_v13, %v510_v12 }
  0xbe   : > { %v655_v18 = vadd.f32 %v1015_v14, %v649_v17 }
  0xc0   : > { %v657_v20 = vmin.f32 %v655_v18, 20.0  ;;  %vm673_vm2 = vcmp.gt.f32.partialorder %v655_v18, 20.0 }
  0xc1   : > { %v632_v22 = vpop.f32.mrf.mxu1 }
  0xc2   : > { %v659_v23 = vmul.f32 1.442695, %v657_v20  ;;  %v647_v25 = vadd.f32 %v646_v21, %v632_v22 }
  0xc4   : > { %1016 = vpow2.f32 %v659_v23  ;;  %v650_v26 = vadd.f32 %v647_v25, %v512_v24 }
  0xc6   : > { %v656_v27 = vadd.f32 %v1015_v14, %v650_v26 }
  0xc8   : > { %v658_v28 = vmin.f32 %v656_v27, 20.0  ;;  %vm674_vm4 = vcmp.gt.f32.partialorder %v656_v27, 20.0 }
  0xca   : > { %v1017_v29 = vpop.eup %1016  ;;  %v661_v30 = vmul.f32 1.442695, %v658_v28 }
  0xcb   : > { %v663_v31 = vadd.f32 2.0, %v1017_v29 }
  0xcc   : > { %1018 = vpow2.f32 %v661_v30 }
  0xcd   : > { %v665_v32 = vmul.f32 %v1017_v29, %v663_v31 }
  0xcf   : > { %v667_v33 = vadd.f32 2.0, %v665_v32 }
  0xd1   : > { %1020 = vrcp.f32 %v667_v33 }
  0xd2   : > { %v1019_v34 = vpop.eup %1018 }
  0xd3   : > { %v664_v35 = vadd.f32 2.0, %v1019_v34 }
  0xd5   : > { %v666_v36 = vmul.f32 %v1019_v34, %v664_v35 }
  0xd7   : > { %v1021_v38 = vpop.eup %1020  ;;  %v668_v39 = vadd.f32 2.0, %v666_v36 }
  0xd8   : > { %v671_v40 = vmul.f32 %v1021_v38, %v665_v32 }
  0xd9   : > { %1022 = vrcp.f32 %v668_v39 }
  0xda   : > { %v675_v42 = vmul.f32 %v671_v40, %v655_v18 }
  0xdc   : > { %v677_v43 = vsel %vm673_vm2, %v655_v18, %v675_v42 }
  0xdd   : > { %v683_v44 = vadd.f32 %v1005_v41, %v677_v43 }
  0xdf   : > { %v1023_v45 = vpop.eup %1022  ;;  %v685_v46 = vpack.c.bf16 %v683_v44, %v683_v44 }
  0xe0   : > { %v672_v47 = vmul.f32 %v1023_v45, %v666_v36 }
  0xe1   : > { %688 = vst.msk [vmem:[%s224_s5] sm:$0xf] %vm687_vm3, %v685_v46 }
  0xe2   : > { %v676_v49 = vmul.f32 %v672_v47, %v656_v27 }
  0xe4   : > { %v678_v50 = vsel %vm674_vm4, %v656_v27, %v676_v49 }
  0xe5   : > { %v684_v51 = vadd.f32 %v1006_v48, %v678_v50 }
  0xe7   : > { %v686_v52 = vpack.c.bf16 %v684_v51, %v684_v51 }
  0xe9   : > { %689 = vst.msk [vmem:[%s224_s5 + $0x4] sm:$0xf] %vm687_vm3, %v686_v52 }
  0xea PF: > { %s14_s15 = sadd.s32 1, %s1030_s15  }
  0xeb   : > { %p11_p5 = scmp.ge.s32.totalorder %s14_s15, 4  }
  0xed   :  { %13 = sbr.rel (!%p11_p5) target bundleno = 1 (0x1), region = 71 }

// kernel: cspdarknet_forward.33
= control target key start
LH: loop header
LB: loop body
LE: loop exit
PB: predicated region body
PF: predicated region fallthrough
CT: control target
= control target key end

     0   :  { %s500_s12 = smov 0   ;;  %s563_s0 = inlined_call_operand.vmem [shape: bf16[32,192], index: 0, kind: input, shape index: {}]   ;;  %s564_s1 = inlined_call_operand.vmem [shape: bf16[192,128], index: 1, kind: input, shape index: {}]   ;;  %s565_s2 = inlined_call_operand.vmem [shape: f32[1,128], index: 2, kind: input, shape index: {}]   ;;  %s566_s3 = inlined_call_operand.vmem [shape: f32[32,128], index: 3, kind: output, shape index: {}]  }
   0x1 LB: > { %s379_s13 = sadd.s32 4294967295, %s478_s12   ;;  %p383_p0 = scmp.ge.s32.totalorder %s478_s12, 1  ;;  %s478_s12 = sphi %s500_s12, %s13_s12  }
   0x2   : > { %p139_p1 = scmp.lt.s32.totalorder %s478_s12, 3 }
   0x4   : > { %p140_p2 = pnand %p383_p0, %p139_p1 }
   0x5   : > { %s384_s16 = sshll.u32 (!%p140_p2), %s379_s13, 1 }
   0x6   : > { %143 = sbr.rel (%p140_p2) target bundleno = 182 (0xb6), region = 32  ;;  %p165_p3 = scmp.lt.s32.totalorder (!%p140_p2), %s384_s16, 3 }
   0xb   : > { %v458_v0 = vld [vmem:[%s564_s1 + $0x38] sm:$0xff]  ;;  %v457_v2 = vld [vmem:[%s564_s1 + $0x30] sm:$0xff]  ;;  %s568_s16 = smov (!%p165_p3, %s384_s16), 3  ;;  %v456_v4 = vld [vmem:[%s564_s1 + $0x28] sm:$0xff]  ;;  %vm289_vm0 = vcmask 523264  }
   0xc   : > { %v462_v1 = vld [vmem:[%s564_s1 + $0x58] sm:$0xff]  ;;  %293 = vmatpush.bf16.msra.mxu0 %v458_v0  ;;  %v461_v3 = vld [vmem:[%s564_s1 + $0x50] sm:$0xff]  ;;  %s448_s23 = sshll.u32 %s568_s16, 3  ;;  %v460_v5 = vld [vmem:[%s564_s1 + $0x48] sm:$0xff] }
   0xd   : > { %311 = vmatpush.bf16.msra.mxu1 %v462_v1  ;;  %s169_s30 = scalar_lea.vmem %s563_s0, %s448_s23  ;;  %v455_v6 = vld [vmem:[%s564_s1 + $0x20] sm:$0xff]  ;;  %v454_v10 = vld [vmem:[%s564_s1 + $0x18] sm:$0xff]  ;;  %v453_v12 = vld [vmem:[%s564_s1 + $0x10] sm:$0xff]  ;;  %s175_s22 = scalar_lea.vmem %s566_s3, %s448_s23 }
   0xe   : > { %v459_v7 = vld [vmem:[%s564_s1 + $0x40] sm:$0xff]  ;;  %v393_v9 = vld [vmem:[%s169_s30 + $0x8] sm:$0xf0]  ;;  %v450_v16 = vld [vmem:[%s169_s30 + $0x4] sm:$0xf0] }
   0xf   : > { %v449_v8 = vld [vmem:[%s169_s30 + $0x4] sm:$0xf]  ;;  %v452_v13 = vld [vmem:[%s564_s1 + $0x8] sm:$0xff]  ;;  %v391_v15 = vld [vmem:[%s169_s30] sm:$0xf] }
  0x10   : > { %294 = vmatpush.bf16.msra.mxu0 %v457_v2  ;;  %v396_v11 = vor.u32 %v449_v8, %v393_v9  ;;  %v451_v14 = vld [vmem:[%s564_s1] sm:$0xff]  ;;  %v392_v17 = vor.u32 %v450_v16, %v391_v15 }
  0x11   : > { %312 = vmatpush.bf16.msra.mxu1 %v461_v3  ;;  %v471_v18 = vld [vmem:[%s565_s2] ss:$0 sm:$0xff] }
  0x14   : > { %295 = vmatpush.bf16.msra.mxu0 %v456_v4 }
  0x15   : > { %313 = vmatpush.bf16.msra.mxu1 %v460_v5 }
  0x18   : > { %296 = vmatpush.bf16.msra.mxu0 %v455_v6 }
  0x19   : > { %314 = vmatpush.bf16.msra.mxu1 %v459_v7 }
  0x1c   : > { %297 = vmatpush.bf16.msra.mxu0 %v454_v10  ;;  %445 = vmatmul.msk.bf16.vlgmr.msra.gmra.mxu1 %vm289_vm0, %v396_v11 }
  0x20   : > { %298 = vmatpush.bf16.msra.mxu0 %v453_v12 }
  0x24   : > { %299 = vmatpush.bf16.msra.mxu0 %v452_v13 }
  0x28   : > { %300 = vmatpush.bf16.msra.mxu0 %v451_v14 }
  0x2b   : > { %301 = vmatmul.bf16.vlgmr.msra.gmra.mxu0 %v392_v17 }
  0x99   : > { %v316_v19 = vpop.f32.mrf.mxu1 }
  0xa1   : > { %v318_v25 = vpop.f32.mrf.mxu1 }
  0xa8   : > { %v302_v20 = vpop.f32.mrf.mxu0 }
  0xa9   : > { %v303_v21 = vadd.f32 %v471_v18, %v302_v20 }
  0xab   : > { %v317_v22 = vadd.f32 %v316_v19, %v303_v21 }
  0xad   : > { %321 = vst [vmem:[%s175_s22] sm:$0xff] %v317_v22 }
  0xb0   : > { %v304_v23 = vpop.f32.mrf.mxu0 }
  0xb1   : > { %v305_v24 = vadd.f32 %v471_v18, %v304_v23 }
  0xb3   : > { %v319_v26 = vadd.f32 %v318_v25, %v305_v24 }
  0xb5   : > { %322 = vst [vmem:[%s175_s22 + $0x8] sm:$0xff] %v319_v26 }
  0xb6 PF: > { %s13_s12 = sadd.s32 1, %s478_s12  }
  0xb7   : > { %p10_p4 = scmp.ge.s32.totalorder %s13_s12, 4  }
  0xb9   :  { %12 = sbr.rel (!%p10_p4) target bundleno = 1 (0x1), region = 62 }

// kernel: cspdarknet_forward.32
= control target key start
LH: loop header
LB: loop body
LE: loop exit
PB: predicated region body
PF: predicated region fallthrough
CT: control target
= control target key end

     0   :  { %s2333_s12 = smov 0   ;;  %s3296_s0 = inlined_call_operand.vmem [shape: bf16[48,384], index: 0, kind: input, shape index: {}]   ;;  %s3297_s1 = inlined_call_operand.vmem [shape: bf16[3,384,192], index: 1, kind: input, shape index: {}]   ;;  %s3298_s2 = inlined_call_operand.vmem [shape: f32[1,192], index: 2, kind: input, shape index: {}]   ;;  %s3299_s3 = inlined_call_operand.vmem [shape: bf16[32,192], index: 3, kind: output, shape index: {}]  }
   0x1 LB: > { %s1453_s13 = sadd.s32 4294967295, %s2311_s12   ;;  %p1457_p0 = scmp.ge.s32.totalorder %s2311_s12, 1  ;;  %s2311_s12 = sphi %s2333_s12, %s13_s12  }
   0x2   : > { %p139_p1 = scmp.lt.s32.totalorder %s2311_s12, 3 }
   0x4   : > { %p140_p2 = pnand %p1457_p0, %p139_p1 }
   0x5   : > { %s165_s30 = smul.u32 (!%p140_p2), 3, %s1453_s13  ;;  %s1459_s28 = sshll.u32 (!%p140_p2), %s1453_s13, 1 }
   0x6   : > { %143 = sbr.rel (%p140_p2) target bundleno = 320 (0x140), region = 32  ;;  %p173_p4 = scmp.lt.s32.totalorder (!%p140_p2), %s1459_s28, 3 }
   0x7   : > { %p166_p3 = scmp.lt.s32.totalorder (!%p140_p2), %s165_s30, 5 }
   0xb   : > { %v1568_v0 = vld [vmem:[%s3297_s1 + $0x1f0] sm:$0xf]  ;;  %v2215_v1 = vld [vmem:[%s3297_s1 + $0x1f4] sm:$0xf0]  ;;  %v2214_v9 = vld [vmem:[%s3297_s1 + $0x1f4] sm:$0xf] }
   0xc   : > { %v1632_v2 = vld [vmem:[%s3297_s1 + $0x270] sm:$0xf]  ;;  %v1569_v3 = vor.u32 %v2215_v1, %v1568_v0  ;;  %v2231_v4 = vld [vmem:[%s3297_s1 + $0x274] sm:$0xf0]  ;;  %v1570_v10 = vld [vmem:[%s3297_s1 + $0x1f8] sm:$0xf0] }
   0xd   : > { %v1696_v5 = vld [vmem:[%s3297_s1 + $0x2f0] sm:$0xf]  ;;  %v2247_v6 = vld [vmem:[%s3297_s1 + $0x2f4] sm:$0xf0]  ;;  %v1633_v7 = vor.u32 %v2231_v4, %v1632_v2  ;;  %v1560_v11 = vld [vmem:[%s3297_s1 + $0x1e0] sm:$0xf]  ;;  %v1573_v12 = vor.u32 %v2214_v9, %v1570_v10 }
   0xe   : > { %v1697_v8 = vor.u32 %v2247_v6, %v1696_v5  ;;  %560 = vmatpush.bf16.msra.mxu0 %v1569_v3  ;;  %v2213_v13 = vld [vmem:[%s3297_s1 + $0x1e4] sm:$0xf0]  ;;  %v1624_v14 = vld [vmem:[%s3297_s1 + $0x260] sm:$0xf]  ;;  %v2212_v20 = vld [vmem:[%s3297_s1 + $0x1e4] sm:$0xf] }
   0xf   : > { %v2229_v15 = vld [vmem:[%s3297_s1 + $0x264] sm:$0xf0]  ;;  %574 = vmatpush.bf16.msra.mxu1 %v1633_v7  ;;  %v1561_v16 = vor.u32 %v2213_v13, %v1560_v11  ;;  %v1688_v18 = vld [vmem:[%s3297_s1 + $0x2e0] sm:$0xf]  ;;  %602 = vmatpush.bf16.msra.mxu3 %v1573_v12  ;;  %v1562_v22 = vld [vmem:[%s3297_s1 + $0x1e8] sm:$0xf0] }
  0x10   : > { %588 = vmatpush.bf16.msra.mxu2 %v1697_v8  ;;  %v1625_v17 = vor.u32 %v2229_v15, %v1624_v14  ;;  %v2245_v19 = vld [vmem:[%s3297_s1 + $0x2e4] sm:$0xf0]  ;;  %v1552_v23 = vld [vmem:[%s3297_s1 + $0x1d0] sm:$0xf]  ;;  %v2211_v24 = vld [vmem:[%s3297_s1 + $0x1d4] sm:$0xf0]  ;;  %v1565_v25 = vor.u32 %v2212_v20, %v1562_v22 }
  0x11   : > { %v1689_v21 = vor.u32 %v2245_v19, %v1688_v18  ;;  %v1616_v26 = vld [vmem:[%s3297_s1 + $0x250] sm:$0xf]  ;;  %v2227_v27 = vld [vmem:[%s3297_s1 + $0x254] sm:$0xf0]  ;;  %v1553_v29 = vor.u32 %v2211_v24, %v1552_v23  ;;  %v2210_v31 = vld [vmem:[%s3297_s1 + $0x1d4] sm:$0xf] }
  0x12   : > { %v1680_v28 = vld [vmem:[%s3297_s1 + $0x2d0] sm:$0xf]  ;;  %561 = vmatpush.bf16.msra.mxu0 %v1561_v16  ;;  %v2243_v30 = vld [vmem:[%s3297_s1 + $0x2d4] sm:$0xf0]  ;;  %v1554_v32 = vld [vmem:[%s3297_s1 + $0x1d8] sm:$0xf0]  ;;  %v1617_v33 = vor.u32 %v2227_v27, %v1616_v26 }
  0x13   : > { %575 = vmatpush.bf16.msra.mxu1 %v1625_v17  ;;  %v1681_v34 = vor.u32 %v2243_v30, %v1680_v28  ;;  %v1544_v35 = vld [vmem:[%s3297_s1 + $0x1c0] sm:$0xf]  ;;  %v2209_v36 = vld [vmem:[%s3297_s1 + $0x1c4] sm:$0xf0]  ;;  %603 = vmatpush.bf16.msra.mxu3 %v1565_v25  ;;  %v1557_v38 = vor.u32 %v2210_v31, %v1554_v32  ;;  %v2208_v42 = vld [vmem:[%s3297_s1 + $0x1c4] sm:$0xf] }
  0x14   : > { %589 = vmatpush.bf16.msra.mxu2 %v1689_v21  ;;  %v1608_v37 = vld [vmem:[%s3297_s1 + $0x240] sm:$0xf]  ;;  %v2225_v39 = vld [vmem:[%s3297_s1 + $0x244] sm:$0xf0]  ;;  %v1546_v43 = vld [vmem:[%s3297_s1 + $0x1c8] sm:$0xf0]  ;;  %v1545_v44 = vor.u32 %v2209_v36, %v1544_v35 }
  0x15   : > { %v1672_v40 = vld [vmem:[%s3297_s1 + $0x2c0] sm:$0xf]  ;;  %v2241_v41 = vld [vmem:[%s3297_s1 + $0x2c4] sm:$0xf0]  ;;  %v1609_v45 = vor.u32 %v2225_v39, %v1608_v37  ;;  %v1536_v47 = vld [vmem:[%s3297_s1 + $0x1b0] sm:$0xf]  ;;  %v1549_v50 = vor.u32 %v2208_v42, %v1546_v43 }
  0x16   : > { %562 = vmatpush.bf16.msra.mxu0 %v1553_v29  ;;  %v1673_v46 = vor.u32 %v2241_v41, %v1672_v40  ;;  %v2207_v48 = vld [vmem:[%s3297_s1 + $0x1b4] sm:$0xf0]  ;;  %v1600_v49 = vld [vmem:[%s3297_s1 + $0x230] sm:$0xf]  ;;  %v2206_v54 = vld [vmem:[%s3297_s1 + $0x1b4] sm:$0xf] }
  0x17   : > { %576 = vmatpush.bf16.msra.mxu1 %v1617_v33  ;;  %604 = vmatpush.bf16.msra.mxu3 %v1557_v38  ;;  %v2223_v51 = vld [vmem:[%s3297_s1 + $0x234] sm:$0xf0]  ;;  %v1664_v52 = vld [vmem:[%s3297_s1 + $0x2b0] sm:$0xf]  ;;  %v1538_v55 = vld [vmem:[%s3297_s1 + $0x1b8] sm:$0xf0]  ;;  %v1537_v56 = vor.u32 %v2207_v48, %v1536_v47 }
  0x18   : > { %590 = vmatpush.bf16.msra.mxu2 %v1681_v34  ;;  %v2239_v53 = vld [vmem:[%s3297_s1 + $0x2b4] sm:$0xf0]  ;;  %v1601_v57 = vor.u32 %v2223_v51, %v1600_v49  ;;  %v1528_v59 = vld [vmem:[%s3297_s1 + $0x1a0] sm:$0xf]  ;;  %v2205_v60 = vld [vmem:[%s3297_s1 + $0x1a4] sm:$0xf0]  ;;  %v1541_v62 = vor.u32 %v2206_v54, %v1538_v55 }
  0x19   : > { %v1665_v58 = vor.u32 %v2239_v53, %v1664_v52  ;;  %v1592_v61 = vld [vmem:[%s3297_s1 + $0x220] sm:$0xf]  ;;  %v2221_v63 = vld [vmem:[%s3297_s1 + $0x224] sm:$0xf0]  ;;  %v2204_v2 = vld [vmem:[%s3297_s1 + $0x1a4] sm:$0xf]  ;;  %v1529_v4 = vor.u32 %v2205_v60, %v1528_v59 }
  0x1a   : > { %563 = vmatpush.bf16.msra.mxu0 %v1545_v44  ;;  %v1656_v0 = vld [vmem:[%s3297_s1 + $0x2a0] sm:$0xf]  ;;  %v2237_v1 = vld [vmem:[%s3297_s1 + $0x2a4] sm:$0xf0]  ;;  %v1530_v3 = vld [vmem:[%s3297_s1 + $0x1a8] sm:$0xf0]  ;;  %v1593_v5 = vor.u32 %v2221_v63, %v1592_v61 }
  0x1b   : > { %577 = vmatpush.bf16.msra.mxu1 %v1609_v45  ;;  %605 = vmatpush.bf16.msra.mxu3 %v1549_v50  ;;  %v1657_v6 = vor.u32 %v2237_v1, %v1656_v0  ;;  %v1520_v7 = vld [vmem:[%s3297_s1 + $0x190] sm:$0xf]  ;;  %v2203_v8 = vld [vmem:[%s3297_s1 + $0x194] sm:$0xf0]  ;;  %v1533_v10 = vor.u32 %v2204_v2, %v1530_v3  ;;  %v2202_v14 = vld [vmem:[%s3297_s1 + $0x194] sm:$0xf] }
  0x1c   : > { %591 = vmatpush.bf16.msra.mxu2 %v1673_v46  ;;  %v1584_v9 = vld [vmem:[%s3297_s1 + $0x210] sm:$0xf]  ;;  %v2219_v11 = vld [vmem:[%s3297_s1 + $0x214] sm:$0xf0]  ;;  %v1522_v15 = vld [vmem:[%s3297_s1 + $0x198] sm:$0xf0]  ;;  %v1521_v16 = vor.u32 %v2203_v8, %v1520_v7 }
  0x1d   : > { %v1648_v12 = vld [vmem:[%s3297_s1 + $0x290] sm:$0xf]  ;;  %v2235_v13 = vld [vmem:[%s3297_s1 + $0x294] sm:$0xf0]  ;;  %v1512_v17 = vld [vmem:[%s3297_s1 + $0x180] sm:$0xf]  ;;  %v1585_v19 = vor.u32 %v2219_v11, %v1584_v9  ;;  %v1525_v24 = vor.u32 %v2202_v14, %v1522_v15 }
  0x1e   : > { %564 = vmatpush.bf16.msra.mxu0 %v1537_v56  ;;  %v2201_v18 = vld [vmem:[%s3297_s1 + $0x184] sm:$0xf0]  ;;  %v1649_v20 = vor.u32 %v2235_v13, %v1648_v12  ;;  %v1576_v21 = vld [vmem:[%s3297_s1 + $0x200] sm:$0xf]  ;;  %v2230_v26 = vld [vmem:[%s3297_s1 + $0x274] sm:$0xf] }
  0x1f   : > { %578 = vmatpush.bf16.msra.mxu1 %v1601_v57  ;;  %606 = vmatpush.bf16.msra.mxu3 %v1541_v62  ;;  %v2217_v22 = vld [vmem:[%s3297_s1 + $0x204] sm:$0xf0]  ;;  %v1640_v23 = vld [vmem:[%s3297_s1 + $0x280] sm:$0xf]  ;;  %v1634_v27 = vld [vmem:[%s3297_s1 + $0x278] sm:$0xf0]  ;;  %v1513_v31 = vor.u32 %v2201_v18, %v1512_v17 }
  0x20   : > { %592 = vmatpush.bf16.msra.mxu2 %v1665_v58  ;;  %v2233_v25 = vld [vmem:[%s3297_s1 + $0x284] sm:$0xf0]  ;;  %v2246_v28 = vld [vmem:[%s3297_s1 + $0x2f4] sm:$0xf]  ;;  %v1698_v29 = vld [vmem:[%s3297_s1 + $0x2f8] sm:$0xf0]  ;;  %v1577_v35 = vor.u32 %v2217_v22, %v1576_v21  ;;  %v1637_v39 = vor.u32 %v2230_v26, %v1634_v27 }
  0x21   : > { %v1772_v30 = vld [vmem:[%s3297_s1 + $0x70] sm:$0xf]  ;;  %v2167_v32 = vld [vmem:[%s3297_s1 + $0x74] sm:$0xf0]  ;;  %v2200_v33 = vld [vmem:[%s3297_s1 + $0x184] sm:$0xf]  ;;  %v1641_v36 = vor.u32 %v2233_v25, %v1640_v23  ;;  %v1701_v40 = vor.u32 %v2246_v28, %v1698_v29 }
  0x22   : > { %565 = vmatpush.bf16.msra.mxu0 %v1529_v4  ;;  %v1514_v34 = vld [vmem:[%s3297_s1 + $0x188] sm:$0xf0]  ;;  %v1836_v37 = vld [vmem:[%s3297_s1 + $0xf0] sm:$0xf]  ;;  %v2183_v38 = vld [vmem:[%s3297_s1 + $0xf4] sm:$0xf0]  ;;  %v1773_v43 = vor.u32 %v2167_v32, %v1772_v30 }
  0x23   : > { %579 = vmatpush.bf16.msra.mxu1 %v1593_v5  ;;  %607 = vmatpush.bf16.msra.mxu3 %v1533_v10  ;;  %v2228_v41 = vld [vmem:[%s3297_s1 + $0x264] sm:$0xf]  ;;  %v1626_v42 = vld [vmem:[%s3297_s1 + $0x268] sm:$0xf0]  ;;  %v1517_v44 = vor.u32 %v2200_v33, %v1514_v34  ;;  %v1764_v47 = vld [vmem:[%s3297_s1 + $0x60] sm:$0xf]  ;;  %v1837_v48 = vor.u32 %v2183_v38, %v1836_v37 }
  0x24   : > { %593 = vmatpush.bf16.msra.mxu2 %v1657_v6  ;;  %v2244_v45 = vld [vmem:[%s3297_s1 + $0x2e4] sm:$0xf]  ;;  %v1690_v46 = vld [vmem:[%s3297_s1 + $0x2e8] sm:$0xf0]  ;;  %v2165_v49 = vld [vmem:[%s3297_s1 + $0x64] sm:$0xf0]  ;;  %v1629_v55 = vor.u32 %v2228_v41, %v1626_v42 }
  0x25   : > { %v1828_v50 = vld [vmem:[%s3297_s1 + $0xe0] sm:$0xf]  ;;  %v2181_v51 = vld [vmem:[%s3297_s1 + $0xe4] sm:$0xf0]  ;;  %v2226_v52 = vld [vmem:[%s3297_s1 + $0x254] sm:$0xf]  ;;  %v1693_v56 = vor.u32 %v2244_v45, %v1690_v46  ;;  %v1765_v60 = vor.u32 %v2165_v49, %v1764_v47 }
  0x26   : > { %566 = vmatpush.bf16.msra.mxu0 %v1521_v16  ;;  %v1618_v53 = vld [vmem:[%s3297_s1 + $0x258] sm:$0xf0]  ;;  %v2242_v54 = vld [vmem:[%s3297_s1 + $0x2d4] sm:$0xf]  ;;  %v1756_v58 = vld [vmem:[%s3297_s1 + $0x50] sm:$0xf]  ;;  %v1829_v63 = vor.u32 %v2181_v51, %v1828_v50 }
  0x27   : > { %580 = vmatpush.bf16.msra.mxu1 %v1585_v19  ;;  %608 = vmatpush.bf16.msra.mxu3 %v1525_v24  ;;  %v1682_v57 = vld [vmem:[%s3297_s1 + $0x2d8] sm:$0xf0]  ;;  %v2163_v59 = vld [vmem:[%s3297_s1 + $0x54] sm:$0xf0]  ;;  %v1820_v61 = vld [vmem:[%s3297_s1 + $0xd0] sm:$0xf]  ;;  %v1621_v5 = vor.u32 %v2226_v52, %v1618_v53 }
  0x28   : > { %594 = vmatpush.bf16.msra.mxu2 %v1649_v20  ;;  %v2179_v62 = vld [vmem:[%s3297_s1 + $0xd4] sm:$0xf0]  ;;  %v2224_v0 = vld [vmem:[%s3297_s1 + $0x244] sm:$0xf]  ;;  %v1610_v1 = vld [vmem:[%s3297_s1 + $0x248] sm:$0xf0]  ;;  %v1685_v6 = vor.u32 %v2242_v54, %v1682_v57  ;;  %v1757_v10 = vor.u32 %v2163_v59, %v1756_v58 }
  0x29   : > { %v2240_v2 = vld [vmem:[%s3297_s1 + $0x2c4] sm:$0xf]  ;;  %v1674_v3 = vld [vmem:[%s3297_s1 + $0x2c8] sm:$0xf0]  ;;  %v1748_v4 = vld [vmem:[%s3297_s1 + $0x40] sm:$0xf]  ;;  %v1821_v13 = vor.u32 %v2179_v62, %v1820_v61  ;;  %v1613_v16 = vor.u32 %v2224_v0, %v1610_v1 }
  0x2a   : > { %567 = vmatpush.bf16.msra.mxu0 %v1513_v31  ;;  %s3301_s30 = smov (!%p166_p3, %s165_s30), 5  ;;  %v2161_v7 = vld [vmem:[%s3297_s1 + $0x44] sm:$0xf0]  ;;  %v1812_v8 = vld [vmem:[%s3297_s1 + $0xc0] sm:$0xf]  ;;  %v1677_v17 = vor.u32 %v2240_v2, %v1674_v3  ;;  %vm307_vm0 = vcmask 1045504  }
  0x2b   : > { %581 = vmatpush.bf16.msra.mxu1 %v1577_v35  ;;  %609 = vmatpush.bf16.msra.mxu3 %v1517_v44  ;;  %v2177_v9 = vld [vmem:[%s3297_s1 + $0xc4] sm:$0xf0]  ;;  %s2296_s6 = smul.u32 12, %s3301_s30  ;;  %v2634_v11 = vld [vmem:[%s3297_s1 + $0x234] sm:$0xf]  ;;  %v1749_v20 = vor.u32 %v2161_v7, %v1748_v4  ;;  %s3303_s28 = smov (!%p173_p4, %s1459_s28), 3 }
  0x2c   : > { %595 = vmatpush.bf16.msra.mxu2 %v1641_v36  ;;  %v1602_v12 = vld [vmem:[%s3297_s1 + $0x238] sm:$0xf0]  ;;  %v2642_v14 = vld [vmem:[%s3297_s1 + $0x2b4] sm:$0xf]  ;;  %v1740_v18 = vld [vmem:[%s3297_s1 + $0x30] sm:$0xf]  ;;  %v1813_v21 = vor.u32 %v2177_v9, %v1812_v8 }
  0x2d   : > { %v2647_v15 = vld [vmem:[%s3297_s1 + $0x2b8] sm:$0xf0]  ;;  %s2652_s18 = scalar_lea.vmem %s3296_s0, %s2296_s6  ;;  %v2159_v19 = vld [vmem:[%s3297_s1 + $0x34] sm:$0xf0]  ;;  %v1605_v25 = vor.u32 %v2634_v11, %v1602_v12  ;;  %v2220_v46 = vld [vmem:[%s3297_s1 + $0x224] sm:$0xf] }
  0x2e   : > { %616 = vmatpush.bf16.msrb.mxu0 %v1637_v39  ;;  %v232_v22 = vld [vmem:[%s2652_s18 + $0x8] sm:$0xc]  ;;  %v2662_v23 = vld [vmem:[%s2652_s18 + $0x14] sm:$0xf]  ;;  %v236_v24 = vld [vmem:[%s2652_s18 + $0x20] sm:$0x3]  ;;  %v1669_v29 = vor.u32 %v2642_v14, %v2647_v15  ;;  %v1741_v42 = vor.u32 %v2159_v19, %v1740_v18 }
  0x2f   : > { %630 = vmatpush.bf16.msrb.mxu1 %v1701_v40  ;;  %914 = vmatpush.bf16.msrb.mxu3 %v1837_v48  ;;  %v294_v26 = vunpack.c.l.b16 %v232_v22  ;;  %v297_v27 = vunpack.c.l.b16 %v2662_v23  ;;  %v300_v28 = vunpack.c.l.b16 %v236_v24  ;;  %v231_v30 = vld [vmem:[%s2652_s18] sm:$0xcc]  ;;  %v2671_v31 = vld [vmem:[%s2652_s18 + $0xc] sm:$0xff]  ;;  %v235_v32 = vld [vmem:[%s2652_s18 + $0x18] sm:$0x33]  ;;  %s2148_s13 = sshll.u32 %s3303_s28, 3 }
  0x30   : > { %900 = vmatpush.bf16.msrb.mxu2 %v1773_v43  ;;  %v292_v33 = vunpack.c.l.b16 %v231_v30  ;;  %v295_v34 = vunpack.c.l.b16 %v2671_v31  ;;  %v298_v35 = vunpack.c.l.b16 %v235_v32  ;;  %v293_v36 = vunpack.c.h.b16 %v231_v30  ;;  %v1804_v39 = vld [vmem:[%s3297_s1 + $0xb0] sm:$0xf]  ;;  %v2175_v45 = vld [vmem:[%s3297_s1 + $0xb4] sm:$0xf0]  ;;  %v1594_v47 = vld [vmem:[%s3297_s1 + $0x228] sm:$0xf0]  ;;  %s177_s7 = scalar_lea.vmem %s3299_s3, %s2148_s13 }
  0x31   : > { %v303_v37 = vpack.c.b16 %v297_v27, %v294_v26  ;;  %v306_v38 = vpack.c.b16 %v300_v28, %v300_v28  ;;  %v296_v40 = vunpack.c.h.b16 %v2671_v31  ;;  %v299_v41 = vunpack.c.h.b16 %v235_v32  ;;  %v2236_v50 = vld [vmem:[%s3297_s1 + $0x2a4] sm:$0xf]  ;;  %v1658_v51 = vld [vmem:[%s3297_s1 + $0x2a8] sm:$0xf0]  ;;  %v2157_v57 = vld [vmem:[%s3297_s1 + $0x24] sm:$0xf0] }
  0x32   : > { %617 = vmatpush.bf16.msrb.mxu0 %v1629_v55  ;;  %v301_v43 = vpack.c.b16 %v295_v34, %v292_v33  ;;  %v304_v44 = vpack.c.b16 %v298_v35, %v298_v35  ;;  %v1805_v59 = vor.u32 %v2175_v45, %v1804_v39  ;;  %v1796_v0 = vld [vmem:[%s3297_s1 + $0xa0] sm:$0xf]  ;;  %v2173_v1 = vld [vmem:[%s3297_s1 + $0xa4] sm:$0xf0]  ;;  %v1661_v2 = vor.u32 %v2236_v50, %v1658_v51  ;;  %v2234_v7 = vld [vmem:[%s3297_s1 + $0x294] sm:$0xf] }
  0x33   : > { %631 = vmatpush.bf16.msrb.mxu1 %v1693_v56  ;;  %915 = vmatpush.bf16.msrb.mxu3 %v1829_v63  ;;  %v314_v48 = vrot.slane %v303_v37, 2  ;;  %v315_v49 = vrot.slane %v306_v38, 2  ;;  %v302_v52 = vpack.c.b16 %v296_v40, %v293_v36  ;;  %v305_v53 = vpack.c.b16 %v299_v41, %v299_v41  ;;  %v1732_v56 = vld [vmem:[%s3297_s1 + $0x20] sm:$0xf]  ;;  %v1650_v8 = vld [vmem:[%s3297_s1 + $0x298] sm:$0xf0] }
  0x34   : > { %901 = vmatpush.bf16.msrb.mxu2 %v1765_v60  ;;  %v308_v54 = vrot.slane %v301_v43, 2  ;;  %v309_v55 = vrot.slane %v304_v44, 2  ;;  %v1597_v63 = vor.u32 %v2220_v46, %v1594_v47  ;;  %v1733_v3 = vor.u32 %v2157_v57, %v1732_v56  ;;  %v1724_v9 = vld [vmem:[%s3297_s1 + $0x10] sm:$0xf]  ;;  %v2216_v15 = vld [vmem:[%s3297_s1 + $0x204] sm:$0xf] }
  0x35   : > { %v2707_v58 = vsel %vm307_vm0, %v314_v48, %v315_v49  ;;  %v311_v60 = vrot.slane %v302_v52, 2  ;;  %v312_v61 = vrot.slane %v305_v53, 2  ;;  %v1797_v11 = vor.u32 %v2173_v1, %v1796_v0  ;;  %v1788_v12 = vld [vmem:[%s3297_s1 + $0x90] sm:$0xf]  ;;  %v2153_v22 = vld [vmem:[%s3297_s1 + $0x4] sm:$0xf0] }
  0x36   : > { %618 = vmatpush.bf16.msrb.mxu0 %v1621_v5  ;;  %596 = vmatmul.bf16.vlgmr.msra.gmra.mxu2 %v2707_v58  ;;  %v310_v62 = vsel %vm307_vm0, %v308_v54, %v309_v55  ;;  %v2218_v5 = vld [vmem:[%s3297_s1 + $0x214] sm:$0xf]  ;;  %v1653_v18 = vor.u32 %v2234_v7, %v1650_v8  ;;  %v1900_v24 = vld [vmem:[%s3297_s1 + $0x170] sm:$0xf]  ;;  %v1838_v32 = vld [vmem:[%s3297_s1 + $0xf8] sm:$0xf0] }
  0x37   : > { %632 = vmatpush.bf16.msrb.mxu1 %v1685_v6  ;;  %916 = vmatpush.bf16.msrb.mxu3 %v1821_v13  ;;  %v2718_v4 = vsel %vm307_vm0, %v311_v60, %v312_v61  ;;  %v1586_v6 = vld [vmem:[%s3297_s1 + $0x218] sm:$0xf0]  ;;  %v2171_v13 = vld [vmem:[%s3297_s1 + $0x94] sm:$0xf0]  ;;  %v2166_v26 = vld [vmem:[%s3297_s1 + $0x74] sm:$0xf] }
  0x38   : > { %902 = vmatpush.bf16.msrb.mxu2 %v1757_v10  ;;  %610 = vmatmul.bf16.vlgmr.msra.gmra.mxu3 %v310_v62  ;;  %v2155_v10 = vld [vmem:[%s3297_s1 + $0x14] sm:$0xf0]  ;;  %v1589_v14 = vor.u32 %v2218_v5, %v1586_v6  ;;  %v1789_v28 = vor.u32 %v2171_v13, %v1788_v12  ;;  %v2182_v30 = vld [vmem:[%s3297_s1 + $0xf4] sm:$0xf]  ;;  %v1780_v35 = vld [vmem:[%s3297_s1 + $0x80] sm:$0xf] }
  0x39   : > { %568 = vmatmul.bf16.vlgmr.msra.gmra.mxu0 %v310_v62  ;;  %582 = vmatmul.bf16.vlgmr.msra.gmra.mxu1 %v2718_v4  ;;  %v1725_v19 = vor.u32 %v2155_v10, %v1724_v9  ;;  %v2169_v36 = vld [vmem:[%s3297_s1 + $0x84] sm:$0xf0]  ;;  %v1704_v37 = vld [vmem:[%s2652_s18] sm:$0xf]  ;;  %v2150_v41 = vld [vmem:[%s2652_s18 + $0x8] sm:$0xf0]  ;;  %v1841_v48 = vor.u32 %v2182_v30, %v1838_v32 }
  0x3a   : > { %619 = vmatpush.bf16.msrb.mxu0 %v1613_v16  ;;  %v1578_v16 = vld [vmem:[%s3297_s1 + $0x208] sm:$0xf0]  ;;  %v1902_v43 = vld [vmem:[%s3297_s1 + $0x178] sm:$0xf0]  ;;  %v2149_v46 = vld [vmem:[%s2652_s18 + $0x4] sm:$0xf]  ;;  %v1781_v49 = vor.u32 %v2169_v36, %v1780_v35  ;;  %v2806_v53 = vor.u32 %v2150_v41, %v1704_v37 }
  0x3b   : > { %633 = vmatpush.bf16.msrb.mxu1 %v1677_v17  ;;  %917 = vmatpush.bf16.msrb.mxu3 %v1813_v21  ;;  %v2232_v17 = vld [vmem:[%s3297_s1 + $0x284] sm:$0xf]  ;;  %v1716_v21 = vld [vmem:[%s3297_s1] sm:$0xf]  ;;  %v1581_v33 = vor.u32 %v2216_v15, %v1578_v16  ;;  %v1706_v47 = vld [vmem:[%s2652_s18 + $0xc] sm:$0xf0] }
  0x3c   : > { %903 = vmatpush.bf16.msrb.mxu2 %v1749_v20  ;;  %v1642_v20 = vld [vmem:[%s3297_s1 + $0x288] sm:$0xf0]  ;;  %v1717_v39 = vor.u32 %v2153_v22, %v1716_v21  ;;  %v1892_v50 = vld [vmem:[%s3297_s1 + $0x160] sm:$0xf]  ;;  %v2197_v51 = vld [vmem:[%s3297_s1 + $0x164] sm:$0xf0]  ;;  %v2823_v61 = vor.u32 %v2149_v46, %v1706_v47 }
  0x3d   : > { %v1645_v38 = vor.u32 %v2232_v17, %v1642_v20  ;;  %v2164_v52 = vld [vmem:[%s3297_s1 + $0x64] sm:$0xf]  ;;  %v1766_v55 = vld [vmem:[%s3297_s1 + $0x68] sm:$0xf0]  ;;  %v1893_v62 = vor.u32 %v2197_v51, %v1892_v50  ;;  %v1884_v1 = vld [vmem:[%s3297_s1 + $0x150] sm:$0xf] }
  0x3e   : > { %620 = vmatpush.bf16.msrb.mxu0 %v1605_v25  ;;  %v2199_v25 = vld [vmem:[%s3297_s1 + $0x174] sm:$0xf0]  ;;  %v2180_v56 = vld [vmem:[%s3297_s1 + $0xe4] sm:$0xf]  ;;  %v1830_v57 = vld [vmem:[%s3297_s1 + $0xe8] sm:$0xf0] }
  0x3f   : > { %634 = vmatpush.bf16.msrb.mxu1 %v1669_v29  ;;  %918 = vmatpush.bf16.msrb.mxu3 %v1805_v59  ;;  %v1774_v29 = vld [vmem:[%s3297_s1 + $0x78] sm:$0xf0]  ;;  %v1901_v44 = vor.u32 %v2199_v25, %v1900_v24  ;;  %v2196_v59 = vld [vmem:[%s3297_s1 + $0x164] sm:$0xf]  ;;  %v1894_v60 = vld [vmem:[%s3297_s1 + $0x168] sm:$0xf0]  ;;  %v1833_v0 = vor.u32 %v2180_v56, %v1830_v57 }
  0x40   : > { %904 = vmatpush.bf16.msrb.mxu2 %v1741_v42  ;;  %v2198_v42 = vld [vmem:[%s3297_s1 + $0x174] sm:$0xf]  ;;  %v1777_v45 = vor.u32 %v2166_v26, %v1774_v29  ;;  %v1897_v5 = vor.u32 %v2196_v59, %v1894_v60  ;;  %v1758_v6 = vld [vmem:[%s3297_s1 + $0x58] sm:$0xf0]  ;;  %v2193_v15 = vld [vmem:[%s3297_s1 + $0x144] sm:$0xf0] }
  0x41   : > { %v1905_v54 = vor.u32 %v2198_v42, %v1902_v43  ;;  %v2178_v7 = vld [vmem:[%s3297_s1 + $0xd4] sm:$0xf]  ;;  %v1822_v8 = vld [vmem:[%s3297_s1 + $0xd8] sm:$0xf0]  ;;  %v2160_v16 = vld [vmem:[%s3297_s1 + $0x44] sm:$0xf] }
  0x42   : > { %621 = vmatpush.bf16.msrb.mxu0 %v1597_v63  ;;  %v1769_v63 = vor.u32 %v2164_v52, %v1766_v55  ;;  %v2194_v9 = vld [vmem:[%s3297_s1 + $0x154] sm:$0xf]  ;;  %v1886_v10 = vld [vmem:[%s3297_s1 + $0x158] sm:$0xf0]  ;;  %v1825_v13 = vor.u32 %v2178_v7, %v1822_v8  ;;  %v1814_v20 = vld [vmem:[%s3297_s1 + $0xc8] sm:$0xf0] }
  0x43   : > { %635 = vmatpush.bf16.msrb.mxu1 %v1661_v2  ;;  %919 = vmatpush.bf16.msrb.mxu3 %v1797_v11  ;;  %v2195_v2 = vld [vmem:[%s3297_s1 + $0x154] sm:$0xf0]  ;;  %v1889_v17 = vor.u32 %v2194_v9, %v1886_v10  ;;  %v2192_v21 = vld [vmem:[%s3297_s1 + $0x144] sm:$0xf]  ;;  %v1878_v22 = vld [vmem:[%s3297_s1 + $0x148] sm:$0xf0] }
  0x44   : > { %905 = vmatpush.bf16.msrb.mxu2 %v1733_v3  ;;  %v2162_v3 = vld [vmem:[%s3297_s1 + $0x54] sm:$0xf]  ;;  %v1885_v11 = vor.u32 %v2195_v2, %v1884_v1  ;;  %v1742_v30 = vld [vmem:[%s3297_s1 + $0x38] sm:$0xf0]  ;;  %v1860_v41 = vld [vmem:[%s3297_s1 + $0x120] sm:$0xf] }
  0x45   : > { %v1761_v12 = vor.u32 %v2162_v3, %v1758_v6  ;;  %v2158_v29 = vld [vmem:[%s3297_s1 + $0x34] sm:$0xf]  ;;  %v1870_v36 = vld [vmem:[%s3297_s1 + $0x138] sm:$0xf0]  ;;  %v2189_v42 = vld [vmem:[%s3297_s1 + $0x124] sm:$0xf0] }
  0x46   : > { %622 = vmatpush.bf16.msrb.mxu0 %v1589_v14  ;;  %v1876_v14 = vld [vmem:[%s3297_s1 + $0x140] sm:$0xf]  ;;  %v2174_v32 = vld [vmem:[%s3297_s1 + $0xb4] sm:$0xf]  ;;  %v2156_v43 = vld [vmem:[%s3297_s1 + $0x24] sm:$0xf]  ;;  %v1861_v50 = vor.u32 %v2189_v42, %v1860_v41 }
  0x47   : > { %636 = vmatpush.bf16.msrb.mxu1 %v1653_v18  ;;  %920 = vmatpush.bf16.msrb.mxu3 %v1789_v28  ;;  %v1750_v18 = vld [vmem:[%s3297_s1 + $0x48] sm:$0xf0]  ;;  %v1877_v24 = vor.u32 %v2193_v15, %v1876_v14  ;;  %v2191_v28 = vld [vmem:[%s3297_s1 + $0x134] sm:$0xf0]  ;;  %v2190_v35 = vld [vmem:[%s3297_s1 + $0x134] sm:$0xf] }
  0x48   : > { %906 = vmatpush.bf16.msrb.mxu2 %v1725_v19  ;;  %v2176_v19 = vld [vmem:[%s3297_s1 + $0xc4] sm:$0xf]  ;;  %v1753_v25 = vor.u32 %v2160_v16, %v1750_v18  ;;  %v1798_v47 = vld [vmem:[%s3297_s1 + $0xa8] sm:$0xf0]  ;;  %v2187_v55 = vld [vmem:[%s3297_s1 + $0x114] sm:$0xf0] }
  0x49   : > { %v1817_v26 = vor.u32 %v2176_v19, %v1814_v20  ;;  %v2172_v46 = vld [vmem:[%s3297_s1 + $0xa4] sm:$0xf]  ;;  %v2154_v56 = vld [vmem:[%s3297_s1 + $0x14] sm:$0xf]  ;;  %v1726_v59 = vld [vmem:[%s3297_s1 + $0x18] sm:$0xf0] }
  0x4a   : > { %623 = vmatpush.bf16.msrb.mxu0 %v1581_v33  ;;  %v1806_v33 = vld [vmem:[%s3297_s1 + $0xb8] sm:$0xf0]  ;;  %v1801_v52 = vor.u32 %v2172_v46, %v1798_v47  ;;  %v2170_v60 = vld [vmem:[%s3297_s1 + $0x94] sm:$0xf]  ;;  %v1844_v2 = vld [vmem:[%s3297_s1 + $0x100] sm:$0xf] }
  0x4b   : > { %637 = vmatpush.bf16.msrb.mxu1 %v1645_v38  ;;  %921 = vmatpush.bf16.msrb.mxu3 %v1781_v49  ;;  %v1745_v38 = vor.u32 %v2158_v29, %v1742_v30  ;;  %v1862_v49 = vld [vmem:[%s3297_s1 + $0x128] sm:$0xf0]  ;;  %v2185_v3 = vld [vmem:[%s3297_s1 + $0x104] sm:$0xf0]  ;;  %v2152_v7 = vld [vmem:[%s3297_s1 + $0x4] sm:$0xf] }
  0x4c   : > { %907 = vmatpush.bf16.msrb.mxu2 %v1717_v39  ;;  %v1809_v39 = vor.u32 %v2174_v32, %v1806_v33  ;;  %v1718_v8 = vld [vmem:[%s3297_s1 + $0x8] sm:$0xf0]  ;;  %v2168_v9 = vld [vmem:[%s3297_s1 + $0x84] sm:$0xf]  ;;  %v2076_v14 = vld [vmem:[%s3297_s1 + $0x3f0] sm:$0xf] }
  0x4d   : > { %624 = vmatmul.bf16.vlgmr.msrb.gmra.mxu0 %v2718_v4  ;;  %v1868_v4 = vld [vmem:[%s3297_s1 + $0x130] sm:$0xf]  ;;  %v2279_v15 = vld [vmem:[%s3297_s1 + $0x3f4] sm:$0xf0]  ;;  %v2184_v19 = vld [vmem:[%s3297_s1 + $0x104] sm:$0xf] }
  0x4e   : > { %928 = vmatpush.bf16.msra.mxu0 %v1901_v44  ;;  %922 = vmatmul.bf16.vlgmr.msrb.gmra.mxu3 %v2823_v61  ;;  %v1869_v37 = vor.u32 %v2191_v28, %v1868_v4  ;;  %v1873_v44 = vor.u32 %v2190_v35, %v1870_v36  ;;  %v2140_v16 = vld [vmem:[%s3297_s1 + $0x470] sm:$0xf]  ;;  %v2295_v18 = vld [vmem:[%s3297_s1 + $0x474] sm:$0xf0]  ;;  %v1846_v20 = vld [vmem:[%s3297_s1 + $0x108] sm:$0xf0]  ;;  %v2077_v4 = vor.u32 %v2279_v15, %v2076_v14 }
  0x4f   : > { %942 = vmatpush.bf16.msra.mxu1 %v1777_v45  ;;  %908 = vmatmul.bf16.vlgmr.msrb.gmra.mxu2 %v2806_v53  ;;  %v1734_v45 = vld [vmem:[%s3297_s1 + $0x28] sm:$0xf0]  ;;  %v2004_v28 = vld [vmem:[%s3297_s1 + $0x360] sm:$0xf]  ;;  %v2262_v29 = vld [vmem:[%s3297_s1 + $0x374] sm:$0xf]  ;;  %v2141_v30 = vor.u32 %v2295_v18, %v2140_v16  ;;  %v1849_v32 = vor.u32 %v2184_v19, %v1846_v20 }
  0x50   : > { %956 = vmatpush.bf16.msra.mxu2 %v1841_v48  ;;  %970 = vmatpush.bf16.msra.mxu3 %v1905_v54  ;;  %v2188_v48 = vld [vmem:[%s3297_s1 + $0x124] sm:$0xf]  ;;  %v1737_v51 = vor.u32 %v2156_v43, %v1734_v45  ;;  %v1852_v54 = vld [vmem:[%s3297_s1 + $0x110] sm:$0xf]  ;;  %v2261_v33 = vld [vmem:[%s3297_s1 + $0x364] sm:$0xf0] }
  0x51   : > { %638 = vmatmul.bf16.vlgmr.msrb.gmra.mxu1 %v2707_v58  ;;  %v1881_v58 = vor.u32 %v2192_v21, %v1878_v22  ;;  %v1865_v57 = vor.u32 %v2188_v48, %v1862_v49  ;;  %v1853_v1 = vor.u32 %v2187_v55, %v1852_v54  ;;  %v1721_v21 = vor.u32 %v2152_v7, %v1718_v8  ;;  %v2068_v35 = vld [vmem:[%s3297_s1 + $0x3e0] sm:$0xf]  ;;  %v2293_v41 = vld [vmem:[%s3297_s1 + $0x464] sm:$0xf0]  ;;  %v2260_v45 = vld [vmem:[%s3297_s1 + $0x364] sm:$0xf] }
  0x52   : > { %929 = vmatpush.bf16.msra.mxu0 %v1893_v62  ;;  %v1790_v62 = vld [vmem:[%s3297_s1 + $0x98] sm:$0xf0]  ;;  %v985_v36 = vld [vmem:[%s2652_s18 + $0x20] sm:$0xf]  ;;  %v2006_v46 = vld [vmem:[%s3297_s1 + $0x368] sm:$0xf0] }
  0x53   : > { %943 = vmatpush.bf16.msra.mxu1 %v1769_v63  ;;  %v2186_v63 = vld [vmem:[%s3297_s1 + $0x114] sm:$0xf]  ;;  %v1793_v6 = vor.u32 %v2170_v60, %v1790_v62  ;;  %v1039_v42 = vunpack.c.l.b16 %v985_v36  ;;  %v984_v48 = vld [vmem:[%s2652_s18 + $0x18] sm:$0xff]  ;;  %v2060_v54 = vld [vmem:[%s3297_s1 + $0x3d0] sm:$0xf]  ;;  %vm1390_vm1 = vcmask 1043456  }
  0x54   : > { %957 = vmatpush.bf16.msra.mxu2 %v1833_v0  ;;  %971 = vmatpush.bf16.msra.mxu3 %v1897_v5  ;;  %v1854_v0 = vld [vmem:[%s3297_s1 + $0x118] sm:$0xf0]  ;;  %v1729_v5 = vor.u32 %v2154_v56, %v1726_v59  ;;  %v1037_v23 = vunpack.c.l.b16 %v984_v48  ;;  %v2275_v55 = vld [vmem:[%s3297_s1 + $0x3d4] sm:$0xf0]  ;;  %v2124_v56 = vld [vmem:[%s3297_s1 + $0x450] sm:$0xf]  ;;  %v2009_v59 = vor.u32 %v2260_v45, %v2006_v46 }
  0x55   : > { %v1857_v10 = vor.u32 %v2186_v63, %v1854_v0  ;;  %v3026_v47 = vpack.c.b16 %v1039_v42, %v297_v27  ;;  %v1038_v27 = vunpack.c.h.b16 %v984_v48  ;;  %v2258_v63 = vld [vmem:[%s3297_s1 + $0x354] sm:$0xf]  ;;  %v2061_v0 = vor.u32 %v2275_v55, %v2060_v54  ;;  %v1988_v31 = vld [vmem:[%s3297_s1 + $0x340] sm:$0xf]  ;;  %v2256_v8 = vld [vmem:[%s3297_s1 + $0x344] sm:$0xf] }
  0x56   : > { %930 = vmatpush.bf16.msra.mxu0 %v1885_v11  ;;  %v1782_v11 = vld [vmem:[%s3297_s1 + $0x88] sm:$0xf0]  ;;  %v3051_v60 = vpack.c.b16 %v1037_v23, %v295_v34  ;;  %v2044_v14 = vld [vmem:[%s3297_s1 + $0x3b0] sm:$0xf]  ;;  %v2271_v15 = vld [vmem:[%s3297_s1 + $0x3b4] sm:$0xf0] }
  0x57   : > { %944 = vmatpush.bf16.msra.mxu1 %v1761_v12  ;;  %v2012_v12 = vld [vmem:[%s3297_s1 + $0x370] sm:$0xf]  ;;  %v1785_v22 = vor.u32 %v2168_v9, %v1782_v11  ;;  %v1990_v9 = vld [vmem:[%s3297_s1 + $0x348] sm:$0xf0]  ;;  %v2254_v20 = vld [vmem:[%s3297_s1 + $0x334] sm:$0xf] }
  0x58   : > { %958 = vmatpush.bf16.msra.mxu2 %v1825_v13  ;;  %972 = vmatpush.bf16.msra.mxu3 %v1889_v17  ;;  %v2263_v13 = vld [vmem:[%s3297_s1 + $0x374] sm:$0xf0]  ;;  %v1845_v17 = vor.u32 %v2185_v3, %v1844_v2  ;;  %v2273_v2 = vld [vmem:[%s3297_s1 + $0x3c4] sm:$0xf0]  ;;  %v2116_v3 = vld [vmem:[%s3297_s1 + $0x440] sm:$0xf]  ;;  %v1993_v18 = vor.u32 %v2256_v8, %v1990_v9 }
  0x59   : > { %v2108_v16 = vld [vmem:[%s3297_s1 + $0x430] sm:$0xf]  ;;  %v2267_v42 = vld [vmem:[%s3297_s1 + $0x394] sm:$0xf0]  ;;  %v1956_v48 = vld [vmem:[%s3297_s1 + $0x300] sm:$0xf] }
  0x5a   : > { %931 = vmatpush.bf16.msra.mxu0 %v1877_v24  ;;  %v1712_v24 = vld [vmem:[%s2652_s18 + $0x8] sm:$0xf]  ;;  %v2020_v23 = vld [vmem:[%s3297_s1 + $0x380] sm:$0xf]  ;;  %v2134_v8 = vld [vmem:[%s3297_s1 + $0x468] sm:$0xf0] }
  0x5b   : > { %945 = vmatpush.bf16.msra.mxu1 %v1753_v25  ;;  %v2151_v25 = vld [vmem:[%s2652_s18 + $0x10] sm:$0xf0]  ;;  %v2249_v54 = vld [vmem:[%s3297_s1 + $0x304] sm:$0xf0]  ;;  %v2084_v55 = vld [vmem:[%s3297_s1 + $0x400] sm:$0xf] }
  0x5c   : > { %959 = vmatpush.bf16.msra.mxu2 %v1817_v26  ;;  %973 = vmatpush.bf16.msra.mxu3 %v1881_v58  ;;  %v2013_v26 = vor.u32 %v2263_v13, %v2012_v12  ;;  %v2014_v58 = vld [vmem:[%s3297_s1 + $0x378] sm:$0xf0]  ;;  %v1980_v12 = vld [vmem:[%s3297_s1 + $0x330] sm:$0xf]  ;;  %v2255_v13 = vld [vmem:[%s3297_s1 + $0x334] sm:$0xf0] }
  0x5d   : > { %v2017_v43 = vor.u32 %v2262_v29, %v2014_v58  ;;  %v1981_v19 = vor.u32 %v2255_v13, %v1980_v12  ;;  %v2100_v29 = vld [vmem:[%s3297_s1 + $0x420] sm:$0xf]  ;;  %v2285_v58 = vld [vmem:[%s3297_s1 + $0x424] sm:$0xf0]  ;;  %v2274_v12 = vld [vmem:[%s3297_s1 + $0x3d4] sm:$0xf] }
  0x5e   : > { %932 = vmatpush.bf16.msra.mxu0 %v1869_v37  ;;  %v1713_v37 = vor.u32 %v2151_v25, %v1712_v24  ;;  %v1972_v25 = vld [vmem:[%s3297_s1 + $0x320] sm:$0xf]  ;;  %v2062_v13 = vld [vmem:[%s3297_s1 + $0x3d8] sm:$0xf0]  ;;  %vm1391_vm2 = vcmask 523268  }
  0x5f   : > { %946 = vmatpush.bf16.msra.mxu1 %v1745_v38  ;;  %v2277_v38 = vld [vmem:[%s3297_s1 + $0x3e4] sm:$0xf0]  ;;  %vm1392_vm3 = vmor %vm1391_vm2, %vm1390_vm1 }
  0x60   : > { %960 = vmatpush.bf16.msra.mxu2 %v1809_v39  ;;  %974 = vmatpush.bf16.msra.mxu3 %v1873_v44  ;;  %v2132_v39 = vld [vmem:[%s3297_s1 + $0x460] sm:$0xf]  ;;  %v2005_v44 = vor.u32 %v2261_v33, %v2004_v28  ;;  %v2069_v49 = vor.u32 %v2277_v38, %v2068_v35  ;;  %v2269_v28 = vld [vmem:[%s3297_s1 + $0x3a4] sm:$0xf0]  ;;  %v2252_v33 = vld [vmem:[%s3297_s1 + $0x324] sm:$0xf] }
  0x61   : > { %v1974_v35 = vld [vmem:[%s3297_s1 + $0x328] sm:$0xf0]  ;;  %v1964_v38 = vld [vmem:[%s3297_s1 + $0x310] sm:$0xf] }
  0x62   : > { %933 = vmatpush.bf16.msra.mxu0 %v1861_v50  ;;  %v2133_v50 = vor.u32 %v2293_v41, %v2132_v39  ;;  %v2251_v39 = vld [vmem:[%s3297_s1 + $0x314] sm:$0xf0]  ;;  %v2028_v41 = vld [vmem:[%s3297_s1 + $0x390] sm:$0xf]  ;;  %v1977_v45 = vor.u32 %v2252_v33, %v1974_v35  ;;  %v2102_v33 = vld [vmem:[%s3297_s1 + $0x428] sm:$0xf0] }
  0x63   : > { %947 = vmatpush.bf16.msra.mxu1 %v1737_v51  ;;  %v1996_v51 = vld [vmem:[%s3297_s1 + $0x350] sm:$0xf]  ;;  %v1965_v46 = vor.u32 %v2251_v39, %v1964_v38  ;;  %v2030_v38 = vld [vmem:[%s3297_s1 + $0x398] sm:$0xf0]  ;;  %v2282_v39 = vld [vmem:[%s3297_s1 + $0x414] sm:$0xf] }
  0x64   : > { %961 = vmatpush.bf16.msra.mxu2 %v1801_v52  ;;  %975 = vmatpush.bf16.msra.mxu3 %v1865_v57  ;;  %v2259_v52 = vld [vmem:[%s3297_s1 + $0x354] sm:$0xf0] }
  0x65   : > { %v2291_v57 = vld [vmem:[%s3297_s1 + $0x454] sm:$0xf0]  ;;  %v1997_v62 = vor.u32 %v2259_v52, %v1996_v51  ;;  %v2029_v51 = vor.u32 %v2267_v42, %v2028_v41  ;;  %v2094_v41 = vld [vmem:[%s3297_s1 + $0x418] sm:$0xf0] }
  0x66   : > { %934 = vmatpush.bf16.msra.mxu0 %v1853_v1  ;;  %v2125_v34 = vor.u32 %v2291_v57, %v2124_v56  ;;  %v2052_v1 = vld [vmem:[%s3297_s1 + $0x3c0] sm:$0xf]  ;;  %v2281_v56 = vld [vmem:[%s3297_s1 + $0x404] sm:$0xf0]  ;;  %v2278_v57 = vld [vmem:[%s3297_s1 + $0x3f4] sm:$0xf] }
  0x67   : > { %948 = vmatpush.bf16.msra.mxu1 %v1729_v5  ;;  %v2289_v5 = vld [vmem:[%s3297_s1 + $0x444] sm:$0xf0] }
  0x68   : > { %962 = vmatpush.bf16.msra.mxu2 %v1793_v6  ;;  %976 = vmatpush.bf16.msra.mxu3 %v1857_v10  ;;  %v2053_v10 = vor.u32 %v2273_v2, %v2052_v1  ;;  %v2117_v11 = vor.u32 %v2289_v5, %v2116_v3  ;;  %v2085_v1 = vor.u32 %v2281_v56, %v2084_v55  ;;  %v2276_v5 = vld [vmem:[%s3297_s1 + $0x3e4] sm:$0xf] }
  0x6a   : > { %935 = vmatpush.bf16.msra.mxu0 %v1845_v17  ;;  %v2287_v17 = vld [vmem:[%s3297_s1 + $0x434] sm:$0xf0] }
  0x6b   : > { %949 = vmatpush.bf16.msra.mxu1 %v1721_v21  ;;  %v1982_v21 = vld [vmem:[%s3297_s1 + $0x338] sm:$0xf0]  ;;  %v2109_v24 = vor.u32 %v2287_v17, %v2108_v16  ;;  %v2065_v16 = vor.u32 %v2274_v12, %v2062_v13 }
  0x6c   : > { %963 = vmatpush.bf16.msra.mxu2 %v1785_v22  ;;  %977 = vmatpush.bf16.msra.mxu3 %v1849_v32  ;;  %v2045_v22 = vor.u32 %v2271_v15, %v2044_v14  ;;  %v2290_v14 = vld [vmem:[%s3297_s1 + $0x454] sm:$0xf]  ;;  %v2126_v15 = vld [vmem:[%s3297_s1 + $0x458] sm:$0xf0] }
  0x6d   : > { %936 = vmatmul.bf16.vlgmr.msra.gmra.mxu0 %v1713_v37  ;;  %v2129_v17 = vor.u32 %v2290_v14, %v2126_v15 }
  0x6e   : > { %1286 = vmatpush.bf16.msrb.mxu0 %v2013_v26  ;;  %950 = vmatmul.bf16.vlgmr.msra.gmra.mxu1 %v2806_v53  ;;  %v3055_v53 = vpack.c.b16 %v1038_v27, %v296_v40  ;;  %v2257_v40 = vld [vmem:[%s3297_s1 + $0x344] sm:$0xf0] }
  0x6f   : > { %1300 = vmatpush.bf16.msrb.mxu1 %v2077_v4  ;;  %964 = vmatmul.bf16.vlgmr.msra.gmra.mxu2 %v2823_v61  ;;  %v1998_v61 = vld [vmem:[%s3297_s1 + $0x358] sm:$0xf0]  ;;  %v1989_v7 = vor.u32 %v2257_v40, %v1988_v31  ;;  %v2253_v26 = vld [vmem:[%s3297_s1 + $0x324] sm:$0xf0]  ;;  %v2036_v4 = vld [vmem:[%s3297_s1 + $0x3a0] sm:$0xf] }
  0x70   : > { %1314 = vmatpush.bf16.msrb.mxu2 %v2141_v30  ;;  %1328 = vmatpush.bf16.msrb.mxu3 %v2017_v43  ;;  %v2001_v6 = vor.u32 %v2258_v63, %v1998_v61  ;;  %v1985_v30 = vor.u32 %v2254_v20, %v1982_v21  ;;  %v1973_v32 = vor.u32 %v2253_v26, %v1972_v25  ;;  %v2092_v43 = vld [vmem:[%s3297_s1 + $0x410] sm:$0xf]  ;;  %v2265_v27 = vld [vmem:[%s3297_s1 + $0x384] sm:$0xf0]  ;;  %v2142_v63 = vld [vmem:[%s3297_s1 + $0x478] sm:$0xf0] }
  0x71   : > { %978 = vmatmul.bf16.vlgmr.msra.gmra.mxu3 %v1713_v37  ;;  %v2037_v36 = vor.u32 %v2269_v28, %v2036_v4  ;;  %v2101_v37 = vor.u32 %v2285_v58, %v2100_v29  ;;  %v1958_v31 = vld [vmem:[%s3297_s1 + $0x308] sm:$0xf0]  ;;  %v2021_v40 = vor.u32 %v2265_v27, %v2020_v23  ;;  %v2288_v20 = vld [vmem:[%s3297_s1 + $0x444] sm:$0xf]  ;;  %v2270_v25 = vld [vmem:[%s3297_s1 + $0x3b4] sm:$0xf] }
  0x72   : > { %1287 = vmatpush.bf16.msrb.mxu0 %v2005_v44  ;;  %v2283_v44 = vld [vmem:[%s3297_s1 + $0x414] sm:$0xf0]  ;;  %v2118_v21 = vld [vmem:[%s3297_s1 + $0x448] sm:$0xf0]  ;;  %v2046_v26 = vld [vmem:[%s3297_s1 + $0x3b8] sm:$0xf0] }
  0x73   : > { %1301 = vmatpush.bf16.msrb.mxu1 %v2069_v49  ;;  %v2250_v49 = vld [vmem:[%s3297_s1 + $0x314] sm:$0xf]  ;;  %v2093_v52 = vor.u32 %v2283_v44, %v2092_v43  ;;  %v2049_v28 = vor.u32 %v2270_v25, %v2046_v26  ;;  %v2268_v58 = vld [vmem:[%s3297_s1 + $0x3a4] sm:$0xf]  ;;  %v2097_v43 = vor.u32 %v2282_v39, %v2094_v41  ;;  %v1374_v25 = vld [vmem:[%s3298_s2] sm:$0x3] }
  0x74   : > { %1315 = vmatpush.bf16.msrb.mxu2 %v2133_v50  ;;  %1329 = vmatpush.bf16.msrb.mxu3 %v2009_v59  ;;  %v1966_v50 = vld [vmem:[%s3297_s1 + $0x318] sm:$0xf0]  ;;  %v2286_v4 = vld [vmem:[%s3297_s1 + $0x434] sm:$0xf]  ;;  %v2264_v44 = vld [vmem:[%s3297_s1 + $0x384] sm:$0xf] }
  0x75   : > { %v2078_v59 = vld [vmem:[%s3297_s1 + $0x3f8] sm:$0xf0]  ;;  %v1969_v61 = vor.u32 %v2250_v49, %v1966_v50 }
  0x76   : > { %1288 = vmatpush.bf16.msrb.mxu0 %v1997_v62  ;;  %v2294_v62 = vld [vmem:[%s3297_s1 + $0x474] sm:$0xf]  ;;  %v2081_v2 = vor.u32 %v2278_v57, %v2078_v59 }
  0x77   : > { %1302 = vmatpush.bf16.msrb.mxu1 %v2061_v0  ;;  %v1957_v0 = vor.u32 %v2249_v54, %v1956_v48  ;;  %v2145_v3 = vor.u32 %v2294_v62, %v2142_v63  ;;  %v2086_v48 = vld [vmem:[%s3297_s1 + $0x408] sm:$0xf0] }
  0x78   : > { %1316 = vmatpush.bf16.msrb.mxu2 %v2125_v34  ;;  %1330 = vmatpush.bf16.msrb.mxu3 %v2001_v6  ;;  %v2248_v34 = vld [vmem:[%s3297_s1 + $0x304] sm:$0xf]  ;;  %v2070_v6 = vld [vmem:[%s3297_s1 + $0x3e8] sm:$0xf0] }
  0x79   : > { %v1961_v9 = vor.u32 %v2248_v34, %v1958_v31 }
  0x7a   : > { %1289 = vmatpush.bf16.msrb.mxu0 %v1989_v7  ;;  %v2292_v7 = vld [vmem:[%s3297_s1 + $0x464] sm:$0xf] }
  0x7b   : > { %1303 = vmatpush.bf16.msrb.mxu1 %v2053_v10  ;;  %v2073_v10 = vor.u32 %v2276_v5, %v2070_v6 }
  0x7c   : > { %1317 = vmatpush.bf16.msrb.mxu2 %v2117_v11  ;;  %1331 = vmatpush.bf16.msrb.mxu3 %v1993_v18  ;;  %v2137_v11 = vor.u32 %v2292_v7, %v2134_v8  ;;  %v2272_v18 = vld [vmem:[%s3297_s1 + $0x3c4] sm:$0xf] }
  0x7e   : > { %1290 = vmatpush.bf16.msrb.mxu0 %v1981_v19  ;;  %v2054_v19 = vld [vmem:[%s3297_s1 + $0x3c8] sm:$0xf0] }
  0x7f   : > { %1304 = vmatpush.bf16.msrb.mxu1 %v2045_v22  ;;  %v2057_v22 = vor.u32 %v2272_v18, %v2054_v19 }
  0x80   : > { %1318 = vmatpush.bf16.msrb.mxu2 %v2109_v24  ;;  %1332 = vmatpush.bf16.msrb.mxu3 %v1985_v30  ;;  %v2121_v24 = vor.u32 %v2288_v20, %v2118_v21  ;;  %v2038_v30 = vld [vmem:[%s3297_s1 + $0x3a8] sm:$0xf0] }
  0x81   : > { %v2041_v35 = vor.u32 %v2268_v58, %v2038_v30 }
  0x82   : > { %1291 = vmatpush.bf16.msrb.mxu0 %v1973_v32  ;;  %v2284_v32 = vld [vmem:[%s3297_s1 + $0x424] sm:$0xf] }
  0x83   : > { %1305 = vmatpush.bf16.msrb.mxu1 %v2037_v36  ;;  %v2105_v36 = vor.u32 %v2284_v32, %v2102_v33  ;;  %v1376_v33 = vperm.slane %v1374_v25, 0 }
  0x84   : > { %1319 = vmatpush.bf16.msrb.mxu2 %v2101_v37  ;;  %1333 = vmatpush.bf16.msrb.mxu3 %v1977_v45  ;;  %v2266_v37 = vld [vmem:[%s3297_s1 + $0x394] sm:$0xf]  ;;  %v2022_v45 = vld [vmem:[%s3297_s1 + $0x388] sm:$0xf0] }
  0x85   : > { %v2033_v42 = vor.u32 %v2266_v37, %v2030_v38  ;;  %v2025_v49 = vor.u32 %v2264_v44, %v2022_v45 }
  0x86   : > { %1292 = vmatpush.bf16.msrb.mxu0 %v1965_v46  ;;  %v2280_v46 = vld [vmem:[%s3297_s1 + $0x404] sm:$0xf] }
  0x87   : > { %1306 = vmatpush.bf16.msrb.mxu1 %v2029_v51  ;;  %v2089_v50 = vor.u32 %v2280_v46, %v2086_v48 }
  0x88   : > { %1320 = vmatpush.bf16.msrb.mxu2 %v2093_v52  ;;  %1334 = vmatpush.bf16.msrb.mxu3 %v1969_v61 }
  0x8a   : > { %1293 = vmatpush.bf16.msrb.mxu0 %v1957_v0 }
  0x8b   : > { %1307 = vmatpush.bf16.msrb.mxu1 %v2021_v40 }
  0x8c   : > { %1321 = vmatpush.bf16.msrb.mxu2 %v2085_v1  ;;  %1335 = vmatpush.bf16.msrb.mxu3 %v1961_v9 }
  0x8d   : > { %1294 = vmatmul.bf16.vlgmr.msrb.gmra.mxu0 %v3051_v60 }
  0x8e   : > { %1342 = vmatpush.bf16.msra.mxu0 %v2081_v2  ;;  %1308 = vmatmul.bf16.vlgmr.msrb.gmra.mxu1 %v3055_v53 }
  0x8f   : > { %1356 = vmatpush.bf16.msra.mxu1 %v2145_v3  ;;  %1322 = vmatmul.bf16.vlgmr.msrb.gmra.mxu2 %v3026_v47 }
  0x90   : > { %1336 = vmatmul.bf16.vlgmr.msrb.gmra.mxu3 %v3051_v60  ;;  %v2110_v60 = vld [vmem:[%s3297_s1 + $0x438] sm:$0xf0] }
  0x91   : > { %v2113_v29 = vor.u32 %v2286_v4, %v2110_v60 }
  0x92   : > { %1343 = vmatpush.bf16.msra.mxu0 %v2073_v10 }
  0x93   : > { %1357 = vmatpush.bf16.msra.mxu1 %v2137_v11 }
  0x96   : > { %1344 = vmatpush.bf16.msra.mxu0 %v2065_v16 }
  0x97   : > { %1358 = vmatpush.bf16.msra.mxu1 %v2129_v17 }
  0x9a   : > { %1345 = vmatpush.bf16.msra.mxu0 %v2057_v22 }
  0x9b   : > { %1359 = vmatpush.bf16.msra.mxu1 %v2121_v24 }
  0x9e   : > { %1346 = vmatpush.bf16.msra.mxu0 %v2049_v28 }
  0x9f   : > { %1360 = vmatpush.bf16.msra.mxu1 %v2113_v29 }
  0xa2   : > { %1347 = vmatpush.bf16.msra.mxu0 %v2041_v35 }
  0xa3   : > { %1361 = vmatpush.bf16.msra.mxu1 %v2105_v36 }
  0xa6   : > { %1348 = vmatpush.bf16.msra.mxu0 %v2033_v42  ;;  %v1377_v42 = vperm.slane %v1374_v25, 1 }
  0xa7   : > { %1362 = vmatpush.bf16.msra.mxu1 %v2097_v43 }
  0xaa   : > { %1349 = vmatpush.bf16.msra.mxu0 %v2025_v49 }
  0xab   : > { %1363 = vmatpush.bf16.msra.mxu1 %v2089_v50 }
  0xad   : > { %1350 = vmatmul.bf16.vlgmr.msra.gmra.mxu0 %v3055_v53 }
  0xae   : > { %1364 = vmatmul.bf16.vlgmr.msra.gmra.mxu1 %v3026_v47 }
  0xb6   : > { %v569_v51 = vpop.f32.mrf.mxu0  ;;  %v583_v52 = vpop.f32.mrf.mxu1 }
  0xb7   : > { %v584_v9 = vadd.f32 %v583_v52, %v569_v51 }
  0xb9   : > { %v597_v54 = vpop.f32.mrf.mxu2 }
  0xba   : > { %v598_v12 = vadd.f32 %v597_v54, %v584_v9 }
  0xbb   : > { %v611_v55 = vpop.f32.mrf.mxu3 }
  0xbe   : > { %v571_v23 = vpop.f32.mrf.mxu0  ;;  %v585_v27 = vpop.f32.mrf.mxu1 }
  0xbf   : > { %v586_v19 = vadd.f32 %v585_v27, %v571_v23 }
  0xc1   : > { %v599_v59 = vpop.f32.mrf.mxu2 }
  0xc2   : > { %v600_v24 = vadd.f32 %v599_v59, %v586_v19 }
  0xc3   : > { %v613_v62 = vpop.f32.mrf.mxu3 }
  0xca   : > { %v625_v56 = vpop.f32.mrf.mxu0 }
  0xcb   : > { %v626_v10 = vadd.f32 %v625_v56, %v611_v55 }
  0xce   : > { %v639_v57 = vpop.f32.mrf.mxu1 }
  0xcf   : > { %v640_v17 = vadd.f32 %v639_v57, %v626_v10 }
  0xd1   : > { %v923_v34 = vpop.f32.mrf.mxu3 }
  0xd2   : > { %v627_v63 = vpop.f32.mrf.mxu0  ;;  %v909_v0 = vpop.f32.mrf.mxu2 }
  0xd3   : > { %v910_v16 = vadd.f32 %v909_v0, %v598_v12  ;;  %v628_v4 = vadd.f32 %v627_v63, %v613_v62 }
  0xd5   : > { %v924_v20 = vadd.f32 %v923_v34, %v910_v16 }
  0xd6   : > { %v641_v61 = vpop.f32.mrf.mxu1 }
  0xd7   : > { %v642_v38 = vadd.f32 %v641_v61, %v628_v4 }
  0xd9   : > { %v925_v53 = vpop.f32.mrf.mxu3 }
  0xda   : > { %v911_v1 = vpop.f32.mrf.mxu2 }
  0xdb   : > { %v912_v29 = vadd.f32 %v911_v1, %v600_v24 }
  0xdd   : > { %v926_v43 = vadd.f32 %v925_v53, %v912_v29 }
  0xea   : > { %v937_v31 = vpop.f32.mrf.mxu0 }
  0xeb   : > { %v951_v40 = vpop.f32.mrf.mxu1  ;;  %v938_v60 = vadd.f32 %v937_v31, %v924_v20 }
  0xec   : > { %v952_v21 = vadd.f32 %v951_v40, %v640_v17 }
  0xf2   : > { %v965_v2 = vpop.f32.mrf.mxu2  ;;  %v939_v47 = vpop.f32.mrf.mxu0 }
  0xf3   : > { %v953_v3 = vpop.f32.mrf.mxu1  ;;  %v966_v28 = vadd.f32 %v965_v2, %v952_v21  ;;  %v940_v49 = vadd.f32 %v939_v47, %v926_v43 }
  0xf4   : > { %v979_v5 = vpop.f32.mrf.mxu3  ;;  %v954_v44 = vadd.f32 %v953_v3, %v642_v38 }
  0xf5   : > { %v980_v39 = vadd.f32 %v979_v5, %v966_v28 }
  0xfa   : > { %v967_v8 = vpop.f32.mrf.mxu2 }
  0xfb   : > { %v968_v50 = vadd.f32 %v967_v8, %v954_v44 }
  0xfc   : > { %v981_v11 = vpop.f32.mrf.mxu3 }
  0xfd   : > { %v982_v59 = vadd.f32 %v981_v11, %v968_v50 }
 0x10a   : > { %v1295_v6 = vpop.f32.mrf.mxu0 }
 0x10b   : > { %v1309_v7 = vpop.f32.mrf.mxu1 }
 0x10c   : > { %v1310_v18 = vadd.f32 %v1309_v7, %v1295_v6 }
 0x112   : > { %v1323_v13 = vpop.f32.mrf.mxu2  ;;  %v1297_v14 = vpop.f32.mrf.mxu0 }
 0x113   : > { %v1311_v15 = vpop.f32.mrf.mxu1  ;;  %v1324_v22 = vadd.f32 %v1323_v13, %v1310_v18  ;;  %v1337_v26 = vpop.f32.mrf.mxu3 }
 0x114   : > { %v1312_v35 = vadd.f32 %v1311_v15, %v1297_v14 }
 0x115   : > { %v1370_v32 = vadd.f32 %v1324_v22, %v938_v60 }
 0x117   : > { %v1380_v45 = vadd.f32 %v1376_v33, %v1370_v32 }
 0x119   : > { %v1384_v23 = vmax.f32 %v1380_v45, 0.0 }
 0x11a   : > { %v1325_v37 = vpop.f32.mrf.mxu2 }
 0x11b   : > { %v1326_v46 = vadd.f32 %v1325_v37, %v1312_v35  ;;  %v1339_v52 = vpop.f32.mrf.mxu3 }
 0x11d   : > { %v1372_v27 = vadd.f32 %v1326_v46, %v940_v49 }
 0x11f   : > { %v1382_v61 = vadd.f32 %v1376_v33, %v1372_v27 }
 0x121   : > { %v1386_v31 = vmax.f32 %v1382_v61, 0.0 }
 0x12a   : > { %v1351_v58 = vpop.f32.mrf.mxu0 }
 0x12b   : > { %v1365_v30 = vpop.f32.mrf.mxu1  ;;  %v1352_v36 = vadd.f32 %v1351_v58, %v1337_v26 }
 0x12d   : > { %v1366_v41 = vadd.f32 %v1365_v30, %v1352_v36 }
 0x12f   : > { %v1371_v48 = vadd.f32 %v1366_v41, %v980_v39 }
 0x131   : > { %v1381_v51 = vadd.f32 %v1377_v42, %v1371_v48 }
 0x132   : > { %v1353_v54 = vpop.f32.mrf.mxu0 }
 0x133   : > { %v1385_v55 = vmax.f32 %v1381_v51, 0.0  ;;  %v1354_v56 = vadd.f32 %v1353_v54, %v1339_v52  ;;  %v1367_v57 = vpop.f32.mrf.mxu1 }
 0x135   : > { %v1388_v62 = vpack.c.bf16 %v1385_v55, %v1384_v23  ;;  %v1368_v63 = vadd.f32 %v1367_v57, %v1354_v56 }
 0x137   : > { %1393 = vst.msk [vmem:[%s177_s7] sm:$0xff] %vm1392_vm3, %v1388_v62  ;;  %v1373_v0 = vadd.f32 %v1368_v63, %v982_v59 }
 0x139   : > { %v1383_v34 = vadd.f32 %v1377_v42, %v1373_v0 }
 0x13b   : > { %v1387_v40 = vmax.f32 %v1383_v34, 0.0 }
 0x13d   : > { %v1389_v1 = vpack.c.bf16 %v1387_v40, %v1386_v31 }
 0x13f   : > { %1394 = vst.msk [vmem:[%s177_s7 + $0x8] sm:$0xff] %vm1392_vm3, %v1389_v1 }
 0x140 PF: > { %s13_s12 = sadd.s32 1, %s2311_s12  }
 0x141   : > { %p10_p5 = scmp.ge.s32.totalorder %s13_s12, 4  }
 0x143   :  { %12 = sbr.rel (!%p10_p5) target bundleno = 1 (0x1), region = 64 }

</bundles_post_ra>
